<compile_context>
chip_gen: v6e
topology: v6e:2x2x1
jax: 0.10.0
libtpu: 0.0.40
codegen_flags: <defaults>
</compile_context>

<pallas_src>
import functools

import numpy as np
import jax
import jax.numpy as jnp
from jax.experimental import pallas as pl
from jax.experimental.pallas import tpu as pltpu

EPS = 1e-5
N_CLASS = 35
LANE = 128   # TPU lane width; channel dims padded to a multiple of this
SUB = 8      # sublane granularity; spatial row counts padded to a multiple


def _round_up(x, m):
    return (x + m - 1) // m * m


def _cpad(c):
    return _round_up(c, LANE)


# ----------------------------------------------------------------------------
# Pallas kernel: whole ResNetSmall forward, G images per grid step.
# ----------------------------------------------------------------------------
def _resnet_kernel(G, layer_meta, pool_rows, *refs):
    """layer_meta: per-block static geometry (p_in, p_out, w_out) in per-image
    row counts; G images are stacked along the matmul M dimension."""
    patches_ref, w_stem_ref, b_stem_ref = refs[0], refs[1], refs[2]
    wfc_ref, bfc_ref, out_ref = refs[-3], refs[-2], refs[-1]
    block_refs = refs[3:-3]

    # ---- Stem: conv3x3 (BN scale folded into weights) + bias + ReLU.
    #      All G images are already stacked in M -> one MXU pass.
    a = jnp.dot(patches_ref[...], w_stem_ref[...],
                preferred_element_type=jnp.float32)
    a = jnp.maximum(a + b_stem_ref[...], 0.0)           # (G*H*W, 128) f32

    for li, (p_in, p_out, w_out) in enumerate(layer_meta):
        s1_ref, w1s_ref, b1s_ref, m2_ref, w2_ref, b2_ref = \
            block_refs[6 * li: 6 * li + 6]
        cout_p = w2_ref.shape[1]

        # ---- conv1 (3x3 s2 p1, BN folded) + FUSED 1x1 s2 skip conv.
        # The skip's gathered rows equal conv1's centre-tap columns, so the
        # skip weights occupy lanes [cout_p:2*cout_p] of w1s and one matmul
        # (N = 2*cout_p) produces both results.
        a16 = a.astype(jnp.bfloat16)
        img_rows = []
        for g in range(G):                       # static unroll over images
            ag = a16[g * p_in:(g + 1) * p_in]
            parts = []
            for t in range(9):                   # per-tap 0/1 row gather (MXU)
                gt = jnp.dot(s1_ref[t], ag, preferred_element_type=jnp.float32)
                # Exact 0/1 gather -> this bf16 cast is lossless.  Kept as an
                # explicit cast (not a bf16-output dot) for lowering safety.
                parts.append(gt.astype(jnp.bfloat16))
            img_rows.append(jnp.concatenate(parts, axis=1))
        patches1 = img_rows[0] if G == 1 else jnp.concatenate(img_rows, axis=0)
        y = jnp.dot(patches1, w1s_ref[...], preferred_element_type=jnp.float32)
        y = y + b1s_ref[...]
        h = jnp.maximum(y[:, :cout_p], 0.0)      # conv1 + bn1 + relu
        skip = y[:, cout_p:]                     # 1x1 skip conv (+ its bias)

        # ---- conv2 (3x3 s1 p1, BN folded): tap gather = sublane roll (XLU)
        #      + per-tap 0/1 boundary mask (VPU); no MXU gather matmuls.
        #      The mask also zeroes contributions from padded/garbage rows.
        rows2 = G * p_out
        parts = []
        for t in range(9):
            dy, dx = divmod(t, 3)
            delta = (dy - 1) * w_out + (dx - 1)  # row-major flat row shift
            mt = m2_ref[t]                       # (p_out, 1) f32 per-image mask
            if G > 1:
                mt = jnp.concatenate([mt] * G, axis=0)
            sh = (-delta) % rows2                # out[r] = h[(r + delta) % rows2]
            xt = h if sh == 0 else pltpu.roll(h, sh, axis=0)
            parts.append((xt * mt).astype(jnp.bfloat16))
        patches2 = jnp.concatenate(parts, axis=1)
        h2 = jnp.dot(patches2, w2_ref[...], preferred_element_type=jnp.float32)
        a = jnp.maximum(h2 + b2_ref[...] + skip, 0.0)    # residual + relu

    # ---- AdaptiveAvgPool2d(1) + Flatten + Linear (per image).
    # TODO(synk): nn.Dropout(0.3) implemented as eval-mode identity (inference).
    p_last = layer_meta[-1][1]
    c_last = a.shape[1]
    pooled_rows = []
    for g in range(G):                           # sublane reduce over valid rows
        pooled_rows.append(
            jnp.sum(a[g * p_last: g * p_last + pool_rows], axis=0, keepdims=True))
    pooled = pooled_rows[0] if G == 1 else jnp.concatenate(pooled_rows, axis=0)
    pooled = pooled * (1.0 / pool_rows)          # (G, 256) f32
    if G < SUB:                                  # pad M to a full sublane group
        pooled = jnp.concatenate(
            [pooled, jnp.zeros((SUB - G, c_last), pooled.dtype)], axis=0)
    logits = jnp.dot(pooled.astype(jnp.bfloat16), wfc_ref[...],
                     preferred_element_type=jnp.float32) + bfc_ref[...]
    out_ref[0] = logits[:G]                      # (G, ncls_pad), lane-dense store


# ----------------------------------------------------------------------------
# One-time parameter preparation (done once, outside the forward pass)
# ----------------------------------------------------------------------------
def _selection_stack(hi, wi, k, stride, pad, p_in):
    """Per-tap 0/1 gather matrices for a conv on a (hi x wi) image (used only
    for the stride-2 conv1 path).  Zero rows implement spatial zero padding."""
    ho = (hi + 2 * pad - k) // stride + 1
    wo = (wi + 2 * pad - k) // stride + 1
    p_out = _round_up(ho * wo, SUB)
    s = np.zeros((k * k, p_out, p_in), np.float32)
    for dy in range(k):
        for dx in range(k):
            t = dy * k + dx
            for yo in range(ho):
                yi = stride * yo + dy - pad
                if yi < 0 or yi >= hi:
                    continue
                for xo in range(wo):
                    xi = stride * xo + dx - pad
                    if xi < 0 or xi >= wi:
                        continue
                    s[t, yo * wo + xo, yi * wi + xi] = 1.0
    return jnp.asarray(s, jnp.bfloat16), ho, wo, p_out


def _shift_masks(h, w):
    """Per-tap 0/1 validity masks for a 3x3 stride-1 pad-1 conv expressed as
    row shifts.  mask[t, r] = 1 iff output row r is a valid spatial position
    AND the shifted source row for tap t lies inside the image (so padded /
    garbage rows never contribute)."""
    p = _round_up(h * w, SUB)
    m = np.zeros((9, p, 1), np.float32)
    for dy in range(3):
        for dx in range(3):
            t = dy * 3 + dx
            for yo in range(h):
                yi = yo + dy - 1
                if yi < 0 or yi >= h:
                    continue
                for xo in range(w):
                    xi = xo + dx - 1
                    if xi < 0 or xi >= w:
                        continue
                    m[t, yo * w + xo, 0] = 1.0
    return jnp.asarray(m, jnp.float32)


def _bn_fold(w_oihw, conv_b, bn):
    """Fold eval-mode BN affine scale into the conv weights (all in f32)."""
    cout = w_oihw.shape[0]
    if bn is None:
        scale = jnp.ones((cout,), jnp.float32)
        bias = conv_b.astype(jnp.float32)
    else:
        gamma, beta, mean, var = bn
        scale = gamma / jnp.sqrt(var + EPS)
        bias = beta + (conv_b - mean) * scale
    w = jnp.transpose(w_oihw, (2, 3, 1, 0)).astype(jnp.float32) * scale
    return w, bias                      # (kh, kw, cin, cout) f32, (cout,) f32


def _pack_rows(w_hwio, cin_pad):
    kh, kw, cin, cout = w_hwio.shape
    w = jnp.pad(w_hwio, ((0, 0), (0, 0), (0, cin_pad - cin), (0, 0)))
    return w.reshape(kh * kw * cin_pad, cout)


def _pad_cols(w, cout_pad):
    return jnp.pad(w, ((0, 0), (0, cout_pad - w.shape[1])))


def _pad_bias(b, cout_pad):
    return jnp.pad(b, (0, cout_pad - b.shape[0])).reshape(1, cout_pad)


def prepare_kernel_params(p, height=16, width=16):
    """Build the constant kernel operands: fused/folded bf16 weights, padded
    f32 biases, stride-2 gather matrices and stride-1 shift masks."""
    assert (height * width) % SUB == 0
    consts = []

    # Stem: im2col K layout (dy, dx, cin) padded to 128.
    wf, bf = _bn_fold(p["stem_w"], p["stem_b"], p["stem_bn"])
    k_pad = _cpad(3 * 3 * 3)
    w = wf.reshape(3 * 3 * 3, 32)
    w = jnp.pad(w, ((0, k_pad - 27), (0, _cpad(32) - 32)))
    consts += [w.astype(jnp.bfloat16),
               _pad_bias(bf, _cpad(32)).astype(jnp.float32)]

    hi, wi, p_in = height, width, height * width
    for name, cin, cout in (("layer1", 32, 64), ("layer2", 64, 128),
                            ("layer3", 128, 256)):
        d = p[name]
        cin_p, cout_p = _cpad(cin), _cpad(cout)

        # 3x3 stride-2 per-tap gather matrices (per image).
        s1, ho, wo, p_out = _selection_stack(hi, wi, 3, 2, 1, p_in)

        # conv1 (BN folded) + 1x1 skip, fused into one (9*cin_p, 2*cout_p)
        # weight: skip weights live only in the centre-tap (t=4) row block.
        w1f, b1f = _bn_fold(d["c1_w"], d["c1_b"], d["bn1"])
        wsf, bsf = _bn_fold(d["skip_w"], d["skip_b"], None)
        w1 = _pad_cols(_pack_rows(w1f, cin_p), cout_p)          # (9*cin_p, cout_p)
        ws_rows = _pad_cols(_pack_rows(wsf, cin_p), cout_p)     # (cin_p,   cout_p)
        ws = jnp.zeros((9 * cin_p, cout_p), jnp.float32)
        ws = ws.at[4 * cin_p:5 * cin_p].set(ws_rows)            # centre tap only
        w1s = jnp.concatenate([w1, ws], axis=1).astype(jnp.bfloat16)
        b1s = jnp.concatenate([_pad_bias(b1f, cout_p),
                               _pad_bias(bsf, cout_p)], axis=1).astype(jnp.float32)

        # conv2 (3x3 stride-1 pad-1, BN folded): roll-gather masks + weight.
        m2 = _shift_masks(ho, wo)
        w2f, b2f = _bn_fold(d["c2_w"], d["c2_b"], d["bn2"])
        w2 = _pad_cols(_pack_rows(w2f, cout_p), cout_p).astype(jnp.bfloat16)
        b2 = _pad_bias(b2f, cout_p).astype(jnp.float32)

        consts += [s1, w1s, b1s, m2, w2, b2]
        hi, wi, p_in = ho, wo, p_out

    ncls_pad = _cpad(N_CLASS)
    wfc = jnp.pad(jnp.transpose(p["fc_w"]).astype(jnp.float32),
                  ((0, 0), (0, ncls_pad - N_CLASS))).astype(jnp.bfloat16)
    bfc = jnp.pad(p["fc_b"].astype(jnp.float32),
                  (0, ncls_pad - N_CLASS)).reshape(1, ncls_pad)
    consts += [wfc, bfc]
    return consts


# ----------------------------------------------------------------------------
# JAX glue: tiny stem im2col + the single fused pallas_call
# ----------------------------------------------------------------------------
def _im2col_stem(x_nhwc, k=3, pad=1):
    n, h, w, c = x_nhwc.shape
    xp = jnp.pad(x_nhwc, ((0, 0), (pad, pad), (pad, pad), (0, 0)))
    ho, wo = h + 2 * pad - k + 1, w + 2 * pad - k + 1
    cols = []
    for dy in range(k):
        for dx in range(k):
            cols.append(xp[:, dy:dy + ho, dx:dx + wo, :])
    patches = jnp.concatenate(cols, axis=-1)            # (n, ho, wo, k*k*c)
    return patches.reshape(n * ho * wo, k * k * c), ho, wo


def _const_spec(a):
    nd = a.ndim
    return pl.BlockSpec(a.shape, lambda i, _nd=nd: (0,) * _nd)


@functools.partial(jax.jit, static_argnames=("images_per_step",))
def forward(consts, x_nhwc, images_per_step=1):
    n = x_nhwc.shape[0]
    k_pad = consts[0].shape[0]                   # stem K padded to 128
    ncls_pad = consts[-1].shape[1]               # 35 -> 128

    G = images_per_step
    steps = -(-n // G)
    n_pad = steps * G

    patches, ho, wo = _im2col_stem(x_nhwc)       # tiny (n*h*w, 27) stem im2col
    rows0 = ho * wo
    patches = jnp.pad(patches, ((0, (n_pad - n) * rows0),
                                (0, k_pad - patches.shape[1])))
    patches = patches.astype(jnp.bfloat16)

    # Static per-block geometry (per-image row counts) for the 3 BasicBlocks.
    layer_meta = []
    hi, wi, p_in = ho, wo, rows0
    for _ in range(3):
        hn, wn = (hi + 2 - 3) // 2 + 1, (wi + 2 - 3) // 2 + 1
        p_out = _round_up(hn * wn, SUB)
        layer_meta.append((p_in, p_out, wn))
        hi, wi, p_in = hn, wn, p_out
    layer_meta = tuple(layer_meta)
    pool_rows = hi * wi                          # valid rows of final activation

    out = pl.pallas_call(
        functools.partial(_resnet_kernel, G, layer_meta, pool_rows),
        grid=(steps,),                           # G images per grid step
        out_shape=jax.ShapeDtypeStruct((steps, G, ncls_pad), jnp.float32),
        in_specs=[pl.BlockSpec((G * rows0, k_pad), lambda i: (i, 0))]
                 + [_const_spec(a) for a in consts],
        out_specs=pl.BlockSpec((1, G, ncls_pad), lambda i: (i, 0, 0)),
        compiler_params=pltpu.CompilerParams(
            dimension_semantics=("parallel",),   # shards steps over v7x's 2 TCs
            vmem_limit_bytes=48 * 1024 * 1024,   # actual use ~5 MiB; < 64 MiB (v7x)
        ),
    )(patches, *consts)
    return out.reshape(n_pad, ncls_pad)[:n, :N_CLASS]


# ----------------------------------------------------------------------------
# Deterministic parameter init (PyTorch-like fan-in uniform; BN eval stats)
# ----------------------------------------------------------------------------
def make_conv(key, cin, cout, k):
    kw, kb = jax.random.split(key)
    bound = 1.0 / ((cin * k * k) ** 0.5)
    w = jax.random.uniform(kw, (cout, cin, k, k), jnp.float32, -bound, bound)
    b = jax.random.uniform(kb, (cout,), jnp.float32, -bound, bound)
    return w, b


def make_bn(key, c):
    kg, kb = jax.random.split(key)
    gamma = 1.0 + 0.05 * jax.random.normal(kg, (c,), jnp.float32)
    beta = 0.05 * jax.random.normal(kb, (c,), jnp.float32)
    return gamma, beta, jnp.zeros((c,), jnp.float32), jnp.ones((c,), jnp.float32)


def init_params(key):
    ks = jax.random.split(key, 8)
    p = {}
    p["stem_w"], p["stem_b"] = make_conv(ks[0], 3, 32, 3)
    p["stem_bn"] = make_bn(ks[1], 32)

    def block(k, cin, cout):
        k0, k1, k2, k3, k4 = jax.random.split(k, 5)
        d = {}
        d["c1_w"], d["c1_b"] = make_conv(k0, cin, cout, 3)
        d["bn1"] = make_bn(k1, cout)
        d["c2_w"], d["c2_b"] = make_conv(k2, cout, cout, 3)
        d["bn2"] = make_bn(k3, cout)
        d["skip_w"], d["skip_b"] = make_conv(k4, cin, cout, 1)
        return d

    p["layer1"] = block(ks[2], 32, 64)
    p["layer2"] = block(ks[3], 64, 128)
    p["layer3"] = block(ks[4], 128, 256)

    kfw, kfb = jax.random.split(ks[5])
    bound = 1.0 / (256.0 ** 0.5)
    p["fc_w"] = jax.random.uniform(kfw, (N_CLASS, 256), jnp.float32, -bound, bound)
    p["fc_b"] = jax.random.uniform(kfb, (N_CLASS,), jnp.float32, -bound, bound)
    return p


# ----------------------------------------------------------------------------
# Pure-JAX f32 reference (same eval-mode semantics) for correctness checking
# ----------------------------------------------------------------------------
def forward_ref(p, x_nhwc):
    def bn_apply(x, bn, conv_b):
        gamma, beta, mean, var = bn
        scale = gamma / jnp.sqrt(var + EPS)
        return x * scale + (beta + (conv_b - mean) * scale)

    def conv(x, w, stride, pad):
        return jax.lax.conv_general_dilated(
            x, jnp.transpose(w, (2, 3, 1, 0)), (stride, stride),
            [(pad, pad), (pad, pad)],
            dimension_numbers=("NHWC", "HWIO", "NHWC"),
            precision=jax.lax.Precision.HIGHEST,
        )

    h = jax.nn.relu(bn_apply(conv(x_nhwc, p["stem_w"], 1, 1), p["stem_bn"], p["stem_b"]))
    for name in ("layer1", "layer2", "layer3"):
        d = p[name]
        skip = conv(h, d["skip_w"], 2, 0) + d["skip_b"]
        y = jax.nn.relu(bn_apply(conv(h, d["c1_w"], 2, 1), d["bn1"], d["c1_b"]))
        y = bn_apply(conv(y, d["c2_w"], 1, 1), d["bn2"], d["c2_b"])
        h = jax.nn.relu(y + skip)
    pooled = jnp.mean(h, axis=(1, 2))
    return pooled @ p["fc_w"].T + p["fc_b"]


# ----------------------------------------------------------------------------
if __name__ == "__main__":
    # Small shapes consistent with the module: batch=2, 3 input channels, 16x16.
    x_nchw = jax.random.normal(jax.random.PRNGKey(0), (2, 3, 16, 16), jnp.float32)
    params = init_params(jax.random.PRNGKey(1))

    x_nhwc = jnp.transpose(x_nchw, (0, 2, 3, 1))       # NCHW -> NHWC
    consts = prepare_kernel_params(params, 16, 16)     # one-time weight/gather prep

    ref = jax.block_until_ready(forward_ref(params, x_nhwc))

    # v7x-style config: 1 image per step, grid=(batch,) keeps both TCs busy.
    out1 = jax.block_until_ready(forward(consts, x_nhwc, images_per_step=1))
    # v5e/v6e-style config: whole batch stacked into the matmul M dim, grid=(1,).
    out2 = jax.block_until_ready(forward(consts, x_nhwc, images_per_step=2))

    for out in (out1, out2):
        assert out.shape == (2, N_CLASS), out.shape
        assert bool(jnp.all(jnp.isfinite(out)))
        # bf16 MXU inputs with f32 accumulation -> loosened tolerance vs f32 ref.
        assert bool(jnp.allclose(out, ref, rtol=2e-2, atol=1e-2)), \
            float(jnp.max(jnp.abs(out - ref)))

    print("KERNEL_OK")
</pallas_src>

<mosaic_0001>
module attributes {stable_mosaic.version = 11 : i64} {
  func.func @_resnet_kernel(%arg0: i32, %arg1: memref<256x128xbf16, #tpu.memory_space<vmem>>, %arg2: memref<128x128xbf16, #tpu.memory_space<vmem>>, %arg3: memref<1x128xf32, #tpu.memory_space<vmem>>, %arg4: memref<9x64x256xbf16, #tpu.memory_space<vmem>>, %arg5: memref<1152x256xbf16, #tpu.memory_space<vmem>>, %arg6: memref<1x256xf32, #tpu.memory_space<vmem>>, %arg7: memref<9x64x1xf32, #tpu.memory_space<vmem>>, %arg8: memref<1152x128xbf16, #tpu.memory_space<vmem>>, %arg9: memref<1x128xf32, #tpu.memory_space<vmem>>, %arg10: memref<9x16x64xbf16, #tpu.memory_space<vmem>>, %arg11: memref<1152x256xbf16, #tpu.memory_space<vmem>>, %arg12: memref<1x256xf32, #tpu.memory_space<vmem>>, %arg13: memref<9x16x1xf32, #tpu.memory_space<vmem>>, %arg14: memref<1152x128xbf16, #tpu.memory_space<vmem>>, %arg15: memref<1x128xf32, #tpu.memory_space<vmem>>, %arg16: memref<9x8x16xbf16, #tpu.memory_space<vmem>>, %arg17: memref<1152x512xbf16, #tpu.memory_space<vmem>>, %arg18: memref<1x512xf32, #tpu.memory_space<vmem>>, %arg19: memref<9x8x1xf32, #tpu.memory_space<vmem>>, %arg20: memref<2304x256xbf16, #tpu.memory_space<vmem>>, %arg21: memref<1x256xf32, #tpu.memory_space<vmem>>, %arg22: memref<256x128xbf16, #tpu.memory_space<vmem>>, %arg23: memref<1x128xf32, #tpu.memory_space<vmem>>, %arg24: memref<1x1x128xf32, #tpu.memory_space<vmem>>) attributes {dimension_semantics = [#tpu.dimension_semantics<parallel>], iteration_bounds = array<i64: 2>, scalar_prefetch = 0 : i64, scratch_operands = 0 : i64, tpu.core_type = #tpu.core_type<tc>, window_params = [{transform_indices = @transform_0, window_bounds = array<i64: 256, 128>}, {pipeline_mode = #tpu.pipeline_mode<synchronous>, transform_indices = @transform_1, window_bounds = array<i64: 128, 128>}, {pipeline_mode = #tpu.pipeline_mode<synchronous>, transform_indices = @transform_2, window_bounds = array<i64: 1, 128>}, {pipeline_mode = #tpu.pipeline_mode<synchronous>, transform_indices = @transform_3, window_bounds = array<i64: 9, 64, 256>}, {pipeline_mode = #tpu.pipeline_mode<synchronous>, transform_indices = @transform_4, window_bounds = array<i64: 1152, 256>}, {pipeline_mode = #tpu.pipeline_mode<synchronous>, transform_indices = @transform_5, window_bounds = array<i64: 1, 256>}, {pipeline_mode = #tpu.pipeline_mode<synchronous>, transform_indices = @transform_6, window_bounds = array<i64: 9, 64, 1>}, {pipeline_mode = #tpu.pipeline_mode<synchronous>, transform_indices = @transform_7, window_bounds = array<i64: 1152, 128>}, {pipeline_mode = #tpu.pipeline_mode<synchronous>, transform_indices = @transform_8, window_bounds = array<i64: 1, 128>}, {pipeline_mode = #tpu.pipeline_mode<synchronous>, transform_indices = @transform_9, window_bounds = array<i64: 9, 16, 64>}, {pipeline_mode = #tpu.pipeline_mode<synchronous>, transform_indices = @transform_10, window_bounds = array<i64: 1152, 256>}, {pipeline_mode = #tpu.pipeline_mode<synchronous>, transform_indices = @transform_11, window_bounds = array<i64: 1, 256>}, {pipeline_mode = #tpu.pipeline_mode<synchronous>, transform_indices = @transform_12, window_bounds = array<i64: 9, 16, 1>}, {pipeline_mode = #tpu.pipeline_mode<synchronous>, transform_indices = @transform_13, window_bounds = array<i64: 1152, 128>}, {pipeline_mode = #tpu.pipeline_mode<synchronous>, transform_indices = @transform_14, window_bounds = array<i64: 1, 128>}, {pipeline_mode = #tpu.pipeline_mode<synchronous>, transform_indices = @transform_15, window_bounds = array<i64: 9, 8, 16>}, {pipeline_mode = #tpu.pipeline_mode<synchronous>, transform_indices = @transform_16, window_bounds = array<i64: 1152, 512>}, {pipeline_mode = #tpu.pipeline_mode<synchronous>, transform_indices = @transform_17, window_bounds = array<i64: 1, 512>}, {pipeline_mode = #tpu.pipeline_mode<synchronous>, transform_indices = @transform_18, window_bounds = array<i64: 9, 8, 1>}, {pipeline_mode = #tpu.pipeline_mode<synchronous>, transform_indices = @transform_19, window_bounds = array<i64: 2304, 256>}, {pipeline_mode = #tpu.pipeline_mode<synchronous>, transform_indices = @transform_20, window_bounds = array<i64: 1, 256>}, {pipeline_mode = #tpu.pipeline_mode<synchronous>, transform_indices = @transform_21, window_bounds = array<i64: 256, 128>}, {pipeline_mode = #tpu.pipeline_mode<synchronous>, transform_indices = @transform_22, window_bounds = array<i64: 1, 128>}, {transform_indices = @transform_23, window_bounds = array<i64: 1, 1, 128>}]} {
    %c0 = arith.constant 0 : index
    %c0_0 = arith.constant 0 : index
    %0 = vector.load %arg1[%c0, %c0_0] : memref<256x128xbf16, #tpu.memory_space<vmem>>, vector<256x128xbf16>
    %c0_1 = arith.constant 0 : index
    %c0_2 = arith.constant 0 : index
    %1 = vector.load %arg2[%c0_1, %c0_2] : memref<128x128xbf16, #tpu.memory_space<vmem>>, vector<128x128xbf16>
    %cst = arith.constant dense<0.000000e+00> : vector<256x128xf32>
    %2 = tpu.matmul %0, %1, %cst {dimension_numbers = #tpu.dot_dimension_numbers<[1], [0], [0], [1], [0, 0, 1, 1], [], []>} : vector<256x128xbf16>, vector<128x128xbf16>, vector<256x128xf32> -> vector<256x128xf32>
    %c0_3 = arith.constant 0 : index
    %c0_4 = arith.constant 0 : index
    %3 = vector.load %arg3[%c0_3, %c0_4] : memref<1x128xf32, #tpu.memory_space<vmem>>, vector<1x128xf32>
    %4 = vector.broadcast %3 : vector<1x128xf32> to vector<256x128xf32>
    %5 = arith.addf %2, %4 : vector<256x128xf32>
    %cst_5 = arith.constant 0.000000e+00 : f32
    %6 = vector.broadcast %cst_5 : f32 to vector<256x128xf32>
    %7 = arith.maximumf %5, %6 : vector<256x128xf32>
    %8 = arith.truncf %7 : vector<256x128xf32> to vector<256x128xbf16>
    %c0_6 = arith.constant 0 : index
    %c0_7 = arith.constant 0 : index
    %c0_8 = arith.constant 0 : index
    %9 = vector.load %arg4[%c0_6, %c0_7, %c0_8] : memref<9x64x256xbf16, #tpu.memory_space<vmem>>, vector<1x64x256xbf16>
    %10 = vector.shape_cast %9 : vector<1x64x256xbf16> to vector<64x256xbf16>
    %cst_9 = arith.constant dense<0.000000e+00> : vector<64x128xf32>
    %11 = tpu.matmul %10, %8, %cst_9 {dimension_numbers = #tpu.dot_dimension_numbers<[1], [0], [0], [1], [0, 0, 1, 1], [], []>} : vector<64x256xbf16>, vector<256x128xbf16>, vector<64x128xf32> -> vector<64x128xf32>
    %12 = arith.truncf %11 : vector<64x128xf32> to vector<64x128xbf16>
    %c1 = arith.constant 1 : index
    %c0_10 = arith.constant 0 : index
    %c0_11 = arith.constant 0 : index
    %13 = vector.load %arg4[%c1, %c0_10, %c0_11] : memref<9x64x256xbf16, #tpu.memory_space<vmem>>, vector<1x64x256xbf16>
    %14 = vector.shape_cast %13 : vector<1x64x256xbf16> to vector<64x256xbf16>
    %cst_12 = arith.constant dense<0.000000e+00> : vector<64x128xf32>
    %15 = tpu.matmul %14, %8, %cst_12 {dimension_numbers = #tpu.dot_dimension_numbers<[1], [0], [0], [1], [0, 0, 1, 1], [], []>} : vector<64x256xbf16>, vector<256x128xbf16>, vector<64x128xf32> -> vector<64x128xf32>
    %16 = arith.truncf %15 : vector<64x128xf32> to vector<64x128xbf16>
    %c2 = arith.constant 2 : index
    %c0_13 = arith.constant 0 : index
    %c0_14 = arith.constant 0 : index
    %17 = vector.load %arg4[%c2, %c0_13, %c0_14] : memref<9x64x256xbf16, #tpu.memory_space<vmem>>, vector<1x64x256xbf16>
    %18 = vector.shape_cast %17 : vector<1x64x256xbf16> to vector<64x256xbf16>
    %cst_15 = arith.constant dense<0.000000e+00> : vector<64x128xf32>
    %19 = tpu.matmul %18, %8, %cst_15 {dimension_numbers = #tpu.dot_dimension_numbers<[1], [0], [0], [1], [0, 0, 1, 1], [], []>} : vector<64x256xbf16>, vector<256x128xbf16>, vector<64x128xf32> -> vector<64x128xf32>
    %20 = arith.truncf %19 : vector<64x128xf32> to vector<64x128xbf16>
    %c3 = arith.constant 3 : index
    %c0_16 = arith.constant 0 : index
    %c0_17 = arith.constant 0 : index
    %21 = vector.load %arg4[%c3, %c0_16, %c0_17] : memref<9x64x256xbf16, #tpu.memory_space<vmem>>, vector<1x64x256xbf16>
    %22 = vector.shape_cast %21 : vector<1x64x256xbf16> to vector<64x256xbf16>
    %cst_18 = arith.constant dense<0.000000e+00> : vector<64x128xf32>
    %23 = tpu.matmul %22, %8, %cst_18 {dimension_numbers = #tpu.dot_dimension_numbers<[1], [0], [0], [1], [0, 0, 1, 1], [], []>} : vector<64x256xbf16>, vector<256x128xbf16>, vector<64x128xf32> -> vector<64x128xf32>
    %24 = arith.truncf %23 : vector<64x128xf32> to vector<64x128xbf16>
    %c4 = arith.constant 4 : index
    %c0_19 = arith.constant 0 : index
    %c0_20 = arith.constant 0 : index
    %25 = vector.load %arg4[%c4, %c0_19, %c0_20] : memref<9x64x256xbf16, #tpu.memory_space<vmem>>, vector<1x64x256xbf16>
    %26 = vector.shape_cast %25 : vector<1x64x256xbf16> to vector<64x256xbf16>
    %cst_21 = arith.constant dense<0.000000e+00> : vector<64x128xf32>
    %27 = tpu.matmul %26, %8, %cst_21 {dimension_numbers = #tpu.dot_dimension_numbers<[1], [0], [0], [1], [0, 0, 1, 1], [], []>} : vector<64x256xbf16>, vector<256x128xbf16>, vector<64x128xf32> -> vector<64x128xf32>
    %28 = arith.truncf %27 : vector<64x128xf32> to vector<64x128xbf16>
    %c5 = arith.constant 5 : index
    %c0_22 = arith.constant 0 : index
    %c0_23 = arith.constant 0 : index
    %29 = vector.load %arg4[%c5, %c0_22, %c0_23] : memref<9x64x256xbf16, #tpu.memory_space<vmem>>, vector<1x64x256xbf16>
    %30 = vector.shape_cast %29 : vector<1x64x256xbf16> to vector<64x256xbf16>
    %cst_24 = arith.constant dense<0.000000e+00> : vector<64x128xf32>
    %31 = tpu.matmul %30, %8, %cst_24 {dimension_numbers = #tpu.dot_dimension_numbers<[1], [0], [0], [1], [0, 0, 1, 1], [], []>} : vector<64x256xbf16>, vector<256x128xbf16>, vector<64x128xf32> -> vector<64x128xf32>
    %32 = arith.truncf %31 : vector<64x128xf32> to vector<64x128xbf16>
    %c6 = arith.constant 6 : index
    %c0_25 = arith.constant 0 : index
    %c0_26 = arith.constant 0 : index
    %33 = vector.load %arg4[%c6, %c0_25, %c0_26] : memref<9x64x256xbf16, #tpu.memory_space<vmem>>, vector<1x64x256xbf16>
    %34 = vector.shape_cast %33 : vector<1x64x256xbf16> to vector<64x256xbf16>
    %cst_27 = arith.constant dense<0.000000e+00> : vector<64x128xf32>
    %35 = tpu.matmul %34, %8, %cst_27 {dimension_numbers = #tpu.dot_dimension_numbers<[1], [0], [0], [1], [0, 0, 1, 1], [], []>} : vector<64x256xbf16>, vector<256x128xbf16>, vector<64x128xf32> -> vector<64x128xf32>
    %36 = arith.truncf %35 : vector<64x128xf32> to vector<64x128xbf16>
    %c7 = arith.constant 7 : index
    %c0_28 = arith.constant 0 : index
    %c0_29 = arith.constant 0 : index
    %37 = vector.load %arg4[%c7, %c0_28, %c0_29] : memref<9x64x256xbf16, #tpu.memory_space<vmem>>, vector<1x64x256xbf16>
    %38 = vector.shape_cast %37 : vector<1x64x256xbf16> to vector<64x256xbf16>
    %cst_30 = arith.constant dense<0.000000e+00> : vector<64x128xf32>
    %39 = tpu.matmul %38, %8, %cst_30 {dimension_numbers = #tpu.dot_dimension_numbers<[1], [0], [0], [1], [0, 0, 1, 1], [], []>} : vector<64x256xbf16>, vector<256x128xbf16>, vector<64x128xf32> -> vector<64x128xf32>
    %40 = arith.truncf %39 : vector<64x128xf32> to vector<64x128xbf16>
    %c8 = arith.constant 8 : index
    %c0_31 = arith.constant 0 : index
    %c0_32 = arith.constant 0 : index
    %41 = vector.load %arg4[%c8, %c0_31, %c0_32] : memref<9x64x256xbf16, #tpu.memory_space<vmem>>, vector<1x64x256xbf16>
    %42 = vector.shape_cast %41 : vector<1x64x256xbf16> to vector<64x256xbf16>
    %cst_33 = arith.constant dense<0.000000e+00> : vector<64x128xf32>
    %43 = tpu.matmul %42, %8, %cst_33 {dimension_numbers = #tpu.dot_dimension_numbers<[1], [0], [0], [1], [0, 0, 1, 1], [], []>} : vector<64x256xbf16>, vector<256x128xbf16>, vector<64x128xf32> -> vector<64x128xf32>
    %44 = arith.truncf %43 : vector<64x128xf32> to vector<64x128xbf16>
    %45 = tpu.concatenate %12, %16, %20, %24, %28, %32, %36, %40, %44 in 1 : vector<64x128xbf16>, vector<64x128xbf16>, vector<64x128xbf16>, vector<64x128xbf16>, vector<64x128xbf16>, vector<64x128xbf16>, vector<64x128xbf16>, vector<64x128xbf16>, vector<64x128xbf16> -> vector<64x1152xbf16>
    %c0_34 = arith.constant 0 : index
    %c0_35 = arith.constant 0 : index
    %46 = vector.load %arg5[%c0_34, %c0_35] : memref<1152x256xbf16, #tpu.memory_space<vmem>>, vector<1152x256xbf16>
    %cst_36 = arith.constant dense<0.000000e+00> : vector<64x256xf32>
    %47 = tpu.matmul %45, %46, %cst_36 {dimension_numbers = #tpu.dot_dimension_numbers<[1], [0], [0], [1], [0, 0, 1, 1], [], []>} : vector<64x1152xbf16>, vector<1152x256xbf16>, vector<64x256xf32> -> vector<64x256xf32>
    %c0_37 = arith.constant 0 : index
    %c0_38 = arith.constant 0 : index
    %48 = vector.load %arg6[%c0_37, %c0_38] : memref<1x256xf32, #tpu.memory_space<vmem>>, vector<1x256xf32>
    %49 = vector.broadcast %48 : vector<1x256xf32> to vector<64x256xf32>
    %50 = arith.addf %47, %49 : vector<64x256xf32>
    %51 = vector.extract_strided_slice %50 {offsets = [0, 0], sizes = [64, 128], strides = [1, 1]} : vector<64x256xf32> to vector<64x128xf32>
    %cst_39 = arith.constant 0.000000e+00 : f32
    %52 = vector.broadcast %cst_39 : f32 to vector<64x128xf32>
    %53 = arith.maximumf %51, %52 : vector<64x128xf32>
    %54 = vector.extract_strided_slice %50 {offsets = [0, 128], sizes = [64, 128], strides = [1, 1]} : vector<64x256xf32> to vector<64x128xf32>
    %c0_40 = arith.constant 0 : index
    %c0_41 = arith.constant 0 : index
    %c0_42 = arith.constant 0 : index
    %55 = vector.load %arg7[%c0_40, %c0_41, %c0_42] : memref<9x64x1xf32, #tpu.memory_space<vmem>>, vector<1x64x1xf32>
    %56 = vector.shape_cast %55 : vector<1x64x1xf32> to vector<64x1xf32>
    %c9_i32 = arith.constant 9 : i32
    %57 = tpu.dynamic_rotate %53 by %c9_i32 dim 0 : vector<64x128xf32>, i32 -> vector<64x128xf32>
    %58 = vector.broadcast %56 : vector<64x1xf32> to vector<64x128xf32>
    %59 = arith.mulf %57, %58 : vector<64x128xf32>
    %60 = arith.truncf %59 : vector<64x128xf32> to vector<64x128xbf16>
    %c1_43 = arith.constant 1 : index
    %c0_44 = arith.constant 0 : index
    %c0_45 = arith.constant 0 : index
    %61 = vector.load %arg7[%c1_43, %c0_44, %c0_45] : memref<9x64x1xf32, #tpu.memory_space<vmem>>, vector<1x64x1xf32>
    %62 = vector.shape_cast %61 : vector<1x64x1xf32> to vector<64x1xf32>
    %c8_i32 = arith.constant 8 : i32
    %63 = tpu.dynamic_rotate %53 by %c8_i32 dim 0 : vector<64x128xf32>, i32 -> vector<64x128xf32>
    %64 = vector.broadcast %62 : vector<64x1xf32> to vector<64x128xf32>
    %65 = arith.mulf %63, %64 : vector<64x128xf32>
    %66 = arith.truncf %65 : vector<64x128xf32> to vector<64x128xbf16>
    %c2_46 = arith.constant 2 : index
    %c0_47 = arith.constant 0 : index
    %c0_48 = arith.constant 0 : index
    %67 = vector.load %arg7[%c2_46, %c0_47, %c0_48] : memref<9x64x1xf32, #tpu.memory_space<vmem>>, vector<1x64x1xf32>
    %68 = vector.shape_cast %67 : vector<1x64x1xf32> to vector<64x1xf32>
    %c7_i32 = arith.constant 7 : i32
    %69 = tpu.dynamic_rotate %53 by %c7_i32 dim 0 : vector<64x128xf32>, i32 -> vector<64x128xf32>
    %70 = vector.broadcast %68 : vector<64x1xf32> to vector<64x128xf32>
    %71 = arith.mulf %69, %70 : vector<64x128xf32>
    %72 = arith.truncf %71 : vector<64x128xf32> to vector<64x128xbf16>
    %c3_49 = arith.constant 3 : index
    %c0_50 = arith.constant 0 : index
    %c0_51 = arith.constant 0 : index
    %73 = vector.load %arg7[%c3_49, %c0_50, %c0_51] : memref<9x64x1xf32, #tpu.memory_space<vmem>>, vector<1x64x1xf32>
    %74 = vector.shape_cast %73 : vector<1x64x1xf32> to vector<64x1xf32>
    %c1_i32 = arith.constant 1 : i32
    %75 = tpu.dynamic_rotate %53 by %c1_i32 dim 0 : vector<64x128xf32>, i32 -> vector<64x128xf32>
    %76 = vector.broadcast %74 : vector<64x1xf32> to vector<64x128xf32>
    %77 = arith.mulf %75, %76 : vector<64x128xf32>
    %78 = arith.truncf %77 : vector<64x128xf32> to vector<64x128xbf16>
    %c4_52 = arith.constant 4 : index
    %c0_53 = arith.constant 0 : index
    %c0_54 = arith.constant 0 : index
    %79 = vector.load %arg7[%c4_52, %c0_53, %c0_54] : memref<9x64x1xf32, #tpu.memory_space<vmem>>, vector<1x64x1xf32>
    %80 = vector.shape_cast %79 : vector<1x64x1xf32> to vector<64x1xf32>
    %81 = vector.broadcast %80 : vector<64x1xf32> to vector<64x128xf32>
    %82 = arith.mulf %53, %81 : vector<64x128xf32>
    %83 = arith.truncf %82 : vector<64x128xf32> to vector<64x128xbf16>
    %c5_55 = arith.constant 5 : index
    %c0_56 = arith.constant 0 : index
    %c0_57 = arith.constant 0 : index
    %84 = vector.load %arg7[%c5_55, %c0_56, %c0_57] : memref<9x64x1xf32, #tpu.memory_space<vmem>>, vector<1x64x1xf32>
    %85 = vector.shape_cast %84 : vector<1x64x1xf32> to vector<64x1xf32>
    %c63_i32 = arith.constant 63 : i32
    %86 = tpu.dynamic_rotate %53 by %c63_i32 dim 0 : vector<64x128xf32>, i32 -> vector<64x128xf32>
    %87 = vector.broadcast %85 : vector<64x1xf32> to vector<64x128xf32>
    %88 = arith.mulf %86, %87 : vector<64x128xf32>
    %89 = arith.truncf %88 : vector<64x128xf32> to vector<64x128xbf16>
    %c6_58 = arith.constant 6 : index
    %c0_59 = arith.constant 0 : index
    %c0_60 = arith.constant 0 : index
    %90 = vector.load %arg7[%c6_58, %c0_59, %c0_60] : memref<9x64x1xf32, #tpu.memory_space<vmem>>, vector<1x64x1xf32>
    %91 = vector.shape_cast %90 : vector<1x64x1xf32> to vector<64x1xf32>
    %c57_i32 = arith.constant 57 : i32
    %92 = tpu.dynamic_rotate %53 by %c57_i32 dim 0 : vector<64x128xf32>, i32 -> vector<64x128xf32>
    %93 = vector.broadcast %91 : vector<64x1xf32> to vector<64x128xf32>
    %94 = arith.mulf %92, %93 : vector<64x128xf32>
    %95 = arith.truncf %94 : vector<64x128xf32> to vector<64x128xbf16>
    %c7_61 = arith.constant 7 : index
    %c0_62 = arith.constant 0 : index
    %c0_63 = arith.constant 0 : index
    %96 = vector.load %arg7[%c7_61, %c0_62, %c0_63] : memref<9x64x1xf32, #tpu.memory_space<vmem>>, vector<1x64x1xf32>
    %97 = vector.shape_cast %96 : vector<1x64x1xf32> to vector<64x1xf32>
    %c56_i32 = arith.constant 56 : i32
    %98 = tpu.dynamic_rotate %53 by %c56_i32 dim 0 : vector<64x128xf32>, i32 -> vector<64x128xf32>
    %99 = vector.broadcast %97 : vector<64x1xf32> to vector<64x128xf32>
    %100 = arith.mulf %98, %99 : vector<64x128xf32>
    %101 = arith.truncf %100 : vector<64x128xf32> to vector<64x128xbf16>
    %c8_64 = arith.constant 8 : index
    %c0_65 = arith.constant 0 : index
    %c0_66 = arith.constant 0 : index
    %102 = vector.load %arg7[%c8_64, %c0_65, %c0_66] : memref<9x64x1xf32, #tpu.memory_space<vmem>>, vector<1x64x1xf32>
    %103 = vector.shape_cast %102 : vector<1x64x1xf32> to vector<64x1xf32>
    %c55_i32 = arith.constant 55 : i32
    %104 = tpu.dynamic_rotate %53 by %c55_i32 dim 0 : vector<64x128xf32>, i32 -> vector<64x128xf32>
    %105 = vector.broadcast %103 : vector<64x1xf32> to vector<64x128xf32>
    %106 = arith.mulf %104, %105 : vector<64x128xf32>
    %107 = arith.truncf %106 : vector<64x128xf32> to vector<64x128xbf16>
    %108 = tpu.concatenate %60, %66, %72, %78, %83, %89, %95, %101, %107 in 1 : vector<64x128xbf16>, vector<64x128xbf16>, vector<64x128xbf16>, vector<64x128xbf16>, vector<64x128xbf16>, vector<64x128xbf16>, vector<64x128xbf16>, vector<64x128xbf16>, vector<64x128xbf16> -> vector<64x1152xbf16>
    %c0_67 = arith.constant 0 : index
    %c0_68 = arith.constant 0 : index
    %109 = vector.load %arg8[%c0_67, %c0_68] : memref<1152x128xbf16, #tpu.memory_space<vmem>>, vector<1152x128xbf16>
    %cst_69 = arith.constant dense<0.000000e+00> : vector<64x128xf32>
    %110 = tpu.matmul %108, %109, %cst_69 {dimension_numbers = #tpu.dot_dimension_numbers<[1], [0], [0], [1], [0, 0, 1, 1], [], []>} : vector<64x1152xbf16>, vector<1152x128xbf16>, vector<64x128xf32> -> vector<64x128xf32>
    %c0_70 = arith.constant 0 : index
    %c0_71 = arith.constant 0 : index
    %111 = vector.load %arg9[%c0_70, %c0_71] : memref<1x128xf32, #tpu.memory_space<vmem>>, vector<1x128xf32>
    %112 = vector.broadcast %111 : vector<1x128xf32> to vector<64x128xf32>
    %113 = arith.addf %110, %112 : vector<64x128xf32>
    %114 = arith.addf %113, %54 : vector<64x128xf32>
    %cst_72 = arith.constant 0.000000e+00 : f32
    %115 = vector.broadcast %cst_72 : f32 to vector<64x128xf32>
    %116 = arith.maximumf %114, %115 : vector<64x128xf32>
    %117 = arith.truncf %116 : vector<64x128xf32> to vector<64x128xbf16>
    %c0_73 = arith.constant 0 : index
    %c0_74 = arith.constant 0 : index
    %c0_75 = arith.constant 0 : index
    %118 = vector.load %arg10[%c0_73, %c0_74, %c0_75] : memref<9x16x64xbf16, #tpu.memory_space<vmem>>, vector<1x16x64xbf16>
    %119 = vector.shape_cast %118 : vector<1x16x64xbf16> to vector<16x64xbf16>
    %cst_76 = arith.constant dense<0.000000e+00> : vector<16x128xf32>
    %120 = tpu.matmul %119, %117, %cst_76 {dimension_numbers = #tpu.dot_dimension_numbers<[1], [0], [0], [1], [0, 0, 1, 1], [], []>} : vector<16x64xbf16>, vector<64x128xbf16>, vector<16x128xf32> -> vector<16x128xf32>
    %121 = arith.truncf %120 : vector<16x128xf32> to vector<16x128xbf16>
    %c1_77 = arith.constant 1 : index
    %c0_78 = arith.constant 0 : index
    %c0_79 = arith.constant 0 : index
    %122 = vector.load %arg10[%c1_77, %c0_78, %c0_79] : memref<9x16x64xbf16, #tpu.memory_space<vmem>>, vector<1x16x64xbf16>
    %123 = vector.shape_cast %122 : vector<1x16x64xbf16> to vector<16x64xbf16>
    %cst_80 = arith.constant dense<0.000000e+00> : vector<16x128xf32>
    %124 = tpu.matmul %123, %117, %cst_80 {dimension_numbers = #tpu.dot_dimension_numbers<[1], [0], [0], [1], [0, 0, 1, 1], [], []>} : vector<16x64xbf16>, vector<64x128xbf16>, vector<16x128xf32> -> vector<16x128xf32>
    %125 = arith.truncf %124 : vector<16x128xf32> to vector<16x128xbf16>
    %c2_81 = arith.constant 2 : index
    %c0_82 = arith.constant 0 : index
    %c0_83 = arith.constant 0 : index
    %126 = vector.load %arg10[%c2_81, %c0_82, %c0_83] : memref<9x16x64xbf16, #tpu.memory_space<vmem>>, vector<1x16x64xbf16>
    %127 = vector.shape_cast %126 : vector<1x16x64xbf16> to vector<16x64xbf16>
    %cst_84 = arith.constant dense<0.000000e+00> : vector<16x128xf32>
    %128 = tpu.matmul %127, %117, %cst_84 {dimension_numbers = #tpu.dot_dimension_numbers<[1], [0], [0], [1], [0, 0, 1, 1], [], []>} : vector<16x64xbf16>, vector<64x128xbf16>, vector<16x128xf32> -> vector<16x128xf32>
    %129 = arith.truncf %128 : vector<16x128xf32> to vector<16x128xbf16>
    %c3_85 = arith.constant 3 : index
    %c0_86 = arith.constant 0 : index
    %c0_87 = arith.constant 0 : index
    %130 = vector.load %arg10[%c3_85, %c0_86, %c0_87] : memref<9x16x64xbf16, #tpu.memory_space<vmem>>, vector<1x16x64xbf16>
    %131 = vector.shape_cast %130 : vector<1x16x64xbf16> to vector<16x64xbf16>
    %cst_88 = arith.constant dense<0.000000e+00> : vector<16x128xf32>
    %132 = tpu.matmul %131, %117, %cst_88 {dimension_numbers = #tpu.dot_dimension_numbers<[1], [0], [0], [1], [0, 0, 1, 1], [], []>} : vector<16x64xbf16>, vector<64x128xbf16>, vector<16x128xf32> -> vector<16x128xf32>
    %133 = arith.truncf %132 : vector<16x128xf32> to vector<16x128xbf16>
    %c4_89 = arith.constant 4 : index
    %c0_90 = arith.constant 0 : index
    %c0_91 = arith.constant 0 : index
    %134 = vector.load %arg10[%c4_89, %c0_90, %c0_91] : memref<9x16x64xbf16, #tpu.memory_space<vmem>>, vector<1x16x64xbf16>
    %135 = vector.shape_cast %134 : vector<1x16x64xbf16> to vector<16x64xbf16>
    %cst_92 = arith.constant dense<0.000000e+00> : vector<16x128xf32>
    %136 = tpu.matmul %135, %117, %cst_92 {dimension_numbers = #tpu.dot_dimension_numbers<[1], [0], [0], [1], [0, 0, 1, 1], [], []>} : vector<16x64xbf16>, vector<64x128xbf16>, vector<16x128xf32> -> vector<16x128xf32>
    %137 = arith.truncf %136 : vector<16x128xf32> to vector<16x128xbf16>
    %c5_93 = arith.constant 5 : index
    %c0_94 = arith.constant 0 : index
    %c0_95 = arith.constant 0 : index
    %138 = vector.load %arg10[%c5_93, %c0_94, %c0_95] : memref<9x16x64xbf16, #tpu.memory_space<vmem>>, vector<1x16x64xbf16>
    %139 = vector.shape_cast %138 : vector<1x16x64xbf16> to vector<16x64xbf16>
    %cst_96 = arith.constant dense<0.000000e+00> : vector<16x128xf32>
    %140 = tpu.matmul %139, %117, %cst_96 {dimension_numbers = #tpu.dot_dimension_numbers<[1], [0], [0], [1], [0, 0, 1, 1], [], []>} : vector<16x64xbf16>, vector<64x128xbf16>, vector<16x128xf32> -> vector<16x128xf32>
    %141 = arith.truncf %140 : vector<16x128xf32> to vector<16x128xbf16>
    %c6_97 = arith.constant 6 : index
    %c0_98 = arith.constant 0 : index
    %c0_99 = arith.constant 0 : index
    %142 = vector.load %arg10[%c6_97, %c0_98, %c0_99] : memref<9x16x64xbf16, #tpu.memory_space<vmem>>, vector<1x16x64xbf16>
    %143 = vector.shape_cast %142 : vector<1x16x64xbf16> to vector<16x64xbf16>
    %cst_100 = arith.constant dense<0.000000e+00> : vector<16x128xf32>
    %144 = tpu.matmul %143, %117, %cst_100 {dimension_numbers = #tpu.dot_dimension_numbers<[1], [0], [0], [1], [0, 0, 1, 1], [], []>} : vector<16x64xbf16>, vector<64x128xbf16>, vector<16x128xf32> -> vector<16x128xf32>
    %145 = arith.truncf %144 : vector<16x128xf32> to vector<16x128xbf16>
    %c7_101 = arith.constant 7 : index
    %c0_102 = arith.constant 0 : index
    %c0_103 = arith.constant 0 : index
    %146 = vector.load %arg10[%c7_101, %c0_102, %c0_103] : memref<9x16x64xbf16, #tpu.memory_space<vmem>>, vector<1x16x64xbf16>
    %147 = vector.shape_cast %146 : vector<1x16x64xbf16> to vector<16x64xbf16>
    %cst_104 = arith.constant dense<0.000000e+00> : vector<16x128xf32>
    %148 = tpu.matmul %147, %117, %cst_104 {dimension_numbers = #tpu.dot_dimension_numbers<[1], [0], [0], [1], [0, 0, 1, 1], [], []>} : vector<16x64xbf16>, vector<64x128xbf16>, vector<16x128xf32> -> vector<16x128xf32>
    %149 = arith.truncf %148 : vector<16x128xf32> to vector<16x128xbf16>
    %c8_105 = arith.constant 8 : index
    %c0_106 = arith.constant 0 : index
    %c0_107 = arith.constant 0 : index
    %150 = vector.load %arg10[%c8_105, %c0_106, %c0_107] : memref<9x16x64xbf16, #tpu.memory_space<vmem>>, vector<1x16x64xbf16>
    %151 = vector.shape_cast %150 : vector<1x16x64xbf16> to vector<16x64xbf16>
    %cst_108 = arith.constant dense<0.000000e+00> : vector<16x128xf32>
    %152 = tpu.matmul %151, %117, %cst_108 {dimension_numbers = #tpu.dot_dimension_numbers<[1], [0], [0], [1], [0, 0, 1, 1], [], []>} : vector<16x64xbf16>, vector<64x128xbf16>, vector<16x128xf32> -> vector<16x128xf32>
    %153 = arith.truncf %152 : vector<16x128xf32> to vector<16x128xbf16>
    %154 = tpu.concatenate %121, %125, %129, %133, %137, %141, %145, %149, %153 in 1 : vector<16x128xbf16>, vector<16x128xbf16>, vector<16x128xbf16>, vector<16x128xbf16>, vector<16x128xbf16>, vector<16x128xbf16>, vector<16x128xbf16>, vector<16x128xbf16>, vector<16x128xbf16> -> vector<16x1152xbf16>
    %c0_109 = arith.constant 0 : index
    %c0_110 = arith.constant 0 : index
    %155 = vector.load %arg11[%c0_109, %c0_110] : memref<1152x256xbf16, #tpu.memory_space<vmem>>, vector<1152x256xbf16>
    %cst_111 = arith.constant dense<0.000000e+00> : vector<16x256xf32>
    %156 = tpu.matmul %154, %155, %cst_111 {dimension_numbers = #tpu.dot_dimension_numbers<[1], [0], [0], [1], [0, 0, 1, 1], [], []>} : vector<16x1152xbf16>, vector<1152x256xbf16>, vector<16x256xf32> -> vector<16x256xf32>
    %c0_112 = arith.constant 0 : index
    %c0_113 = arith.constant 0 : index
    %157 = vector.load %arg12[%c0_112, %c0_113] : memref<1x256xf32, #tpu.memory_space<vmem>>, vector<1x256xf32>
    %158 = vector.broadcast %157 : vector<1x256xf32> to vector<16x256xf32>
    %159 = arith.addf %156, %158 : vector<16x256xf32>
    %160 = vector.extract_strided_slice %159 {offsets = [0, 0], sizes = [16, 128], strides = [1, 1]} : vector<16x256xf32> to vector<16x128xf32>
    %cst_114 = arith.constant 0.000000e+00 : f32
    %161 = vector.broadcast %cst_114 : f32 to vector<16x128xf32>
    %162 = arith.maximumf %160, %161 : vector<16x128xf32>
    %163 = vector.extract_strided_slice %159 {offsets = [0, 128], sizes = [16, 128], strides = [1, 1]} : vector<16x256xf32> to vector<16x128xf32>
    %c0_115 = arith.constant 0 : index
    %c0_116 = arith.constant 0 : index
    %c0_117 = arith.constant 0 : index
    %164 = vector.load %arg13[%c0_115, %c0_116, %c0_117] : memref<9x16x1xf32, #tpu.memory_space<vmem>>, vector<1x16x1xf32>
    %165 = vector.shape_cast %164 : vector<1x16x1xf32> to vector<16x1xf32>
    %c5_i32 = arith.constant 5 : i32
    %166 = tpu.dynamic_rotate %162 by %c5_i32 dim 0 : vector<16x128xf32>, i32 -> vector<16x128xf32>
    %167 = vector.broadcast %165 : vector<16x1xf32> to vector<16x128xf32>
    %168 = arith.mulf %166, %167 : vector<16x128xf32>
    %169 = arith.truncf %168 : vector<16x128xf32> to vector<16x128xbf16>
    %c1_118 = arith.constant 1 : index
    %c0_119 = arith.constant 0 : index
    %c0_120 = arith.constant 0 : index
    %170 = vector.load %arg13[%c1_118, %c0_119, %c0_120] : memref<9x16x1xf32, #tpu.memory_space<vmem>>, vector<1x16x1xf32>
    %171 = vector.shape_cast %170 : vector<1x16x1xf32> to vector<16x1xf32>
    %c4_i32 = arith.constant 4 : i32
    %172 = tpu.dynamic_rotate %162 by %c4_i32 dim 0 : vector<16x128xf32>, i32 -> vector<16x128xf32>
    %173 = vector.broadcast %171 : vector<16x1xf32> to vector<16x128xf32>
    %174 = arith.mulf %172, %173 : vector<16x128xf32>
    %175 = arith.truncf %174 : vector<16x128xf32> to vector<16x128xbf16>
    %c2_121 = arith.constant 2 : index
    %c0_122 = arith.constant 0 : index
    %c0_123 = arith.constant 0 : index
    %176 = vector.load %arg13[%c2_121, %c0_122, %c0_123] : memref<9x16x1xf32, #tpu.memory_space<vmem>>, vector<1x16x1xf32>
    %177 = vector.shape_cast %176 : vector<1x16x1xf32> to vector<16x1xf32>
    %c3_i32 = arith.constant 3 : i32
    %178 = tpu.dynamic_rotate %162 by %c3_i32 dim 0 : vector<16x128xf32>, i32 -> vector<16x128xf32>
    %179 = vector.broadcast %177 : vector<16x1xf32> to vector<16x128xf32>
    %180 = arith.mulf %178, %179 : vector<16x128xf32>
    %181 = arith.truncf %180 : vector<16x128xf32> to vector<16x128xbf16>
    %c3_124 = arith.constant 3 : index
    %c0_125 = arith.constant 0 : index
    %c0_126 = arith.constant 0 : index
    %182 = vector.load %arg13[%c3_124, %c0_125, %c0_126] : memref<9x16x1xf32, #tpu.memory_space<vmem>>, vector<1x16x1xf32>
    %183 = vector.shape_cast %182 : vector<1x16x1xf32> to vector<16x1xf32>
    %c1_i32_127 = arith.constant 1 : i32
    %184 = tpu.dynamic_rotate %162 by %c1_i32_127 dim 0 : vector<16x128xf32>, i32 -> vector<16x128xf32>
    %185 = vector.broadcast %183 : vector<16x1xf32> to vector<16x128xf32>
    %186 = arith.mulf %184, %185 : vector<16x128xf32>
    %187 = arith.truncf %186 : vector<16x128xf32> to vector<16x128xbf16>
    %c4_128 = arith.constant 4 : index
    %c0_129 = arith.constant 0 : index
    %c0_130 = arith.constant 0 : index
    %188 = vector.load %arg13[%c4_128, %c0_129, %c0_130] : memref<9x16x1xf32, #tpu.memory_space<vmem>>, vector<1x16x1xf32>
    %189 = vector.shape_cast %188 : vector<1x16x1xf32> to vector<16x1xf32>
    %190 = vector.broadcast %189 : vector<16x1xf32> to vector<16x128xf32>
    %191 = arith.mulf %162, %190 : vector<16x128xf32>
    %192 = arith.truncf %191 : vector<16x128xf32> to vector<16x128xbf16>
    %c5_131 = arith.constant 5 : index
    %c0_132 = arith.constant 0 : index
    %c0_133 = arith.constant 0 : index
    %193 = vector.load %arg13[%c5_131, %c0_132, %c0_133] : memref<9x16x1xf32, #tpu.memory_space<vmem>>, vector<1x16x1xf32>
    %194 = vector.shape_cast %193 : vector<1x16x1xf32> to vector<16x1xf32>
    %c15_i32 = arith.constant 15 : i32
    %195 = tpu.dynamic_rotate %162 by %c15_i32 dim 0 : vector<16x128xf32>, i32 -> vector<16x128xf32>
    %196 = vector.broadcast %194 : vector<16x1xf32> to vector<16x128xf32>
    %197 = arith.mulf %195, %196 : vector<16x128xf32>
    %198 = arith.truncf %197 : vector<16x128xf32> to vector<16x128xbf16>
    %c6_134 = arith.constant 6 : index
    %c0_135 = arith.constant 0 : index
    %c0_136 = arith.constant 0 : index
    %199 = vector.load %arg13[%c6_134, %c0_135, %c0_136] : memref<9x16x1xf32, #tpu.memory_space<vmem>>, vector<1x16x1xf32>
    %200 = vector.shape_cast %199 : vector<1x16x1xf32> to vector<16x1xf32>
    %c13_i32 = arith.constant 13 : i32
    %201 = tpu.dynamic_rotate %162 by %c13_i32 dim 0 : vector<16x128xf32>, i32 -> vector<16x128xf32>
    %202 = vector.broadcast %200 : vector<16x1xf32> to vector<16x128xf32>
    %203 = arith.mulf %201, %202 : vector<16x128xf32>
    %204 = arith.truncf %203 : vector<16x128xf32> to vector<16x128xbf16>
    %c7_137 = arith.constant 7 : index
    %c0_138 = arith.constant 0 : index
    %c0_139 = arith.constant 0 : index
    %205 = vector.load %arg13[%c7_137, %c0_138, %c0_139] : memref<9x16x1xf32, #tpu.memory_space<vmem>>, vector<1x16x1xf32>
    %206 = vector.shape_cast %205 : vector<1x16x1xf32> to vector<16x1xf32>
    %c12_i32 = arith.constant 12 : i32
    %207 = tpu.dynamic_rotate %162 by %c12_i32 dim 0 : vector<16x128xf32>, i32 -> vector<16x128xf32>
    %208 = vector.broadcast %206 : vector<16x1xf32> to vector<16x128xf32>
    %209 = arith.mulf %207, %208 : vector<16x128xf32>
    %210 = arith.truncf %209 : vector<16x128xf32> to vector<16x128xbf16>
    %c8_140 = arith.constant 8 : index
    %c0_141 = arith.constant 0 : index
    %c0_142 = arith.constant 0 : index
    %211 = vector.load %arg13[%c8_140, %c0_141, %c0_142] : memref<9x16x1xf32, #tpu.memory_space<vmem>>, vector<1x16x1xf32>
    %212 = vector.shape_cast %211 : vector<1x16x1xf32> to vector<16x1xf32>
    %c11_i32 = arith.constant 11 : i32
    %213 = tpu.dynamic_rotate %162 by %c11_i32 dim 0 : vector<16x128xf32>, i32 -> vector<16x128xf32>
    %214 = vector.broadcast %212 : vector<16x1xf32> to vector<16x128xf32>
    %215 = arith.mulf %213, %214 : vector<16x128xf32>
    %216 = arith.truncf %215 : vector<16x128xf32> to vector<16x128xbf16>
    %217 = tpu.concatenate %169, %175, %181, %187, %192, %198, %204, %210, %216 in 1 : vector<16x128xbf16>, vector<16x128xbf16>, vector<16x128xbf16>, vector<16x128xbf16>, vector<16x128xbf16>, vector<16x128xbf16>, vector<16x128xbf16>, vector<16x128xbf16>, vector<16x128xbf16> -> vector<16x1152xbf16>
    %c0_143 = arith.constant 0 : index
    %c0_144 = arith.constant 0 : index
    %218 = vector.load %arg14[%c0_143, %c0_144] : memref<1152x128xbf16, #tpu.memory_space<vmem>>, vector<1152x128xbf16>
    %cst_145 = arith.constant dense<0.000000e+00> : vector<16x128xf32>
    %219 = tpu.matmul %217, %218, %cst_145 {dimension_numbers = #tpu.dot_dimension_numbers<[1], [0], [0], [1], [0, 0, 1, 1], [], []>} : vector<16x1152xbf16>, vector<1152x128xbf16>, vector<16x128xf32> -> vector<16x128xf32>
    %c0_146 = arith.constant 0 : index
    %c0_147 = arith.constant 0 : index
    %220 = vector.load %arg15[%c0_146, %c0_147] : memref<1x128xf32, #tpu.memory_space<vmem>>, vector<1x128xf32>
    %221 = vector.broadcast %220 : vector<1x128xf32> to vector<16x128xf32>
    %222 = arith.addf %219, %221 : vector<16x128xf32>
    %223 = arith.addf %222, %163 : vector<16x128xf32>
    %cst_148 = arith.constant 0.000000e+00 : f32
    %224 = vector.broadcast %cst_148 : f32 to vector<16x128xf32>
    %225 = arith.maximumf %223, %224 : vector<16x128xf32>
    %226 = arith.truncf %225 : vector<16x128xf32> to vector<16x128xbf16>
    %c0_149 = arith.constant 0 : index
    %c0_150 = arith.constant 0 : index
    %c0_151 = arith.constant 0 : index
    %227 = vector.load %arg16[%c0_149, %c0_150, %c0_151] : memref<9x8x16xbf16, #tpu.memory_space<vmem>>, vector<1x8x16xbf16>
    %228 = vector.shape_cast %227 : vector<1x8x16xbf16> to vector<8x16xbf16>
    %cst_152 = arith.constant dense<0.000000e+00> : vector<8x128xf32>
    %229 = tpu.matmul %228, %226, %cst_152 {dimension_numbers = #tpu.dot_dimension_numbers<[1], [0], [0], [1], [0, 0, 1, 1], [], []>} : vector<8x16xbf16>, vector<16x128xbf16>, vector<8x128xf32> -> vector<8x128xf32>
    %230 = arith.truncf %229 : vector<8x128xf32> to vector<8x128xbf16>
    %c1_153 = arith.constant 1 : index
    %c0_154 = arith.constant 0 : index
    %c0_155 = arith.constant 0 : index
    %231 = vector.load %arg16[%c1_153, %c0_154, %c0_155] : memref<9x8x16xbf16, #tpu.memory_space<vmem>>, vector<1x8x16xbf16>
    %232 = vector.shape_cast %231 : vector<1x8x16xbf16> to vector<8x16xbf16>
    %cst_156 = arith.constant dense<0.000000e+00> : vector<8x128xf32>
    %233 = tpu.matmul %232, %226, %cst_156 {dimension_numbers = #tpu.dot_dimension_numbers<[1], [0], [0], [1], [0, 0, 1, 1], [], []>} : vector<8x16xbf16>, vector<16x128xbf16>, vector<8x128xf32> -> vector<8x128xf32>
    %234 = arith.truncf %233 : vector<8x128xf32> to vector<8x128xbf16>
    %c2_157 = arith.constant 2 : index
    %c0_158 = arith.constant 0 : index
    %c0_159 = arith.constant 0 : index
    %235 = vector.load %arg16[%c2_157, %c0_158, %c0_159] : memref<9x8x16xbf16, #tpu.memory_space<vmem>>, vector<1x8x16xbf16>
    %236 = vector.shape_cast %235 : vector<1x8x16xbf16> to vector<8x16xbf16>
    %cst_160 = arith.constant dense<0.000000e+00> : vector<8x128xf32>
    %237 = tpu.matmul %236, %226, %cst_160 {dimension_numbers = #tpu.dot_dimension_numbers<[1], [0], [0], [1], [0, 0, 1, 1], [], []>} : vector<8x16xbf16>, vector<16x128xbf16>, vector<8x128xf32> -> vector<8x128xf32>
    %238 = arith.truncf %237 : vector<8x128xf32> to vector<8x128xbf16>
    %c3_161 = arith.constant 3 : index
    %c0_162 = arith.constant 0 : index
    %c0_163 = arith.constant 0 : index
    %239 = vector.load %arg16[%c3_161, %c0_162, %c0_163] : memref<9x8x16xbf16, #tpu.memory_space<vmem>>, vector<1x8x16xbf16>
    %240 = vector.shape_cast %239 : vector<1x8x16xbf16> to vector<8x16xbf16>
    %cst_164 = arith.constant dense<0.000000e+00> : vector<8x128xf32>
    %241 = tpu.matmul %240, %226, %cst_164 {dimension_numbers = #tpu.dot_dimension_numbers<[1], [0], [0], [1], [0, 0, 1, 1], [], []>} : vector<8x16xbf16>, vector<16x128xbf16>, vector<8x128xf32> -> vector<8x128xf32>
    %242 = arith.truncf %241 : vector<8x128xf32> to vector<8x128xbf16>
    %c4_165 = arith.constant 4 : index
    %c0_166 = arith.constant 0 : index
    %c0_167 = arith.constant 0 : index
    %243 = vector.load %arg16[%c4_165, %c0_166, %c0_167] : memref<9x8x16xbf16, #tpu.memory_space<vmem>>, vector<1x8x16xbf16>
    %244 = vector.shape_cast %243 : vector<1x8x16xbf16> to vector<8x16xbf16>
    %cst_168 = arith.constant dense<0.000000e+00> : vector<8x128xf32>
    %245 = tpu.matmul %244, %226, %cst_168 {dimension_numbers = #tpu.dot_dimension_numbers<[1], [0], [0], [1], [0, 0, 1, 1], [], []>} : vector<8x16xbf16>, vector<16x128xbf16>, vector<8x128xf32> -> vector<8x128xf32>
    %246 = arith.truncf %245 : vector<8x128xf32> to vector<8x128xbf16>
    %c5_169 = arith.constant 5 : index
    %c0_170 = arith.constant 0 : index
    %c0_171 = arith.constant 0 : index
    %247 = vector.load %arg16[%c5_169, %c0_170, %c0_171] : memref<9x8x16xbf16, #tpu.memory_space<vmem>>, vector<1x8x16xbf16>
    %248 = vector.shape_cast %247 : vector<1x8x16xbf16> to vector<8x16xbf16>
    %cst_172 = arith.constant dense<0.000000e+00> : vector<8x128xf32>
    %249 = tpu.matmul %248, %226, %cst_172 {dimension_numbers = #tpu.dot_dimension_numbers<[1], [0], [0], [1], [0, 0, 1, 1], [], []>} : vector<8x16xbf16>, vector<16x128xbf16>, vector<8x128xf32> -> vector<8x128xf32>
    %250 = arith.truncf %249 : vector<8x128xf32> to vector<8x128xbf16>
    %c6_173 = arith.constant 6 : index
    %c0_174 = arith.constant 0 : index
    %c0_175 = arith.constant 0 : index
    %251 = vector.load %arg16[%c6_173, %c0_174, %c0_175] : memref<9x8x16xbf16, #tpu.memory_space<vmem>>, vector<1x8x16xbf16>
    %252 = vector.shape_cast %251 : vector<1x8x16xbf16> to vector<8x16xbf16>
    %cst_176 = arith.constant dense<0.000000e+00> : vector<8x128xf32>
    %253 = tpu.matmul %252, %226, %cst_176 {dimension_numbers = #tpu.dot_dimension_numbers<[1], [0], [0], [1], [0, 0, 1, 1], [], []>} : vector<8x16xbf16>, vector<16x128xbf16>, vector<8x128xf32> -> vector<8x128xf32>
    %254 = arith.truncf %253 : vector<8x128xf32> to vector<8x128xbf16>
    %c7_177 = arith.constant 7 : index
    %c0_178 = arith.constant 0 : index
    %c0_179 = arith.constant 0 : index
    %255 = vector.load %arg16[%c7_177, %c0_178, %c0_179] : memref<9x8x16xbf16, #tpu.memory_space<vmem>>, vector<1x8x16xbf16>
    %256 = vector.shape_cast %255 : vector<1x8x16xbf16> to vector<8x16xbf16>
    %cst_180 = arith.constant dense<0.000000e+00> : vector<8x128xf32>
    %257 = tpu.matmul %256, %226, %cst_180 {dimension_numbers = #tpu.dot_dimension_numbers<[1], [0], [0], [1], [0, 0, 1, 1], [], []>} : vector<8x16xbf16>, vector<16x128xbf16>, vector<8x128xf32> -> vector<8x128xf32>
    %258 = arith.truncf %257 : vector<8x128xf32> to vector<8x128xbf16>
    %c8_181 = arith.constant 8 : index
    %c0_182 = arith.constant 0 : index
    %c0_183 = arith.constant 0 : index
    %259 = vector.load %arg16[%c8_181, %c0_182, %c0_183] : memref<9x8x16xbf16, #tpu.memory_space<vmem>>, vector<1x8x16xbf16>
    %260 = vector.shape_cast %259 : vector<1x8x16xbf16> to vector<8x16xbf16>
    %cst_184 = arith.constant dense<0.000000e+00> : vector<8x128xf32>
    %261 = tpu.matmul %260, %226, %cst_184 {dimension_numbers = #tpu.dot_dimension_numbers<[1], [0], [0], [1], [0, 0, 1, 1], [], []>} : vector<8x16xbf16>, vector<16x128xbf16>, vector<8x128xf32> -> vector<8x128xf32>
    %262 = arith.truncf %261 : vector<8x128xf32> to vector<8x128xbf16>
    %263 = tpu.concatenate %230, %234, %238, %242, %246, %250, %254, %258, %262 in 1 : vector<8x128xbf16>, vector<8x128xbf16>, vector<8x128xbf16>, vector<8x128xbf16>, vector<8x128xbf16>, vector<8x128xbf16>, vector<8x128xbf16>, vector<8x128xbf16>, vector<8x128xbf16> -> vector<8x1152xbf16>
    %c0_185 = arith.constant 0 : index
    %c0_186 = arith.constant 0 : index
    %264 = vector.load %arg17[%c0_185, %c0_186] : memref<1152x512xbf16, #tpu.memory_space<vmem>>, vector<1152x512xbf16>
    %cst_187 = arith.constant dense<0.000000e+00> : vector<8x512xf32>
    %265 = tpu.matmul %263, %264, %cst_187 {dimension_numbers = #tpu.dot_dimension_numbers<[1], [0], [0], [1], [0, 0, 1, 1], [], []>} : vector<8x1152xbf16>, vector<1152x512xbf16>, vector<8x512xf32> -> vector<8x512xf32>
    %c0_188 = arith.constant 0 : index
    %c0_189 = arith.constant 0 : index
    %266 = vector.load %arg18[%c0_188, %c0_189] : memref<1x512xf32, #tpu.memory_space<vmem>>, vector<1x512xf32>
    %267 = vector.broadcast %266 : vector<1x512xf32> to vector<8x512xf32>
    %268 = arith.addf %265, %267 : vector<8x512xf32>
    %269 = vector.extract_strided_slice %268 {offsets = [0, 0], sizes = [8, 256], strides = [1, 1]} : vector<8x512xf32> to vector<8x256xf32>
    %cst_190 = arith.constant 0.000000e+00 : f32
    %270 = vector.broadcast %cst_190 : f32 to vector<8x256xf32>
    %271 = arith.maximumf %269, %270 : vector<8x256xf32>
    %272 = vector.extract_strided_slice %268 {offsets = [0, 256], sizes = [8, 256], strides = [1, 1]} : vector<8x512xf32> to vector<8x256xf32>
    %c0_191 = arith.constant 0 : index
    %c0_192 = arith.constant 0 : index
    %c0_193 = arith.constant 0 : index
    %273 = vector.load %arg19[%c0_191, %c0_192, %c0_193] : memref<9x8x1xf32, #tpu.memory_space<vmem>>, vector<1x8x1xf32>
    %274 = vector.shape_cast %273 : vector<1x8x1xf32> to vector<8x1xf32>
    %c3_i32_194 = arith.constant 3 : i32
    %275 = tpu.dynamic_rotate %271 by %c3_i32_194 dim 0 : vector<8x256xf32>, i32 -> vector<8x256xf32>
    %276 = vector.broadcast %274 : vector<8x1xf32> to vector<8x256xf32>
    %277 = arith.mulf %275, %276 : vector<8x256xf32>
    %278 = arith.truncf %277 : vector<8x256xf32> to vector<8x256xbf16>
    %c1_195 = arith.constant 1 : index
    %c0_196 = arith.constant 0 : index
    %c0_197 = arith.constant 0 : index
    %279 = vector.load %arg19[%c1_195, %c0_196, %c0_197] : memref<9x8x1xf32, #tpu.memory_space<vmem>>, vector<1x8x1xf32>
    %280 = vector.shape_cast %279 : vector<1x8x1xf32> to vector<8x1xf32>
    %c2_i32 = arith.constant 2 : i32
    %281 = tpu.dynamic_rotate %271 by %c2_i32 dim 0 : vector<8x256xf32>, i32 -> vector<8x256xf32>
    %282 = vector.broadcast %280 : vector<8x1xf32> to vector<8x256xf32>
    %283 = arith.mulf %281, %282 : vector<8x256xf32>
    %284 = arith.truncf %283 : vector<8x256xf32> to vector<8x256xbf16>
    %c2_198 = arith.constant 2 : index
    %c0_199 = arith.constant 0 : index
    %c0_200 = arith.constant 0 : index
    %285 = vector.load %arg19[%c2_198, %c0_199, %c0_200] : memref<9x8x1xf32, #tpu.memory_space<vmem>>, vector<1x8x1xf32>
    %286 = vector.shape_cast %285 : vector<1x8x1xf32> to vector<8x1xf32>
    %c1_i32_201 = arith.constant 1 : i32
    %287 = tpu.dynamic_rotate %271 by %c1_i32_201 dim 0 : vector<8x256xf32>, i32 -> vector<8x256xf32>
    %288 = vector.broadcast %286 : vector<8x1xf32> to vector<8x256xf32>
    %289 = arith.mulf %287, %288 : vector<8x256xf32>
    %290 = arith.truncf %289 : vector<8x256xf32> to vector<8x256xbf16>
    %c3_202 = arith.constant 3 : index
    %c0_203 = arith.constant 0 : index
    %c0_204 = arith.constant 0 : index
    %291 = vector.load %arg19[%c3_202, %c0_203, %c0_204] : memref<9x8x1xf32, #tpu.memory_space<vmem>>, vector<1x8x1xf32>
    %292 = vector.shape_cast %291 : vector<1x8x1xf32> to vector<8x1xf32>
    %c1_i32_205 = arith.constant 1 : i32
    %293 = tpu.dynamic_rotate %271 by %c1_i32_205 dim 0 : vector<8x256xf32>, i32 -> vector<8x256xf32>
    %294 = vector.broadcast %292 : vector<8x1xf32> to vector<8x256xf32>
    %295 = arith.mulf %293, %294 : vector<8x256xf32>
    %296 = arith.truncf %295 : vector<8x256xf32> to vector<8x256xbf16>
    %c4_206 = arith.constant 4 : index
    %c0_207 = arith.constant 0 : index
    %c0_208 = arith.constant 0 : index
    %297 = vector.load %arg19[%c4_206, %c0_207, %c0_208] : memref<9x8x1xf32, #tpu.memory_space<vmem>>, vector<1x8x1xf32>
    %298 = vector.shape_cast %297 : vector<1x8x1xf32> to vector<8x1xf32>
    %299 = vector.broadcast %298 : vector<8x1xf32> to vector<8x256xf32>
    %300 = arith.mulf %271, %299 : vector<8x256xf32>
    %301 = arith.truncf %300 : vector<8x256xf32> to vector<8x256xbf16>
    %c5_209 = arith.constant 5 : index
    %c0_210 = arith.constant 0 : index
    %c0_211 = arith.constant 0 : index
    %302 = vector.load %arg19[%c5_209, %c0_210, %c0_211] : memref<9x8x1xf32, #tpu.memory_space<vmem>>, vector<1x8x1xf32>
    %303 = vector.shape_cast %302 : vector<1x8x1xf32> to vector<8x1xf32>
    %c7_i32_212 = arith.constant 7 : i32
    %304 = tpu.dynamic_rotate %271 by %c7_i32_212 dim 0 : vector<8x256xf32>, i32 -> vector<8x256xf32>
    %305 = vector.broadcast %303 : vector<8x1xf32> to vector<8x256xf32>
    %306 = arith.mulf %304, %305 : vector<8x256xf32>
    %307 = arith.truncf %306 : vector<8x256xf32> to vector<8x256xbf16>
    %c6_213 = arith.constant 6 : index
    %c0_214 = arith.constant 0 : index
    %c0_215 = arith.constant 0 : index
    %308 = vector.load %arg19[%c6_213, %c0_214, %c0_215] : memref<9x8x1xf32, #tpu.memory_space<vmem>>, vector<1x8x1xf32>
    %309 = vector.shape_cast %308 : vector<1x8x1xf32> to vector<8x1xf32>
    %c7_i32_216 = arith.constant 7 : i32
    %310 = tpu.dynamic_rotate %271 by %c7_i32_216 dim 0 : vector<8x256xf32>, i32 -> vector<8x256xf32>
    %311 = vector.broadcast %309 : vector<8x1xf32> to vector<8x256xf32>
    %312 = arith.mulf %310, %311 : vector<8x256xf32>
    %313 = arith.truncf %312 : vector<8x256xf32> to vector<8x256xbf16>
    %c7_217 = arith.constant 7 : index
    %c0_218 = arith.constant 0 : index
    %c0_219 = arith.constant 0 : index
    %314 = vector.load %arg19[%c7_217, %c0_218, %c0_219] : memref<9x8x1xf32, #tpu.memory_space<vmem>>, vector<1x8x1xf32>
    %315 = vector.shape_cast %314 : vector<1x8x1xf32> to vector<8x1xf32>
    %c6_i32 = arith.constant 6 : i32
    %316 = tpu.dynamic_rotate %271 by %c6_i32 dim 0 : vector<8x256xf32>, i32 -> vector<8x256xf32>
    %317 = vector.broadcast %315 : vector<8x1xf32> to vector<8x256xf32>
    %318 = arith.mulf %316, %317 : vector<8x256xf32>
    %319 = arith.truncf %318 : vector<8x256xf32> to vector<8x256xbf16>
    %c8_220 = arith.constant 8 : index
    %c0_221 = arith.constant 0 : index
    %c0_222 = arith.constant 0 : index
    %320 = vector.load %arg19[%c8_220, %c0_221, %c0_222] : memref<9x8x1xf32, #tpu.memory_space<vmem>>, vector<1x8x1xf32>
    %321 = vector.shape_cast %320 : vector<1x8x1xf32> to vector<8x1xf32>
    %c5_i32_223 = arith.constant 5 : i32
    %322 = tpu.dynamic_rotate %271 by %c5_i32_223 dim 0 : vector<8x256xf32>, i32 -> vector<8x256xf32>
    %323 = vector.broadcast %321 : vector<8x1xf32> to vector<8x256xf32>
    %324 = arith.mulf %322, %323 : vector<8x256xf32>
    %325 = arith.truncf %324 : vector<8x256xf32> to vector<8x256xbf16>
    %326 = tpu.concatenate %278, %284, %290, %296, %301, %307, %313, %319, %325 in 1 : vector<8x256xbf16>, vector<8x256xbf16>, vector<8x256xbf16>, vector<8x256xbf16>, vector<8x256xbf16>, vector<8x256xbf16>, vector<8x256xbf16>, vector<8x256xbf16>, vector<8x256xbf16> -> vector<8x2304xbf16>
    %c0_224 = arith.constant 0 : index
    %c0_225 = arith.constant 0 : index
    %327 = vector.load %arg20[%c0_224, %c0_225] : memref<2304x256xbf16, #tpu.memory_space<vmem>>, vector<2304x256xbf16>
    %cst_226 = arith.constant dense<0.000000e+00> : vector<8x256xf32>
    %328 = tpu.matmul %326, %327, %cst_226 {dimension_numbers = #tpu.dot_dimension_numbers<[1], [0], [0], [1], [0, 0, 1, 1], [], []>} : vector<8x2304xbf16>, vector<2304x256xbf16>, vector<8x256xf32> -> vector<8x256xf32>
    %c0_227 = arith.constant 0 : index
    %c0_228 = arith.constant 0 : index
    %329 = vector.load %arg21[%c0_227, %c0_228] : memref<1x256xf32, #tpu.memory_space<vmem>>, vector<1x256xf32>
    %330 = vector.broadcast %329 : vector<1x256xf32> to vector<8x256xf32>
    %331 = arith.addf %328, %330 : vector<8x256xf32>
    %332 = arith.addf %331, %272 : vector<8x256xf32>
    %cst_229 = arith.constant 0.000000e+00 : f32
    %333 = vector.broadcast %cst_229 : f32 to vector<8x256xf32>
    %334 = arith.maximumf %332, %333 : vector<8x256xf32>
    %335 = vector.extract_strided_slice %334 {offsets = [0, 0], sizes = [4, 256], strides = [1, 1]} : vector<8x256xf32> to vector<4x256xf32>
    %cst_230 = arith.constant dense<0.000000e+00> : vector<256xf32>
    %336 = vector.multi_reduction <add>, %335, %cst_230 [0] : vector<4x256xf32> to vector<256xf32>
    %337 = vector.shape_cast %336 : vector<256xf32> to vector<1x256xf32>
    %cst_231 = arith.constant 2.500000e-01 : f32
    %338 = vector.broadcast %cst_231 : f32 to vector<1x256xf32>
    %339 = arith.mulf %337, %338 : vector<1x256xf32>
    %cst_232 = arith.constant 0.000000e+00 : f32
    %340 = vector.broadcast %cst_232 : f32 to vector<7x256xf32>
    %341 = tpu.concatenate %339, %340 in 0 : vector<1x256xf32>, vector<7x256xf32> -> vector<8x256xf32>
    %342 = arith.truncf %341 : vector<8x256xf32> to vector<8x256xbf16>
    %c0_233 = arith.constant 0 : index
    %c0_234 = arith.constant 0 : index
    %343 = vector.load %arg22[%c0_233, %c0_234] : memref<256x128xbf16, #tpu.memory_space<vmem>>, vector<256x128xbf16>
    %cst_235 = arith.constant dense<0.000000e+00> : vector<8x128xf32>
    %344 = tpu.matmul %342, %343, %cst_235 {dimension_numbers = #tpu.dot_dimension_numbers<[1], [0], [0], [1], [0, 0, 1, 1], [], []>} : vector<8x256xbf16>, vector<256x128xbf16>, vector<8x128xf32> -> vector<8x128xf32>
    %c0_236 = arith.constant 0 : index
    %c0_237 = arith.constant 0 : index
    %345 = vector.load %arg23[%c0_236, %c0_237] : memref<1x128xf32, #tpu.memory_space<vmem>>, vector<1x128xf32>
    %346 = vector.broadcast %345 : vector<1x128xf32> to vector<8x128xf32>
    %347 = arith.addf %344, %346 : vector<8x128xf32>
    %348 = vector.extract_strided_slice %347 {offsets = [0, 0], sizes = [1, 128], strides = [1, 1]} : vector<8x128xf32> to vector<1x128xf32>
    %c0_238 = arith.constant 0 : index
    %c0_239 = arith.constant 0 : index
    %c0_240 = arith.constant 0 : index
    %349 = vector.load %arg24[%c0_238, %c0_239, %c0_240] : memref<1x1x128xf32, #tpu.memory_space<vmem>>, vector<1x1x128xf32>
    %350 = vector.shape_cast %349 : vector<1x1x128xf32> to vector<1x128xf32>
    %351 = vector.shape_cast %348 : vector<1x128xf32> to vector<1x1x128xf32>
    tpu.vector_store %arg24[%c0_238, %c0_239, %c0_240], %351 {strides = array<i32>} : memref<1x1x128xf32, #tpu.memory_space<vmem>>, vector<1x1x128xf32>,
    return
  }
  func.func @transform_0(%arg0: i32) -> (i32, i32) {
    %c0_i32 = arith.constant 0 : i32
    %c0_i32_0 = arith.constant 0 : i32
    return %arg0, %c0_i32 : i32, i32
  }
  func.func @transform_1(%arg0: i32) -> (i32, i32) {
    %c0_i32 = arith.constant 0 : i32
    %c0_i32_0 = arith.constant 0 : i32
    %c0_i32_1 = arith.constant 0 : i32
    return %c0_i32, %c0_i32_0 : i32, i32
  }
  func.func @transform_2(%arg0: i32) -> (i32, i32) {
    %c0_i32 = arith.constant 0 : i32
    %c0_i32_0 = arith.constant 0 : i32
    %c0_i32_1 = arith.constant 0 : i32
    return %c0_i32, %c0_i32_0 : i32, i32
  }
  func.func @transform_3(%arg0: i32) -> (i32, i32, i32) {
    %c0_i32 = arith.constant 0 : i32
    %c0_i32_0 = arith.constant 0 : i32
    %c0_i32_1 = arith.constant 0 : i32
    %c0_i32_2 = arith.constant 0 : i32
    return %c0_i32, %c0_i32_0, %c0_i32_1 : i32, i32, i32
  }
  func.func @transform_4(%arg0: i32) -> (i32, i32) {
    %c0_i32 = arith.constant 0 : i32
    %c0_i32_0 = arith.constant 0 : i32
    %c0_i32_1 = arith.constant 0 : i32
    return %c0_i32, %c0_i32_0 : i32, i32
  }
  func.func @transform_5(%arg0: i32) -> (i32, i32) {
    %c0_i32 = arith.constant 0 : i32
    %c0_i32_0 = arith.constant 0 : i32
    %c0_i32_1 = arith.constant 0 : i32
    return %c0_i32, %c0_i32_0 : i32, i32
  }
  func.func @transform_6(%arg0: i32) -> (i32, i32, i32) {
    %c0_i32 = arith.constant 0 : i32
    %c0_i32_0 = arith.constant 0 : i32
    %c0_i32_1 = arith.constant 0 : i32
    %c0_i32_2 = arith.constant 0 : i32
    return %c0_i32, %c0_i32_0, %c0_i32_1 : i32, i32, i32
  }
  func.func @transform_7(%arg0: i32) -> (i32, i32) {
    %c0_i32 = arith.constant 0 : i32
    %c0_i32_0 = arith.constant 0 : i32
    %c0_i32_1 = arith.constant 0 : i32
    return %c0_i32, %c0_i32_0 : i32, i32
  }
  func.func @transform_8(%arg0: i32) -> (i32, i32) {
    %c0_i32 = arith.constant 0 : i32
    %c0_i32_0 = arith.constant 0 : i32
    %c0_i32_1 = arith.constant 0 : i32
    return %c0_i32, %c0_i32_0 : i32, i32
  }
  func.func @transform_9(%arg0: i32) -> (i32, i32, i32) {
    %c0_i32 = arith.constant 0 : i32
    %c0_i32_0 = arith.constant 0 : i32
    %c0_i32_1 = arith.constant 0 : i32
    %c0_i32_2 = arith.constant 0 : i32
    return %c0_i32, %c0_i32_0, %c0_i32_1 : i32, i32, i32
  }
  func.func @transform_10(%arg0: i32) -> (i32, i32) {
    %c0_i32 = arith.constant 0 : i32
    %c0_i32_0 = arith.constant 0 : i32
    %c0_i32_1 = arith.constant 0 : i32
    return %c0_i32, %c0_i32_0 : i32, i32
  }
  func.func @transform_11(%arg0: i32) -> (i32, i32) {
    %c0_i32 = arith.constant 0 : i32
    %c0_i32_0 = arith.constant 0 : i32
    %c0_i32_1 = arith.constant 0 : i32
    return %c0_i32, %c0_i32_0 : i32, i32
  }
  func.func @transform_12(%arg0: i32) -> (i32, i32, i32) {
    %c0_i32 = arith.constant 0 : i32
    %c0_i32_0 = arith.constant 0 : i32
    %c0_i32_1 = arith.constant 0 : i32
    %c0_i32_2 = arith.constant 0 : i32
    return %c0_i32, %c0_i32_0, %c0_i32_1 : i32, i32, i32
  }
  func.func @transform_13(%arg0: i32) -> (i32, i32) {
    %c0_i32 = arith.constant 0 : i32
    %c0_i32_0 = arith.constant 0 : i32
    %c0_i32_1 = arith.constant 0 : i32
    return %c0_i32, %c0_i32_0 : i32, i32
  }
  func.func @transform_14(%arg0: i32) -> (i32, i32) {
    %c0_i32 = arith.constant 0 : i32
    %c0_i32_0 = arith.constant 0 : i32
    %c0_i32_1 = arith.constant 0 : i32
    return %c0_i32, %c0_i32_0 : i32, i32
  }
  func.func @transform_15(%arg0: i32) -> (i32, i32, i32) {
    %c0_i32 = arith.constant 0 : i32
    %c0_i32_0 = arith.constant 0 : i32
    %c0_i32_1 = arith.constant 0 : i32
    %c0_i32_2 = arith.constant 0 : i32
    return %c0_i32, %c0_i32_0, %c0_i32_1 : i32, i32, i32
  }
  func.func @transform_16(%arg0: i32) -> (i32, i32) {
    %c0_i32 = arith.constant 0 : i32
    %c0_i32_0 = arith.constant 0 : i32
    %c0_i32_1 = arith.constant 0 : i32
    return %c0_i32, %c0_i32_0 : i32, i32
  }
  func.func @transform_17(%arg0: i32) -> (i32, i32) {
    %c0_i32 = arith.constant 0 : i32
    %c0_i32_0 = arith.constant 0 : i32
    %c0_i32_1 = arith.constant 0 : i32
    return %c0_i32, %c0_i32_0 : i32, i32
  }
  func.func @transform_18(%arg0: i32) -> (i32, i32, i32) {
    %c0_i32 = arith.constant 0 : i32
    %c0_i32_0 = arith.constant 0 : i32
    %c0_i32_1 = arith.constant 0 : i32
    %c0_i32_2 = arith.constant 0 : i32
    return %c0_i32, %c0_i32_0, %c0_i32_1 : i32, i32, i32
  }
  func.func @transform_19(%arg0: i32) -> (i32, i32) {
    %c0_i32 = arith.constant 0 : i32
    %c0_i32_0 = arith.constant 0 : i32
    %c0_i32_1 = arith.constant 0 : i32
    return %c0_i32, %c0_i32_0 : i32, i32
  }
  func.func @transform_20(%arg0: i32) -> (i32, i32) {
    %c0_i32 = arith.constant 0 : i32
    %c0_i32_0 = arith.constant 0 : i32
    %c0_i32_1 = arith.constant 0 : i32
    return %c0_i32, %c0_i32_0 : i32, i32
  }
  func.func @transform_21(%arg0: i32) -> (i32, i32) {
    %c0_i32 = arith.constant 0 : i32
    %c0_i32_0 = arith.constant 0 : i32
    %c0_i32_1 = arith.constant 0 : i32
    return %c0_i32, %c0_i32_0 : i32, i32
  }
  func.func @transform_22(%arg0: i32) -> (i32, i32) {
    %c0_i32 = arith.constant 0 : i32
    %c0_i32_0 = arith.constant 0 : i32
    %c0_i32_1 = arith.constant 0 : i32
    return %c0_i32, %c0_i32_0 : i32, i32
  }
  func.func @transform_23(%arg0: i32) -> (i32, i32, i32) {
    %c0_i32 = arith.constant 0 : i32
    %c0_i32_0 = arith.constant 0 : i32
    %c0_i32_1 = arith.constant 0 : i32
    return %arg0, %c0_i32, %c0_i32_0 : i32, i32, i32
  }
}

</mosaic_0001>

<bundles_post_ra>
// kernel: forward.1
= control target key start
LH: loop header
LB: loop body
LE: loop exit
PB: predicated region body
PF: predicated region fallthrough
CT: control target
= control target key end

     0   :  { %s20933_s0 = inlined_call_operand.vmem [shape: bf16[512,128], index: 0, kind: input, shape index: {}]   ;;  %s20934_s1 = inlined_call_operand.hbm [shape: bf16[128,128], index: 1, kind: input, shape index: {}]   ;;  %s20935_s2 = inlined_call_operand.vmem [shape: f32[1,128], index: 2, kind: input, shape index: {}]   ;;  %s20936_s3 = inlined_call_operand.vmem [shape: bf16[9,64,256], index: 3, kind: input, shape index: {}]   ;;  %s20937_s4 = inlined_call_operand.hbm [shape: bf16[1152,256], index: 4, kind: input, shape index: {}]   ;;  %s20938_s5 = inlined_call_operand.hbm [shape: f32[1,256], index: 5, kind: input, shape index: {}]   ;;  %s20939_s6 = inlined_call_operand.vmem [shape: f32[9,64,1], index: 6, kind: input, shape index: {}]   ;;  %s20940_s7 = inlined_call_operand.hbm [shape: bf16[1152,128], index: 7, kind: input, shape index: {}]   ;;  %s20941_s8 = inlined_call_operand.hbm [shape: f32[1,128], index: 8, kind: input, shape index: {}]   ;;  %s20942_s9 = inlined_call_operand.vmem [shape: bf16[9,16,64], index: 9, kind: input, shape index: {}]   ;;  %s20943_s10 = inlined_call_operand.hbm [shape: bf16[1152,256], index: 10, kind: input, shape index: {}]   ;;  %s20944_s11 = inlined_call_operand.hbm [shape: f32[1,256], index: 11, kind: input, shape index: {}]   ;;  %s20945_s12 = inlined_call_operand.vmem [shape: f32[9,16,1], index: 12, kind: input, shape index: {}]   ;;  %s20946_s13 = inlined_call_operand.hbm [shape: bf16[1152,128], index: 13, kind: input, shape index: {}]   ;;  %s20947_s14 = inlined_call_operand.hbm [shape: f32[1,128], index: 14, kind: input, shape index: {}]   ;;  %s20948_s15 = inlined_call_operand.vmem [shape: bf16[9,8,16], index: 15, kind: input, shape index: {}]   ;;  %s20949_s16 = inlined_call_operand.vmem [shape: bf16[1152,512], index: 16, kind: input, shape index: {}]   ;;  %s20950_s17 = inlined_call_operand.vmem [shape: f32[1,512], index: 17, kind: input, shape index: {}]   ;;  %s20951_s18 = inlined_call_operand.vmem [shape: f32[9,8,1], index: 18, kind: input, shape index: {}]   ;;  %s20952_s19 = inlined_call_operand.hbm [shape: bf16[2304,256], index: 19, kind: input, shape index: {}]   ;;  %s20953_s20 = inlined_call_operand.hbm [shape: f32[1,256], index: 20, kind: input, shape index: {}]   ;;  %s20954_s21 = inlined_call_operand.vmem [shape: bf16[256,128], index: 21, kind: input, shape index: {}]   ;;  %s20955_s22 = inlined_call_operand.hbm [shape: f32[1,128], index: 22, kind: input, shape index: {}]   ;;  %s20956_s23 = inlined_call_operand.hbm [shape: f32[2,1,128], index: 23, kind: output, shape index: {}]  }
   0x1   :  { %20998 = sst [smem:[#allocation109_spill]] %s20933_s0 }
   0x2   :  { %20999 = sst [smem:[#allocation110_spill]] %s20934_s1 }
   0x3   :  { %21000 = sst [smem:[#allocation111_spill]] %s20935_s2 }
   0x4   :  { %21001 = sst [smem:[#allocation112_spill]] %s20936_s3 }
   0x5   :  { %21002 = sst [smem:[#allocation113_spill]] %s20937_s4 }
   0x6   :  { %21003 = sst [smem:[#allocation114_spill]] %s20938_s5 }
   0x7   :  { %21004 = sst [smem:[#allocation115_spill]] %s20939_s6 }
   0x8   :  { %21005 = sst [smem:[#allocation116_spill]] %s20940_s7 }
   0x9   :  { %21006 = sst [smem:[#allocation117_spill]] %s20956_s23 }
   0xa   :  { %28 = vsyncpa [#allocation3], 0 }
   0xb   :  { %29 = vsyncpa [#allocation6], 0 }
   0xc   :  { %30 = vsyncpa [#allocation9], 0 }
   0xd   :  { %31 = vsyncpa [#allocation12], 0 }
   0xe   :  { %32 = vsyncpa [#allocation15], 0 }
   0xf   :  { %33 = vsyncpa [#allocation18], 0 }
  0x10   :  { %34 = vsyncpa [#allocation21], 0 }
  0x11   :  { %35 = vsyncpa [#allocation4], 0 }
  0x12   :  { %37 = vsyncpa [#allocation4 + $0x1], 0  ;;  %s17481_s4 = smov 0   ;;  %s17483_s30 = smov 0  }
  0x13   :  { %s17485_s24 = smov 0   ;;  %s17487_s25 = smov 0  }
  0x14 LB: > { %21007 = sst [smem:[#allocation31_spill]] %s17327_s4  ;;  %s17502_s5 = sadd.s32 4294967295, %s17339_s25   ;;  %s17339_s25 = sphi %s17487_s25, %s21252_s25   ;;  %s17335_s24 = sphi %s17485_s24, %s21255_s24   ;;  %s17331_s30 = sphi %s17483_s30, %s21254_s30   ;;  %s17327_s4 = sphi %s17481_s4, %s21253_s4  }
  0x15   : > { %21008 = sst [smem:[#allocation32_spill]] %s17331_s30  ;;  %s12815_s1 = sadd.s32 4294967294, %s17339_s25  }
  0x16   : > { %21009 = sst [smem:[#allocation33_spill]] %s17335_s24  ;;  %s17506_s26 = sadd.s32 1, %s17339_s25  }
  0x17   : > { %21010 = sst [smem:[#allocation34_spill]] %s17339_s25  ;;  %s538_s2 = sadd.s32 1, %s17335_s24 }
  0x18   : > { %21011 = sst [smem:[#allocation35_spill]] %s17506_s26  ;;  %s535_s6 = ssub.s32 %s17339_s25, %s17506_s26 }
  0x19   : > { %p548_p0 = scmp.ne.s32.totalorder %s17335_s24, %s17331_s30  ;;  %p536_p1 = scmp.eq.s32.totalorder %s535_s6, 0 }
  0x1a   : > { %p549_p2 = scmp.eq.s32.totalorder %s17502_s5, 1  ;;  %p554_p3 = scmp.ne.s32.totalorder %s17331_s30, %s17327_s4 }
  0x1b   : > { %p555_p4 = scmp.eq.s32.totalorder %s12815_s1, 1  ;;  %p12816_p7 = scmp.ge.s32.totalorder %s17339_s25, 1 }
  0x1c   : > { %s17517_s27 = scalar_select %p536_p1, %s17335_s24, %s538_s2  }
  0x1d   : > { %p17519_p5 = por %p549_p2, %p548_p0  ;;  %p17523_p6 = por %p555_p4, %p554_p3 }
  0x1e   : > { %21012 = sst [smem:[#allocation36_spill]] %s17517_s27  ;;  %p562_p8 = scmp.lt.s32.totalorder %s17339_s25, 3 }
  0x1f   : > { %s21013_s7 = scalar_select %p17519_p5, 1, 0 }
  0x20   : > { %s21015_s28 = scalar_select %p17523_p6, 1, 0 }
  0x21   : > { %21014 = sst [smem:[#allocation37_spill]] %s21013_s7  ;;  %p20971_p9 = scmp.eq.s32.totalorder %s17502_s5, 0 }
  0x22   : > { %21016 = sst [smem:[#allocation38_spill]] %s21015_s28  ;;  %p17530_p10 = pnand %p12816_p7, %p562_p8 }
  0x23   : > { %s17341_s3 = smov [#allocation5]   ;;  %s17342_s2 = smov [#allocation8]  }
  0x24   : > { %s21017_s29 = scalar_select %p17530_p10, 1, 0 }
  0x25   : > { %s593_s0 = sshll.u32 %s17341_s3, 4  ;;  %p15223_p11 = pneg %p17530_p10  ;;  %s594_s0 = int_to_ptr.vmem [resolvable:$true] %s593_s0 }
  0x26   : > { %s620_s6 = sshll.u32 %s17342_s2, 4  ;;  %s16950_s24 = scalar_lea.vmem %s594_s0, 18432  ;;  %s621_s6 = int_to_ptr.vmem [resolvable:$true] %s620_s6 }
  0x27   : > { %p17538_p12 = pnand %p20971_p9, %p15223_p11  ;;  %p16951_p0 = scmp.ne.s32.totalorder %s594_s0, %s16950_s24 }
  0x28   : > { %p16958_p3 = scmp.lt.s32.totalorder %s594_s0, %s594_s0  ;;  %p16959_p4 = scmp.lt.s32.totalorder %s16950_s24, %s16950_s24 }
  0x29   : > { %p17544_p13 = pneg %p17538_p12 }
  0x2a   : > { %p16960_p7 = por %p16959_p4, %p16958_p3 }
  0x2b   : > { %p16953_p1 = pnand %p16951_p0, %p17544_p13 }
  0x2d   : > { %p16954_p2 = pneg %p16953_p1 }
  0x2f   : > { %p16961_p8 = pnand %p16960_p7, %p16954_p2 }
  0x31   : > { %16964 = shalt.err (!%p16961_p8)
}
  0x32   : > { %s17343_s3 = smov 128   ;;  %s17344_s2 = smov 8  }
  0x33   : > { %s21020_s4 = sld [smem:[#allocation113_spill]]  ;;  %s17345_s25 = smov [#allocation11]  }
  0x34   : > { %s647_s23 = sshll.u32 %s17345_s25, 4  ;;  %s16976_s7 = scalar_lea.vmem %s621_s6, 9216  ;;  %s648_s23 = int_to_ptr.vmem [resolvable:$true] %s647_s23 }
  0x35   : > { %p16977_p11 = scmp.ne.s32.totalorder %s621_s6, %s16976_s7  ;;  %p16984_p2 = scmp.lt.s32.totalorder %s621_s6, %s621_s6 }
  0x36   : > { %p16985_p3 = scmp.lt.s32.totalorder %s16976_s7, %s16976_s7 }
  0x37   : > { %p16979_p0 = pnand %p16977_p11, %p17544_p13 }
  0x38   : > { %p16986_p4 = por %p16985_p3, %p16984_p2 }
  0x39   : > { %15229 = dma.hbm_to_vmem [thread:$0]  (!%p17538_p12), %s21020_s4, 18432, %s594_s0, [#allocation6], %s17343_s3, %s17343_s3, %s17344_s2  }
  0x3a   : > { %p16980_p1 = pneg %p16979_p0 }
  0x3c   : > { %p16987_p7 = pnand %p16986_p4, %p16980_p1 }
  0x3e   : > { %16990 = shalt.err (!%p16987_p7)
}
  0x3f   : > { %s20969_s24 = smov 64   ;;  %s20972_s30 = smov 4  }
  0x40   : > { %s21021_s26 = sld [smem:[#allocation116_spill]]  ;;  %s17002_s28 = scalar_lea.vmem %s648_s23, 18432 }
  0x41   : > { %p17003_p8 = scmp.ne.s32.totalorder %s648_s23, %s17002_s28  ;;  %p17010_p1 = scmp.lt.s32.totalorder %s648_s23, %s648_s23 }
  0x42   : > { %p17011_p2 = scmp.lt.s32.totalorder %s17002_s28, %s17002_s28 }
  0x43   : > { %p17005_p11 = pnand %p17003_p8, %p17544_p13 }
  0x44   : > { %p17012_p3 = por %p17011_p2, %p17010_p1 }
  0x45   : > { %p17006_p0 = pneg %p17005_p11 }
  0x46   : > { %15235 = dma.hbm_to_vmem [thread:$0]  (!%p17538_p12), %s21021_s26, 9216, %s621_s6, [#allocation9], %s20969_s24, %s20969_s24, %s20972_s30  }
  0x47   : > { %p17013_p4 = pnand %p17012_p3, %p17006_p0 }
  0x49   : > { %17016 = shalt.err (!%p17013_p4)
}
  0x4a   : > { %15241 = dma.hbm_to_vmem [thread:$0]  (!%p17538_p12), %s20943_s10, 18432, %s648_s23, [#allocation12], %s17343_s3, %s17343_s3, %s17344_s2  }
  0x4b   : > { %s17348_s6 = smov [#allocation14]   ;;  %s17349_s25 = smov [#allocation17]  }
  0x4c   : > { %s674_s4 = sshll.u32 %s17348_s6, 4  ;;  %s710_s26 = sshll.u32 %s17349_s25, 4  ;;  %s675_s4 = int_to_ptr.vmem [resolvable:$true] %s674_s4  ;;  %s711_s26 = int_to_ptr.vmem [resolvable:$true] %s710_s26 }
  0x4d   : > { %s17028_s24 = scalar_lea.vmem %s675_s4, 9216  ;;  %p17036_p0 = scmp.lt.s32.totalorder %s675_s4, %s675_s4 }
  0x4e   : > { %p17029_p7 = scmp.ne.s32.totalorder %s675_s4, %s17028_s24  ;;  %p17037_p1 = scmp.lt.s32.totalorder %s17028_s24, %s17028_s24 }
  0x50   : > { %p17031_p8 = pnand %p17029_p7, %p17544_p13  ;;  %p17038_p2 = por %p17037_p1, %p17036_p0 }
  0x52   : > { %p17032_p11 = pneg %p17031_p8 }
  0x54   : > { %p17039_p3 = pnand %p17038_p2, %p17032_p11 }
  0x56   : > { %17042 = shalt.err (!%p17039_p3)
}
  0x57   : > { %s21022_s28 = smov 64   ;;  %s17054_s0 = scalar_lea.vmem %s711_s26, 36864 }
  0x58   : > { %15247 = dma.hbm_to_vmem [thread:$0]  (!%p17538_p12), %s20946_s13, 9216, %s675_s4, [#allocation15], %s21022_s28, %s21022_s28, %s20972_s30  }
  0x59   : > { %p17055_p4 = scmp.ne.s32.totalorder %s711_s26, %s17054_s0  ;;  %p17062_p9 = scmp.lt.s32.totalorder %s711_s26, %s711_s26 }
  0x5a   : > { %p17063_p0 = scmp.lt.s32.totalorder %s17054_s0, %s17054_s0 }
  0x5b   : > { %p17057_p7 = pnand %p17055_p4, %p17544_p13 }
  0x5c   : > { %p17064_p11 = por %p17063_p0, %p17062_p9 }
  0x5d   : > { %p17058_p8 = pneg %p17057_p7 }
  0x5f   : > { %p17065_p1 = pnand %p17064_p11, %p17058_p8 }
  0x61   : > { %17068 = shalt.err (!%p17065_p1)
}
  0x62   : > { %15253 = dma.hbm_to_vmem [thread:$0]  (!%p17538_p12), %s20952_s19, 36864, %s711_s26, [#allocation18], %s17343_s3, %s17343_s3, %s17344_s2  }
  0x63   : > { %s17350_s4 = smov [#allocation2]   ;;  %s17351_s23 = smov [#allocation7]  }
  0x64   : > { %s574_s25 = sshll.u32 %s17350_s4, 4  ;;  %s607_s7 = sshll.u32 %s17351_s23, 4  ;;  %s575_s25 = int_to_ptr.vmem [resolvable:$true] %s574_s25  ;;  %s608_s7 = int_to_ptr.vmem [resolvable:$true] %s607_s7 }
  0x65   : > { %s17080_s30 = scalar_lea.vmem %s575_s25, 1024  ;;  %p17088_p4 = scmp.lt.s32.totalorder %s575_s25, %s575_s25 }
  0x66   : > { %p17081_p2 = scmp.ne.s32.totalorder %s575_s25, %s17080_s30  ;;  %p17089_p7 = scmp.lt.s32.totalorder %s17080_s30, %s17080_s30 }
  0x68   : > { %p17083_p9 = pnand %p17081_p2, %p17544_p13  ;;  %p17090_p8 = por %p17089_p7, %p17088_p4 }
  0x6a   : > { %p17084_p3 = pneg %p17083_p9 }
  0x6c   : > { %p17091_p0 = pnand %p17090_p8, %p17084_p3 }
  0x6e   : > { %17094 = shalt.err (!%p17091_p0)
}
  0x6f   : > { %s21023_s0 = smov 4   ;;  %s21024_s26 = sld [smem:[#allocation110_spill]] }
  0x70   : > { %s17106_s24 = scalar_lea.vmem %s608_s7, 32  ;;  %p17114_p9 = scmp.lt.s32.totalorder %s608_s7, %s608_s7 }
  0x71   : > { %p17107_p11 = scmp.ne.s32.totalorder %s608_s7, %s17106_s24  ;;  %p17115_p4 = scmp.lt.s32.totalorder %s17106_s24, %s17106_s24 }
  0x73   : > { %p17109_p1 = pnand %p17107_p11, %p17544_p13  ;;  %p17116_p3 = por %p17115_p4, %p17114_p9 }
  0x75   : > { %15226 = dma.hbm_to_vmem [thread:$0]  (!%p17538_p12), %s21024_s26, 1024, %s575_s25, [#allocation3], %s21022_s28, %s21022_s28, %s21023_s0  }
  0x76   : > { %p17110_p2 = pneg %p17109_p1 }
  0x78   : > { %p17117_p7 = pnand %p17116_p3, %p17110_p2 }
  0x7a   : > { %17120 = shalt.err (!%p17117_p7)
}
  0x7b   : > { %s21025_s4 = sld [smem:[#allocation114_spill]]  ;;  %s17352_s23 = smov [#allocation10]  }
  0x7c   : > { %s634_s28 = sshll.u32 %s17352_s23, 4  ;;  %s17353_s25 = smov [#allocation13]   ;;  %s635_s28 = int_to_ptr.vmem [resolvable:$true] %s634_s28 }
  0x7d   : > { %s661_s0 = sshll.u32 %s17353_s25, 4  ;;  %s17132_s3 = scalar_lea.vmem %s635_s28, 16  ;;  %s662_s0 = int_to_ptr.vmem [resolvable:$true] %s661_s0 }
  0x7e   : > { %p17133_p8 = scmp.ne.s32.totalorder %s635_s28, %s17132_s3  ;;  %s17139_s2 = scalar_lea.vmem %s635_s28, 32 }
  0x7f   : > { %p17140_p1 = scmp.lt.s32.totalorder %s635_s28, %s635_s28  ;;  %p17141_p2 = scmp.lt.s32.totalorder %s17139_s2, %s17132_s3 }
  0x80   : > { %p17135_p0 = pnand %p17133_p8, %p17544_p13 }
  0x81   : > { %15232 = dma.hbm_to_vmem [thread:$0]  (!%p17538_p12), %s21025_s4, 32, %s608_s7, [#allocation6]  }
  0x82   : > { %p17136_p11 = pneg %p17135_p0  ;;  %p17142_p9 = por %p17141_p2, %p17140_p1 }
  0x84   : > { %p17143_p4 = pnand %p17142_p9, %p17136_p11 }
  0x86   : > { %17146 = shalt.err (!%p17143_p4)
}
  0x87   : > { %15238 = dma.hbm_to_vmem [thread:$0]  (!%p17538_p12), %s20941_s8, 16, %s635_s28, [#allocation9]  }
  0x88   : > { %s17158_s24 = scalar_lea.vmem %s662_s0, 32  ;;  %p17166_p0 = scmp.lt.s32.totalorder %s662_s0, %s662_s0 }
  0x89   : > { %p17159_p3 = scmp.ne.s32.totalorder %s662_s0, %s17158_s24  ;;  %p17167_p6 = scmp.lt.s32.totalorder %s17158_s24, %s17158_s24 }
  0x8b   : > { %p17161_p7 = pnand %p17159_p3, %p17544_p13  ;;  %p17168_p5 = por %p17167_p6, %p17166_p0 }
  0x8d   : > { %p17162_p8 = pneg %p17161_p7 }
  0x8f   : > { %p17169_p10 = pnand %p17168_p5, %p17162_p8 }
  0x91   : > { %17172 = shalt.err (!%p17169_p10)
}
  0x92   : > { %15244 = dma.hbm_to_vmem [thread:$0]  (!%p17538_p12), %s20944_s11, 32, %s662_s0, [#allocation12]  }
  0x93   : > { %s17354_s4 = smov [#allocation16]   ;;  %s17355_s28 = smov [#allocation19]  }
  0x94   : > { %s688_s23 = sshll.u32 %s17354_s4, 4  ;;  %s724_s25 = sshll.u32 %s17355_s28, 4  ;;  %s689_s23 = int_to_ptr.vmem [resolvable:$true] %s688_s23  ;;  %s725_s25 = int_to_ptr.vmem [resolvable:$true] %s724_s25 }
  0x95   : > { %s17184_s3 = scalar_lea.vmem %s689_s23, 16  ;;  %s17191_s2 = scalar_lea.vmem %s689_s23, 32 }
  0x96   : > { %p17185_p11 = scmp.ne.s32.totalorder %s689_s23, %s17184_s3  ;;  %p17192_p5 = scmp.lt.s32.totalorder %s689_s23, %s689_s23 }
  0x97   : > { %p17193_p6 = scmp.lt.s32.totalorder %s17191_s2, %s17184_s3 }
  0x98   : > { %p17187_p1 = pnand %p17185_p11, %p17544_p13 }
  0x99   : > { %p17194_p10 = por %p17193_p6, %p17192_p5 }
  0x9a   : > { %p17188_p2 = pneg %p17187_p1 }
  0x9c   : > { %p17195_p9 = pnand %p17194_p10, %p17188_p2 }
  0x9e   : > { %17198 = shalt.err (!%p17195_p9)
}
  0x9f   : > { %15250 = dma.hbm_to_vmem [thread:$0]  (!%p17538_p12), %s20947_s14, 16, %s689_s23, [#allocation15]  }
  0xa0   : > { %s17210_s7 = scalar_lea.vmem %s725_s25, 32  ;;  %p17218_p8 = scmp.lt.s32.totalorder %s725_s25, %s725_s25 }
  0xa1   : > { %p17211_p4 = scmp.ne.s32.totalorder %s725_s25, %s17210_s7  ;;  %p17219_p0 = scmp.lt.s32.totalorder %s17210_s7, %s17210_s7 }
  0xa3   : > { %p17213_p3 = pnand %p17211_p4, %p17544_p13  ;;  %p17220_p11 = por %p17219_p0, %p17218_p8 }
  0xa5   : > { %p17214_p7 = pneg %p17213_p3 }
  0xa7   : > { %p17221_p1 = pnand %p17220_p11, %p17214_p7 }
  0xa9   : > { %17224 = shalt.err (!%p17221_p1)
}
  0xaa   : > { %15256 = dma.hbm_to_vmem [thread:$0]  (!%p17538_p12), %s20953_s20, 32, %s725_s25, [#allocation18]  }
  0xab   : > { %s17356_s6 = smov [#allocation20]  }
  0xac   : > { %s738_s4 = sshll.u32 %s17356_s6, 4  ;;  %s739_s4 = int_to_ptr.vmem [resolvable:$true] %s738_s4 }
  0xad   : > { %s17236_s23 = scalar_lea.vmem %s739_s4, 16  ;;  %s17243_s28 = scalar_lea.vmem %s739_s4, 32 }
  0xae   : > { %p17237_p2 = scmp.ne.s32.totalorder %s739_s4, %s17236_s23  ;;  %p17244_p10 = scmp.lt.s32.totalorder %s739_s4, %s739_s4 }
  0xaf   : > { %p17245_p9 = scmp.lt.s32.totalorder %s17243_s28, %s17236_s23 }
  0xb0   : > { %p17239_p5 = pnand %p17237_p2, %p17544_p13 }
  0xb1   : > { %p17246_p4 = por %p17245_p9, %p17244_p10 }
  0xb2   : > { %p17240_p6 = pneg %p17239_p5 }
  0xb4   : > { %p17247_p3 = pnand %p17246_p4, %p17240_p6 }
  0xb6   : > { %17250 = shalt.err (!%p17247_p3)
}
  0xb7   : > { %15259 = dma.hbm_to_vmem [thread:$0]  (!%p17538_p12), %s20955_s22, 16, %s739_s4, [#allocation21]  }
  0xb8   : > { %p21026_p7 = scmp.ne.s32.totalorder %s21017_s29, 0 }
  0xba   : > { %760 = sbr.rel (%p21026_p7) target bundleno = 3375 (0xd2f), region = 112 }
  0xbf   : > { %p21027_p8 = scmp.eq.s32.totalorder %s17502_s5, 0 }
  0xc1   : > { %17294 = dma.done.wait (%p21027_p8), [#allocation3], 1024   ;;  %p21028_p13 = pmov %p21027_p8 }
  0xc2   : > { %p21029_p0 = pmov %p21027_p8 }
  0xc3   : > { %17296 = vsyncadd (%p21028_p13), [#allocation3], 4294966272 }
  0xc4   : > { %17298 = dma.done.wait (%p21029_p0), [#allocation6], 18464   ;;  %p21030_p11 = pmov %p21029_p0 }
  0xc5   : > { %p21031_p1 = pmov %p21029_p0 }
  0xc6   : > { %17300 = vsyncadd (%p21030_p11), [#allocation6], 4294948832 }
  0xc7   : > { %17302 = dma.done.wait (%p21031_p1), [#allocation9], 9232   ;;  %p21032_p12 = pmov %p21029_p0 }
  0xc8   : > { %p21033_p2 = pmov %p21029_p0 }
  0xc9   : > { %17304 = vsyncadd (%p21032_p12), [#allocation9], 4294958064 }
  0xca   : > { %17306 = dma.done.wait (%p21033_p2), [#allocation12], 18464   ;;  %p21034_p5 = pmov %p21029_p0 }
  0xcb   : > { %p21035_p6 = pmov %p21029_p0 }
  0xcc   : > { %17308 = vsyncadd (%p21034_p5), [#allocation12], 4294948832 }
  0xcd   : > { %17310 = dma.done.wait (%p21035_p6), [#allocation15], 9232   ;;  %p21036_p10 = pmov %p21029_p0 }
  0xce   : > { %p21037_p9 = pmov %p21029_p0 }
  0xcf   : > { %17312 = vsyncadd (%p21036_p10), [#allocation15], 4294958064 }
  0xd0   : > { %17314 = dma.done.wait (%p21037_p9), [#allocation18], 36896   ;;  %p21038_p4 = pmov %p21029_p0 }
  0xd1   : > { %p21039_p3 = pmov %p21029_p0 }
  0xd2   : > { %17316 = vsyncadd (%p21038_p4), [#allocation18], 4294930400 }
  0xd3   : > { %17318 = dma.done.wait (%p21039_p3), [#allocation21], 16   ;;  %p21040_p7 = pmov %p21029_p0 }
  0xd4   : > { %s12843_s27 = sshll.u32 %s17502_s5, 5  ;;  %v15342_v0 = vld [vmem:[#allocation2 + $0x38] sm:$0xff]   ;;  %v15343_v1 = vld [vmem:[#allocation2 + $0x30] sm:$0xff]   ;;  %v15344_v2 = vld [vmem:[#allocation2 + $0x28] sm:$0xff]   ;;  %s21041_s26 = sld [smem:[#allocation109_spill]]  ;;  %vm17359_vm2 = vmmov 0  }
  0xd5   : > { %17320 = vsyncadd (%p21040_p7), [#allocation21], 4294967280  ;;  %p868_p8 = scmp.lt.s32.totalorder %s12843_s27, 63  ;;  %14919 = vmatprep.subr.bf16.mxu0 %v15342_v0  ;;  %v15345_v3 = vld [vmem:[#allocation2 + $0x20] sm:$0xff]   ;;  %v15346_v5 = vld [vmem:[#allocation2 + $0x18] sm:$0xff]   ;;  %s21042_s30 = sld [smem:[#allocation112_spill]] }
  0xd6   : > { %14920 = vmatpush3.bf16.msra.mxu0 %v15342_v0  ;;  %v15347_v6 = vld [vmem:[#allocation2 + $0x10] sm:$0xff]   ;;  %v15348_v7 = vld [vmem:[#allocation2 + $0x8] sm:$0xff]   ;;  %v15349_v8 = vld [vmem:[#allocation2] sm:$0xff]   ;;  %s21044_s2 = sld [smem:[#allocation111_spill]]  ;;  %vm5111_vm3 = vcmask 523264   ;;  %vm7634_vm7 = vcmask 130048  }
  0xd7   : > { %s21257_s27 = smov (!%p868_p8, %s12843_s27), 63  ;;  %14921 = vmatprep.subr.bf16.mxu0 %v15343_v1  ;;  %s21045_s23 = sld [smem:[#allocation115_spill]]  ;;  %vm12432_vm8 = vcmask 1043456   ;;  %vm12449_vm9 = vcmask 1040384  }
  0xd8   : > { %s12844_s29 = sshll.u32 %s21257_s27, 2  ;;  %s21244_s24 = sld [smem:[#allocation32_spill]]  ;;  %vm14172_vm10 = vmpackc.low %vm12449_vm9, %vm12449_vm9 }
  0xd9   : > { %s21245_s4 = sld [smem:[#allocation37_spill]]  ;;  %s14178_s28 = sshll.u32 %s17502_s5, 4 }
  0xda   : > { %s17684_s0 = scalar_lea.vmem %s21041_s26, %s12844_s29  ;;  %14922 = vmatpush3.bf16.msra.mxu0 %v15343_v1  ;;  %s21246_s1 = sld [smem:[#allocation117_spill]] }
  0xdb   : > { %14923 = vmatprep.subr.bf16.mxu0 %v15344_v2  ;;  %v15350_v4 = vld [vmem:[%s17684_s0] sm:$0xff]   ;;  %v15351_v9 = vld [vmem:[%s17684_s0 + $0x8] sm:$0xff]   ;;  %v15352_v10 = vld [vmem:[%s17684_s0 + $0x10] sm:$0xff]   ;;  %s21043_s6 = smov %s21042_s30  ;;  %s17360_s5 = smov [#allocation22]  }
  0xdc   : > { %14935 = vmatprep.mubr.bf16.mxu0 %v15350_v4  ;;  %v15353_v11 = vld [vmem:[%s17684_s0 + $0x18] sm:$0xff]   ;;  %v15354_v12 = vld [vmem:[%s17684_s0 + $0x20] sm:$0xff]   ;;  %v15355_v13 = vld [vmem:[%s17684_s0 + $0x28] sm:$0xff]   ;;  %s17255_s7 = sshll.u32 %s17360_s5, 4  ;;  %s17256_s7 = int_to_ptr.vmem [resolvable:$false] %s17255_s7 }
  0xdd   : > { %v15356_v14 = vld [vmem:[%s17684_s0 + $0x30] sm:$0xff]   ;;  %v15357_v15 = vld [vmem:[%s17684_s0 + $0x38] sm:$0xff]   ;;  %v15358_v16 = vld [vmem:[%s17684_s0 + $0x40] sm:$0xff]  }
  0xde   : > { %14924 = vmatpush3.bf16.msra.mxu0 %v15344_v2  ;;  %v15359_v17 = vld [vmem:[%s17684_s0 + $0x48] sm:$0xff]   ;;  %v15360_v18 = vld [vmem:[%s17684_s0 + $0x50] sm:$0xff]   ;;  %v15361_v19 = vld [vmem:[%s17684_s0 + $0x58] sm:$0xff]  }
  0xdf   : > { %14925 = vmatprep.subr.bf16.mxu0 %v15345_v3  ;;  %v15362_v20 = vld [vmem:[%s17684_s0 + $0x60] sm:$0xff]   ;;  %v15363_v21 = vld [vmem:[%s17684_s0 + $0x68] sm:$0xff]   ;;  %v15364_v22 = vld [vmem:[%s17684_s0 + $0x70] sm:$0xff]   ;;  %p21247_p0 = scmp.ne.s32.totalorder %s21245_s4, 0 }
  0xe0   : > { %v15365_v23 = vld [vmem:[%s17684_s0 + $0x78] sm:$0xff]   ;;  %v15368_v24 = vld [vmem:[%s21042_s30 + $0x4] ss:$8 sps:$4 sm:$0xff]   ;;  %v17711_v26 = vld [vmem:[%s21044_s2] ss:$0 sm:$0xff]  ;;  %s865_s30 = sand.u32 1, %s21244_s24   ;;  %s20898_s25 = scalar_lea.hbm %s21246_s1, %s14178_s28 }
  0xe1   : > { %v15371_v25 = vld [vmem:[%s21043_s6 + $0x84] ss:$8 sps:$4 sm:$0xff]   ;;  %1362 = vmatprep.mubr.bf16.mxu1 %v15368_v24  ;;  %s866_s3 = scalar_lea.vmem [#allocation22], %s865_s30  ;;  %s12631_s26 = scalar_lea.sflag [#allocation4], %s865_s30 }
  0xe2   : > { %14926 = vmatpush3.bf16.msra.mxu0 %v15345_v3  ;;  %s12643_s2 = sshll.u32 %s866_s3, 4  ;;  %s17257_s24 = scalar_lea.vmem %s17256_s7, 32  ;;  %s12644_s2 = int_to_ptr.vmem [resolvable:$true] %s12643_s2 }
  0xe3   : > { %14927 = vmatprep.subr.bf16.mxu0 %v15346_v5  ;;  %s17251_s0 = scalar_lea.vmem %s12644_s2, 16  ;;  %p17258_p12 = scmp.lt.s32.totalorder %s12644_s2, %s17256_s7 }
  0xe4   : > { %p17252_p13 = scmp.ne.s32.totalorder %s12644_s2, %s17251_s0  ;;  %p17259_p2 = scmp.lt.s32.totalorder %s17257_s24, %s17251_s0 }
  0xe6   : > { %14928 = vmatpush3.bf16.msra.mxu0 %v15346_v5  ;;  %p17253_p11 = pnand %p17252_p13, %p21247_p0  ;;  %p17260_p5 = por %p17259_p2, %p17258_p12 }
  0xe7   : > { %14929 = vmatprep.subr.bf16.mxu0 %v15347_v6 }
  0xe8   : > { %p17254_p1 = pneg %p17253_p11 }
  0xea   : > { %14930 = vmatpush3.bf16.msra.mxu0 %v15347_v6  ;;  %p17261_p6 = pnand %p17260_p5, %p17254_p1 }
  0xeb   : > { %14931 = vmatprep.subr.bf16.mxu0 %v15348_v7 }
  0xee   : > { %14932 = vmatpush3.bf16.msra.mxu0 %v15348_v7 }
  0xef   : > { %14933 = vmatprep.subr.bf16.mxu0 %v15349_v8 }
  0xf2   : > { %14934 = vmatpush3.bf16.msra.mxu0 %v15349_v8 }
  0xf5   : > { %14936 = vmatmul.mubr.bf16.vlgmr.msra.gmra.mxu0 %v15351_v9 }
  0xf6   : > { %14939 = vmatprep.mubr.bf16.mxu0 %v15352_v10 }
  0xfd   : > { %14940 = vmatmul.mubr.bf16.gmra.mxu0 %v15353_v11 }
  0xfe   : > { %14943 = vmatprep.mubr.bf16.mxu0 %v15354_v12 }
 0x105   : > { %14944 = vmatmul.mubr.bf16.gmra.mxu0 %v15355_v13 }
 0x106   : > { %14947 = vmatprep.mubr.bf16.mxu0 %v15356_v14 }
 0x10d   : > { %14948 = vmatmul.mubr.bf16.gmra.mxu0 %v15357_v15 }
 0x10e   : > { %14951 = vmatprep.mubr.bf16.mxu0 %v15358_v16 }
 0x115   : > { %14952 = vmatmul.mubr.bf16.gmra.mxu0 %v15359_v17 }
 0x116   : > { %14955 = vmatprep.mubr.bf16.mxu0 %v15360_v18 }
 0x11d   : > { %14956 = vmatmul.mubr.bf16.gmra.mxu0 %v15361_v19 }
 0x11e   : > { %14959 = vmatprep.mubr.bf16.mxu0 %v15362_v20 }
 0x125   : > { %14960 = vmatmul.mubr.bf16.gmra.mxu0 %v15363_v21 }
 0x126   : > { %14963 = vmatprep.mubr.bf16.mxu0 %v15364_v22 }
 0x12d   : > { %14964 = vmatmul.mubr.bf16.gmra.mxu0 %v15365_v23 }
 0x12e   : > { %1598 = vmatprep.mubr.bf16.mxu0 %v15371_v25 }
 0x1b5   : > { %v14937_v27 = vpop.f32.mrf.mxu0 }
 0x1b6   : > { %v1116_v28 = vadd.f32 %v14937_v27, %v17711_v26 }
 0x1b7   : > { %v17714_v29 = vpop.f32.mrf.mxu0 }
 0x1b8   : > { %v1236_v31 = vmax.f32 %v1116_v28, 0.0 }
 0x1b9   : > { %v14938_v30 = vpop.f32.mrf.mxu0 }
 0x1ba   : > { %v1119_v32 = vadd.f32 %v14938_v30, %v17711_v26 }
 0x1bb   : > { %v17717_v33 = vpop.f32.mrf.mxu0 }
 0x1bc   : > { %v1237_v34 = vmax.f32 %v1119_v32, 0.0 }
 0x1bd   : > { %v14941_v35 = vpop.f32.mrf.mxu0 }
 0x1be   : > { %v17719_v36 = vpack.c.bf16 %v1237_v34, %v1236_v31  ;;  %v1132_v37 = vadd.f32 %v14941_v35, %v17711_v26 }
 0x1bf   : > { %v17722_v38 = vpop.f32.mrf.mxu0 }
 0x1c0   : > { %v1240_v40 = vmax.f32 %v1132_v37, 0.0 }
 0x1c1   : > { %v14942_v39 = vpop.f32.mrf.mxu0 }
 0x1c2   : > { %v1135_v41 = vadd.f32 %v14942_v39, %v17711_v26 }
 0x1c3   : > { %v17725_v42 = vpop.f32.mrf.mxu0 }
 0x1c4   : > { %v1241_v43 = vmax.f32 %v1135_v41, 0.0 }
 0x1c5   : > { %v14945_v44 = vpop.f32.mrf.mxu0 }
 0x1c6   : > { %v17727_v45 = vpack.c.bf16 %v1241_v43, %v1240_v40  ;;  %v1148_v30 = vadd.f32 %v14945_v44, %v17711_v26 }
 0x1c7   : > { %v17729_v46 = vpop.f32.mrf.mxu0 }
 0x1c8   : > { %v1244_v44 = vmax.f32 %v1148_v30, 0.0  ;;  %v15386_v30 = vld [vmem:[%s21043_s6 + $0x30] ss:$8 sps:$4 sm:$0xff]  }
 0x1c9   : > { %v14946_v47 = vpop.f32.mrf.mxu0 }
 0x1ca   : > { %v1151_v22 = vadd.f32 %v14946_v47, %v17711_v26  ;;  %v1140_v47 = vadd.f32 %v17711_v26, %v17729_v46 }
 0x1cb   : > { %v1142_v48 = vpop.f32.mrf.mxu0 }
 0x1cc   : > { %v1245_v35 = vmax.f32 %v1151_v22, 0.0  ;;  %v1143_v37 = vadd.f32 %v17711_v26, %v1142_v48  ;;  %v1242_v46 = vmax.f32 %v1140_v47, 0.0  ;;  %v15380_v22 = vld [vmem:[%s21043_s6 + $0x20] ss:$8 sps:$4 sm:$0xff]   ;;  %v15396_v47 = vld [vmem:[%s21043_s6 + $0x54] ss:$8 sps:$4 sm:$0xff]  }
 0x1cd   : > { %v14949_v49 = vpop.f32.mrf.mxu0 }
 0x1ce   : > { %v1164_v5 = vadd.f32 %v14949_v49, %v17711_v26  ;;  %v17780_v48 = vpack.c.bf16 %v1245_v35, %v1244_v44  ;;  %v15390_v35 = vld [vmem:[%s21043_s6 + $0x40] ss:$8 sps:$4 sm:$0xff]  }
 0x1cf   : > { %v1155_v50 = vpop.f32.mrf.mxu0  ;;  %v3592_v44 = vld [vmem:[%s21045_s23] sm:$0xff] }
 0x1d0   : > { %v1248_v16 = vmax.f32 %v1164_v5, 0.0  ;;  %v1156_v17 = vadd.f32 %v17711_v26, %v1155_v50 }
 0x1d1   : > { %v14950_v51 = vpop.f32.mrf.mxu0 }
 0x1d2   : > { %v1167_v2 = vadd.f32 %v14950_v51, %v17711_v26  ;;  %v1246_v31 = vmax.f32 %v1156_v17, 0.0  ;;  %v1243_v51 = vmax.f32 %v1143_v37, 0.0  ;;  %v15374_v17 = vld [vmem:[%s21043_s6 + $0x10] ss:$8 sps:$4 sm:$0xff]   ;;  %v15393_v37 = vld [vmem:[%s21043_s6 + $0x100] ss:$8 sps:$4 sm:$0xff]  }
 0x1d3   : > { %v1158_v52 = vpop.f32.mrf.mxu0 }
 0x1d4   : > { %v1249_v9 = vmax.f32 %v1167_v2, 0.0  ;;  %v1159_v10 = vadd.f32 %v17711_v26, %v1158_v52 }
 0x1d5   : > { %v17731_v53 = vpop.f32.mrf.mxu0 }
 0x1d6   : > { %v17754_v23 = vpack.c.bf16 %v1249_v9, %v1248_v16  ;;  %v1247_v24 = vmax.f32 %v1159_v10, 0.0  ;;  %v15375_v16 = vld [vmem:[%s21043_s6 + $0x94] ss:$8 sps:$4 sm:$0xff]  }
 0x1d7   : > { %v17733_v54 = vpop.f32.mrf.mxu0 }
 0x1d8   : > { %v17768_v39 = vpack.c.bf16 %v1247_v24, %v1246_v31  ;;  %v15383_v24 = vld [vmem:[%s21043_s6 + $0xa0] ss:$8 sps:$4 sm:$0xff]   ;;  %v15389_v31 = vld [vmem:[%s21043_s6 + $0xb0] ss:$8 sps:$4 sm:$0xff]  }
 0x1d9   : > { %v17735_v55 = vpop.f32.mrf.mxu0 }
 0x1db   : > { %v17737_v56 = vpop.f32.mrf.mxu0 }
 0x1dc   : > { %v1175_v5 = vadd.f32 %v17711_v26, %v17737_v56 }
 0x1dd   : > { %v14957_v57 = vpop.f32.mrf.mxu0 }
 0x1de   : > { %v1196_v49 = vadd.f32 %v14957_v57, %v17711_v26  ;;  %v1251_v10 = vmax.f32 %v1175_v5, 0.0  ;;  %v15413_v5 = vld [vmem:[%s21043_s6 + $0x130] ss:$8 sps:$4 sm:$0xff]  }
 0x1df   : > { %v17739_v58 = vpop.f32.mrf.mxu0 }
 0x1e0   : > { %v1188_v57 = vadd.f32 %v17711_v26, %v17739_v58  ;;  %v1180_v58 = vadd.f32 %v17731_v53, %v17711_v26  ;;  %v1172_v53 = vadd.f32 %v17711_v26, %v17733_v54 }
 0x1e1   : > { %v14958_v59 = vpop.f32.mrf.mxu0 }
 0x1e2   : > { %v1199_v40 = vadd.f32 %v14958_v59, %v17711_v26  ;;  %v1250_v54 = vmax.f32 %v1172_v53, 0.0  ;;  %v13166_v53 = vld [vmem:[%s21045_s23 + $0xc0] sm:$0xff] }
 0x1e3   : > { %v1190_v60 = vpop.f32.mrf.mxu0 }
 0x1e4   : > { %v1257_v52 = vmax.f32 %v1199_v40, 0.0  ;;  %v1191_v59 = vadd.f32 %v17711_v26, %v1190_v60  ;;  %v1183_v60 = vadd.f32 %v17735_v55, %v17711_v26  ;;  %v20975_v40 = vmov 0  }
 0x1e5   : > { %v14961_v61 = vpop.f32.mrf.mxu0  ;;  %15340 = vset.pattern.permute.xlu0 %v20975_v40  ;;  %15341 = vset.pattern.permute.xlu1 %v20975_v40 }
 0x1e6   : > { %v1212_v18 = vadd.f32 %v14961_v61, %v17711_v26  ;;  %v1255_v2 = vmax.f32 %v1191_v59, 0.0  ;;  %v1253_v55 = vmax.f32 %v1183_v60, 0.0  ;;  %3621 = vperm.xlu1 %15341, %v3592_v44   ;;  %v15401_v59 = vld [vmem:[%s21043_s6 + $0x110] ss:$8 sps:$4 sm:$0xff]   ;;  %v15404_v60 = vld [vmem:[%s21043_s6 + $0x60] ss:$8 sps:$4 sm:$0xff]  }
 0x1e7   : > { %v1203_v62 = vpop.f32.mrf.mxu0  ;;  %v15429_v44 = vld [vmem:[%s21043_s6 + $0x140] ss:$8 sps:$4 sm:$0xff]  }
 0x1e8   : > { %v1260_v32 = vmax.f32 %v1212_v18, 0.0  ;;  %v1204_v34 = vadd.f32 %v17711_v26, %v1203_v62  ;;  %v1256_v62 = vmax.f32 %v1196_v49, 0.0  ;;  %v15377_v18 = vld [vmem:[%s21043_s6 + $0x90] ss:$8 sps:$4 sm:$0xff]   ;;  %v15399_v49 = vld [vmem:[%s21043_s6 + $0x114] ss:$8 sps:$4 sm:$0xff]  }
 0x1e9   : > { %v14962_v63 = vpop.f32.mrf.mxu0 }
 0x1ea   : > { %v1215_v12 = vadd.f32 %v14962_v63, %v17711_v26  ;;  %v1258_v50 = vmax.f32 %v1204_v34, 0.0  ;;  %v1127_v63 = vadd.f32 %v17711_v26, %v17725_v42  ;;  %v15395_v34 = vld [vmem:[%s21043_s6 + $0x104] ss:$8 sps:$4 sm:$0xff]  }
 0x1eb   : > { %v1206_v0 = vpop.f32.mrf.mxu0 }
 0x1ec   : > { %v1261_v25 = vmax.f32 %v1215_v12, 0.0  ;;  %v1207_v27 = vadd.f32 %v17711_v26, %v1206_v0  ;;  %v17793_v0 = vpack.c.bf16 %v1243_v51, %v1242_v46  ;;  %v1239_v42 = vmax.f32 %v1127_v63, 0.0  ;;  %v3593_v51 = vld [vmem:[%s21045_s23 + $0x8] sm:$0xff]  ;;  %v13153_v63 = vld [vmem:[%s21045_s23 + $0x58] sm:$0xff] }
 0x1ed   : > { %v14965_v1 = vpop.f32.mrf.mxu0  ;;  %3626 = vperm.xlu1 %15341, %v3593_v51   ;;  %v15402_v46 = vld [vmem:[%s21043_s6 + $0x64] ss:$8 sps:$4 sm:$0xff]   ;;  %v15501_v51 = vld [vmem:[#allocation5 + $0x170] ss:$8 sps:$4 sm:$0xff]  }
 0x1ee   : > { %v1228_v4 = vadd.f32 %v14965_v1, %v17711_v26  ;;  %v17771_v41 = vpack.c.bf16 %v1261_v25, %v1260_v32  ;;  %v1259_v43 = vmax.f32 %v1207_v27, 0.0  ;;  %v17797_v1 = vpack.c.bf16 %v1257_v52, %v1256_v62  ;;  %v15384_v25 = vld [vmem:[%s21043_s6 + $0x34] ss:$8 sps:$4 sm:$0xff]   ;;  %v15392_v32 = vld [vmem:[%s21043_s6 + $0x44] ss:$8 sps:$4 sm:$0xff]  }
 0x1ef   : > { %v1219_v3 = vpop.f32.mrf.mxu0  ;;  %v15387_v27 = vld [vmem:[%s21043_s6 + $0xb4] ss:$8 sps:$4 sm:$0xff]   ;;  %v15398_v52 = vld [vmem:[%s21043_s6 + $0x50] ss:$8 sps:$4 sm:$0xff]   ;;  %v15405_v62 = vld [vmem:[%s21043_s6 + $0x124] ss:$8 sps:$4 sm:$0xff]  }
 0x1f0   : > { %v1220_v7 = vadd.f32 %v17711_v26, %v1219_v3  ;;  %v1264_v13 = vmax.f32 %v1228_v4, 0.0  ;;  %v17783_v61 = vpack.c.bf16 %v1259_v43, %v1258_v50  ;;  %v1124_v3 = vadd.f32 %v17711_v26, %v17722_v38  ;;  %v13150_v43 = vld [vmem:[%s21045_s23 + $0x40] sm:$0xff]  ;;  %v13151_v50 = vld [vmem:[%s21045_s23 + $0x48] sm:$0xff] }
 0x1f1   : > { %v14966_v6 = vpop.f32.mrf.mxu0  ;;  %v1254_v4 = vmax.f32 %v1188_v57, 0.0  ;;  %3682 = vperm.xlu0 %15340, %v13150_v43   ;;  %v13152_v57 = vld [vmem:[%s21045_s23 + $0x50] sm:$0xff]  ;;  %3697 = vperm.xlu1 %15341, %v13153_v63   ;;  %v15462_v63 = vld [vmem:[%s21043_s6 + $0x224] ss:$8 sps:$4 sm:$0xff]  }
 0x1f2   : > { %v1231_v8 = vadd.f32 %v14966_v6, %v17711_v26  ;;  %v1262_v19 = vmax.f32 %v1220_v7, 0.0  ;;  %v1238_v38 = vmax.f32 %v1124_v3, 0.0  ;;  %v1252_v7 = vmax.f32 %v1180_v58, 0.0  ;;  %v15408_v3 = vld [vmem:[%s21043_s6 + $0x74] ss:$8 sps:$4 sm:$0xff]  }
 0x1f3   : > { %v1222_v11 = vpop.f32.mrf.mxu0  ;;  %v17809_v6 = vpack.c.bf16 %v1255_v2, %v1254_v4  ;;  %v15407_v2 = vld [vmem:[%s21043_s6 + $0x120] ss:$8 sps:$4 sm:$0xff]   ;;  %v15411_v58 = vld [vmem:[%s21043_s6 + $0x134] ss:$8 sps:$4 sm:$0xff]  }
 0x1f4   : > { %v1265_v14 = vmax.f32 %v1231_v8, 0.0  ;;  %v1223_v15 = vadd.f32 %v17711_v26, %v1222_v11  ;;  %v1111_v8 = vadd.f32 %v17711_v26, %v17717_v33  ;;  %v17819_v9 = vpack.c.bf16 %v1239_v42, %v1238_v38  ;;  %v3594_v4 = vld [vmem:[%s21045_s23 + $0x10] sm:$0xff]  ;;  %v3595_v42 = vld [vmem:[%s21045_s23 + $0x18] sm:$0xff]  ;;  %v15416_v38 = vld [vmem:[%s21043_s6 + $0xc4] ss:$8 sps:$4 sm:$0xff]  }
 0x1f5   : > { %v17821_v56 = vpack.c.bf16 %v1253_v55, %v1252_v7  ;;  %v1108_v11 = vadd.f32 %v17711_v26, %v17714_v29  ;;  %v15366_v26 = vld [vmem:[%s21043_s6] ss:$8 sps:$4 sm:$0xff]   ;;  %3687 = vperm.xlu0 %15340, %v13151_v50   ;;  %v15410_v55 = vld [vmem:[%s21043_s6 + $0x70] ss:$8 sps:$4 sm:$0xff]   ;;  %3636 = vperm.xlu1 %15341, %v3595_v42   ;;  %v15419_v7 = vld [vmem:[%s21043_s6 + $0x184] ss:$8 sps:$4 sm:$0xff]  }
 0x1f6   : > { %v17751_v20 = vpack.c.bf16 %v1265_v14, %v1264_v13  ;;  %v1263_v21 = vmax.f32 %v1223_v15, 0.0  ;;  %v1235_v12 = vmax.f32 %v1111_v8, 0.0  ;;  %v17829_v13 = vpack.c.bf16 %v1251_v10, %v1250_v54  ;;  %v15369_v29 = vld [vmem:[%s21043_s6 + $0x80] ss:$8 sps:$4 sm:$0xff]   ;;  %v15372_v15 = vld [vmem:[%s21043_s6 + $0x14] ss:$8 sps:$4 sm:$0xff]  }
 0x1f7   : > { %v1234_v33 = vmax.f32 %v1108_v11, 0.0  ;;  %v15414_v8 = vld [vmem:[%s21043_s6 + $0xc0] ss:$8 sps:$4 sm:$0xff]   ;;  %v15420_v11 = vld [vmem:[%s21043_s6 + $0xd4] ss:$8 sps:$4 sm:$0xff]  }
 0x1f8   : > { %v17757_v28 = vpack.c.bf16 %v1263_v21, %v1262_v19  ;;  %14205 = vmatprep.subr.bf16.mxu1 %v17751_v20  ;;  %14285 = vmatprep.subr.bf16.mxu0 %v17751_v20  ;;  %v15378_v19 = vld [vmem:[%s21043_s6 + $0x24] ss:$8 sps:$4 sm:$0xff]   ;;  %v15417_v10 = vld [vmem:[%s21043_s6 + $0x180] ss:$8 sps:$4 sm:$0xff]   ;;  %v15432_v54 = vld [vmem:[%s21043_s6 + $0x194] ss:$8 sps:$4 sm:$0xff]  }
 0x1f9   : > { %14206 = vmatpush3.bf16.msra.mxu1 %v17754_v23  ;;  %14286 = vmatpush3.bf16.msra.mxu0 %v17754_v23  ;;  %v17841_v14 = vpack.c.bf16 %v1235_v12, %v1234_v33  ;;  %v15381_v21 = vld [vmem:[%s21043_s6 + $0xa4] ss:$8 sps:$4 sm:$0xff]   ;;  %v15503_v43 = vld [vmem:[#allocation5 + $0x174] ss:$8 sps:$4 sm:$0xff]  }
 0x1fa   : > { %14207 = vmatprep.subr.bf16.mxu1 %v17757_v28  ;;  %14287 = vmatprep.subr.bf16.mxu0 %v17757_v28  ;;  %v13158_v12 = vld [vmem:[%s21045_s23 + $0x80] sm:$0xff]  ;;  %v13167_v33 = vld [vmem:[%s21045_s23 + $0xc8] sm:$0xff]  ;;  %v15456_v50 = vld [vmem:[%s21043_s6 + $0x214] ss:$8 sps:$4 sm:$0xff]  }
 0x1fb   : > { %3692 = vperm.xlu0 %15340, %v13152_v57   ;;  %3826 = vperm.xlu1 %15341, %v13167_v33   ;;  %v15507_v57 = vld [vmem:[#allocation5 + $0x160] ss:$8 sps:$4 sm:$0xff]   ;;  %v15468_v42 = vld [vmem:[%s21043_s6 + $0x234] ss:$8 sps:$4 sm:$0xff]   ;;  %v15537_v33 = vld [vmem:[#allocation5 + $0x110] ss:$8 sps:$4 sm:$0xff]  }
 0x1fd   : > { %14208 = vmatpush3.bf16.msra.mxu1 %v17768_v39  ;;  %14288 = vmatpush3.bf16.msra.mxu0 %v17768_v39 }
 0x1fe   : > { %14209 = vmatprep.subr.bf16.mxu1 %v17771_v41  ;;  %14289 = vmatprep.subr.bf16.mxu0 %v17771_v41 }
 0x1ff   : > { %3631 = vperm.xlu0 %15340, %v3594_v4   ;;  %v15464_v4 = vld [vmem:[%s21043_s6 + $0x220] ss:$8 sps:$4 sm:$0xff]  }
 0x201   : > { %14210 = vmatpush3.bf16.msra.mxu1 %v17780_v48  ;;  %14290 = vmatpush3.bf16.msra.mxu0 %v17780_v48 }
 0x202   : > { %14211 = vmatprep.subr.bf16.mxu1 %v17783_v61  ;;  %14291 = vmatprep.subr.bf16.mxu0 %v17783_v61 }
 0x203   : > { %3821 = vperm.xlu0 %15340, %v13166_v53   ;;  %v15525_v53 = vld [vmem:[#allocation5 + $0x130] ss:$8 sps:$4 sm:$0xff]  }
 0x205   : > { %14212 = vmatpush3.bf16.msra.mxu1 %v17793_v0  ;;  %14292 = vmatpush3.bf16.msra.mxu0 %v17793_v0 }
 0x206   : > { %14213 = vmatprep.subr.bf16.mxu1 %v17797_v1  ;;  %14293 = vmatprep.subr.bf16.mxu0 %v17797_v1 }
 0x207   : > { %3760 = vperm.xlu0 %15340, %v13158_v12   ;;  %v15476_v12 = vld [vmem:[#allocation5 + $0x74] ss:$8 sps:$4 sm:$0xff]  }
 0x209   : > { %14214 = vmatpush3.bf16.msra.mxu1 %v17727_v45  ;;  %14294 = vmatpush3.bf16.msra.mxu0 %v17727_v45 }
 0x20a   : > { %14215 = vmatprep.subr.bf16.mxu1 %v17809_v6  ;;  %14295 = vmatprep.subr.bf16.mxu0 %v17809_v6 }
 0x20d   : > { %14216 = vmatpush3.bf16.msra.mxu1 %v17819_v9  ;;  %14296 = vmatpush3.bf16.msra.mxu0 %v17819_v9 }
 0x20e   : > { %14217 = vmatprep.subr.bf16.mxu1 %v17821_v56  ;;  %14297 = vmatprep.subr.bf16.mxu0 %v17821_v56 }
 0x211   : > { %14218 = vmatpush3.bf16.msra.mxu1 %v17719_v36  ;;  %14298 = vmatpush3.bf16.msra.mxu0 %v17719_v36 }
 0x212   : > { %14219 = vmatprep.subr.bf16.mxu1 %v17829_v13  ;;  %14299 = vmatprep.subr.bf16.mxu0 %v17829_v13 }
 0x215   : > { %14220 = vmatpush3.bf16.msra.mxu1 %v17841_v14  ;;  %14300 = vmatpush3.bf16.msra.mxu0 %v17841_v14 }
 0x216   : > { %14245 = vmatprep.subr.bf16.mxu1 %v17751_v20  ;;  %14365 = vmatprep.subr.bf16.mxu0 %v17751_v20 }
 0x218   : > { %1363 = vmatmul.mubr.bf16.vlgmr.msra.gmra.mxu1 %v15366_v26  ;;  %1599 = vmatmul.mubr.bf16.vlgmr.msra.gmra.mxu0 %v15369_v29  ;;  %v15422_v26 = vld [vmem:[%s21043_s6 + $0xd0] ss:$8 sps:$4 sm:$0xff]  }
 0x219   : > { %14246 = vmatpush3.bf16.msra.mxu1 %v17754_v23  ;;  %14366 = vmatpush3.bf16.msra.mxu0 %v17754_v23  ;;  %v15434_v29 = vld [vmem:[%s21043_s6 + $0x190] ss:$8 sps:$4 sm:$0xff]  }
 0x21a   : > { %14247 = vmatprep.subr.bf16.mxu1 %v17757_v28  ;;  %14367 = vmatprep.subr.bf16.mxu0 %v17757_v28 }
 0x21b   : > { %1370 = vmatprep.mubr.bf16.mxu1 %v15372_v15  ;;  %1606 = vmatprep.mubr.bf16.mxu0 %v15375_v16  ;;  %v15423_v15 = vld [vmem:[%s21043_s6 + $0xe4] ss:$8 sps:$4 sm:$0xff]  }
 0x21c   : > { %v15438_v16 = vld [vmem:[%s21043_s6 + $0x1a4] ss:$8 sps:$4 sm:$0xff]  }
 0x21d   : > { %14248 = vmatpush3.bf16.msra.mxu1 %v17768_v39  ;;  %14368 = vmatpush3.bf16.msra.mxu0 %v17768_v39 }
 0x21e   : > { %14249 = vmatprep.subr.bf16.mxu1 %v17771_v41  ;;  %14369 = vmatprep.subr.bf16.mxu0 %v17771_v41 }
 0x220   : > { %1371 = vmatmul.mubr.bf16.gmra.mxu1 %v15374_v17  ;;  %1607 = vmatmul.mubr.bf16.gmra.mxu0 %v15377_v18  ;;  %v13154_v17 = vld [vmem:[%s21045_s23 + $0x60] sm:$0xff]  ;;  %v13159_v18 = vld [vmem:[%s21045_s23 + $0x88] sm:$0xff] }
 0x221   : > { %14250 = vmatpush3.bf16.msra.mxu1 %v17780_v48  ;;  %14370 = vmatpush3.bf16.msra.mxu0 %v17780_v48 }
 0x222   : > { %14251 = vmatprep.subr.bf16.mxu1 %v17783_v61  ;;  %14371 = vmatprep.subr.bf16.mxu0 %v17783_v61 }
 0x223   : > { %1378 = vmatprep.mubr.bf16.mxu1 %v15378_v19  ;;  %1614 = vmatprep.mubr.bf16.mxu0 %v15381_v21  ;;  %v15425_v19 = vld [vmem:[%s21043_s6 + $0xe0] ss:$8 sps:$4 sm:$0xff]  }
 0x224   : > { %v15440_v21 = vld [vmem:[%s21043_s6 + $0x1a0] ss:$8 sps:$4 sm:$0xff]   ;;  %3702 = vperm.xlu0 %15340, %v13154_v17   ;;  %3765 = vperm.xlu1 %15341, %v13159_v18  }
 0x225   : > { %14252 = vmatpush3.bf16.msra.mxu1 %v17793_v0  ;;  %14372 = vmatpush3.bf16.msra.mxu0 %v17793_v0  ;;  %v13174_v17 = vld [vmem:[%s21045_s23 + $0x100] sm:$0xff]  ;;  %v13183_v18 = vld [vmem:[%s21045_s23 + $0x148] sm:$0xff] }
 0x226   : > { %14253 = vmatprep.subr.bf16.mxu1 %v17797_v1  ;;  %14373 = vmatprep.subr.bf16.mxu0 %v17797_v1 }
 0x228   : > { %1379 = vmatmul.mubr.bf16.gmra.mxu1 %v15380_v22  ;;  %1615 = vmatmul.mubr.bf16.gmra.mxu0 %v15383_v24  ;;  %v15426_v22 = vld [vmem:[%s21043_s6 + $0xf4] ss:$8 sps:$4 sm:$0xff]  }
 0x229   : > { %14254 = vmatpush3.bf16.msra.mxu1 %v17727_v45  ;;  %14374 = vmatpush3.bf16.msra.mxu0 %v17727_v45  ;;  %v15444_v24 = vld [vmem:[%s21043_s6 + $0x1b4] ss:$8 sps:$4 sm:$0xff]  }
 0x22a   : > { %14255 = vmatprep.subr.bf16.mxu1 %v17809_v6  ;;  %14375 = vmatprep.subr.bf16.mxu0 %v17809_v6 }
 0x22b   : > { %1386 = vmatprep.mubr.bf16.mxu1 %v15384_v25  ;;  %1622 = vmatprep.mubr.bf16.mxu0 %v15387_v27  ;;  %v3596_v25 = vld [vmem:[%s21045_s23 + $0x20] sm:$0xff]  ;;  %v13155_v27 = vld [vmem:[%s21045_s23 + $0x68] sm:$0xff] }
 0x22c   : > { %3641 = vperm.xlu0 %15340, %v3596_v25   ;;  %3707 = vperm.xlu1 %15341, %v13155_v27   ;;  %v13172_v25 = vld [vmem:[%s21045_s23 + $0xf0] sm:$0xff]  ;;  %v15465_v27 = vld [vmem:[%s21043_s6 + $0x1e4] ss:$8 sps:$4 sm:$0xff]  }
 0x22d   : > { %14256 = vmatpush3.bf16.msra.mxu1 %v17819_v9  ;;  %14376 = vmatpush3.bf16.msra.mxu0 %v17819_v9 }
 0x22e   : > { %14257 = vmatprep.subr.bf16.mxu1 %v17821_v56  ;;  %14377 = vmatprep.subr.bf16.mxu0 %v17821_v56 }
 0x230   : > { %1387 = vmatmul.mubr.bf16.gmra.mxu1 %v15386_v30  ;;  %1623 = vmatmul.mubr.bf16.gmra.mxu0 %v15389_v31  ;;  %v15428_v30 = vld [vmem:[%s21043_s6 + $0xf0] ss:$8 sps:$4 sm:$0xff]  }
 0x231   : > { %14258 = vmatpush3.bf16.msra.mxu1 %v17719_v36  ;;  %14378 = vmatpush3.bf16.msra.mxu0 %v17719_v36  ;;  %v15446_v31 = vld [vmem:[%s21043_s6 + $0x1b0] ss:$8 sps:$4 sm:$0xff]  }
 0x232   : > { %14259 = vmatprep.subr.bf16.mxu1 %v17829_v13  ;;  %14379 = vmatprep.subr.bf16.mxu0 %v17829_v13 }
 0x233   : > { %1480 = vmatprep.mubr.bf16.mxu1 %v15392_v32  ;;  %1834 = vmatprep.mubr.bf16.mxu0 %v15395_v34  ;;  %v15431_v32 = vld [vmem:[%s21043_s6 + $0x144] ss:$8 sps:$4 sm:$0xff]  }
 0x234   : > { %v15452_v34 = vld [vmem:[%s21043_s6 + $0x204] ss:$8 sps:$4 sm:$0xff]  }
 0x235   : > { %14260 = vmatpush3.bf16.msra.mxu1 %v17841_v14  ;;  %14380 = vmatpush3.bf16.msra.mxu0 %v17841_v14 }
 0x236   : > { %14325 = vmatprep.subr.bf16.mxu1 %v17751_v20  ;;  %14445 = vmatprep.subr.bf16.mxu0 %v17751_v20 }
 0x238   : > { %1481 = vmatmul.mubr.bf16.vlgmr.msra.gmra.mxu1 %v15390_v35  ;;  %1835 = vmatmul.mubr.bf16.vlgmr.msra.gmra.mxu0 %v15393_v37  ;;  %v13168_v35 = vld [vmem:[%s21045_s23 + $0xd0] sm:$0xff]  ;;  %v3597_v37 = vld [vmem:[%s21045_s23 + $0x28] sm:$0xff] }
 0x239   : > { %14326 = vmatpush3.bf16.msra.mxu1 %v17754_v23  ;;  %14446 = vmatpush3.bf16.msra.mxu0 %v17754_v23 }
 0x23a   : > { %14327 = vmatprep.subr.bf16.mxu1 %v17757_v28  ;;  %14447 = vmatprep.subr.bf16.mxu0 %v17757_v28 }
 0x23b   : > { %1488 = vmatprep.mubr.bf16.mxu1 %v15396_v47  ;;  %1842 = vmatprep.mubr.bf16.mxu0 %v15399_v49  ;;  %v15435_v47 = vld [vmem:[%s21043_s6 + $0x154] ss:$8 sps:$4 sm:$0xff]   ;;  %v15450_v49 = vld [vmem:[%s21043_s6 + $0x200] ss:$8 sps:$4 sm:$0xff]  }
 0x23c   : > { %3831 = vperm.xlu0 %15340, %v13168_v35   ;;  %3646 = vperm.xlu1 %15341, %v3597_v37   ;;  %v15552_v35 = vld [vmem:[#allocation5 + $0x1e0] ss:$8 sps:$4 sm:$0xff]   ;;  %v13164_v37 = vld [vmem:[%s21045_s23 + $0xb0] sm:$0xff] }
 0x23d   : > { %14328 = vmatpush3.bf16.msra.mxu1 %v17768_v39  ;;  %14448 = vmatpush3.bf16.msra.mxu0 %v17768_v39 }
 0x23e   : > { %14329 = vmatprep.subr.bf16.mxu1 %v17771_v41  ;;  %14449 = vmatprep.subr.bf16.mxu0 %v17771_v41 }
 0x240   : > { %1489 = vmatmul.mubr.bf16.gmra.mxu1 %v15398_v52  ;;  %1843 = vmatmul.mubr.bf16.gmra.mxu0 %v15401_v59  ;;  %v15509_v52 = vld [vmem:[#allocation5 + $0x164] ss:$8 sps:$4 sm:$0xff]   ;;  %v13160_v59 = vld [vmem:[%s21045_s23 + $0x90] sm:$0xff] }
 0x241   : > { %14330 = vmatpush3.bf16.msra.mxu1 %v17780_v48  ;;  %14450 = vmatpush3.bf16.msra.mxu0 %v17780_v48 }
 0x242   : > { %14331 = vmatprep.subr.bf16.mxu1 %v17783_v61  ;;  %14451 = vmatprep.subr.bf16.mxu0 %v17783_v61 }
 0x243   : > { %1496 = vmatprep.mubr.bf16.mxu1 %v15402_v46  ;;  %1850 = vmatprep.mubr.bf16.mxu0 %v15405_v62  ;;  %v15437_v46 = vld [vmem:[%s21043_s6 + $0x150] ss:$8 sps:$4 sm:$0xff]   ;;  %v15441_v62 = vld [vmem:[%s21043_s6 + $0x164] ss:$8 sps:$4 sm:$0xff]  }
 0x244   : > { %3770 = vperm.xlu0 %15340, %v13160_v59   ;;  %v15471_v59 = vld [vmem:[%s21043_s6 + $0x1f4] ss:$8 sps:$4 sm:$0xff]  }
 0x245   : > { %14332 = vmatpush3.bf16.msra.mxu1 %v17793_v0  ;;  %14452 = vmatpush3.bf16.msra.mxu0 %v17793_v0 }
 0x246   : > { %14333 = vmatprep.subr.bf16.mxu1 %v17797_v1  ;;  %14453 = vmatprep.subr.bf16.mxu0 %v17797_v1 }
 0x248   : > { %1497 = vmatmul.mubr.bf16.gmra.mxu1 %v15404_v60  ;;  %1851 = vmatmul.mubr.bf16.gmra.mxu0 %v15407_v2  ;;  %v15515_v60 = vld [vmem:[#allocation5 + $0x154] ss:$8 sps:$4 sm:$0xff]   ;;  %v15513_v2 = vld [vmem:[#allocation5 + $0x150] ss:$8 sps:$4 sm:$0xff]  }
 0x249   : > { %14334 = vmatpush3.bf16.msra.mxu1 %v17727_v45  ;;  %14454 = vmatpush3.bf16.msra.mxu0 %v17727_v45 }
 0x24a   : > { %14335 = vmatprep.subr.bf16.mxu1 %v17809_v6  ;;  %14455 = vmatprep.subr.bf16.mxu0 %v17809_v6 }
 0x24b   : > { %1504 = vmatprep.mubr.bf16.mxu1 %v15408_v3  ;;  %1858 = vmatprep.mubr.bf16.mxu0 %v15411_v58  ;;  %v13161_v3 = vld [vmem:[%s21045_s23 + $0x98] sm:$0xff]  ;;  %v15443_v58 = vld [vmem:[%s21043_s6 + $0x160] ss:$8 sps:$4 sm:$0xff]  }
 0x24d   : > { %14336 = vmatpush3.bf16.msra.mxu1 %v17819_v9  ;;  %14456 = vmatpush3.bf16.msra.mxu0 %v17819_v9 }
 0x24e   : > { %14337 = vmatprep.subr.bf16.mxu1 %v17821_v56  ;;  %14457 = vmatprep.subr.bf16.mxu0 %v17821_v56 }
 0x250   : > { %1505 = vmatmul.mubr.bf16.gmra.mxu1 %v15410_v55  ;;  %1859 = vmatmul.mubr.bf16.gmra.mxu0 %v15413_v5  ;;  %v15519_v55 = vld [vmem:[#allocation5 + $0x140] ss:$8 sps:$4 sm:$0xff]   ;;  %v15527_v5 = vld [vmem:[#allocation5 + $0x134] ss:$8 sps:$4 sm:$0xff]  }
 0x251   : > { %14338 = vmatpush3.bf16.msra.mxu1 %v17719_v36  ;;  %14458 = vmatpush3.bf16.msra.mxu0 %v17719_v36 }
 0x252   : > { %14339 = vmatprep.subr.bf16.mxu1 %v17829_v13  ;;  %14459 = vmatprep.subr.bf16.mxu0 %v17829_v13 }
 0x253   : > { %1716 = vmatprep.mubr.bf16.mxu1 %v15416_v38  ;;  %2070 = vmatprep.mubr.bf16.mxu0 %v15419_v7  ;;  %v13170_v38 = vld [vmem:[%s21045_s23 + $0xe0] sm:$0xff]  ;;  %v15470_v7 = vld [vmem:[%s21043_s6 + $0x230] ss:$8 sps:$4 sm:$0xff]  }
 0x255   : > { %14340 = vmatpush3.bf16.msra.mxu1 %v17841_v14  ;;  %14460 = vmatpush3.bf16.msra.mxu0 %v17841_v14 }
 0x256   : > { %14405 = vmatprep.subr.bf16.mxu1 %v17751_v20  ;;  %14525 = vmatprep.subr.bf16.mxu0 %v17751_v20 }
 0x258   : > { %1717 = vmatmul.mubr.bf16.vlgmr.msra.gmra.mxu1 %v15414_v8  ;;  %2071 = vmatmul.mubr.bf16.vlgmr.msra.gmra.mxu0 %v15417_v10  ;;  %v15531_v8 = vld [vmem:[#allocation5 + $0x120] ss:$8 sps:$4 sm:$0xff]   ;;  %v15533_v10 = vld [vmem:[#allocation5 + $0x124] ss:$8 sps:$4 sm:$0xff]  }
 0x259   : > { %14406 = vmatpush3.bf16.msra.mxu1 %v17754_v23  ;;  %14526 = vmatpush3.bf16.msra.mxu0 %v17754_v23 }
 0x25a   : > { %14407 = vmatprep.subr.bf16.mxu1 %v17757_v28  ;;  %14527 = vmatprep.subr.bf16.mxu0 %v17757_v28 }
 0x25b   : > { %1724 = vmatprep.mubr.bf16.mxu1 %v15420_v11  ;;  %2078 = vmatprep.mubr.bf16.mxu0 %v15432_v54  ;;  %v13171_v11 = vld [vmem:[%s21045_s23 + $0xe8] sm:$0xff]  ;;  %v15539_v54 = vld [vmem:[#allocation5 + $0x114] ss:$8 sps:$4 sm:$0xff]  }
 0x25d   : > { %14408 = vmatpush3.bf16.msra.mxu1 %v17768_v39  ;;  %14528 = vmatpush3.bf16.msra.mxu0 %v17768_v39 }
 0x25e   : > { %14409 = vmatprep.subr.bf16.mxu1 %v17771_v41  ;;  %14529 = vmatprep.subr.bf16.mxu0 %v17771_v41 }
 0x260   : > { %1725 = vmatmul.mubr.bf16.gmra.mxu1 %v15422_v26  ;;  %2079 = vmatmul.mubr.bf16.gmra.mxu0 %v15434_v29  ;;  %v15459_v26 = vld [vmem:[%s21043_s6 + $0x1d4] ss:$8 sps:$4 sm:$0xff]   ;;  %v15545_v29 = vld [vmem:[#allocation5 + $0x104] ss:$8 sps:$4 sm:$0xff]  }
 0x261   : > { %14410 = vmatpush3.bf16.msra.mxu1 %v17780_v48  ;;  %14530 = vmatpush3.bf16.msra.mxu0 %v17780_v48 }
 0x262   : > { %14411 = vmatprep.subr.bf16.mxu1 %v17783_v61  ;;  %14531 = vmatprep.subr.bf16.mxu0 %v17783_v61 }
 0x263   : > { %1732 = vmatprep.mubr.bf16.mxu1 %v15423_v15  ;;  %2086 = vmatprep.mubr.bf16.mxu0 %v15438_v16  ;;  %v15479_v15 = vld [vmem:[#allocation5 + $0x64] ss:$8 sps:$4 sm:$0xff]   ;;  %v15543_v16 = vld [vmem:[#allocation5 + $0x100] ss:$8 sps:$4 sm:$0xff]  }
 0x265   : > { %14412 = vmatpush3.bf16.msra.mxu1 %v17793_v0  ;;  %14532 = vmatpush3.bf16.msra.mxu0 %v17793_v0 }
 0x266   : > { %14413 = vmatprep.subr.bf16.mxu1 %v17797_v1  ;;  %14533 = vmatprep.subr.bf16.mxu0 %v17797_v1 }
 0x268   : > { %1733 = vmatmul.mubr.bf16.gmra.mxu1 %v15425_v19  ;;  %2087 = vmatmul.mubr.bf16.gmra.mxu0 %v15440_v21  ;;  %v15548_v19 = vld [vmem:[#allocation5 + $0x1f4] ss:$8 sps:$4 sm:$0xff]  }
 0x269   : > { %14414 = vmatpush3.bf16.msra.mxu1 %v17727_v45  ;;  %14534 = vmatpush3.bf16.msra.mxu0 %v17727_v45  ;;  %v15482_v21 = vld [vmem:[#allocation5 + $0x54] ss:$8 sps:$4 sm:$0xff]  }
 0x26a   : > { %14415 = vmatprep.subr.bf16.mxu1 %v17809_v6  ;;  %14535 = vmatprep.subr.bf16.mxu0 %v17809_v6 }
 0x26b   : > { %1740 = vmatprep.mubr.bf16.mxu1 %v15426_v22  ;;  %2094 = vmatprep.mubr.bf16.mxu0 %v15444_v24  ;;  %v15461_v22 = vld [vmem:[%s21043_s6 + $0x1d0] ss:$8 sps:$4 sm:$0xff]  }
 0x26c   : > { %v15546_v24 = vld [vmem:[#allocation5 + $0x1f0] ss:$8 sps:$4 sm:$0xff]  }
 0x26d   : > { %14416 = vmatpush3.bf16.msra.mxu1 %v17819_v9  ;;  %14536 = vmatpush3.bf16.msra.mxu0 %v17819_v9 }
 0x26e   : > { %14417 = vmatprep.subr.bf16.mxu1 %v17821_v56  ;;  %14537 = vmatprep.subr.bf16.mxu0 %v17821_v56 }
 0x270   : > { %1741 = vmatmul.mubr.bf16.gmra.mxu1 %v15428_v30  ;;  %2095 = vmatmul.mubr.bf16.gmra.mxu0 %v15446_v31  ;;  %v13175_v30 = vld [vmem:[%s21045_s23 + $0x108] sm:$0xff] }
 0x271   : > { %14418 = vmatpush3.bf16.msra.mxu1 %v17719_v36  ;;  %14538 = vmatpush3.bf16.msra.mxu0 %v17719_v36  ;;  %v15554_v31 = vld [vmem:[#allocation5 + $0x1e4] ss:$8 sps:$4 sm:$0xff]  }
 0x272   : > { %14419 = vmatprep.subr.bf16.mxu1 %v17829_v13  ;;  %14539 = vmatprep.subr.bf16.mxu0 %v17829_v13 }
 0x273   : > { %1952 = vmatprep.mubr.bf16.mxu1 %v15431_v32  ;;  %2306 = vmatprep.mubr.bf16.mxu0 %v15452_v34  ;;  %v15480_v32 = vld [vmem:[#allocation5 + $0x50] ss:$8 sps:$4 sm:$0xff]   ;;  %v15485_v34 = vld [vmem:[#allocation5 + $0x44] ss:$8 sps:$4 sm:$0xff]  }
 0x275   : > { %14420 = vmatpush3.bf16.msra.mxu1 %v17841_v14  ;;  %14540 = vmatpush3.bf16.msra.mxu0 %v17841_v14 }
 0x276   : > { %14485 = vmatprep.subr.bf16.mxu1 %v17751_v20  ;;  %3292 = vmatprep.subr.bf16.mxu0 %v15503_v43  ;;  %v13169_v20 = vld [vmem:[%s21045_s23 + $0xd8] sm:$0xff] }
 0x277   : > { %3836 = vperm.xlu1 %15341, %v13169_v20   ;;  %v13173_v43 = vld [vmem:[%s21045_s23 + $0xf8] sm:$0xff] }
 0x278   : > { %1953 = vmatmul.mubr.bf16.vlgmr.msra.gmra.mxu1 %v15429_v44  ;;  %2307 = vmatmul.mubr.bf16.vlgmr.msra.gmra.mxu0 %v15450_v49  ;;  %v15560_v44 = vld [vmem:[#allocation5 + $0x1d4] ss:$8 sps:$4 sm:$0xff]  }
 0x279   : > { %14486 = vmatpush3.bf16.msra.mxu1 %v17754_v23  ;;  %1960 = vmatprep.mubr.bf16.mxu1 %v15435_v47  ;;  %v15458_v23 = vld [vmem:[%s21043_s6 + $0x210] ss:$8 sps:$4 sm:$0xff]   ;;  %v15483_v47 = vld [vmem:[#allocation5 + $0x40] ss:$8 sps:$4 sm:$0xff]   ;;  %v15488_v49 = vld [vmem:[#allocation5 + $0x34] ss:$8 sps:$4 sm:$0xff]  }
 0x27a   : > { %14487 = vmatprep.subr.bf16.mxu1 %v17757_v28  ;;  %2314 = vmatprep.mubr.bf16.mxu0 %v15456_v50  ;;  %v13156_v28 = vld [vmem:[%s21045_s23 + $0x70] sm:$0xff]  ;;  %v15467_v50 = vld [vmem:[%s21043_s6 + $0x1e0] ss:$8 sps:$4 sm:$0xff]   ;;  %v13165_v20 = vld [vmem:[%s21045_s23 + $0xb8] sm:$0xff] }
 0x27b   : > { %3293 = vmatpush1.bf16.msra.mxu0 %v15501_v51  ;;  %3712 = vperm.xlu0 %15340, %v13156_v28   ;;  %v15558_v51 = vld [vmem:[#allocation5 + $0x1d0] ss:$8 sps:$4 sm:$0xff]  }
 0x27c   : > { %3294 = vmatprep.subr.bf16.mxu0 %v15509_v52  ;;  %3775 = vperm.xlu1 %15341, %v13161_v3   ;;  %v13184_v52 = vld [vmem:[%s21045_s23 + $0x150] sm:$0xff] }
 0x27d   : > { %14488 = vmatpush3.bf16.msra.mxu1 %v17768_v39  ;;  %v15521_v39 = vld [vmem:[#allocation5 + $0x144] ss:$8 sps:$4 sm:$0xff]   ;;  %v13176_v28 = vld [vmem:[%s21045_s23 + $0x110] sm:$0xff] }
 0x27e   : > { %14489 = vmatprep.subr.bf16.mxu1 %v17771_v41  ;;  %v3598_v41 = vld [vmem:[%s21045_s23 + $0x30] sm:$0xff] }
 0x27f   : > { %3295 = vmatpush1.bf16.msra.mxu0 %v15507_v57  ;;  %3651 = vperm.xlu0 %15340, %v3598_v41   ;;  %v15491_v57 = vld [vmem:[#allocation5 + $0x24] ss:$8 sps:$4 sm:$0xff]   ;;  %v15494_v3 = vld [vmem:[#allocation5 + $0x14] ss:$8 sps:$4 sm:$0xff]   ;;  %v15570_v41 = vld [vmem:[#allocation5 + $0x1b0] ss:$8 sps:$4 sm:$0xff]  }
 0x280   : > { %1961 = vmatmul.mubr.bf16.gmra.mxu1 %v15437_v46  ;;  %2315 = vmatmul.mubr.bf16.gmra.mxu0 %v15458_v23  ;;  %v15566_v46 = vld [vmem:[#allocation5 + $0x1c4] ss:$8 sps:$4 sm:$0xff]   ;;  %v15564_v23 = vld [vmem:[#allocation5 + $0x1c0] ss:$8 sps:$4 sm:$0xff]  }
 0x281   : > { %14490 = vmatpush3.bf16.msra.mxu1 %v17780_v48  ;;  %1968 = vmatprep.mubr.bf16.mxu1 %v15441_v62  ;;  %v13157_v48 = vld [vmem:[%s21045_s23 + $0x78] sm:$0xff] }
 0x282   : > { %14491 = vmatprep.subr.bf16.mxu1 %v17783_v61  ;;  %2322 = vmatprep.mubr.bf16.mxu0 %v15462_v63  ;;  %v15447_v61 = vld [vmem:[%s21043_s6 + $0x174] ss:$8 sps:$4 sm:$0xff]   ;;  %v15486_v62 = vld [vmem:[#allocation5 + $0x30] ss:$8 sps:$4 sm:$0xff]  }
 0x283   : > { %3296 = vmatprep.subr.bf16.mxu0 %v15515_v60  ;;  %3717 = vperm.xlu1 %15341, %v13157_v48   ;;  %v13185_v63 = vld [vmem:[%s21045_s23 + $0x158] sm:$0xff]  ;;  %v15578_v48 = vld [vmem:[#allocation5 + $0x1a4] ss:$8 sps:$4 sm:$0xff]  }
 0x284   : > { %3297 = vmatpush1.bf16.msra.mxu0 %v15513_v2  ;;  %3841 = vperm.xlu0 %15340, %v13170_v38   ;;  %v15572_v60 = vld [vmem:[#allocation5 + $0x1b4] ss:$8 sps:$4 sm:$0xff]   ;;  %v15489_v2 = vld [vmem:[#allocation5 + $0x20] ss:$8 sps:$4 sm:$0xff]  }
 0x285   : > { %14492 = vmatpush3.bf16.msra.mxu1 %v17793_v0  ;;  %3298 = vmatprep.subr.bf16.mxu0 %v15521_v39  ;;  %v3599_v0 = vld [vmem:[%s21045_s23 + $0x38] sm:$0xff]  ;;  %v13199_v38 = vld [vmem:[%s21045_s23 + $0x1c8] sm:$0xff] }
 0x286   : > { %14493 = vmatprep.subr.bf16.mxu1 %v17797_v1  ;;  %v15449_v1 = vld [vmem:[%s21043_s6 + $0x170] ss:$8 sps:$4 sm:$0xff]  }
 0x287   : > { %3656 = vperm.xlu1 %15341, %v3599_v0   ;;  %v15473_v39 = vld [vmem:[%s21043_s6 + $0x1f0] ss:$8 sps:$4 sm:$0xff]   ;;  %v15584_v0 = vld [vmem:[#allocation5 + $0x194] ss:$8 sps:$4 sm:$0xff]  }
 0x288   : > { %1969 = vmatmul.mubr.bf16.gmra.mxu1 %v15443_v58  ;;  %2323 = vmatmul.mubr.bf16.gmra.mxu0 %v15464_v4  ;;  %v13198_v58 = vld [vmem:[%s21045_s23 + $0x1c0] sm:$0xff]  ;;  %v13177_v4 = vld [vmem:[%s21045_s23 + $0x118] sm:$0xff] }
 0x289   : > { %14494 = vmatpush3.bf16.msra.mxu1 %v17727_v45  ;;  %1976 = vmatprep.mubr.bf16.mxu1 %v15447_v61  ;;  %v13162_v45 = vld [vmem:[%s21045_s23 + $0xa0] sm:$0xff]  ;;  %v15492_v61 = vld [vmem:[#allocation5 + $0x10] ss:$8 sps:$4 sm:$0xff]  }
 0x28a   : > { %14495 = vmatprep.subr.bf16.mxu1 %v17809_v6  ;;  %2330 = vmatprep.mubr.bf16.mxu0 %v15468_v42  ;;  %v15455_v6 = vld [vmem:[%s21043_s6 + $0x1c4] ss:$8 sps:$4 sm:$0xff]  }
 0x28b   : > { %3299 = vmatpush1.bf16.msra.mxu0 %v15519_v55  ;;  %3780 = vperm.xlu0 %15340, %v13162_v45   ;;  %v15497_v42 = vld [vmem:[#allocation5 + $0x4] ss:$8 sps:$4 sm:$0xff]   ;;  %v15576_v55 = vld [vmem:[#allocation5 + $0x1a0] ss:$8 sps:$4 sm:$0xff]  }
 0x28c   : > { %3300 = vmatprep.subr.bf16.mxu0 %v15527_v5  ;;  %3846 = vperm.xlu1 %15341, %v13171_v11   ;;  %v13190_v5 = vld [vmem:[%s21045_s23 + $0x180] sm:$0xff] }
 0x28d   : > { %14496 = vmatpush3.bf16.msra.mxu1 %v17819_v9  ;;  %v13182_v9 = vld [vmem:[%s21045_s23 + $0x140] sm:$0xff] }
 0x28e   : > { %14497 = vmatprep.subr.bf16.mxu1 %v17821_v56  ;;  %v15453_v56 = vld [vmem:[%s21043_s6 + $0x1c0] ss:$8 sps:$4 sm:$0xff]   ;;  %v15506_v11 = vld [vmem:[#allocation5 + $0xe4] ss:$8 sps:$4 sm:$0xff]  }
 0x28f   : > { %3301 = vmatpush1.bf16.msra.mxu0 %v15525_v53  ;;  %3943 = vperm.xlu0 %15340, %v13182_v9   ;;  %v15582_v53 = vld [vmem:[#allocation5 + $0x190] ss:$8 sps:$4 sm:$0xff]   ;;  %v13186_v45 = vld [vmem:[%s21045_s23 + $0x160] sm:$0xff] }
 0x290   : > { %1977 = vmatmul.mubr.bf16.gmra.mxu1 %v15449_v1  ;;  %2331 = vmatmul.mubr.bf16.gmra.mxu0 %v15470_v7  ;;  %v15495_v1 = vld [vmem:[#allocation5] ss:$8 sps:$4 sm:$0xff]   ;;  %v15500_v7 = vld [vmem:[#allocation5 + $0xf4] ss:$8 sps:$4 sm:$0xff]  }
 0x291   : > { %14498 = vmatpush3.bf16.msra.mxu1 %v17719_v36  ;;  %2188 = vmatprep.mubr.bf16.mxu1 %v15455_v6  ;;  %v13163_v36 = vld [vmem:[%s21045_s23 + $0xa8] sm:$0xff]  ;;  %v13178_v9 = vld [vmem:[%s21045_s23 + $0x120] sm:$0xff] }
 0x292   : > { %14499 = vmatprep.subr.bf16.mxu1 %v17829_v13  ;;  %3302 = vmatprep.subr.bf16.mxu0 %v15533_v10  ;;  %v15474_v13 = vld [vmem:[#allocation5 + $0x70] ss:$8 sps:$4 sm:$0xff]   ;;  %v13191_v6 = vld [vmem:[%s21045_s23 + $0x188] sm:$0xff] }
 0x293   : > { %3303 = vmatpush1.bf16.msra.mxu0 %v15531_v8  ;;  %3785 = vperm.xlu1 %15341, %v13163_v36   ;;  %v15590_v8 = vld [vmem:[#allocation5 + $0x184] ss:$8 sps:$4 sm:$0xff]   ;;  %v15498_v10 = vld [vmem:[#allocation5 + $0xf0] ss:$8 sps:$4 sm:$0xff]  }
 0x294   : > { %3304 = vmatprep.subr.bf16.mxu0 %v15539_v54  ;;  %3882 = vperm.xlu0 %15340, %v13174_v17   ;;  %v15588_v54 = vld [vmem:[#allocation5 + $0x180] ss:$8 sps:$4 sm:$0xff]   ;;  %v13200_v36 = vld [vmem:[%s21045_s23 + $0x1d0] sm:$0xff]  ;;  %v13201_v17 = vld [vmem:[%s21045_s23 + $0x1d8] sm:$0xff] }
 0x295   : > { %14500 = vmatpush3.bf16.msra.mxu1 %v17841_v14  ;;  %v15477_v14 = vld [vmem:[#allocation5 + $0x60] ss:$8 sps:$4 sm:$0xff]  }
 0x296   : > { %3219 = vmatprep.subr.bf16.mxu1 %v15476_v12  ;;  %v15599_v12 = vld [vmem:[#allocation5 + $0x374] ss:$8 sps:$4 sm:$0xff]  }
 0x297   : > { %3305 = vmatpush1.bf16.msra.mxu0 %v15537_v33  ;;  %3948 = vperm.xlu1 %15341, %v13183_v18   ;;  %v15504_v33 = vld [vmem:[#allocation5 + $0xe0] ss:$8 sps:$4 sm:$0xff]  }
 0x298   : > { %2189 = vmatmul.mubr.bf16.vlgmr.msra.gmra.mxu1 %v15453_v56  ;;  %3306 = vmatprep.subr.bf16.mxu0 %v15545_v29  ;;  %v13187_v56 = vld [vmem:[%s21045_s23 + $0x168] sm:$0xff] }
 0x299   : > { %2196 = vmatprep.mubr.bf16.mxu1 %v15459_v26  ;;  %3220 = vmatpush1.bf16.msra.mxu1 %v15474_v13  ;;  %v15512_v26 = vld [vmem:[#allocation5 + $0xd4] ss:$8 sps:$4 sm:$0xff]   ;;  %v13179_v29 = vld [vmem:[%s21045_s23 + $0x128] sm:$0xff]  ;;  %v15510_v13 = vld [vmem:[#allocation5 + $0xd0] ss:$8 sps:$4 sm:$0xff]  }
 0x29a   : > { %3221 = vmatprep.subr.bf16.mxu1 %v15479_v15  ;;  %3851 = vperm.xlu0 %15340, %v13172_v25   ;;  %v15518_v15 = vld [vmem:[#allocation5 + $0xc4] ss:$8 sps:$4 sm:$0xff]   ;;  %v15516_v18 = vld [vmem:[#allocation5 + $0xc0] ss:$8 sps:$4 sm:$0xff]   ;;  %v13180_v25 = vld [vmem:[%s21045_s23 + $0x130] sm:$0xff] }
 0x29b   : > { %3307 = vmatpush1.bf16.msra.mxu0 %v15543_v16  ;;  %3887 = vperm.xlu1 %15341, %v13175_v30   ;;  %v13192_v16 = vld [vmem:[%s21045_s23 + $0x190] sm:$0xff]  ;;  %v15528_v30 = vld [vmem:[#allocation5 + $0xa0] ss:$8 sps:$4 sm:$0xff]  }
 0x29c   : > { %3308 = vmatprep.subr.bf16.mxu0 %v15548_v19  ;;  %v15524_v19 = vld [vmem:[#allocation5 + $0xb4] ss:$8 sps:$4 sm:$0xff]  }
 0x29d   : > { %3222 = vmatpush1.bf16.msra.mxu1 %v15477_v14  ;;  %v13188_v14 = vld [vmem:[%s21045_s23 + $0x170] sm:$0xff] }
 0x29e   : > { %3223 = vmatprep.subr.bf16.mxu1 %v15482_v21  ;;  %3790 = vperm.xlu0 %15340, %v13164_v37   ;;  %v13193_v21 = vld [vmem:[%s21045_s23 + $0x198] sm:$0xff]  ;;  %v15542_v37 = vld [vmem:[#allocation5 + $0x84] ss:$8 sps:$4 sm:$0xff]  }
 0x29f   : > { %3309 = vmatpush2.bf16.msra.mxu0 %v15546_v24  ;;  %3856 = vperm.xlu1 %15341, %v13173_v43   ;;  %v15530_v24 = vld [vmem:[#allocation5 + $0xa4] ss:$8 sps:$4 sm:$0xff]  }
 0x2a0   : > { %2197 = vmatmul.mubr.bf16.gmra.mxu1 %v15461_v22  ;;  %3310 = vmatprep.subr.bf16.mxu0 %v15554_v31  ;;  %v15522_v22 = vld [vmem:[#allocation5 + $0xb0] ss:$8 sps:$4 sm:$0xff]   ;;  %v15536_v31 = vld [vmem:[#allocation5 + $0x94] ss:$8 sps:$4 sm:$0xff]   ;;  %v13194_v43 = vld [vmem:[%s21045_s23 + $0x1a0] sm:$0xff] }
 0x2a1   : > { %2204 = vmatprep.mubr.bf16.mxu1 %v15465_v27  ;;  %3224 = vmatpush1.bf16.msra.mxu1 %v15480_v32  ;;  %v13189_v27 = vld [vmem:[%s21045_s23 + $0x178] sm:$0xff]  ;;  %v13202_v32 = vld [vmem:[%s21045_s23 + $0x1e0] sm:$0xff] }
 0x2a2   : > { %3225 = vmatprep.subr.bf16.mxu1 %v15485_v34  ;;  %3953 = vperm.xlu0 %15340, %v13184_v52   ;;  %v13181_v34 = vld [vmem:[%s21045_s23 + $0x138] sm:$0xff]  ;;  %v13208_v52 = vld [vmem:[%s21045_s23 + $0x210] sm:$0xff] }
 0x2a3   : > { %3311 = vmatpush2.bf16.msra.mxu0 %v15552_v35  ;;  %3795 = vperm.xlu1 %15341, %v13165_v20   ;;  %v15534_v35 = vld [vmem:[#allocation5 + $0x90] ss:$8 sps:$4 sm:$0xff]  }
 0x2a4   : > { %3312 = vmatprep.subr.bf16.mxu0 %v15560_v44  ;;  %v13203_v44 = vld [vmem:[%s21045_s23 + $0x1e8] sm:$0xff] }
 0x2a5   : > { %3226 = vmatpush1.bf16.msra.mxu1 %v15483_v47  ;;  %v15540_v47 = vld [vmem:[#allocation5 + $0x80] ss:$8 sps:$4 sm:$0xff]  }
 0x2a6   : > { %3227 = vmatprep.subr.bf16.mxu1 %v15488_v49  ;;  %3892 = vperm.xlu0 %15340, %v13176_v28   ;;  %v15551_v49 = vld [vmem:[#allocation5 + $0x274] ss:$8 sps:$4 sm:$0xff]  }
 0x2a7   : > { %3313 = vmatpush2.bf16.msra.mxu0 %v15558_v51  ;;  %3958 = vperm.xlu1 %15341, %v13185_v63   ;;  %v13195_v51 = vld [vmem:[%s21045_s23 + $0x1a8] sm:$0xff]  ;;  %v13209_v28 = vld [vmem:[%s21045_s23 + $0x218] sm:$0xff] }
 0x2a8   : > { %2205 = vmatmul.mubr.bf16.gmra.mxu1 %v15467_v50  ;;  %3314 = vmatprep.subr.bf16.mxu0 %v15566_v46  ;;  %v13206_v50 = vld [vmem:[%s21045_s23 + $0x200] sm:$0xff] }
 0x2a9   : > { %2212 = vmatprep.mubr.bf16.mxu1 %v15471_v59  ;;  %3228 = vmatpush1.bf16.msra.mxu1 %v15486_v62  ;;  %v13207_v59 = vld [vmem:[%s21045_s23 + $0x208] sm:$0xff] }
 0x2aa   : > { %3229 = vmatprep.subr.bf16.mxu1 %v15491_v57  ;;  %4065 = vperm.xlu0 %15340, %v13198_v58  }
 0x2ab   : > { %3315 = vmatpush2.bf16.msra.mxu0 %v15564_v23  ;;  %3897 = vperm.xlu1 %15341, %v13177_v4   ;;  %v13204_v23 = vld [vmem:[%s21045_s23 + $0x1f0] sm:$0xff] }
 0x2ac   : > { %3316 = vmatprep.subr.bf16.mxu0 %v15572_v60 }
 0x2ad   : > { %3230 = vmatpush1.bf16.msra.mxu1 %v15489_v2 }
 0x2ae   : > { %3231 = vmatprep.subr.bf16.mxu1 %v15494_v3  ;;  %4004 = vperm.xlu0 %15340, %v13190_v5  }
 0x2af   : > { %3317 = vmatpush2.bf16.msra.mxu0 %v15570_v41  ;;  %4070 = vperm.xlu1 %15341, %v13199_v38   ;;  %v13205_v41 = vld [vmem:[%s21045_s23 + $0x1f8] sm:$0xff] }
 0x2b0   : > { %2213 = vmatmul.mubr.bf16.gmra.mxu1 %v15473_v39  ;;  %3318 = vmatprep.subr.bf16.mxu0 %v15578_v48  ;;  %v13196_v39 = vld [vmem:[%s21045_s23 + $0x1b0] sm:$0xff]  ;;  %v13210_v48 = vld [vmem:[%s21045_s23 + $0x220] sm:$0xff]  ;;  %v13197_v38 = vld [vmem:[%s21045_s23 + $0x1b8] sm:$0xff] }
 0x2b1   : > { %3232 = vmatpush1.bf16.msra.mxu1 %v15492_v61 }
 0x2b2   : > { %3233 = vmatprep.subr.bf16.mxu1 %v15497_v42  ;;  %3963 = vperm.xlu0 %15340, %v13186_v45  }
 0x2b3   : > { %3319 = vmatpush2.bf16.msra.mxu0 %v15576_v55  ;;  %4009 = vperm.xlu1 %15341, %v13191_v6  }
 0x2b4   : > { %3320 = vmatprep.subr.bf16.mxu0 %v15584_v0  ;;  %v13212_v0 = vld [vmem:[%s21045_s23 + $0x230] sm:$0xff] }
 0x2b5   : > { %3234 = vmatpush1.bf16.msra.mxu1 %v15495_v1 }
 0x2b6   : > { %3235 = vmatprep.subr.bf16.mxu1 %v15500_v7  ;;  %3902 = vperm.xlu0 %15340, %v13178_v9  }
 0x2b7   : > { %3321 = vmatpush2.bf16.msra.mxu0 %v15582_v53  ;;  %3968 = vperm.xlu1 %15341, %v13187_v56   ;;  %v13211_v53 = vld [vmem:[%s21045_s23 + $0x228] sm:$0xff]  ;;  %v13213_v56 = vld [vmem:[%s21045_s23 + $0x238] sm:$0xff] }
 0x2b8   : > { %3322 = vmatprep.subr.bf16.mxu0 %v15590_v8  ;;  %v13465_v8 = vld [vmem:[%s20945_s12 + $0x10] sm:$0xff] }
 0x2b9   : > { %3236 = vmatpush2.bf16.msra.mxu1 %v15498_v10 }
 0x2ba   : > { %3237 = vmatprep.subr.bf16.mxu1 %v15506_v11  ;;  %4075 = vperm.xlu0 %15340, %v13200_v36   ;;  %v13466_v36 = vld [vmem:[%s20945_s12 + $0x18] sm:$0xff] }
 0x2bb   : > { %3323 = vmatpush2.bf16.msra.mxu0 %v15588_v54  ;;  %3907 = vperm.xlu1 %15341, %v13179_v29  }
 0x2bc   : > { %3438 = vmatprep.subr.bf16.mxu0 %v15599_v12  ;;  %v6674_v12 = vld [vmem:[%s20945_s12] sm:$0xff] }
 0x2bd   : > { %3238 = vmatpush2.bf16.msra.mxu1 %v15504_v33 }
 0x2be   : > { %3239 = vmatprep.subr.bf16.mxu1 %v15512_v26  ;;  %4014 = vperm.xlu0 %15340, %v13192_v16  }
 0x2bf   : > { %4080 = vperm.xlu1 %15341, %v13201_v17  }
 0x2c1   : > { %3240 = vmatpush2.bf16.msra.mxu1 %v15510_v13 }
 0x2c2   : > { %3241 = vmatprep.subr.bf16.mxu1 %v15518_v15  ;;  %3973 = vperm.xlu0 %15340, %v13188_v14   ;;  %v13469_v15 = vld [vmem:[%s20945_s12 + $0x30] sm:$0xff]  ;;  %v6675_v14 = vld [vmem:[%s20945_s12 + $0x8] sm:$0xff] }
 0x2c3   : > { %4019 = vperm.xlu1 %15341, %v13193_v21   ;;  %v13467_v21 = vld [vmem:[%s20945_s12 + $0x20] sm:$0xff] }
 0x2c5   : > { %3242 = vmatpush2.bf16.msra.mxu1 %v15516_v18 }
 0x2c6   : > { %3243 = vmatprep.subr.bf16.mxu1 %v15524_v19  ;;  %3912 = vperm.xlu0 %15340, %v13180_v25   ;;  %v13470_v25 = vld [vmem:[%s20945_s12 + $0x38] sm:$0xff] }
 0x2c7   : > { %3978 = vperm.xlu1 %15341, %v13189_v27  }
 0x2c9   : > { %3244 = vmatpush2.bf16.msra.mxu1 %v15522_v22 }
 0x2ca   : > { %3245 = vmatprep.subr.bf16.mxu1 %v15530_v24  ;;  %4085 = vperm.xlu0 %15340, %v13202_v32  }
 0x2cb   : > { %3917 = vperm.xlu1 %15341, %v13181_v34   ;;  %v13473_v34 = vld [vmem:[%s20945_s12 + $0x50] sm:$0xff] }
 0x2cd   : > { %3246 = vmatpush2.bf16.msra.mxu1 %v15528_v30 }
 0x2ce   : > { %3247 = vmatprep.subr.bf16.mxu1 %v15536_v31  ;;  %4024 = vperm.xlu0 %15340, %v13194_v43   ;;  %v13468_v43 = vld [vmem:[%s20945_s12 + $0x28] sm:$0xff] }
 0x2cf   : > { %4090 = vperm.xlu1 %15341, %v13203_v44  }
 0x2d1   : > { %3248 = vmatpush2.bf16.msra.mxu1 %v15534_v35 }
 0x2d2   : > { %3249 = vmatprep.subr.bf16.mxu1 %v15542_v37  ;;  %4126 = vperm.xlu0 %15340, %v13206_v50  }
 0x2d3   : > { %4029 = vperm.xlu1 %15341, %v13195_v51  }
 0x2d5   : > { %3250 = vmatpush2.bf16.msra.mxu1 %v15540_v47 }
 0x2d6   : > { %3365 = vmatprep.subr.bf16.mxu1 %v15551_v49  ;;  %4136 = vperm.xlu0 %15340, %v13208_v52   ;;  %v13471_v52 = vld [vmem:[%s20945_s12 + $0x40] sm:$0xff] }
 0x2d7   : > { %4131 = vperm.xlu1 %15341, %v13207_v59  }
 0x2d8   : > { %v18352_v20 = vpop.f32.mrf.mxu1  ;;  %v18354_v46 = vpop.f32.mrf.mxu0 }
 0x2da   : > { %v18356_v62 = vpop.f32.mrf.mxu1  ;;  %v18358_v57 = vpop.f32.mrf.mxu0  ;;  %4095 = vperm.xlu0 %15340, %v13204_v23  }
 0x2db   : > { %4141 = vperm.xlu1 %15341, %v13209_v28   ;;  %v14223_v59 = vadd.f32 %v18356_v62, %v18352_v20  ;;  %v13477_v20 = vld [vmem:[%s20945_s12 + $0x70] sm:$0xff] }
 0x2dc   : > { %v18366_v63 = vpop.f32.mrf.mxu1  ;;  %v18368_v60 = vpop.f32.mrf.mxu0 }
 0x2de   : > { %v18370_v2 = vpop.f32.mrf.mxu1  ;;  %v18372_v3 = vpop.f32.mrf.mxu0  ;;  %4034 = vperm.xlu0 %15340, %v13196_v39   ;;  %v15549_v39 = vld [vmem:[#allocation5 + $0x270] ss:$8 sps:$4 sm:$0xff]  }
 0x2df   : > { %4100 = vperm.xlu1 %15341, %v13205_v41   ;;  %v14226_v44 = vadd.f32 %v18370_v2, %v18366_v63  ;;  %v13474_v63 = vld [vmem:[%s20945_s12 + $0x58] sm:$0xff] }
 0x2e0   : > { %v18380_v58 = vpop.f32.mrf.mxu1  ;;  %v18382_v4 = vpop.f32.mrf.mxu0 }
 0x2e1   : > { %v1395_v41 = vpack.c.bf16 %v14226_v44, %v14223_v59  ;;  %v13476_v59 = vld [vmem:[%s20945_s12 + $0x68] sm:$0xff] }
 0x2e2   : > { %v18387_v61 = vpop.f32.mrf.mxu1  ;;  %v18389_v42 = vpop.f32.mrf.mxu0  ;;  %4146 = vperm.xlu0 %15340, %v13210_v48  }
 0x2e3   : > { %4039 = vperm.xlu1 %15341, %v13197_v38   ;;  %v15557_v38 = vld [vmem:[#allocation5 + $0x264] ss:$8 sps:$4 sm:$0xff]  }
 0x2e4   : > { %v18391_v55 = vpop.f32.mrf.mxu1  ;;  %v18393_v5 = vpop.f32.mrf.mxu0 }
 0x2e6   : > { %v18401_v1 = vpop.f32.mrf.mxu1  ;;  %v18403_v7 = vpop.f32.mrf.mxu0  ;;  %4156 = vperm.xlu0 %15340, %v13212_v0  }
 0x2e7   : > { %4151 = vperm.xlu1 %15341, %v13211_v53  }
 0x2e8   : > { %v18408_v45 = vpop.f32.mrf.mxu1  ;;  %v18410_v6 = vpop.f32.mrf.mxu0 }
 0x2ea   : > { %v18415_v10 = vpop.f32.mrf.mxu1  ;;  %v18417_v11 = vpop.f32.mrf.mxu0  ;;  %6704 = vperm.xlu0 %15340, %v13465_v8   ;;  %v13472_v8 = vld [vmem:[%s20945_s12 + $0x48] sm:$0xff] }
 0x2eb   : > { %4161 = vperm.xlu1 %15341, %v13213_v56   ;;  %v15555_v56 = vld [vmem:[#allocation5 + $0x260] ss:$8 sps:$4 sm:$0xff]  }
 0x2ec   : > { %v18419_v54 = vpop.f32.mrf.mxu1  ;;  %v18421_v9 = vpop.f32.mrf.mxu0 }
 0x2ee   : > { %v18429_v33 = vpop.f32.mrf.mxu1  ;;  %v18431_v26 = vpop.f32.mrf.mxu0  ;;  %6683 = vperm.xlu0 %15340, %v6674_v12   ;;  %v14232_v12 = vadd.f32 %v18401_v1, %v18391_v55  ;;  %v13478_v55 = vld [vmem:[%s20945_s12 + $0x78] sm:$0xff] }
 0x2ef   : > { %6709 = vperm.xlu1 %15341, %v13466_v36  }
 0x2f0   : > { %v18436_v29 = vpop.f32.mrf.mxu1  ;;  %v18438_v13 = vpop.f32.mrf.mxu0 }
 0x2f2   : > { %v18443_v16 = vpop.f32.mrf.mxu1  ;;  %v18445_v17 = vpop.f32.mrf.mxu0  ;;  %6745 = vperm.xlu0 %15340, %v13469_v15   ;;  %v15563_v15 = vld [vmem:[#allocation5 + $0x254] ss:$8 sps:$4 sm:$0xff]  }
 0x2f3   : > { %6688 = vperm.xlu1 %15341, %v6675_v14  }
 0x2f4   : > { %v18447_v18 = vpop.f32.mrf.mxu1  ;;  %v18449_v19 = vpop.f32.mrf.mxu0 }
 0x2f6   : > { %v18457_v22 = vpop.f32.mrf.mxu1  ;;  %v18459_v24 = vpop.f32.mrf.mxu0  ;;  %6725 = vperm.xlu0 %15340, %v13467_v21  }
 0x2f7   : > { %6750 = vperm.xlu1 %15341, %v13470_v25  }
 0x2f8   : > { %v14261_v27 = vpop.f32.mrf.mxu1  ;;  %v18464_v30 = vpop.f32.mrf.mxu0 }
 0x2fa   : > { %v14262_v31 = vpop.f32.mrf.mxu1  ;;  %v18466_v32 = vpop.f32.mrf.mxu0  ;;  %6781 = vperm.xlu0 %15340, %v13473_v34  }
 0x2fb   : > { %v14263_v50 = vadd.f32 %v14262_v31, %v14261_v27  ;;  %6730 = vperm.xlu1 %15341, %v13468_v43   ;;  %v13475_v27 = vld [vmem:[%s20945_s12 + $0x60] sm:$0xff]  ;;  %v14229_v31 = vadd.f32 %v18387_v61, %v18380_v58  ;;  %v15561_v43 = vld [vmem:[#allocation5 + $0x250] ss:$8 sps:$4 sm:$0xff]  }
 0x2fc   : > { %v14264_v35 = vpop.f32.mrf.mxu1  ;;  %v18471_v37 = vpop.f32.mrf.mxu0  ;;  %v13479_v58 = vld [vmem:[%s20945_s12 + $0x80] sm:$0xff] }
 0x2fd   : > { %v1396_v44 = vpack.c.bf16 %v14232_v12, %v14229_v31  ;;  %v15573_v12 = vld [vmem:[#allocation5 + $0x230] ss:$8 sps:$4 sm:$0xff]   ;;  %v13859_v31 = vld [vmem:[%s20951_s18 + $0x8] sm:$0xff] }
 0x2fe   : > { %v14265_v47 = vpop.f32.mrf.mxu1  ;;  %v18478_v49 = vpop.f32.mrf.mxu0  ;;  %6761 = vperm.xlu0 %15340, %v13471_v52  }
 0x2ff   : > { %v14266_v51 = vadd.f32 %v14265_v47, %v14264_v35  ;;  %6786 = vperm.xlu1 %15341, %v13474_v63   ;;  %v14238_v63 = vadd.f32 %v18429_v33, %v18419_v54  ;;  %v13480_v54 = vld [vmem:[%s20945_s12 + $0x88] sm:$0xff] }
 0x300   : > { %v14267_v23 = vpop.f32.mrf.mxu1  ;;  %v18485_v28 = vpop.f32.mrf.mxu0 }
 0x301   : > { %v1513_v2 = vpack.c.bf16 %v14266_v51, %v14263_v50  ;;  %v15569_v50 = vld [vmem:[#allocation5 + $0x244] ss:$8 sps:$4 sm:$0xff]  }
 0x302   : > { %v14268_v48 = vpop.f32.mrf.mxu1  ;;  %v18490_v0 = vpop.f32.mrf.mxu0  ;;  %6813 = vperm.xlu0 %15340, %v13477_v20   ;;  %v10209_v20 = vld [vmem:[%s20951_s18] sm:$0xff] }
 0x303   : > { %3251 = vmatprep.mubr.bf16.mxu1 %v1513_v2  ;;  %v14269_v21 = vadd.f32 %v14268_v48, %v14267_v23  ;;  %6766 = vperm.xlu1 %15341, %v13472_v8   ;;  %v15567_v23 = vld [vmem:[#allocation5 + $0x240] ss:$8 sps:$4 sm:$0xff]  }
 0x304   : > { %v14270_v62 = vpop.f32.mrf.mxu1  ;;  %3252 = vmatmul.mubr.bf16.vlgmr.msra.gmra.mxu1 %v1395_v41  ;;  %v18495_v53 = vpop.f32.mrf.mxu0 }
 0x305   : > { %3366 = vmatpush1.bf16.msra.mxu1 %v15549_v39  ;;  %v15575_v39 = vld [vmem:[#allocation5 + $0x234] ss:$8 sps:$4 sm:$0xff]  }
 0x306   : > { %v14271_v36 = vpop.f32.mrf.mxu1  ;;  %3367 = vmatprep.subr.bf16.mxu1 %v15557_v38  ;;  %v18502_v14 = vpop.f32.mrf.mxu0  ;;  %6797 = vperm.xlu0 %15340, %v13475_v27  }
 0x307   : > { %v14272_v25 = vadd.f32 %v14271_v36, %v14270_v62  ;;  %6818 = vperm.xlu1 %15341, %v13478_v55   ;;  %v14235_v62 = vadd.f32 %v18415_v10, %v18408_v45  ;;  %v13860_v45 = vld [vmem:[%s20951_s18 + $0x10] sm:$0xff]  ;;  %v14244_v55 = vadd.f32 %v18457_v22, %v18447_v18  ;;  %v13861_v18 = vld [vmem:[%s20951_s18 + $0x18] sm:$0xff] }
 0x308   : > { %v14273_v34 = vpop.f32.mrf.mxu1  ;;  %v18509_v35 = vpop.f32.mrf.mxu0 }
 0x309   : > { %v1514_v1 = vpack.c.bf16 %v14272_v25, %v14269_v21  ;;  %3368 = vmatpush1.bf16.msra.mxu1 %v15555_v56  ;;  %v1397_v36 = vpack.c.bf16 %v14238_v63, %v14235_v62  ;;  %v15581_v21 = vld [vmem:[#allocation5 + $0x224] ss:$8 sps:$4 sm:$0xff]   ;;  %v15585_v63 = vld [vmem:[#allocation5 + $0x210] ss:$8 sps:$4 sm:$0xff]  }
 0x30a   : > { %v14274_v47 = vpop.f32.mrf.mxu1  ;;  %3369 = vmatprep.subr.bf16.mxu1 %v15563_v15  ;;  %v18514_v51 = vpop.f32.mrf.mxu0  ;;  %6829 = vperm.xlu0 %15340, %v13479_v58   ;;  %v13862_v58 = vld [vmem:[%s20951_s18 + $0x20] sm:$0xff]  ;;  %v13863_v62 = vld [vmem:[%s20951_s18 + $0x28] sm:$0xff] }
 0x30b   : > { %3261 = vmatprep.mubr.bf16.mxu1 %v1514_v1  ;;  %v14275_v48 = vadd.f32 %v14274_v47, %v14273_v34  ;;  %6802 = vperm.xlu1 %15341, %v13476_v59   ;;  %v15579_v34 = vld [vmem:[#allocation5 + $0x220] ss:$8 sps:$4 sm:$0xff]  }
 0x30c   : > { %v14276_v61 = vpop.f32.mrf.mxu1  ;;  %3262 = vmatmul.mubr.bf16.gmra.mxu1 %v1396_v44  ;;  %v18519_v52 = vpop.f32.mrf.mxu0 }
 0x30d   : > { %3370 = vmatpush1.bf16.msra.mxu1 %v15561_v43  ;;  %v15587_v43 = vld [vmem:[#allocation5 + $0x214] ss:$8 sps:$4 sm:$0xff]  }
 0x30e   : > { %v14277_v2 = vpop.f32.mrf.mxu1  ;;  %3371 = vmatprep.subr.bf16.mxu1 %v15569_v50  ;;  %v18526_v41 = vpop.f32.mrf.mxu0  ;;  %10214 = vperm.xlu0 %15340, %v10209_v20  }
 0x30f   : > { %v14278_v38 = vadd.f32 %v14277_v2, %v14276_v61  ;;  %6834 = vperm.xlu1 %15341, %v13480_v54   ;;  %v14241_v61 = vadd.f32 %v18443_v16, %v18436_v29  ;;  %v13864_v29 = vld [vmem:[%s20951_s18 + $0x30] sm:$0xff]  ;;  %v14303_v54 = vadd.f32 %v18358_v57, %v18354_v46  ;;  %v13865_v46 = vld [vmem:[%s20951_s18 + $0x38] sm:$0xff] }
 0x310   : > { %v14279_v8 = vpop.f32.mrf.mxu1  ;;  %v18533_v56 = vpop.f32.mrf.mxu0 }
 0x311   : > { %v1515_v33 = vpack.c.bf16 %v14278_v38, %v14275_v48  ;;  %3372 = vmatpush1.bf16.msra.mxu1 %v15567_v23  ;;  %v1398_v2 = vpack.c.bf16 %v14244_v55, %v14241_v61  ;;  %v15593_v48 = vld [vmem:[#allocation5 + $0x204] ss:$8 sps:$4 sm:$0xff]   ;;  %v18586_v55 = vpop.permute.xlu0 %3682 }
 0x312   : > { %v14280_v15 = vpop.f32.mrf.mxu1  ;;  %3373 = vmatprep.subr.bf16.mxu1 %v15575_v39  ;;  %v18538_v25 = vpop.f32.mrf.mxu0  ;;  %10240 = vperm.xlu0 %15340, %v13860_v45   ;;  %21046 = vst [vmem:[#allocation39_spill] sm:$0xff] %v18586_v55 }
 0x313   : > { %3271 = vmatprep.mubr.bf16.mxu1 %v1515_v33  ;;  %v14281_v47 = vadd.f32 %v14280_v15, %v14279_v8  ;;  %10227 = vperm.xlu1 %15341, %v13859_v31   ;;  %v15591_v8 = vld [vmem:[#allocation5 + $0x200] ss:$8 sps:$4 sm:$0xff]   ;;  %v14306_v33 = vadd.f32 %v18372_v3, %v18368_v60  ;;  %v15594_v60 = vld [vmem:[#allocation5 + $0x2f0] ss:$8 sps:$4 sm:$0xff]  }
 0x314   : > { %v14282_v10 = vpop.f32.mrf.mxu1  ;;  %3272 = vmatmul.mubr.bf16.gmra.mxu1 %v1397_v36  ;;  %v18543_v27 = vpop.f32.mrf.mxu0  ;;  %v15596_v36 = vld [vmem:[#allocation5 + $0x2f4] ss:$8 sps:$4 sm:$0xff]   ;;  %v15597_v3 = vld [vmem:[#allocation5 + $0x370] ss:$8 sps:$4 sm:$0xff]  }
 0x315   : > { %3374 = vmatpush1.bf16.msra.mxu1 %v15573_v12 }
 0x316   : > { %v14283_v1 = vpop.f32.mrf.mxu1  ;;  %3375 = vmatprep.subr.bf16.mxu1 %v15581_v21  ;;  %v18550_v44 = vpop.f32.mrf.mxu0  ;;  %10262 = vperm.xlu0 %15340, %v13862_v58  }
 0x317   : > { %v14284_v50 = vadd.f32 %v14283_v1, %v14282_v10  ;;  %10251 = vperm.xlu1 %15341, %v13861_v18   ;;  %v13866_v10 = vld [vmem:[%s20951_s18 + $0x40] sm:$0xff]  ;;  %v1631_v1 = vpack.c.bf16 %v14306_v33, %v14303_v54 }
 0x318   : > { %v14341_v59 = vpop.f32.mrf.mxu1  ;;  %v18557_v23 = vpop.f32.mrf.mxu0  ;;  %v15600_v18 = vld [vmem:[#allocation5 + $0x2e0] ss:$8 sps:$4 sm:$0xff]  }
 0x319   : > { %v1516_v22 = vpack.c.bf16 %v14284_v50, %v14281_v47  ;;  %3376 = vmatpush1.bf16.msra.mxu1 %v15579_v34  ;;  %v15602_v47 = vld [vmem:[#allocation5 + $0x2e4] ss:$8 sps:$4 sm:$0xff]  }
 0x31a   : > { %v14342_v39 = vpop.f32.mrf.mxu1  ;;  %3377 = vmatprep.subr.bf16.mxu1 %v15587_v43  ;;  %v18562_v38 = vpop.f32.mrf.mxu0  ;;  %10286 = vperm.xlu0 %15340, %v13864_v29   ;;  %v15605_v50 = vld [vmem:[#allocation5 + $0x364] ss:$8 sps:$4 sm:$0xff]   ;;  %v15611_v29 = vld [vmem:[#allocation5 + $0x354] ss:$8 sps:$4 sm:$0xff]  }
 0x31b   : > { %3281 = vmatprep.mubr.bf16.mxu1 %v1516_v22  ;;  %v14343_v21 = vadd.f32 %v14342_v39, %v14341_v59  ;;  %10275 = vperm.xlu1 %15341, %v13863_v62   ;;  %v15603_v22 = vld [vmem:[#allocation5 + $0x360] ss:$8 sps:$4 sm:$0xff]  }
 0x31c   : > { %v14344_v16 = vpop.f32.mrf.mxu1  ;;  %3282 = vmatmul.mubr.bf16.gmra.mxu1 %v1398_v2  ;;  %v18567_v20 = vpop.f32.mrf.mxu0  ;;  %v14312_v2 = vadd.f32 %v18403_v7, %v18393_v5  ;;  %v15614_v5 = vld [vmem:[#allocation5 + $0x2c4] ss:$8 sps:$4 sm:$0xff]  }
 0x31d   : > { %3378 = vmatpush1.bf16.msra.mxu1 %v15585_v63  ;;  %v14309_v63 = vadd.f32 %v18389_v42, %v18382_v4  ;;  %v15609_v4 = vld [vmem:[#allocation5 + $0x350] ss:$8 sps:$4 sm:$0xff]   ;;  %v15617_v7 = vld [vmem:[#allocation5 + $0x344] ss:$8 sps:$4 sm:$0xff]  }
 0x31e   : > { %v14345_v12 = vpop.f32.mrf.mxu1  ;;  %3379 = vmatprep.subr.bf16.mxu1 %v15593_v48  ;;  %v18576_v15 = vpop.f32.mrf.mxu0  ;;  %10312 = vperm.xlu0 %15340, %v13866_v10   ;;  %v15608_v48 = vld [vmem:[#allocation5 + $0x2d4] ss:$8 sps:$4 sm:$0xff]  }
 0x31f   : > { %v14346_v45 = vadd.f32 %v14345_v12, %v14344_v16  ;;  %10299 = vperm.xlu1 %15341, %v13865_v46   ;;  %v1632_v42 = vpack.c.bf16 %v14312_v2, %v14309_v63  ;;  %v15612_v46 = vld [vmem:[#allocation5 + $0x2c0] ss:$8 sps:$4 sm:$0xff]  }
 0x320   : > { %v14347_v31 = vpop.f32.mrf.mxu1  ;;  %v18581_v34 = vpop.f32.mrf.mxu0 }
 0x321   : > { %v1749_v57 = vpack.c.bf16 %v14346_v45, %v14343_v21  ;;  %3380 = vmatpush1.bf16.msra.mxu1 %v15591_v8 }
 0x322   : > { %v14348_v43 = vpop.f32.mrf.mxu1  ;;  %3381 = vmatprep.subr.bf16.mxu1 %v15596_v36  ;;  %v18588_v58 = vpop.f32.mrf.mxu0  ;;  %v15606_v36 = vld [vmem:[#allocation5 + $0x2d0] ss:$8 sps:$4 sm:$0xff]  }
 0x323   : > { %3324 = vmatprep.mubr.bf16.mxu0 %v1749_v57  ;;  %v14349_v62 = vadd.f32 %v14348_v43, %v14347_v31  ;;  %v15615_v57 = vld [vmem:[#allocation5 + $0x340] ss:$8 sps:$4 sm:$0xff]   ;;  %v15620_v43 = vld [vmem:[#allocation5 + $0x2b4] ss:$8 sps:$4 sm:$0xff]  }
 0x324   : > { %v14350_v61 = vpop.f32.mrf.mxu1  ;;  %3325 = vmatmul.mubr.bf16.vlgmr.msra.gmra.mxu0 %v1631_v1  ;;  %v18590_v59 = vpop.f32.mrf.mxu0 }
 0x325   : > { %3382 = vmatpush2.bf16.msra.mxu1 %v15594_v60  ;;  %3439 = vmatpush1.bf16.msra.mxu0 %v15597_v3  ;;  %v14315_v60 = vadd.f32 %v18417_v11, %v18410_v6  ;;  %v14318_v3 = vadd.f32 %v18431_v26, %v18421_v9  ;;  %v15621_v6 = vld [vmem:[#allocation5 + $0x330] ss:$8 sps:$4 sm:$0xff]   ;;  %v15626_v9 = vld [vmem:[#allocation5 + $0x2a4] ss:$8 sps:$4 sm:$0xff]  }
 0x326   : > { %v14351_v39 = vpop.f32.mrf.mxu1  ;;  %3383 = vmatprep.subr.bf16.mxu1 %v15602_v47  ;;  %3440 = vmatprep.subr.bf16.mxu0 %v15605_v50  ;;  %v18596_v16 = vpop.f32.mrf.mxu0  ;;  %v15623_v47 = vld [vmem:[#allocation5 + $0x334] ss:$8 sps:$4 sm:$0xff]   ;;  %v15629_v26 = vld [vmem:[#allocation5 + $0x324] ss:$8 sps:$4 sm:$0xff]  }
 0x327   : > { %v14352_v8 = vadd.f32 %v14351_v39, %v14350_v61  ;;  %v15618_v39 = vld [vmem:[#allocation5 + $0x2b0] ss:$8 sps:$4 sm:$0xff]   ;;  %v1633_v11 = vpack.c.bf16 %v14318_v3, %v14315_v60 }
 0x328   : > { %v14353_v54 = vpop.f32.mrf.mxu1  ;;  %v18598_v33 = vpop.f32.mrf.mxu0 }
 0x329   : > { %v1750_v12 = vpack.c.bf16 %v14352_v8, %v14349_v62  ;;  %3384 = vmatpush2.bf16.msra.mxu1 %v15600_v18  ;;  %3441 = vmatpush1.bf16.msra.mxu0 %v15603_v22 }
 0x32a   : > { %v14354_v21 = vpop.f32.mrf.mxu1  ;;  %3385 = vmatprep.subr.bf16.mxu1 %v15608_v48  ;;  %3442 = vmatprep.subr.bf16.mxu0 %v15611_v29  ;;  %v18600_v45 = vpop.f32.mrf.mxu0 }
 0x32b   : > { %3334 = vmatprep.mubr.bf16.mxu0 %v1750_v12  ;;  %v14355_v61 = vadd.f32 %v14354_v21, %v14353_v54  ;;  %v15624_v54 = vld [vmem:[#allocation5 + $0x2a0] ss:$8 sps:$4 sm:$0xff]   ;;  %v15632_v21 = vld [vmem:[#allocation5 + $0x294] ss:$8 sps:$4 sm:$0xff]  }
 0x32c   : > { %v14356_v10 = vpop.f32.mrf.mxu1  ;;  %3335 = vmatmul.mubr.bf16.gmra.mxu0 %v1632_v42  ;;  %v18602_v31 = vpop.f32.mrf.mxu0  ;;  %v15627_v12 = vld [vmem:[#allocation5 + $0x320] ss:$8 sps:$4 sm:$0xff]  }
 0x32d   : > { %3386 = vmatpush2.bf16.msra.mxu1 %v15606_v36  ;;  %3443 = vmatpush1.bf16.msra.mxu0 %v15609_v4  ;;  %v14321_v36 = vadd.f32 %v18445_v17, %v18438_v13  ;;  %v14324_v4 = vadd.f32 %v18459_v24, %v18449_v19  ;;  %v15633_v13 = vld [vmem:[#allocation5 + $0x310] ss:$8 sps:$4 sm:$0xff]   ;;  %v15638_v19 = vld [vmem:[#allocation5 + $0x284] ss:$8 sps:$4 sm:$0xff]  }
 0x32e   : > { %v14357_v1 = vpop.f32.mrf.mxu1  ;;  %3387 = vmatprep.subr.bf16.mxu1 %v15614_v5  ;;  %3444 = vmatprep.subr.bf16.mxu0 %v15617_v7  ;;  %v18608_v50 = vpop.f32.mrf.mxu0  ;;  %v15635_v5 = vld [vmem:[#allocation5 + $0x314] ss:$8 sps:$4 sm:$0xff]   ;;  %v15641_v24 = vld [vmem:[#allocation5 + $0x304] ss:$8 sps:$4 sm:$0xff]  }
 0x32f   : > { %v14358_v18 = vadd.f32 %v14357_v1, %v14356_v10  ;;  %v15630_v1 = vld [vmem:[#allocation5 + $0x290] ss:$8 sps:$4 sm:$0xff]   ;;  %v1634_v17 = vpack.c.bf16 %v14324_v4, %v14321_v36 }
 0x330   : > { %v14359_v22 = vpop.f32.mrf.mxu1  ;;  %v18610_v63 = vpop.f32.mrf.mxu0  ;;  %v15642_v36 = vld [vmem:[#allocation5 + $0x3f0] ss:$8 sps:$4 sm:$0xff]  }
 0x331   : > { %v1751_v2 = vpack.c.bf16 %v14358_v18, %v14355_v61  ;;  %3388 = vmatpush2.bf16.msra.mxu1 %v15612_v46  ;;  %3445 = vmatpush1.bf16.msra.mxu0 %v15615_v57  ;;  %v15636_v18 = vld [vmem:[#allocation5 + $0x280] ss:$8 sps:$4 sm:$0xff]   ;;  %v15645_v4 = vld [vmem:[#allocation5 + $0x470] ss:$8 sps:$4 sm:$0xff]  }
 0x332   : > { %v14360_v48 = vpop.f32.mrf.mxu1  ;;  %3389 = vmatprep.subr.bf16.mxu1 %v15620_v43  ;;  %3446 = vmatprep.subr.bf16.mxu0 %v15623_v47  ;;  %v18612_v29 = vpop.f32.mrf.mxu0 }
 0x333   : > { %3344 = vmatprep.mubr.bf16.mxu0 %v1751_v2  ;;  %v14361_v10 = vadd.f32 %v14360_v48, %v14359_v22  ;;  %v15639_v22 = vld [vmem:[#allocation5 + $0x300] ss:$8 sps:$4 sm:$0xff]   ;;  %v14383_v2 = vadd.f32 %v18466_v32, %v18464_v30  ;;  %v15647_v48 = vld [vmem:[#allocation5 + $0x474] ss:$8 sps:$4 sm:$0xff]   ;;  %v15650_v32 = vld [vmem:[#allocation5 + $0x3e4] ss:$8 sps:$4 sm:$0xff]  }
 0x334   : > { %v14362_v62 = vpop.f32.mrf.mxu1  ;;  %3345 = vmatmul.mubr.bf16.gmra.mxu0 %v1633_v11  ;;  %v18614_v8 = vpop.f32.mrf.mxu0  ;;  %v15644_v11 = vld [vmem:[#allocation5 + $0x3f4] ss:$8 sps:$4 sm:$0xff]  }
 0x335   : > { %3390 = vmatpush2.bf16.msra.mxu1 %v15618_v39  ;;  %3447 = vmatpush1.bf16.msra.mxu0 %v15621_v6  ;;  %v14386_v39 = vadd.f32 %v18478_v49, %v18471_v37  ;;  %v15653_v37 = vld [vmem:[#allocation5 + $0x464] ss:$8 sps:$4 sm:$0xff]  }
 0x336   : > { %v14363_v42 = vpop.f32.mrf.mxu1  ;;  %3391 = vmatprep.subr.bf16.mxu1 %v15626_v9  ;;  %3448 = vmatprep.subr.bf16.mxu0 %v15629_v26  ;;  %v18620_v7 = vpop.f32.mrf.mxu0 }
 0x337   : > { %v14364_v46 = vadd.f32 %v14363_v42, %v14362_v62  ;;  %v1867_v42 = vpack.c.bf16 %v14386_v39, %v14383_v2 }
 0x338   : > { %v14421_v57 = vpop.f32.mrf.mxu1  ;;  %v18622_v60 = vpop.f32.mrf.mxu0 }
 0x339   : > { %v1752_v3 = vpack.c.bf16 %v14364_v46, %v14361_v10  ;;  %3392 = vmatpush2.bf16.msra.mxu1 %v15624_v54  ;;  %3449 = vmatpush1.bf16.msra.mxu0 %v15627_v12  ;;  %v15651_v10 = vld [vmem:[#allocation5 + $0x460] ss:$8 sps:$4 sm:$0xff]   ;;  %v14389_v46 = vadd.f32 %v18490_v0, %v18485_v28  ;;  %v15662_v0 = vld [vmem:[#allocation5 + $0x3c4] ss:$8 sps:$4 sm:$0xff]  }
 0x33a   : > { %v14422_v43 = vpop.f32.mrf.mxu1  ;;  %3393 = vmatprep.subr.bf16.mxu1 %v15632_v21  ;;  %3450 = vmatprep.subr.bf16.mxu0 %v15635_v5  ;;  %v18624_v47 = vpop.f32.mrf.mxu0  ;;  %v15648_v5 = vld [vmem:[#allocation5 + $0x3e0] ss:$8 sps:$4 sm:$0xff]  }
 0x33b   : > { %3354 = vmatprep.mubr.bf16.mxu0 %v1752_v3  ;;  %v14423_v9 = vadd.f32 %v14422_v43, %v14421_v57  ;;  %v14392_v57 = vadd.f32 %v18502_v14, %v18495_v53  ;;  %v15665_v53 = vld [vmem:[#allocation5 + $0x444] ss:$8 sps:$4 sm:$0xff]  }
 0x33c   : > { %v14424_v61 = vpop.f32.mrf.mxu1  ;;  %3355 = vmatmul.mubr.bf16.gmra.mxu0 %v1634_v17  ;;  %v18630_v62 = vpop.f32.mrf.mxu0 }
 0x33d   : > { %3394 = vmatpush2.bf16.msra.mxu1 %v15630_v1  ;;  %3451 = vmatpush1.bf16.msra.mxu0 %v15633_v13  ;;  %v15656_v1 = vld [vmem:[#allocation5 + $0x3d4] ss:$8 sps:$4 sm:$0xff]   ;;  %v1868_v2 = vpack.c.bf16 %v14392_v57, %v14389_v46  ;;  %v15672_v46 = vld [vmem:[#allocation5 + $0x3a0] ss:$8 sps:$4 sm:$0xff]  }
 0x33e   : > { %v14425_v6 = vpop.f32.mrf.mxu1  ;;  %3395 = vmatprep.subr.bf16.mxu1 %v15638_v19  ;;  %3452 = vmatprep.subr.bf16.mxu0 %v15641_v24  ;;  %v18632_v49 = vpop.f32.mrf.mxu0  ;;  %v15659_v13 = vld [vmem:[#allocation5 + $0x454] ss:$8 sps:$4 sm:$0xff]   ;;  %v15675_v57 = vld [vmem:[#allocation5 + $0x420] ss:$8 sps:$4 sm:$0xff]  }
 0x33f   : > { %v14426_v26 = vadd.f32 %v14425_v6, %v14424_v61  ;;  %v15660_v6 = vld [vmem:[#allocation5 + $0x3c0] ss:$8 sps:$4 sm:$0xff]  }
 0x340   : > { %v14427_v54 = vpop.f32.mrf.mxu1  ;;  %v18638_v19 = vpop.f32.mrf.mxu0 }
 0x341   : > { %v1985_v12 = vpack.c.bf16 %v14426_v26, %v14423_v9  ;;  %3396 = vmatpush2.bf16.msra.mxu1 %v15636_v18  ;;  %3453 = vmatpush1.bf16.msra.mxu0 %v15639_v22  ;;  %v15654_v18 = vld [vmem:[#allocation5 + $0x3d0] ss:$8 sps:$4 sm:$0xff]   ;;  %v14398_v9 = vadd.f32 %v18526_v41, %v18519_v52  ;;  %v15677_v52 = vld [vmem:[#allocation5 + $0x424] ss:$8 sps:$4 sm:$0xff]  }
 0x342   : > { %v14428_v30 = vpop.f32.mrf.mxu1  ;;  %3454 = vmatprep.subr.bf16.mxu0 %v15644_v11  ;;  %3511 = vmatprep.subr.bf16.mxu1 %v15647_v48  ;;  %v15657_v22 = vld [vmem:[#allocation5 + $0x450] ss:$8 sps:$4 sm:$0xff]   ;;  %v18640_v14 = vpop.f32.mrf.mxu0  ;;  %v15663_v11 = vld [vmem:[#allocation5 + $0x440] ss:$8 sps:$4 sm:$0xff]   ;;  %v14395_v48 = vadd.f32 %v18514_v51, %v18509_v35  ;;  %v15674_v51 = vld [vmem:[#allocation5 + $0x3a4] ss:$8 sps:$4 sm:$0xff]  }
 0x343   : > { %3397 = vmatprep.mubr.bf16.mxu1 %v1985_v12  ;;  %v14429_v17 = vadd.f32 %v14428_v30, %v14427_v54  ;;  %v15668_v54 = vld [vmem:[#allocation5 + $0x3b4] ss:$8 sps:$4 sm:$0xff]  }
 0x344   : > { %v14430_v21 = vpop.f32.mrf.mxu1  ;;  %3398 = vmatmul.mubr.bf16.vlgmr.msra.gmra.mxu1 %v1867_v42  ;;  %v15671_v12 = vld [vmem:[#allocation5 + $0x434] ss:$8 sps:$4 sm:$0xff]   ;;  %v18646_v42 = vpop.f32.mrf.mxu0 }
 0x345   : > { %3455 = vmatpush2.bf16.msra.mxu0 %v15642_v36  ;;  %3512 = vmatpush1.bf16.msra.mxu1 %v15645_v4 }
 0x346   : > { %v14431_v3 = vpop.f32.mrf.mxu1  ;;  %3456 = vmatprep.subr.bf16.mxu0 %v15650_v32  ;;  %3513 = vmatprep.subr.bf16.mxu1 %v15653_v37  ;;  %v15666_v37 = vld [vmem:[#allocation5 + $0x3b0] ss:$8 sps:$4 sm:$0xff]   ;;  %v18648_v41 = vpop.f32.mrf.mxu0 }
 0x347   : > { %v14432_v43 = vadd.f32 %v14431_v3, %v14430_v21  ;;  %v15669_v21 = vld [vmem:[#allocation5 + $0x430] ss:$8 sps:$4 sm:$0xff]   ;;  %v14401_v3 = vadd.f32 %v18538_v25, %v18533_v56  ;;  %v15686_v25 = vld [vmem:[#allocation5 + $0x384] ss:$8 sps:$4 sm:$0xff]  }
 0x348   : > { %v14433_v24 = vpop.f32.mrf.mxu1 }
 0x349   : > { %v1986_v61 = vpack.c.bf16 %v14432_v43, %v14429_v17  ;;  %3457 = vmatpush2.bf16.msra.mxu0 %v15648_v5  ;;  %3514 = vmatpush1.bf16.msra.mxu1 %v15651_v10  ;;  %v1869_v5 = vpack.c.bf16 %v14398_v9, %v14395_v48  ;;  %v15680_v17 = vld [vmem:[#allocation5 + $0x394] ss:$8 sps:$4 sm:$0xff]   ;;  %v15687_v48 = vld [vmem:[#allocation5 + $0x400] ss:$8 sps:$4 sm:$0xff]   ;;  %v14466_v9 = vadd.f32 %v18576_v15, %v18567_v20 }
 0x34a   : > { %v14434_v28 = vpop.f32.mrf.mxu1  ;;  %3458 = vmatprep.subr.bf16.mxu0 %v15656_v1  ;;  %3515 = vmatprep.subr.bf16.mxu1 %v15659_v13  ;;  %v14404_v1 = vadd.f32 %v18550_v44, %v18543_v27  ;;  %v15683_v43 = vld [vmem:[#allocation5 + $0x414] ss:$8 sps:$4 sm:$0xff]   ;;  %v15689_v27 = vld [vmem:[#allocation5 + $0x404] ss:$8 sps:$4 sm:$0xff]  }
 0x34b   : > { %3407 = vmatprep.mubr.bf16.mxu1 %v1986_v61  ;;  %v14435_v36 = vadd.f32 %v14434_v28, %v14433_v24  ;;  %v15678_v28 = vld [vmem:[#allocation5 + $0x390] ss:$8 sps:$4 sm:$0xff]  }
 0x34c   : > { %v14436_v39 = vpop.f32.mrf.mxu1  ;;  %3408 = vmatmul.mubr.bf16.gmra.mxu1 %v1868_v2 }
 0x34d   : > { %3459 = vmatpush2.bf16.msra.mxu0 %v15654_v18  ;;  %3516 = vmatpush1.bf16.msra.mxu1 %v15657_v22  ;;  %v18654_v18 = vpop.f32.mrf.mxu0 }
 0x34e   : > { %v14437_v26 = vpop.f32.mrf.mxu1  ;;  %3460 = vmatprep.subr.bf16.mxu0 %v15662_v0  ;;  %3517 = vmatprep.subr.bf16.mxu1 %v15665_v53  ;;  %v15681_v0 = vld [vmem:[#allocation5 + $0x410] ss:$8 sps:$4 sm:$0xff]   ;;  %v1870_v53 = vpack.c.bf16 %v14404_v1, %v14401_v3 }
 0x34f   : > { %v14438_v4 = vadd.f32 %v14437_v26, %v14436_v39  ;;  %v14554_v44 = vpop.f32.mrf.mxu0  ;;  %v14543_v26 = vadd.f32 %v18624_v47, %v18622_v60 }
 0x350   : > { %v14439_v30 = vpop.f32.mrf.mxu1 }
 0x351   : > { %v1987_v32 = vpack.c.bf16 %v14438_v4, %v14435_v36  ;;  %3461 = vmatpush2.bf16.msra.mxu0 %v15660_v6  ;;  %3518 = vmatpush1.bf16.msra.mxu1 %v15663_v11  ;;  %v14463_v6 = vadd.f32 %v18562_v38, %v18557_v23  ;;  %v15684_v11 = vld [vmem:[#allocation5 + $0x380] ss:$8 sps:$4 sm:$0xff]   ;;  %v14556_v23 = vpop.f32.mrf.mxu0 }
 0x352   : > { %v14440_v35 = vpop.f32.mrf.mxu1  ;;  %3462 = vmatprep.subr.bf16.mxu0 %v15668_v54  ;;  %3519 = vmatprep.subr.bf16.mxu1 %v15671_v12  ;;  %v14546_v54 = vadd.f32 %v18632_v49, %v18630_v62  ;;  %v14469_v62 = vadd.f32 %v18588_v58, %v18581_v34  ;;  %v14472_v49 = vadd.f32 %v18596_v16, %v18590_v59 }
 0x353   : > { %3417 = vmatprep.mubr.bf16.mxu1 %v1987_v32  ;;  %v14441_v24 = vadd.f32 %v14440_v35, %v14439_v30  ;;  %v2103_v32 = vpack.c.bf16 %v14466_v9, %v14463_v6  ;;  %v14557_v60 = vpop.f32.mrf.mxu0  ;;  %v14475_v59 = vadd.f32 %v18600_v45, %v18598_v33  ;;  %v14478_v16 = vadd.f32 %v18608_v50, %v18602_v31  ;;  %v18687_v6 = vpop.permute.xlu0 %3687 }
 0x354   : > { %v14442_v10 = vpop.f32.mrf.mxu1  ;;  %3418 = vmatmul.mubr.bf16.gmra.mxu1 %v1869_v5  ;;  %v2339_v20 = vpack.c.bf16 %v14546_v54, %v14543_v26  ;;  %v14481_v33 = vadd.f32 %v18612_v29, %v18610_v63  ;;  %v14484_v45 = vadd.f32 %v18620_v7, %v18614_v8 }
 0x355   : > { %3463 = vmatpush2.bf16.msra.mxu0 %v15666_v37  ;;  %3520 = vmatpush1.bf16.msra.mxu1 %v15669_v21  ;;  %v14549_v37 = vadd.f32 %v18640_v14, %v18638_v19  ;;  %v14552_v21 = vadd.f32 %v18648_v41, %v18646_v42  ;;  %v14555_v19 = vadd.f32 %v14554_v44, %v18654_v18 }
 0x356   : > { %v14443_v13 = vpop.f32.mrf.mxu1  ;;  %3464 = vmatprep.subr.bf16.mxu0 %v15674_v51  ;;  %3521 = vmatprep.subr.bf16.mxu1 %v15677_v52  ;;  %v14559_v52 = vpop.f32.mrf.mxu0  ;;  %v14558_v14 = vadd.f32 %v14557_v60, %v14556_v23  ;;  %v15691_v23 = vld [vmem:[#allocation8 + $0x38] sm:$0xff]   ;;  %v15695_v60 = vld [vmem:[#allocation8 + $0x30] sm:$0xff]  }
 0x357   : > { %v14444_v61 = vadd.f32 %v14443_v13, %v14442_v10  ;;  %v2340_v3 = vpack.c.bf16 %v14552_v21, %v14549_v37  ;;  %v18691_v63 = vpop.permute.xlu0 %3692  ;;  %v15698_v21 = vld [vmem:[#allocation8 + $0x68] sm:$0xff]  }
 0x358   : > { %v14501_v22 = vpop.f32.mrf.mxu1  ;;  %v14560_v34 = vpop.f32.mrf.mxu0 }
 0x359   : > { %v1988_v2 = vpack.c.bf16 %v14444_v61, %v14441_v24  ;;  %3465 = vmatpush2.bf16.msra.mxu0 %v15672_v46  ;;  %3522 = vmatpush1.bf16.msra.mxu1 %v15675_v57  ;;  %v2104_v57 = vpack.c.bf16 %v14472_v49, %v14469_v62  ;;  %v2105_v61 = vpack.c.bf16 %v14478_v16, %v14475_v59  ;;  %v15697_v62 = vld [vmem:[#allocation8 + $0xb0] sm:$0xff]   ;;  %v15708_v59 = vld [vmem:[#allocation8 + $0xd8] sm:$0xff]  }
 0x35a   : > { %v14502_v56 = vpop.f32.mrf.mxu1  ;;  %3466 = vmatprep.subr.bf16.mxu0 %v15680_v17  ;;  %3523 = vmatprep.subr.bf16.mxu1 %v15683_v43  ;;  %v14562_v17 = vpop.f32.mrf.mxu0  ;;  %v14561_v31 = vadd.f32 %v14560_v34, %v14559_v52  ;;  %v15702_v52 = vld [vmem:[#allocation8 + $0x60] sm:$0xff]   ;;  %v15706_v34 = vld [vmem:[#allocation8 + $0x58] sm:$0xff]  }
 0x35b   : > { %3427 = vmatprep.mubr.bf16.mxu1 %v1988_v2  ;;  %v14503_v36 = vadd.f32 %v14502_v56, %v14501_v22  ;;  %v2341_v22 = vpack.c.bf16 %v14558_v14, %v14555_v19  ;;  %v18695_v8 = vpop.permute.xlu0 %3631  ;;  %v15709_v16 = vld [vmem:[#allocation8 + $0x98] sm:$0xff]  }
 0x35c   : > { %v14504_v39 = vpop.f32.mrf.mxu1  ;;  %3428 = vmatmul.mubr.bf16.gmra.mxu1 %v1870_v53 }
 0x35d   : > { %3467 = vmatpush2.bf16.msra.mxu0 %v15678_v28  ;;  %3524 = vmatpush1.bf16.msra.mxu1 %v15681_v0  ;;  %v14563_v28 = vpop.f32.mrf.mxu0 }
 0x35e   : > { %v14505_v12 = vpop.f32.mrf.mxu1  ;;  %3468 = vmatprep.subr.bf16.mxu0 %v15686_v25  ;;  %3525 = vmatprep.subr.bf16.mxu1 %v15689_v27  ;;  %v14564_v50 = vadd.f32 %v14563_v28, %v14562_v17  ;;  %v2106_v27 = vpack.c.bf16 %v14484_v45, %v14481_v33  ;;  %v15713_v17 = vld [vmem:[#allocation8 + $0x90] sm:$0xff]   ;;  %v15718_v33 = vld [vmem:[#allocation8 + $0x40] sm:$0xff]  }
 0x35f   : > { %v14506_v4 = vadd.f32 %v14505_v12, %v14504_v39  ;;  %3543 = vmatprep.mubr.bf16.mxu1 %v20975_v40  ;;  %v18685_v39 = vpop.permute.xlu1 %3621  ;;  %v15719_v45 = vld [vmem:[#allocation8] sm:$0xff]  }
 0x360   : > { %v14507_v38 = vpop.f32.mrf.mxu1  ;;  %v2342_v44 = vpack.c.bf16 %v14564_v50, %v14561_v31  ;;  %21047 = vst [vmem:[#allocation40_spill] sm:$0xff] %v18685_v39  ;;  %v15720_v50 = vld [vmem:[#allocation8 + $0xc0] sm:$0xff]  }
 0x361   : > { %v2221_v30 = vpack.c.bf16 %v14506_v4, %v14503_v36  ;;  %3469 = vmatpush2.bf16.msra.mxu0 %v15684_v11  ;;  %3526 = vmatpush1.bf16.msra.mxu1 %v15687_v48  ;;  %v18699_v48 = vpop.permute.xlu0 %3821  ;;  %v15690_v4 = vld [vmem:[#allocation8 + $0x78] sm:$0xff]  }
 0x362   : > { %v14508_v15 = vpop.f32.mrf.mxu1  ;;  %21049 = vst [vmem:[#allocation42_spill] sm:$0xff] %v18699_v48  ;;  %14565 = vmatprep.subr.bf16.mxu0 %v15690_v4 }
 0x363   : > { %3470 = vmatprep.mubr.bf16.mxu0 %v2221_v30  ;;  %v14509_v35 = vadd.f32 %v14508_v15, %v14507_v38  ;;  %v18689_v11 = vpop.permute.xlu1 %3626  ;;  %v15692_v38 = vld [vmem:[#allocation8 + $0xf8] sm:$0xff]   ;;  %v15694_v15 = vld [vmem:[#allocation8 + $0x70] sm:$0xff]  }
 0x364   : > { %v14510_v47 = vpop.f32.mrf.mxu1  ;;  %3471 = vmatmul.mubr.bf16.vlgmr.msra.gmra.mxu0 %v2103_v32  ;;  %3544 = vmatmul.mubr.bf16.vlgmr.msra.gmra.mxu1 %v2339_v20  ;;  %21048 = vst [vmem:[#allocation41_spill] sm:$0xff] %v18689_v11  ;;  %v15693_v20 = vld [vmem:[#allocation8 + $0xb8] sm:$0xff]  }
 0x365   : > { %3553 = vmatprep.mubr.bf16.mxu1 %v20975_v40  ;;  %v18703_v26 = vpop.permute.xlu0 %3760  ;;  %14566 = vmatpush3.bf16.msra.mxu0 %v15691_v23 }
 0x366   : > { %v14511_v5 = vpop.f32.mrf.mxu1  ;;  %21051 = vst [vmem:[#allocation44_spill] sm:$0xff] %v18703_v26  ;;  %14605 = vmatprep.subr.bf16.mxu1 %v15692_v38  ;;  %14567 = vmatprep.subr.bf16.mxu0 %v15694_v15  ;;  %v2489_v15 = vlaneseq }
 0x367   : > { %v14512_v51 = vadd.f32 %v14511_v5, %v14510_v47  ;;  %v18693_v29 = vpop.permute.xlu1 %3697  ;;  %14606 = vmatpush3.bf16.msra.mxu1 %v15693_v20  ;;  %v15696_v47 = vld [vmem:[#allocation8 + $0xf0] sm:$0xff]   ;;  %v15699_v5 = vld [vmem:[#allocation8 + $0x28] sm:$0xff]  }
 0x368   : > { %v14513_v10 = vpop.f32.mrf.mxu1  ;;  %14607 = vmatprep.subr.bf16.mxu1 %v15696_v47 }
 0x369   : > { %v2222_v46 = vpack.c.bf16 %v14512_v51, %v14509_v35  ;;  %v18707_v12 = vpop.permute.xlu0 %3702  ;;  %14568 = vmatpush3.bf16.msra.mxu0 %v15695_v60  ;;  %v15700_v35 = vld [vmem:[#allocation8 + $0xe8] sm:$0xff]  }
 0x36a   : > { %v14514_v1 = vpop.f32.mrf.mxu1  ;;  %14569 = vmatprep.subr.bf16.mxu0 %v15698_v21  ;;  %v15701_v51 = vld [vmem:[#allocation8 + $0xa8] sm:$0xff]   ;;  %v18751_v21 = vshrl.u32 %v2489_v15, 7 }
 0x36b   : > { %3480 = vmatprep.mubr.bf16.mxu0 %v2222_v46  ;;  %v14515_v41 = vadd.f32 %v14514_v1, %v14513_v10  ;;  %v18697_v7 = vpop.permute.xlu1 %3636  ;;  %14608 = vmatpush3.bf16.msra.mxu1 %v15697_v62  ;;  %v15703_v10 = vld [vmem:[#allocation8 + $0x20] sm:$0xff]  }
 0x36c   : > { %v14516_v58 = vpop.f32.mrf.mxu1  ;;  %3481 = vmatmul.mubr.bf16.gmra.mxu0 %v2104_v57  ;;  %3554 = vmatmul.mubr.bf16.gmra.mxu1 %v2340_v3  ;;  %v15704_v46 = vld [vmem:[#allocation8 + $0xe0] sm:$0xff]   ;;  %21063 = vst [vmem:[#allocation56_spill] sm:$0xff] %v18751_v21  ;;  %vm3749_vm0 = vcmp.lt.s32.totalorder %v18751_v21, 7  ;;  %vm3610_vm1 = vcmp.lt.s32.totalorder %v18751_v21, 1 }
 0x36d   : > { %3563 = vmatprep.mubr.bf16.mxu1 %v20975_v40  ;;  %v18711_v30 = vpop.permute.xlu0 %3641  ;;  %14570 = vmatpush3.bf16.msra.mxu0 %v15699_v5  ;;  %v15705_v1 = vld [vmem:[#allocation8 + $0xa0] sm:$0xff]   ;;  %v18754_v5 = vsub.s32 1, %v18751_v21 }
 0x36e   : > { %v14517_v42 = vpop.f32.mrf.mxu1  ;;  %14609 = vmatprep.subr.bf16.mxu1 %v15700_v35  ;;  %14571 = vmatprep.subr.bf16.mxu0 %v15702_v52 }
 0x36f   : > { %v14518_v13 = vadd.f32 %v14517_v42, %v14516_v58  ;;  %v18701_v9 = vpop.permute.xlu1 %3826  ;;  %14610 = vmatpush3.bf16.msra.mxu1 %v15701_v51  ;;  %v15707_v58 = vld [vmem:[#allocation8 + $0x18] sm:$0xff]   ;;  %v15710_v42 = vld [vmem:[#allocation8 + $0x50] sm:$0xff]   ;;  %21064 = vst [vmem:[#allocation57_spill] sm:$0xff] %v18754_v5 }
 0x370   : > { %v14519_v43 = vpop.f32.mrf.mxu1  ;;  %21050 = vst [vmem:[#allocation43_spill] sm:$0xff] %v18701_v9  ;;  %14611 = vmatprep.subr.bf16.mxu1 %v15704_v46 }
 0x371   : > { %v2223_v24 = vpack.c.bf16 %v14518_v13, %v14515_v41  ;;  %v18715_v49 = vpop.permute.xlu0 %3831  ;;  %14572 = vmatpush3.bf16.msra.mxu0 %v15703_v10  ;;  %v15711_v41 = vld [vmem:[#allocation8 + $0x10] sm:$0xff]   ;;  %v18762_v10 = vld [vmem:[#allocation7] sm:$0x3] }
 0x372   : > { %v14520_v2 = vpop.f32.mrf.mxu1  ;;  %14573 = vmatprep.subr.bf16.mxu0 %v15706_v34  ;;  %v15712_v13 = vld [vmem:[#allocation8 + $0xd0] sm:$0xff]   ;;  %v18766_v46 = vrot.slane %v18762_v10, %v18754_v5 }
 0x373   : > { %3490 = vmatprep.mubr.bf16.mxu0 %v2223_v24  ;;  %v14521_v53 = vadd.f32 %v14520_v2, %v14519_v43  ;;  %v18705_v54 = vpop.permute.xlu1 %3765  ;;  %14612 = vmatpush3.bf16.msra.mxu1 %v15705_v1  ;;  %v15714_v43 = vld [vmem:[#allocation8 + $0x48] sm:$0xff]  }
 0x374   : > { %v14522_v0 = vpop.f32.mrf.mxu1  ;;  %3491 = vmatmul.mubr.bf16.gmra.mxu0 %v2105_v61  ;;  %3564 = vmatmul.mubr.bf16.gmra.mxu1 %v2341_v22  ;;  %21052 = vst [vmem:[#allocation45_spill] sm:$0xff] %v18705_v54  ;;  %v15715_v61 = vld [vmem:[#allocation8 + $0x8] sm:$0xff]   ;;  %21065 = vst [vmem:[#allocation58_spill] sm:$0xff] %v18766_v46 }
 0x375   : > { %3573 = vmatprep.mubr.bf16.mxu1 %v20975_v40  ;;  %v18719_v57 = vpop.permute.xlu0 %3770  ;;  %14574 = vmatpush3.bf16.msra.mxu0 %v15707_v58  ;;  %v15716_v22 = vld [vmem:[#allocation8 + $0xc8] sm:$0xff]  }
 0x376   : > { %v14523_v18 = vpop.f32.mrf.mxu1  ;;  %14613 = vmatprep.subr.bf16.mxu1 %v15708_v59  ;;  %14575 = vmatprep.subr.bf16.mxu0 %v15710_v42 }
 0x377   : > { %v14524_v56 = vadd.f32 %v14523_v18, %v14522_v0  ;;  %v18709_v36 = vpop.permute.xlu1 %3707  ;;  %14614 = vmatpush3.bf16.msra.mxu1 %v15709_v16  ;;  %v15717_v0 = vld [vmem:[#allocation8 + $0x88] sm:$0xff]   ;;  %v15721_v18 = vld [vmem:[#allocation8 + $0x80] sm:$0xff]  }
 0x378   : > { %14615 = vmatprep.subr.bf16.mxu1 %v15712_v13 }
 0x379   : > { %v2224_v25 = vpack.c.bf16 %v14524_v56, %v14521_v53  ;;  %v18723_v19 = vpop.permute.xlu0 %3712  ;;  %14576 = vmatpush3.bf16.msra.mxu0 %v15711_v41 }
 0x37a   : > { %21053 = vst [vmem:[#allocation46_spill] sm:$0xff] %v18723_v19  ;;  %14577 = vmatprep.subr.bf16.mxu0 %v15714_v43 }
 0x37b   : > { %3500 = vmatprep.mubr.bf16.mxu0 %v2224_v25  ;;  %v18713_v32 = vpop.permute.xlu1 %3646  ;;  %14616 = vmatpush3.bf16.msra.mxu1 %v15713_v17  ;;  %v15722_v25 = vld [vmem:[#allocation8 + $0x178] sm:$0xff]  }
 0x37c   : > { %3501 = vmatmul.mubr.bf16.gmra.mxu0 %v2106_v27  ;;  %3574 = vmatmul.mubr.bf16.gmra.mxu1 %v2342_v44  ;;  %v15724_v44 = vld [vmem:[#allocation8 + $0x1f8] sm:$0xff]  }
 0x37d   : > { %v18729_v2 = vpop.permute.xlu0 %3651  ;;  %14578 = vmatpush3.bf16.msra.mxu0 %v15715_v61  ;;  %14617 = vmatprep.subr.bf16.mxu1 %v15716_v22 }
 0x37e   : > { %21055 = vst [vmem:[#allocation48_spill] sm:$0xff] %v18729_v2  ;;  %14579 = vmatprep.subr.bf16.mxu0 %v15718_v33 }
 0x37f   : > { %v18717_v37 = vpop.permute.xlu1 %3836  ;;  %14618 = vmatpush3.bf16.msra.mxu1 %v15717_v0 }
 0x380   : > { %14619 = vmatprep.subr.bf16.mxu1 %v15720_v50 }
 0x381   : > { %14580 = vmatpush3.bf16.msra.mxu0 %v15719_v45  ;;  %v18733_v53 = vpop.permute.xlu0 %3841 }
 0x382   : > { %14645 = vmatprep.subr.bf16.mxu0 %v15722_v25 }
 0x383   : > { %v18721_v3 = vpop.permute.xlu1 %3775  ;;  %14620 = vmatpush3.bf16.msra.mxu1 %v15721_v18 }
 0x384   : > { %14685 = vmatprep.subr.bf16.mxu1 %v15724_v44 }
 0x385   : > { %v18741_v23 = vpop.permute.xlu0 %3780 }
 0x386   : > { %21059 = vst [vmem:[#allocation52_spill] sm:$0xff] %v18741_v23 }
 0x387   : > { %v18725_v14 = vpop.permute.xlu1 %3717 }
 0x388   : > { %21054 = vst [vmem:[#allocation47_spill] sm:$0xff] %v18725_v14 }
 0x389   : > { %v18747_v60 = vpop.permute.xlu0 %3943 }
 0x38a   : > { %21061 = vst [vmem:[#allocation54_spill] sm:$0xff] %v18747_v60 }
 0x38b   : > { %v18731_v28 = vpop.permute.xlu1 %3656 }
 0x38c   : > { %21056 = vst [vmem:[#allocation49_spill] sm:$0xff] %v18731_v28 }
 0x38d   : > { %v18758_v51 = vpop.permute.xlu0 %3882 }
 0x38f   : > { %v18735_v56 = vpop.permute.xlu1 %3846 }
 0x390   : > { %21057 = vst [vmem:[#allocation50_spill] sm:$0xff] %v18735_v56 }
 0x391   : > { %v18772_v58 = vpop.permute.xlu0 %3851 }
 0x392   : > { %21067 = vst [vmem:[#allocation60_spill] sm:$0xff] %v18772_v58 }
 0x393   : > { %v18743_v38 = vpop.permute.xlu1 %3785 }
 0x394   : > { %21060 = vst [vmem:[#allocation53_spill] sm:$0xff] %v18743_v38 }
 0x395   : > { %v18783_v22 = vpop.permute.xlu0 %3790 }
 0x396   : > { %21070 = vst [vmem:[#allocation63_spill] sm:$0xff] %v18783_v22 }
 0x397   : > { %v18749_v47 = vpop.permute.xlu1 %3948 }
 0x398   : > { %21062 = vst [vmem:[#allocation55_spill] sm:$0xff] %v18749_v47 }
 0x399   : > { %v18794_v44 = vpop.permute.xlu0 %3953 }
 0x39a   : > { %21072 = vst [vmem:[#allocation65_spill] sm:$0xff] %v18794_v44 }
 0x39b   : > { %v18760_v52 = vpop.permute.xlu1 %3887 }
 0x39f   : > { %v18774_v59 = vpop.permute.xlu1 %3856 }
 0x3a0   : > { %21068 = vst [vmem:[#allocation61_spill] sm:$0xff] %v18774_v59 }
 0x3a3   : > { %v18785_v0 = vpop.permute.xlu1 %3795 }
 0x3a4   : > { %21071 = vst [vmem:[#allocation64_spill] sm:$0xff] %v18785_v0 }
 0x3a7   : > { %v18796_v15 = vpop.permute.xlu1 %3958 }
 0x3a8   : > { %21073 = vst [vmem:[#allocation66_spill] sm:$0xff] %v18796_v15 }
 0x3c4   : > { %v18727_v24 = vpop.f32.mrf.mxu1 }
 0x3c6   : > { %v3255_v31 = vpop.f32.mrf.mxu1 }
 0x3c7   : > { %v3256_v16 = vadd.f32 %v3255_v31, %v18766_v46 }
 0x3c8   : > { %v18737_v27 = vpop.f32.mrf.mxu1 }
 0x3ca   : > { %v18739_v4 = vpop.f32.mrf.mxu1 }
 0x3cb   : > { %21058 = vst [vmem:[#allocation51_spill] sm:$0xff] %v18739_v4 }
 0x3cc   : > { %v18745_v20 = vpop.f32.mrf.mxu1 }
 0x3ce   : > { %v3265_v62 = vpop.f32.mrf.mxu1 }
 0x3cf   : > { %v3266_v45 = vadd.f32 %v3265_v62, %v18766_v46 }
 0x3d0   : > { %v18756_v35 = vpop.f32.mrf.mxu1 }
 0x3d2   : > { %v18768_v1 = vpop.f32.mrf.mxu1 }
 0x3d3   : > { %21066 = vst [vmem:[#allocation59_spill] sm:$0xff] %v18768_v1  ;;  %v18807_v1 = vpop.permute.xlu0 %3892 }
 0x3d4   : > { %v18777_v42 = vpop.f32.mrf.mxu1  ;;  %21076 = vst [vmem:[#allocation69_spill] sm:$0xff] %v18807_v1 }
 0x3d6   : > { %v3275_v43 = vpop.f32.mrf.mxu1 }
 0x3d7   : > { %v3276_v5 = vadd.f32 %v3275_v43, %v18766_v46 }
 0x3d8   : > { %v18790_v50 = vpop.f32.mrf.mxu1 }
 0x3e4   : > { %v18770_v34 = vpop.f32.mrf.mxu0 }
 0x3e6   : > { %v3328_v41 = vpop.f32.mrf.mxu0 }
 0x3e7   : > { %v3329_v13 = vadd.f32 %v3328_v41, %v3256_v16  ;;  %v18798_v16 = vpop.f32.mrf.mxu1 }
 0x3e8   : > { %v18779_v17 = vpop.f32.mrf.mxu0  ;;  %21074 = vst [vmem:[#allocation67_spill] sm:$0xff] %v18798_v16 }
 0x3ea   : > { %v18781_v61 = vpop.f32.mrf.mxu0 }
 0x3eb   : > { %21069 = vst [vmem:[#allocation62_spill] sm:$0xff] %v18781_v61  ;;  %v18805_v61 = vpop.f32.mrf.mxu1 }
 0x3ec   : > { %v18787_v33 = vpop.f32.mrf.mxu0 }
 0x3ed   : > { %v3285_v22 = vpop.f32.mrf.mxu1 }
 0x3ee   : > { %v3338_v31 = vpop.f32.mrf.mxu0  ;;  %v3286_v43 = vadd.f32 %v3285_v22, %v18766_v46 }
 0x3ef   : > { %v3339_v18 = vadd.f32 %v3338_v31, %v3266_v45  ;;  %v18809_v45 = vpop.permute.xlu1 %3897  ;;  %v18822_v19 = vpop.f32.mrf.mxu1 }
 0x3f0   : > { %v18792_v25 = vpop.f32.mrf.mxu0  ;;  %21077 = vst [vmem:[#allocation70_spill] sm:$0xff] %v18809_v45 }
 0x3f1   : > { %v18824_v1 = vpop.f32.mrf.mxu1 }
 0x3f2   : > { %v18800_v41 = vpop.f32.mrf.mxu0  ;;  %21080 = vst [vmem:[#allocation73_spill] sm:$0xff] %v18824_v1 }
 0x3f3   : > { %21075 = vst [vmem:[#allocation68_spill] sm:$0xff] %v18800_v41  ;;  %v18817_v41 = vpop.permute.xlu0 %4065  ;;  %v18819_v58 = vpop.permute.xlu1 %4070 }
 0x3f4   : > { %v18802_v40 = vpop.f32.mrf.mxu0  ;;  %21079 = vst [vmem:[#allocation72_spill] sm:$0xff] %v18817_v41 }
 0x3f6   : > { %v3348_v62 = vpop.f32.mrf.mxu0 }
 0x3f7   : > { %v3349_v31 = vadd.f32 %v3348_v62, %v3276_v5  ;;  %v18826_v5 = vpop.permute.xlu0 %4004  ;;  %v18828_v62 = vpop.permute.xlu1 %4009 }
 0x3f8   : > { %v18811_v4 = vpop.f32.mrf.mxu0 }
 0x3fa   : > { %v18813_v0 = vpop.f32.mrf.mxu0 }
 0x3fb   : > { %21078 = vst [vmem:[#allocation71_spill] sm:$0xff] %v18813_v0  ;;  %v18830_v26 = vpop.permute.xlu0 %3963  ;;  %v18832_v48 = vpop.permute.xlu1 %3968 }
 0x3fc   : > { %v18815_v16 = vpop.f32.mrf.mxu0  ;;  %21081 = vst [vmem:[#allocation74_spill] sm:$0xff] %v18830_v26  ;;  %21082 = vst [vmem:[#allocation75_spill] sm:$0xff] %v18832_v48 }
 0x3fe   : > { %v3358_v59 = vpop.f32.mrf.mxu0 }
 0x3ff   : > { %v3359_v14 = vadd.f32 %v3358_v59, %v3286_v43  ;;  %v18836_v39 = vpop.permute.xlu0 %3902  ;;  %v18838_v59 = vpop.permute.xlu1 %3907 }
 0x400   : > { %21084 = vst [vmem:[#allocation77_spill] sm:$0xff] %v18836_v39  ;;  %21085 = vst [vmem:[#allocation78_spill] sm:$0xff] %v18838_v59 }
 0x403   : > { %v18850_v26 = vpop.permute.xlu1 %4080 }
 0x404   : > { %v3399_v45 = vpop.f32.mrf.mxu1  ;;  %21088 = vst [vmem:[#allocation81_spill] sm:$0xff] %v18850_v26  ;;  %v18869_v26 = vpop.f32.mrf.mxu0 }
 0x406   : > { %v3401_v0 = vpop.f32.mrf.mxu1 }
 0x407   : > { %v3402_v15 = vadd.f32 %v3401_v0, %v3329_v13  ;;  %v18848_v0 = vpop.permute.xlu0 %4075  ;;  %v18863_v59 = vpop.permute.xlu1 %4019 }
 0x408   : > { %v3403_v44 = vpop.f32.mrf.mxu1  ;;  %21087 = vst [vmem:[#allocation80_spill] sm:$0xff] %v18848_v0  ;;  %21092 = vst [vmem:[#allocation85_spill] sm:$0xff] %v18863_v59 }
 0x40a   : > { %v18834_v11 = vpop.f32.mrf.mxu1 }
 0x40b   : > { %21083 = vst [vmem:[#allocation76_spill] sm:$0xff] %v18834_v11  ;;  %v18853_v11 = vsub.s32 0, %v18751_v21  ;;  %v21209_v21 = vld [vmem:[#allocation73_spill] sm:$0xff] }
 0x40c   : > { %v3409_v22 = vpop.f32.mrf.mxu1 }
 0x40d   : > { %21089 = vst [vmem:[#allocation82_spill] sm:$0xff] %v18853_v11 }
 0x40e   : > { %v3411_v46 = vpop.f32.mrf.mxu1 }
 0x40f   : > { %v18840_v43 = vadd.f32 %v3411_v46, %v3339_v18  ;;  %v18861_v18 = vpop.permute.xlu0 %4014 }
 0x410   : > { %v18842_v1 = vpop.f32.mrf.mxu1  ;;  %21091 = vst [vmem:[#allocation84_spill] sm:$0xff] %v18861_v18  ;;  %v18881_v18 = vpop.f32.mrf.mxu0 }
 0x411   : > { %21095 = vst [vmem:[#allocation88_spill] sm:$0xff] %v18881_v18 }
 0x412   : > { %v18844_v2 = vpop.f32.mrf.mxu1 }
 0x413   : > { %21086 = vst [vmem:[#allocation79_spill] sm:$0xff] %v18844_v2  ;;  %v2492_v2 = vrot.slane %v18762_v10, %v18853_v11  ;;  %v18876_v9 = vpop.permute.xlu0 %3973 }
 0x414   : > { %v18846_v13 = vpop.f32.mrf.mxu1  ;;  %21093 = vst [vmem:[#allocation86_spill] sm:$0xff] %v18876_v9 }
 0x415   : > { %v3254_v60 = vadd.f32 %v18727_v24, %v2492_v2  ;;  %v3258_v11 = vadd.f32 %v18737_v27, %v2492_v2 }
 0x416   : > { %v3421_v48 = vpop.f32.mrf.mxu1 }
 0x417   : > { %v18855_v28 = vadd.f32 %v3421_v48, %v3349_v31  ;;  %v3327_v59 = vadd.f32 %v18770_v34, %v3254_v60  ;;  %v18887_v23 = vpop.permute.xlu0 %3912  ;;  %v3264_v60 = vadd.f32 %v18745_v20, %v2492_v2  ;;  %v3268_v20 = vadd.f32 %v18756_v35, %v2492_v2 }
 0x418   : > { %v18857_v39 = vpop.f32.mrf.mxu1  ;;  %21097 = vst [vmem:[#allocation90_spill] sm:$0xff] %v18887_v23  ;;  %v3288_v35 = vadd.f32 %v18822_v19, %v2492_v2 }
 0x419   : > { %v3400_v41 = vadd.f32 %v3399_v45, %v3327_v59  ;;  %v3337_v27 = vadd.f32 %v18787_v33, %v3264_v60 }
 0x41a   : > { %v18859_v46 = vpop.f32.mrf.mxu1 }
 0x41b   : > { %21090 = vst [vmem:[#allocation83_spill] sm:$0xff] %v18859_v46  ;;  %v18878_v46 = vpop.permute.xlu1 %3978 }
 0x41c   : > { %v18867_v0 = vpop.f32.mrf.mxu1  ;;  %21094 = vst [vmem:[#allocation87_spill] sm:$0xff] %v18878_v46 }
 0x41e   : > { %v3431_v55 = vpop.f32.mrf.mxu1 }
 0x41f   : > { %v18872_v48 = vadd.f32 %v3431_v55, %v3359_v14  ;;  %v3331_v55 = vadd.f32 %v18779_v17, %v3258_v11  ;;  %v18889_v9 = vpop.permute.xlu1 %3917 }
 0x420   : > { %v18874_v31 = vpop.f32.mrf.mxu1  ;;  %21098 = vst [vmem:[#allocation91_spill] sm:$0xff] %v18889_v9  ;;  %v21128_v9 = vld [vmem:[#allocation39_spill] sm:$0xff] }
 0x421   : > { %v3404_v34 = vadd.f32 %v3403_v44, %v3331_v55 }
 0x422   : > { %v18883_v10 = vpop.f32.mrf.mxu1 }
 0x423   : > { %21096 = vst [vmem:[#allocation89_spill] sm:$0xff] %v18883_v10  ;;  %v18907_v33 = vpop.permute.xlu1 %4090 }
 0x424   : > { %v3472_v54 = vpop.f32.mrf.mxu0  ;;  %v3545_v38 = vpop.f32.mrf.mxu1  ;;  %21104 = vst [vmem:[#allocation97_spill] sm:$0xff] %v18907_v33 }
 0x425   : > { %v3473_v14 = vadd.f32 %v3472_v54, %v3400_v41  ;;  %v3410_v41 = vadd.f32 %v3409_v22, %v3337_v27 }
 0x426   : > { %v3474_v24 = vpop.f32.mrf.mxu0  ;;  %v3547_v47 = vpop.f32.mrf.mxu1 }
 0x427   : > { %v3546_v18 = vadd.f32 %v3545_v38, %v3473_v14  ;;  %v3475_v46 = vadd.f32 %v3474_v24, %v3402_v15  ;;  %v3274_v38 = vadd.f32 %v18777_v42, %v2492_v2  ;;  %v3341_v42 = vadd.f32 %v18792_v25, %v3268_v20 }
 0x428   : > { %v3476_v10 = vpop.f32.mrf.mxu0  ;;  %v3549_v56 = vpop.f32.mrf.mxu1 }
 0x429   : > { %v18893_v45 = vadd.f32 %v3547_v47, %v3475_v46  ;;  %v3477_v59 = vadd.f32 %v3476_v10, %v3404_v34  ;;  %v18895_v11 = vmax.f32 %v3546_v18, 0.0  ;;  %v18905_v47 = vpop.permute.xlu0 %4085  ;;  %v3278_v46 = vadd.f32 %v18790_v50, %v2492_v2 }
 0x42a   : > { %v18897_v54 = vpop.f32.mrf.mxu0  ;;  %v18899_v17 = vpop.f32.mrf.mxu1  ;;  %21103 = vst [vmem:[#allocation96_spill] sm:$0xff] %v18905_v47  ;;  %v3284_v18 = vadd.f32 %v18805_v61, %v2492_v2  ;;  %v3347_v19 = vadd.f32 %v18802_v40, %v3274_v38  ;;  %v3414_v2 = vadd.f32 %v18842_v1, %v3341_v42 }
 0x42b   : > { %21099 = vst [vmem:[#allocation92_spill] sm:$0xff] %v18893_v45  ;;  %21100 = vst [vmem:[#allocation93_spill] sm:$0xff] %v18895_v11  ;;  %v3550_v23 = vadd.f32 %v3549_v56, %v3477_v59  ;;  %v20983_v10 = vrot.slane %v18895_v11, 1  ;;  %v18918_v55 = vmul.f32 %v18758_v51, %v18895_v11  ;;  %v20984_v25 = vrot.slane %v18895_v11, 7 }
 0x42c   : > { %21101 = vst [vmem:[#allocation94_spill] sm:$0xff] %v18897_v54  ;;  %21102 = vst [vmem:[#allocation95_spill] sm:$0xff] %v18899_v17  ;;  %v3482_v44 = vpop.f32.mrf.mxu0  ;;  %v3555_v15 = vpop.f32.mrf.mxu1  ;;  %v3351_v1 = vadd.f32 %v18811_v4, %v3278_v46  ;;  %v3357_v42 = vadd.f32 %v18815_v16, %v3284_v18  ;;  %v3420_v4 = vadd.f32 %v18846_v13, %v3347_v19 }
 0x42d   : > { %v18911_v22 = vmax.f32 %v3550_v23, 0.0  ;;  %v3483_v56 = vadd.f32 %v3482_v44, %v3410_v41  ;;  %21105 = vst [vmem:[#allocation98_spill] sm:$0xff] %v18918_v55 }
 0x42e   : > { %v3484_v14 = vpop.f32.mrf.mxu0  ;;  %v3557_v24 = vpop.f32.mrf.mxu1  ;;  %v3424_v16 = vadd.f32 %v18857_v39, %v3351_v1 }
 0x42f   : > { %v3742_v60 = vrot.slane %v18911_v22, 1  ;;  %v18923_v61 = vmul.f32 %v18760_v52, %v18911_v22  ;;  %v3556_v23 = vadd.f32 %v3555_v15, %v3483_v56  ;;  %v3485_v50 = vadd.f32 %v3484_v14, %v18840_v43  ;;  %v18953_v15 = vpop.permute.xlu0 %4024  ;;  %v18955_v56 = vpop.permute.xlu1 %4029 }
 0x430   : > { %v3486_v34 = vpop.f32.mrf.mxu0  ;;  %v3559_v51 = vpop.f32.mrf.mxu1  ;;  %v3601_v27 = vrot.slane %v18911_v22, 7  ;;  %v3361_v14 = vadd.f32 %v18869_v26, %v3288_v35  ;;  %v3430_v26 = vadd.f32 %v18867_v0, %v3357_v42 }
 0x431   : > { %21106 = vst [vmem:[#allocation99_spill] sm:$0xff] %v18923_v61  ;;  %v18934_v59 = vsel %vm3749_vm0, %v20983_v10, %v3742_v60  ;;  %v18938_v43 = vmax.f32 %v3556_v23, 0.0  ;;  %v18940_v40 = vadd.f32 %v3557_v24, %v3485_v50  ;;  %v3487_v41 = vadd.f32 %v3486_v34, %v3414_v2 }
 0x432   : > { %v18943_v20 = vpop.f32.mrf.mxu0  ;;  %v18945_v38 = vpop.f32.mrf.mxu1  ;;  %v18951_v44 = vsel %vm3610_vm1, %v20984_v25, %v3601_v27  ;;  %v18963_v2 = vmul.f32 %v18691_v63, %v18911_v22 }
 0x433   : > { %21107 = vst [vmem:[#allocation100_spill] sm:$0xff] %v18940_v40  ;;  %21108 = vst [vmem:[#allocation101_spill] sm:$0xff] %v18943_v20  ;;  %v3743_v46 = vrot.slane %v18938_v43, 1  ;;  %v3560_v24 = vadd.f32 %v3559_v51, %v3487_v41  ;;  %v18967_v34 = vmul.f32 %v18693_v29, %v18938_v43  ;;  %v3602_v52 = vrot.slane %v18938_v43, 7 }
 0x434   : > { %21109 = vst [vmem:[#allocation102_spill] sm:$0xff] %v18945_v38  ;;  %v3492_v23 = vpop.f32.mrf.mxu0  ;;  %v3565_v50 = vpop.f32.mrf.mxu1  ;;  %v18980_v51 = vmul.f32 %v18826_v5, %v18951_v44  ;;  %v18992_v41 = vmul.f32 %v18695_v8, %v18951_v44  ;;  %v3721_v38 = vmul.f32 %v18687_v6, %v18895_v11 }
 0x435   : > { %v3493_v13 = vadd.f32 %v3492_v23, %v3420_v4  ;;  %v18974_v18 = vsel %vm3749_vm0, %v3742_v60, %v3743_v46  ;;  %v18976_v35 = vmax.f32 %v3560_v24, 0.0  ;;  %v3616_v39 = vsel %vm3610_vm1, %v3601_v27, %v3602_v52 }
 0x436   : > { %v3494_v19 = vpop.f32.mrf.mxu0  ;;  %v3567_v63 = vpop.f32.mrf.mxu1  ;;  %21110 = vst [vmem:[#allocation103_spill] sm:$0xff] %v18980_v51  ;;  %v18988_v60 = vmul.f32 %v18828_v62, %v3616_v39  ;;  %v18997_v23 = vmul.f32 %v18697_v7, %v3616_v39  ;;  %v19001_v27 = vmul.f32 %v18719_v57, %v18974_v18  ;;  %v19022_v10 = vmul.f32 %v18715_v49, %v3616_v39  ;;  %v21137_v51 = vld [vmem:[#allocation42_spill] sm:$0xff] }
 0x437   : > { %v3566_v0 = vadd.f32 %v3565_v50, %v3493_v13  ;;  %v3495_v1 = vadd.f32 %v3494_v19, %v18855_v28  ;;  %v3744_v42 = vrot.slane %v18976_v35, 1  ;;  %v3603_v24 = vrot.slane %v18976_v35, 7  ;;  %v19003_v28 = vpop.permute.xlu0 %4126  ;;  %v19005_v62 = vpop.permute.xlu1 %4131 }
 0x438   : > { %21111 = vst [vmem:[#allocation104_spill] sm:$0xff] %v18988_v60  ;;  %v3496_v5 = vpop.f32.mrf.mxu0  ;;  %v3569_v4 = vpop.f32.mrf.mxu1 }
 0x439   : > { %v19007_v50 = vmax.f32 %v3566_v0, 0.0  ;;  %v19009_v8 = vadd.f32 %v3567_v63, %v3495_v1  ;;  %v3497_v13 = vadd.f32 %v3496_v5, %v3424_v16  ;;  %v19019_v57 = vsel %vm3610_vm1, %v3602_v52, %v3603_v24 }
 0x43a   : > { %v19013_v29 = vpop.f32.mrf.mxu0  ;;  %v19015_v7 = vpop.f32.mrf.mxu1  ;;  %v19028_v16 = vsel %vm3749_vm0, %v3743_v46, %v3744_v42  ;;  %v19033_v5 = vmul.f32 %v18717_v37, %v19019_v57  ;;  %v19037_v52 = vmul.f32 %v18707_v12, %v18976_v35  ;;  %v19050_v37 = vmul.f32 %v18711_v30, %v19019_v57 }
 0x43b   : > { %21112 = vst [vmem:[#allocation105_spill] sm:$0xff] %v19009_v8  ;;  %21113 = vst [vmem:[#allocation106_spill] sm:$0xff] %v19013_v29  ;;  %v3745_v63 = vrot.slane %v19007_v50, 1  ;;  %v3570_v1 = vadd.f32 %v3569_v4, %v3497_v13  ;;  %v19041_v19 = vmul.f32 %v18709_v36, %v19007_v50  ;;  %v19045_v46 = vmul.f32 %v18721_v3, %v19028_v16  ;;  %v4142_v3 = vpop.permute.xlu1 %4141 }
 0x43c   : > { %21114 = vst [vmem:[#allocation107_spill] sm:$0xff] %v19015_v7  ;;  %v3502_v49 = vpop.f32.mrf.mxu0  ;;  %v3575_v39 = vpop.f32.mrf.mxu1  ;;  %v3604_v4 = vrot.slane %v19007_v50, 7  ;;  %v3434_v13 = vadd.f32 %v18874_v31, %v3361_v14 }
 0x43d   : > { %v19053_v12 = vmax.f32 %v3570_v1, 0.0  ;;  %v3503_v0 = vadd.f32 %v3502_v49, %v3430_v26  ;;  %v19067_v31 = vsel %vm3749_vm0, %v3744_v42, %v3745_v63  ;;  %v4137_v14 = vpop.permute.xlu0 %4136  ;;  %v19080_v42 = vmul.f32 %v18819_v58, %v18938_v43  ;;  %v21119_v58 = vld [vmem:[#allocation53_spill] sm:$0xff] }
 0x43e   : > { %v3504_v36 = vpop.f32.mrf.mxu0  ;;  %v3577_v8 = vpop.f32.mrf.mxu1  ;;  %v19063_v30 = vsel %vm3610_vm1, %v3603_v24, %v3604_v4 }
 0x43f   : > { %v3746_v26 = vrot.slane %v19053_v12, 1  ;;  %v3576_v1 = vadd.f32 %v3575_v39, %v3503_v0  ;;  %v3505_v49 = vadd.f32 %v3504_v36, %v18872_v48  ;;  %v3605_v25 = vrot.slane %v19053_v12, 7 }
 0x440   : > { %v3506_v7 = vpop.f32.mrf.mxu0  ;;  %v19076_v24 = vmul.f32 %v18713_v32, %v19063_v30  ;;  %v3579_v36 = vpop.f32.mrf.mxu1  ;;  %v19092_v6 = vmul.f32 %v18733_v53, %v19063_v30  ;;  %v21116_v32 = vld [vmem:[#allocation50_spill] sm:$0xff]  ;;  %v21118_v53 = vld [vmem:[#allocation55_spill] sm:$0xff] }
 0x441   : > { %v19082_v20 = vmax.f32 %v3576_v1, 0.0  ;;  %v19084_v0 = vadd.f32 %v3577_v8, %v3505_v49  ;;  %v3507_v48 = vadd.f32 %v3506_v7, %v3434_v13  ;;  %v19088_v39 = vsel %vm3610_vm1, %v3604_v4, %v3605_v25  ;;  %v21117_v13 = vld [vmem:[#allocation52_spill] sm:$0xff] }
 0x442   : > { %v19096_v29 = vmul.f32 %v21116_v32, %v19088_v39  ;;  %v19102_v8 = vsel %vm3749_vm0, %v3745_v63, %v3746_v26  ;;  %v19107_v1 = vmul.f32 %v21117_v13, %v19067_v31  ;;  %v19111_v49 = vmul.f32 %v21118_v53, %v18974_v18  ;;  %v21122_v13 = vld [vmem:[#allocation45_spill] sm:$0xff]  ;;  %v21123_v32 = vld [vmem:[#allocation72_spill] sm:$0xff] }
 0x443   : > { %21115 = vst [vmem:[#allocation108_spill] sm:$0xff] %v19084_v0  ;;  %v3606_v7 = vrot.slane %v19082_v20, 7  ;;  %v3580_v4 = vadd.f32 %v3579_v36, %v3507_v48  ;;  %v19117_v0 = vmul.f32 %v21119_v58, %v19102_v8  ;;  %v19120_v63 = vmul.f32 %v4137_v14, %v19067_v31  ;;  %v19137_v58 = vpop.permute.xlu0 %4095  ;;  %v19139_v14 = vpop.permute.xlu1 %4100 }
 0x444   : > { %v19123_v48 = vmul.f32 %v4142_v3, %v19102_v8  ;;  %v3799_v45 = vmul.f32 %v21122_v13, %v18934_v59  ;;  %v19135_v17 = vmul.f32 %v21123_v32, %v18911_v22  ;;  %21124 = vst [vmem:[#allocation55_spill] sm:$0xff] %v19137_v58  ;;  %21125 = vst [vmem:[#allocation53_spill] sm:$0xff] %v19139_v14  ;;  %v21126_v3 = vld [vmem:[#allocation43_spill] sm:$0xff]  ;;  %v21129_v58 = vld [vmem:[#allocation49_spill] sm:$0xff] }
 0x445   : > { %21120 = vst [vmem:[#allocation50_spill] sm:$0xff] %v19120_v63  ;;  %v19125_v36 = vmax.f32 %v3580_v4, 0.0  ;;  %v19131_v53 = vsel %vm3610_vm1, %v3605_v25, %v3606_v7  ;;  %v3860_v40 = vmul.f32 %v21126_v3, %v18951_v44  ;;  %v21127_v25 = vld [vmem:[#allocation54_spill] sm:$0xff]  ;;  %v21130_v4 = vld [vmem:[#allocation48_spill] sm:$0xff]  ;;  %v21133_v3 = vrot.slane %v18895_v11, 1 }
 0x446   : > { %21121 = vst [vmem:[#allocation52_spill] sm:$0xff] %v19123_v48  ;;  %v19149_v54 = vmul.f32 %v21127_v25, %v18934_v59  ;;  %v19157_v44 = vmul.f32 %v21129_v58, %v19131_v53  ;;  %v19162_v13 = vmul.f32 %v21130_v4, %v19088_v39  ;;  %v21135_v63 = vld [vmem:[#allocation40_spill] sm:$0xff] }
 0x447   : > { %v3607_v22 = vrot.slane %v19125_v36, 7  ;;  %v3720_v14 = vmul.f32 %v21128_v9, %v19125_v36  ;;  %v21131_v9 = vrot.slane %v18895_v11, 7  ;;  %v21134_v4 = vrot.slane %v19125_v36, 1  ;;  %v19196_v55 = vpop.permute.xlu0 %4034  ;;  %v21142_v11 = vld [vmem:[#allocation66_spill] sm:$0xff] }
 0x448   : > { %21139 = vst [vmem:[#allocation72_spill] sm:$0xff] %v19196_v55  ;;  %v19212_v55 = vmul.f32 %v21142_v11, %v19067_v31  ;;  %v21147_v11 = vpack.c.bf16 %v18967_v34, %v18963_v2  ;;  %v21150_v34 = vld [vmem:[#allocation75_spill] sm:$0xff] }
 0x449   : > { %v19170_v32 = vsel %vm3610_vm1, %v3606_v7, %v3607_v22  ;;  %v19176_v58 = vsel %vm3610_vm1, %v3607_v22, %v21131_v9  ;;  %v19184_v25 = vsel %vm3749_vm0, %v21134_v4, %v21133_v3  ;;  %v3728_v48 = vpack.c.bf16 %v3721_v38, %v3720_v14  ;;  %v21136_v7 = vld [vmem:[#allocation41_spill] sm:$0xff]  ;;  %v21138_v22 = vld [vmem:[#allocation44_spill] sm:$0xff]  ;;  %v19198_v3 = vpop.permute.xlu1 %4039 }
 0x44a   : > { %21132 = vst [vmem:[#allocation45_spill] sm:$0xff] %v19176_v58  ;;  %v3659_v47 = vmul.f32 %v21135_v63, %v19170_v32  ;;  %v3660_v33 = vmul.f32 %v21136_v7, %v19176_v58  ;;  %v3859_v60 = vmul.f32 %v21137_v51, %v19176_v58  ;;  %v3798_v9 = vmul.f32 %v21138_v22, %v19184_v25  ;;  %v15723_v4 = vld [vmem:[#allocation8 + $0x138] sm:$0xff]   ;;  %v15726_v22 = vld [vmem:[#allocation8 + $0x170] sm:$0xff]  }
 0x44b   : > { %4791 = vmatprep.mubr.bf16.mxu0 %v3728_v48  ;;  %v21140_v7 = vrot.slane %v19082_v20, 1  ;;  %v15725_v58 = vld [vmem:[#allocation8 + $0x1b8] sm:$0xff]  }
 0x44c   : > { %v3667_v38 = vpack.c.bf16 %v3660_v33, %v3659_v47  ;;  %v3867_v14 = vpack.c.bf16 %v3860_v40, %v3859_v60  ;;  %v3806_v63 = vpack.c.bf16 %v3799_v45, %v3798_v9  ;;  %v21141_v48 = vld [vmem:[#allocation65_spill] sm:$0xff]  ;;  %v21143_v47 = vld [vmem:[#allocation80_spill] sm:$0xff] }
 0x44d   : > { %v19204_v51 = vsel %vm3749_vm0, %v3746_v26, %v21140_v7  ;;  %v19208_v61 = vmul.f32 %v21141_v48, %v19028_v16  ;;  %v19216_v45 = vmul.f32 %v21143_v47, %v18976_v35  ;;  %v21144_v33 = vld [vmem:[#allocation81_spill] sm:$0xff]  ;;  %v15728_v60 = vld [vmem:[#allocation8 + $0x1f0] sm:$0xff]   ;;  %v21146_v7 = vld [vmem:[#allocation70_spill] sm:$0xff] }
 0x44e   : > { %v19220_v40 = vmul.f32 %v21144_v33, %v19007_v50  ;;  %4792 = vmatmul.mubr.bf16.vlgmr.msra.gmra.mxu0 %v3667_v38  ;;  %4856 = vmatprep.mubr.bf16.mxu1 %v3867_v14  ;;  %v21145_v26 = vld [vmem:[#allocation69_spill] sm:$0xff]  ;;  %v19228_v48 = vmul.f32 %v21146_v7, %v18976_v35  ;;  %v15727_v14 = vld [vmem:[#allocation8 + $0x130] sm:$0xff]   ;;  %v21149_v47 = vld [vmem:[#allocation74_spill] sm:$0xff] }
 0x44f   : > { %v19224_v9 = vmul.f32 %v21145_v26, %v18938_v43  ;;  %4799 = vmatprep.mubr.bf16.mxu0 %v21147_v11  ;;  %4857 = vmatmul.mubr.bf16.vlgmr.msra.gmra.mxu1 %v3806_v63  ;;  %v3990_v31 = vpack.c.bf16 %v19212_v55, %v19208_v61  ;;  %v21148_v43 = vpack.c.bf16 %v19033_v5, %v19022_v10  ;;  %v15729_v33 = vld [vmem:[#allocation8 + $0x1b0] sm:$0xff]   ;;  %v21152_v5 = vld [vmem:[#allocation85_spill] sm:$0xff]  ;;  %v19258_v11 = vpop.permute.xlu0 %4146 }
 0x450   : > { %v4112_v38 = vpack.c.bf16 %v19220_v40, %v19216_v45  ;;  %14646 = vmatpush3.bf16.msra.mxu0 %v15723_v4  ;;  %v19244_v2 = vmul.f32 %v21149_v47, %v19102_v8  ;;  %v19248_v63 = vmul.f32 %v21150_v34, %v19204_v51  ;;  %14686 = vmatpush3.bf16.msra.mxu1 %v15725_v58  ;;  %v15730_v4 = vld [vmem:[#allocation8 + $0x168] sm:$0xff]   ;;  %v21151_v26 = vld [vmem:[#allocation84_spill] sm:$0xff]  ;;  %v19260_v8 = vpop.permute.xlu1 %4151  ;;  %v15757_v55 = vld [vmem:[#allocation8 + $0x220] sm:$0xff]  }
 0x451   : > { %4864 = vmatprep.mubr.bf16.mxu1 %v21148_v43  ;;  %v3929_v35 = vpack.c.bf16 %v19228_v48, %v19224_v9  ;;  %14647 = vmatprep.subr.bf16.mxu0 %v15726_v22  ;;  %v19252_v10 = vmul.f32 %v21151_v26, %v19019_v57  ;;  %v19256_v7 = vmul.f32 %v21152_v5, %v19063_v30  ;;  %v15732_v43 = vld [vmem:[#allocation8 + $0x1e8] sm:$0xff]   ;;  %v21153_v22 = vld [vmem:[#allocation77_spill] sm:$0xff] }
 0x452   : > { %14687 = vmatprep.subr.bf16.mxu1 %v15728_v60  ;;  %v3991_v58 = vpack.c.bf16 %v19248_v63, %v19244_v2  ;;  %v19266_v47 = vmul.f32 %v21153_v22, %v19007_v50  ;;  %v21154_v57 = vld [vmem:[#allocation78_spill] sm:$0xff]  ;;  %v19278_v5 = vmul.f32 %v18953_v15, %v19088_v39  ;;  %v19282_v50 = vmul.f32 %v18955_v56, %v19131_v53  ;;  %v15758_v40 = vld [vmem:[#allocation8 + $0x218] sm:$0xff]   ;;  %v21183_v48 = vld [vmem:[#allocation55_spill] sm:$0xff] }
 0x453   : > { %v19270_v34 = vmul.f32 %v21154_v57, %v19053_v12  ;;  %v15731_v26 = vld [vmem:[#allocation8 + $0x128] sm:$0xff]   ;;  %v15734_v57 = vld [vmem:[#allocation8 + $0x160] sm:$0xff]   ;;  %v21155_v30 = vpack.c.bf16 %v18997_v23, %v18992_v41  ;;  %v21156_v15 = vpack.c.bf16 %v19041_v19, %v19037_v52  ;;  %v21157_v56 = vpack.c.bf16 %v19045_v46, %v19001_v27  ;;  %v4157_v23 = vpop.permute.xlu0 %4156 }
 0x454   : > { %14648 = vmatpush3.bf16.msra.mxu0 %v15727_v14  ;;  %14688 = vmatpush3.bf16.msra.mxu1 %v15729_v33  ;;  %v15733_v22 = vld [vmem:[#allocation8 + $0x1a8] sm:$0xff]   ;;  %v15736_v14 = vld [vmem:[#allocation8 + $0x1e0] sm:$0xff]   ;;  %v4052_v60 = vpack.c.bf16 %v19282_v50, %v19278_v5  ;;  %v19297_v39 = vmul.f32 %v19003_v28, %v18974_v18  ;;  %v19301_v41 = vmul.f32 %v19005_v62, %v19028_v16  ;;  %v4162_v33 = vpop.permute.xlu1 %4161  ;;  %v15738_v18 = vld [vmem:[#allocation8 + $0x158] sm:$0xff]  }
 0x455   : > { %14649 = vmatprep.subr.bf16.mxu0 %v15730_v4  ;;  %14689 = vmatprep.subr.bf16.mxu1 %v15732_v43  ;;  %v21158_v4 = vpack.c.bf16 %v19096_v29, %v19092_v6  ;;  %v15735_v19 = vld [vmem:[#allocation8 + $0x120] sm:$0xff]   ;;  %v21159_v52 = vld [vmem:[#allocation47_spill] sm:$0xff]  ;;  %v19311_v62 = vmul.f32 %v4157_v23, %v19184_v25  ;;  %v19314_v16 = vmul.f32 %v4162_v33, %v18934_v59  ;;  %v15740_v29 = vld [vmem:[#allocation8 + $0x1d8] sm:$0xff]  }
 0x456   : > { %4800 = vmatmul.mubr.bf16.gmra.mxu0 %v21155_v30  ;;  %v3727_v27 = vmul.f32 %v21159_v52, %v19082_v20  ;;  %v15737_v46 = vld [vmem:[#allocation8 + $0x1a0] sm:$0xff]   ;;  %v4172_v28 = vpack.c.bf16 %v19301_v41, %v19297_v39  ;;  %v15741_v23 = vld [vmem:[#allocation8 + $0x198] sm:$0xff]   ;;  %v21163_v33 = vpack.c.bf16 %v19076_v24, %v19050_v37  ;;  %v15744_v52 = vld [vmem:[#allocation8 + $0x1d0] sm:$0xff]   ;;  %v21180_v45 = vpack.c.bf16 %v19256_v7, %v19252_v10 }
 0x457   : > { %4807 = vmatprep.mubr.bf16.mxu0 %v21156_v15  ;;  %4865 = vmatmul.mubr.bf16.gmra.mxu1 %v21157_v56  ;;  %v21160_v6 = vld [vmem:[#allocation61_spill] sm:$0xff]  ;;  %v21161_v30 = vld [vmem:[#allocation46_spill] sm:$0xff]  ;;  %v21162_v15 = vld [vmem:[#allocation60_spill] sm:$0xff]  ;;  %v20993_v39 = vmov 0.0  }
 0x458   : > { %14650 = vmatpush3.bf16.msra.mxu0 %v15731_v26  ;;  %4872 = vmatprep.mubr.bf16.mxu1 %v21158_v4  ;;  %v3866_v43 = vmul.f32 %v21160_v6, %v19170_v32  ;;  %v3726_v26 = vmul.f32 %v21161_v30, %v19053_v12  ;;  %v3865_v56 = vmul.f32 %v21162_v15, %v19131_v53  ;;  %v21164_v6 = vrot.slane %v19125_v36, 1  ;;  %v15743_v37 = vld [vmem:[#allocation8 + $0x110] sm:$0xff]   ;;  %v15747_v15 = vld [vmem:[#allocation8 + $0x108] sm:$0xff]   ;;  %v21184_v2 = vld [vmem:[#allocation93_spill] sm:$0xff] }
 0x459   : > { %14690 = vmatpush3.bf16.msra.mxu1 %v15733_v22  ;;  %14651 = vmatprep.subr.bf16.mxu0 %v15734_v57  ;;  %v4175_v22 = vpack.c.bf16 %v19314_v16, %v19311_v62  ;;  %v15739_v57 = vld [vmem:[#allocation8 + $0x118] sm:$0xff]   ;;  %v21166_v53 = vpack.c.bf16 %v19117_v0, %v19107_v1  ;;  %v15745_v24 = vld [vmem:[#allocation8 + $0x190] sm:$0xff]   ;;  %v15749_v1 = vld [vmem:[#allocation8 + $0x188] sm:$0xff]  }
 0x45a   : > { %14691 = vmatprep.subr.bf16.mxu1 %v15736_v14  ;;  %v3731_v59 = vpack.c.bf16 %v3727_v27, %v3726_v26  ;;  %v15742_v14 = vld [vmem:[#allocation8 + $0x150] sm:$0xff]   ;;  %v3870_v4 = vpack.c.bf16 %v3866_v43, %v3865_v56  ;;  %v15746_v27 = vld [vmem:[#allocation8 + $0x148] sm:$0xff]   ;;  %v21169_v56 = vpack.c.bf16 %v19157_v44, %v19162_v13  ;;  %v21185_v63 = vld [vmem:[#allocation53_spill] sm:$0xff] }
 0x45b   : > { %v21168_v43 = vld [vmem:[#allocation63_spill] sm:$0xff]  ;;  %v15761_v5 = vld [vmem:[#allocation8 + $0x200] sm:$0xff]  }
 0x45c   : > { %14652 = vmatpush3.bf16.msra.mxu0 %v15735_v19  ;;  %v21165_v19 = vrot.slane %v19082_v20, 1  ;;  %v3804_v26 = vmul.f32 %v21168_v43, %v19204_v51  ;;  %v15755_v13 = vld [vmem:[#allocation8 + $0x230] sm:$0xff]   ;;  %v15760_v43 = vld [vmem:[#allocation8 + $0x208] sm:$0xff]  }
 0x45d   : > { %14692 = vmatpush3.bf16.msra.mxu1 %v15737_v46  ;;  %14653 = vmatprep.subr.bf16.mxu0 %v15738_v18  ;;  %v21167_v46 = vld [vmem:[#allocation64_spill] sm:$0xff]  ;;  %v21172_v44 = vld [vmem:[#allocation99_spill] sm:$0xff]  ;;  %v21192_v50 = vld [vmem:[#allocation50_spill] sm:$0xff] }
 0x45e   : > { %4808 = vmatmul.mubr.bf16.gmra.mxu0 %v21163_v33  ;;  %14693 = vmatprep.subr.bf16.mxu1 %v15740_v29  ;;  %v19333_v30 = vsel %vm3749_vm0, %v21165_v19, %v21164_v6  ;;  %v15748_v29 = vld [vmem:[#allocation8 + $0x1c8] sm:$0xff]   ;;  %v15751_v33 = vld [vmem:[#allocation8 + $0x100] sm:$0xff]   ;;  %v15759_v7 = vld [vmem:[#allocation8 + $0x210] sm:$0xff]  }
 0x45f   : > { %4815 = vmatprep.mubr.bf16.mxu0 %v3731_v59  ;;  %4873 = vmatmul.mubr.bf16.gmra.mxu1 %v21166_v53  ;;  %v3805_v18 = vmul.f32 %v21167_v46, %v19333_v30  ;;  %v15752_v59 = vld [vmem:[#allocation8 + $0x1c0] sm:$0xff]   ;;  %v21186_v46 = vpack.c.bf16 %v19270_v34, %v19266_v47 }
 0x460   : > { %14654 = vmatpush3.bf16.msra.mxu0 %v15739_v57  ;;  %4880 = vmatprep.mubr.bf16.mxu1 %v3870_v4  ;;  %v15750_v57 = vld [vmem:[#allocation8 + $0x140] sm:$0xff]  }
 0x461   : > { %14694 = vmatpush3.bf16.msra.mxu1 %v15741_v23  ;;  %14655 = vmatprep.subr.bf16.mxu0 %v15742_v14  ;;  %v3809_v0 = vpack.c.bf16 %v3805_v18, %v3804_v26  ;;  %v21170_v23 = vpack.c.bf16 %v19111_v49, %v19149_v54  ;;  %v21171_v14 = vpack.c.bf16 %v19080_v42, %v19135_v17  ;;  %v15753_v4 = vld [vmem:[#allocation8 + $0x180] sm:$0xff]   ;;  %v21175_v54 = vld [vmem:[#allocation104_spill] sm:$0xff]  ;;  %v21176_v17 = vld [vmem:[#allocation103_spill] sm:$0xff] }
 0x462   : > { %14695 = vmatprep.subr.bf16.mxu1 %v15744_v52  ;;  %v15754_v52 = vld [vmem:[#allocation8 + $0x238] sm:$0xff]   ;;  %v21173_v6 = vld [vmem:[#allocation98_spill] sm:$0xff]  ;;  %v21177_v42 = vpack.c.bf16 %v21175_v54, %v21176_v17 }
 0x463   : > { %v21174_v19 = vpack.c.bf16 %v21172_v44, %v21173_v6  ;;  %v15756_v49 = vld [vmem:[#allocation8 + $0x228] sm:$0xff]   ;;  %v21178_v53 = vld [vmem:[#allocation97_spill] sm:$0xff]  ;;  %v21188_v26 = vld [vmem:[#allocation72_spill] sm:$0xff] }
 0x464   : > { %14656 = vmatpush3.bf16.msra.mxu0 %v15743_v37  ;;  %v4108_v37 = vmul.f32 %v21178_v53, %v19082_v20  ;;  %v21190_v34 = vld [vmem:[#allocation90_spill] sm:$0xff] }
 0x465   : > { %14696 = vmatpush3.bf16.msra.mxu1 %v15745_v24  ;;  %14657 = vmatprep.subr.bf16.mxu0 %v15746_v27  ;;  %v21179_v24 = vld [vmem:[#allocation96_spill] sm:$0xff] }
 0x466   : > { %4816 = vmatmul.mubr.bf16.gmra.mxu0 %v21169_v56  ;;  %14697 = vmatprep.subr.bf16.mxu1 %v15748_v29  ;;  %v4107_v27 = vmul.f32 %v21179_v24, %v19053_v12  ;;  %v21181_v12 = vld [vmem:[#allocation86_spill] sm:$0xff] }
 0x467   : > { %4881 = vmatmul.mubr.bf16.gmra.mxu1 %v3809_v0  ;;  %4921 = vmatprep.mubr.bf16.mxu0 %v21170_v23  ;;  %v21189_v0 = vld [vmem:[#allocation45_spill] sm:$0xff] }
 0x468   : > { %14658 = vmatpush3.bf16.msra.mxu0 %v15747_v15  ;;  %4986 = vmatprep.mubr.bf16.mxu1 %v21171_v14  ;;  %v4113_v61 = vpack.c.bf16 %v4108_v37, %v4107_v27  ;;  %v4048_v15 = vmul.f32 %v21188_v26, %v19170_v32  ;;  %v4049_v47 = vmul.f32 %v19198_v3, %v21189_v0  ;;  %v21191_v3 = vld [vmem:[#allocation52_spill] sm:$0xff] }
 0x469   : > { %14698 = vmatpush3.bf16.msra.mxu1 %v15749_v1  ;;  %14659 = vmatprep.subr.bf16.mxu0 %v15750_v57  ;;  %v3926_v1 = vmul.f32 %v21190_v34, %v19082_v20  ;;  %v4168_v20 = vmul.f32 %v19258_v11, %v19204_v51  ;;  %v21193_v56 = vpack.c.bf16 %v21191_v3, %v21192_v50  ;;  %v19417_v51 = vpop.f32.mrf.mxu0  ;;  %v19419_v11 = vpop.f32.mrf.mxu1 }
 0x46a   : > { %14699 = vmatprep.subr.bf16.mxu1 %v15752_v59  ;;  %21194 = vst [vmem:[#allocation43_spill] sm:$0xff] %v19417_v51  ;;  %21195 = vst [vmem:[#allocation54_spill] sm:$0xff] %v19419_v11  ;;  %v21214_v51 = vld [vmem:[#allocation76_spill] sm:$0xff] }
 0x46c   : > { %14660 = vmatpush3.bf16.msra.mxu0 %v15751_v33 }
 0x46d   : > { %14700 = vmatpush3.bf16.msra.mxu1 %v15753_v4  ;;  %14967 = vmatprep.subr.bf16.mxu0 %v15754_v52 }
 0x46e   : > { %15015 = vmatprep.subr.bf16.mxu1 %v20993_v39 }
 0x46f   : > { %4922 = vmatmul.mubr.bf16.vlgmr.msra.gmra.mxu0 %v21174_v19 }
 0x470   : > { %4929 = vmatprep.mubr.bf16.mxu0 %v3990_v31  ;;  %4987 = vmatmul.mubr.bf16.vlgmr.msra.gmra.mxu1 %v21177_v42  ;;  %v3987_v31 = vmul.f32 %v21181_v12, %v19333_v30 }
 0x471   : > { %14968 = vmatpush3.bf16.msra.mxu0 %v15754_v52  ;;  %4994 = vmatprep.mubr.bf16.mxu1 %v4112_v38  ;;  %v21182_v38 = vld [vmem:[#allocation87_spill] sm:$0xff] }
 0x472   : > { %14969 = vmatprep.subr.bf16.mxu0 %v15755_v13  ;;  %v3988_v9 = vmul.f32 %v21182_v38, %v19184_v25  ;;  %v21187_v25 = vld [vmem:[#allocation91_spill] sm:$0xff] }
 0x473   : > { %v3927_v29 = vmul.f32 %v21187_v25, %v19125_v36 }
 0x474   : > { %v3992_v10 = vpack.c.bf16 %v3988_v9, %v3987_v31 }
 0x475   : > { %14970 = vmatpush3.bf16.msra.mxu0 %v15755_v13  ;;  %v3931_v57 = vpack.c.bf16 %v3927_v29, %v3926_v1 }
 0x476   : > { %14971 = vmatprep.subr.bf16.mxu0 %v15756_v49 }
 0x477   : > { %4930 = vmatmul.mubr.bf16.gmra.mxu0 %v3929_v35  ;;  %v4109_v35 = vmul.f32 %v21183_v48, %v19125_v36  ;;  %v4169_v36 = vmul.f32 %v19260_v8, %v19333_v30 }
 0x478   : > { %4937 = vmatprep.mubr.bf16.mxu0 %v3991_v58  ;;  %4995 = vmatmul.mubr.bf16.gmra.mxu1 %v21180_v45  ;;  %v4110_v58 = vmul.f32 %v21185_v63, %v21184_v2 }
 0x479   : > { %14972 = vmatpush3.bf16.msra.mxu0 %v15756_v49  ;;  %5002 = vmatprep.mubr.bf16.mxu1 %v4113_v61  ;;  %v4174_v32 = vpack.c.bf16 %v4169_v36, %v4168_v20 }
 0x47a   : > { %14973 = vmatprep.subr.bf16.mxu0 %v15757_v55  ;;  %v4114_v18 = vpack.c.bf16 %v4110_v58, %v4109_v35 }
 0x47d   : > { %14974 = vmatpush3.bf16.msra.mxu0 %v15757_v55 }
 0x47e   : > { %14975 = vmatprep.subr.bf16.mxu0 %v15758_v40 }
 0x47f   : > { %4938 = vmatmul.mubr.bf16.gmra.mxu0 %v21186_v46 }
 0x480   : > { %4945 = vmatprep.mubr.bf16.mxu0 %v3992_v10  ;;  %5003 = vmatmul.mubr.bf16.gmra.mxu1 %v4052_v60  ;;  %v4053_v60 = vpack.c.bf16 %v4049_v47, %v4048_v15 }
 0x481   : > { %14976 = vmatpush3.bf16.msra.mxu0 %v15758_v40  ;;  %5010 = vmatprep.mubr.bf16.mxu1 %v4114_v18 }
 0x482   : > { %14977 = vmatprep.subr.bf16.mxu0 %v15759_v7 }
 0x485   : > { %14978 = vmatpush3.bf16.msra.mxu0 %v15759_v7 }
 0x486   : > { %14979 = vmatprep.subr.bf16.mxu0 %v15760_v43 }
 0x487   : > { %4946 = vmatmul.mubr.bf16.gmra.mxu0 %v3931_v57 }
 0x488   : > { %5011 = vmatmul.mubr.bf16.gmra.mxu1 %v4053_v60  ;;  %14983 = vmatprep.mubr.bf16.mxu0 %v4172_v28  ;;  %v19421_v28 = vld [vmem:[#allocation10] ss:$0 sm:$0xff] }
 0x489   : > { %14980 = vmatpush3.bf16.msra.mxu0 %v15760_v43  ;;  %15023 = vmatprep.mubr.msk.bf16.mxu1 %vm17359_vm2, %v20993_v39 }
 0x48a   : > { %14981 = vmatprep.subr.bf16.mxu0 %v15761_v5 }
 0x48d   : > { %14982 = vmatpush3.bf16.msra.mxu0 %v15761_v5 }
 0x48e   : > { %14991 = vmatprep.subr.bf16.mxu0 %v20993_v39 }
 0x490   : > { %14984 = vmatmul.mubr.bf16.vlgmr.msra.gmra.mxu0 %v21193_v56 }
 0x491   : > { %14987 = vmatprep.mubr.bf16.mxu0 %v4174_v32 }
 0x498   : > { %14988 = vmatmul.mubr.bf16.gmra.mxu0 %v4175_v22 }
 0x499   : > { %14999 = vmatprep.mubr.msk.bf16.mxu0 %vm17359_vm2, %v20993_v39 }
 0x50e   : > { %v14581_v8 = vpop.f32.mrf.mxu0 }
 0x50f   : > { %v14621_v41 = vpop.f32.mrf.mxu1 }
 0x510   : > { %v14582_v62 = vpop.f32.mrf.mxu0 }
 0x511   : > { %v14583_v16 = vadd.f32 %v14582_v62, %v14581_v8  ;;  %v14622_v22 = vpop.f32.mrf.mxu1 }
 0x512   : > { %v14623_v30 = vadd.f32 %v14622_v22, %v14621_v41  ;;  %v14584_v59 = vpop.f32.mrf.mxu0 }
 0x513   : > { %v4794_v23 = vadd.f32 %v14583_v16, %v19421_v28  ;;  %v14624_v14 = vpop.f32.mrf.mxu1 }
 0x514   : > { %v14585_v33 = vpop.f32.mrf.mxu0 }
 0x515   : > { %v19424_v4 = vadd.f32 %v14623_v30, %v4794_v23  ;;  %v14586_v52 = vadd.f32 %v14585_v33, %v14584_v59  ;;  %v14625_v13 = vpop.f32.mrf.mxu1  ;;  %v21206_v33 = vld [vmem:[#allocation51_spill] sm:$0xff] }
 0x516   : > { %v14626_v44 = vadd.f32 %v14625_v13, %v14624_v14  ;;  %v14587_v6 = vpop.f32.mrf.mxu0  ;;  %v21205_v14 = vld [vmem:[#allocation58_spill] sm:$0xff] }
 0x517   : > { %v4797_v19 = vadd.f32 %v14586_v52, %v19421_v28  ;;  %v14627_v54 = vpop.f32.mrf.mxu1  ;;  %v3260_v52 = vadd.f32 %v21206_v33, %v21205_v14  ;;  %v3290_v11 = vadd.f32 %v21209_v21, %v21205_v14 }
 0x518   : > { %v14588_v17 = vpop.f32.mrf.mxu0 }
 0x519   : > { %v19427_v42 = vadd.f32 %v14626_v44, %v4797_v19  ;;  %v14589_v49 = vadd.f32 %v14588_v17, %v14587_v6  ;;  %v14628_v53 = vpop.f32.mrf.mxu1  ;;  %v21207_v6 = vld [vmem:[#allocation59_spill] sm:$0xff] }
 0x51a   : > { %v14590_v37 = vpop.f32.mrf.mxu0  ;;  %v14629_v30 = vadd.f32 %v14628_v53, %v14627_v54  ;;  %v3270_v19 = vadd.f32 %v21207_v6, %v21205_v14  ;;  %v21208_v17 = vld [vmem:[#allocation67_spill] sm:$0xff]  ;;  %v21210_v54 = vld [vmem:[#allocation62_spill] sm:$0xff] }
 0x51b   : > { %v19429_v24 = vpop.f32.mrf.mxu1  ;;  %v4802_v22 = vadd.f32 %v14589_v49, %v19421_v28  ;;  %v3280_v39 = vadd.f32 %v21208_v17, %v21205_v14  ;;  %v3333_v53 = vadd.f32 %v21210_v54, %v3260_v52 }
 0x51c   : > { %v14591_v27 = vpop.f32.mrf.mxu0 }
 0x51d   : > { %v19431_v55 = vpop.f32.mrf.mxu1  ;;  %v14592_v17 = vadd.f32 %v14591_v27, %v14590_v37 }
 0x51e   : > { %v14593_v61 = vpop.f32.mrf.mxu0  ;;  %v14632_v27 = vadd.f32 %v19431_v55, %v19429_v24 }
 0x51f   : > { %v19433_v45 = vpop.f32.mrf.mxu1 }
 0x520   : > { %v14594_v40 = vpop.f32.mrf.mxu0 }
 0x521   : > { %v19435_v12 = vpop.f32.mrf.mxu1 }
 0x522   : > { %v19437_v31 = vpop.f32.mrf.mxu0 }
 0x523   : > { %v19439_v38 = vpop.f32.mrf.mxu1 }
 0x524   : > { %v19441_v9 = vpop.f32.mrf.mxu0 }
 0x525   : > { %v19443_v48 = vpop.f32.mrf.mxu1 }
 0x526   : > { %v14599_v35 = vpop.f32.mrf.mxu0 }
 0x527   : > { %v14639_v2 = vpop.f32.mrf.mxu1 }
 0x528   : > { %v14600_v63 = vpop.f32.mrf.mxu0 }
 0x529   : > { %v14640_v58 = vpop.f32.mrf.mxu1 }
 0x52a   : > { %v14602_v10 = vpop.f32.mrf.mxu0  ;;  %v14641_v14 = vadd.f32 %v14640_v58, %v14639_v2  ;;  %v14635_v2 = vadd.f32 %v19435_v12, %v19433_v45  ;;  %v14638_v12 = vadd.f32 %v19443_v48, %v19439_v38  ;;  %v21223_v38 = vld [vmem:[#allocation43_spill] sm:$0xff] }
 0x52b   : > { %v19445_v7 = vpop.f32.mrf.mxu1 }
 0x52c   : > { %v14603_v46 = vpop.f32.mrf.mxu0 }
 0x52d   : > { %v19447_v18 = vpop.f32.mrf.mxu1 }
 0x52f   : > { %v14661_v25 = vpop.f32.mrf.mxu0 }
 0x530   : > { %v14701_v29 = vpop.f32.mrf.mxu1 }
 0x531   : > { %v14662_v43 = vpop.f32.mrf.mxu0 }
 0x532   : > { %v14702_v26 = vpop.f32.mrf.mxu1 }
 0x533   : > { %v14664_v15 = vpop.f32.mrf.mxu0  ;;  %v14703_v52 = vadd.f32 %v14702_v26, %v14701_v29  ;;  %v14644_v26 = vadd.f32 %v19447_v18, %v19445_v7  ;;  %v21218_v7 = vld [vmem:[#allocation100_spill] sm:$0xff] }
 0x534   : > { %v19449_v0 = vpop.f32.mrf.mxu1 }
 0x535   : > { %v14665_v47 = vpop.f32.mrf.mxu0 }
 0x536   : > { %v19451_v34 = vpop.f32.mrf.mxu1 }
 0x537   : > { %v14667_v1 = vpop.f32.mrf.mxu0 }
 0x538   : > { %v14707_v57 = vpop.f32.mrf.mxu1 }
 0x539   : > { %v14668_v60 = vpop.f32.mrf.mxu0 }
 0x53a   : > { %v14708_v5 = vpop.f32.mrf.mxu1  ;;  %v14669_v13 = vadd.f32 %v14668_v60, %v14667_v1  ;;  %v21212_v1 = vld [vmem:[#allocation71_spill] sm:$0xff] }
 0x53b   : > { %v19453_v36 = vpop.f32.mrf.mxu0  ;;  %v3353_v60 = vadd.f32 %v21212_v1, %v3280_v39  ;;  %v14666_v39 = vadd.f32 %v14665_v47, %v14664_v15 }
 0x53c   : > { %21196 = vst [vmem:[#allocation39_spill] sm:$0xff] %v19453_v36  ;;  %v19455_v20 = vpop.f32.mrf.mxu1  ;;  %v14709_v36 = vadd.f32 %v14708_v5, %v14707_v57 }
 0x53d   : > { %21197 = vst [vmem:[#allocation49_spill] sm:$0xff] %v19455_v20  ;;  %v19457_v32 = vpop.f32.mrf.mxu0  ;;  %v4927_v55 = vadd.f32 %v14666_v39, %v19427_v42  ;;  %v21219_v42 = vld [vmem:[#allocation95_spill] sm:$0xff] }
 0x53e   : > { %21198 = vst [vmem:[#allocation48_spill] sm:$0xff] %v19457_v32  ;;  %v19459_v3 = vpop.f32.mrf.mxu1 }
 0x53f   : > { %21199 = vst [vmem:[#allocation40_spill] sm:$0xff] %v19459_v3  ;;  %v14673_v50 = vpop.f32.mrf.mxu0  ;;  %v4867_v3 = vadd.f32 %v14629_v30, %v4802_v22  ;;  %v14604_v22 = vadd.f32 %v14603_v46, %v14602_v10 }
 0x540   : > { %v19461_v56 = vpop.f32.mrf.mxu1 }
 0x541   : > { %21200 = vst [vmem:[#allocation41_spill] sm:$0xff] %v19461_v56  ;;  %v14674_v8 = vpop.f32.mrf.mxu0  ;;  %v21213_v56 = vld [vmem:[#allocation88_spill] sm:$0xff]  ;;  %v4932_v32 = vadd.f32 %v14669_v13, %v4867_v3  ;;  %v4821_v29 = vadd.f32 %v14604_v22, %v19421_v28 }
 0x542   : > { %v19463_v41 = vpop.f32.mrf.mxu1  ;;  %v3363_v6 = vadd.f32 %v21213_v56, %v3290_v11  ;;  %v21216_v11 = vld [vmem:[#allocation89_spill] sm:$0xff]  ;;  %v14675_v57 = vadd.f32 %v14674_v8, %v14673_v50  ;;  %v21224_v8 = vld [vmem:[#allocation92_spill] sm:$0xff] }
 0x543   : > { %21201 = vst [vmem:[#allocation42_spill] sm:$0xff] %v19463_v41  ;;  %v19465_v62 = vpop.f32.mrf.mxu0  ;;  %v21211_v41 = vld [vmem:[#allocation68_spill] sm:$0xff]  ;;  %v4886_v50 = vadd.f32 %v14644_v26, %v4821_v29 }
 0x544   : > { %21202 = vst [vmem:[#allocation44_spill] sm:$0xff] %v19465_v62  ;;  %v19467_v16 = vpop.f32.mrf.mxu1  ;;  %v19482_v33 = vadd.f32 %v21211_v41, %v3270_v19  ;;  %v3406_v62 = vadd.f32 %v21214_v51, %v3333_v53  ;;  %v3436_v56 = vadd.f32 %v21216_v11, %v3363_v6  ;;  %v21217_v51 = vld [vmem:[#allocation94_spill] sm:$0xff] }
 0x545   : > { %21203 = vst [vmem:[#allocation65_spill] sm:$0xff] %v19467_v16  ;;  %v14677_v59 = vpop.f32.mrf.mxu0  ;;  %v14601_v16 = vadd.f32 %v14600_v63, %v14599_v35  ;;  %v14595_v35 = vadd.f32 %v14594_v40, %v14593_v61  ;;  %v14598_v61 = vadd.f32 %v19441_v9, %v19437_v31  ;;  %v4805_v40 = vadd.f32 %v14592_v17, %v19421_v28 }
 0x546   : > { %v19470_v23 = vpop.f32.mrf.mxu1  ;;  %v3479_v37 = vadd.f32 %v21217_v51, %v3406_v62  ;;  %v14706_v31 = vadd.f32 %v19451_v34, %v19449_v0  ;;  %v21220_v0 = vld [vmem:[#allocation39_spill] sm:$0xff]  ;;  %v21221_v34 = vld [vmem:[#allocation48_spill] sm:$0xff]  ;;  %v3509_v48 = vadd.f32 %v21223_v38, %v3436_v56 }
 0x547   : > { %21204 = vst [vmem:[#allocation66_spill] sm:$0xff] %v19470_v23  ;;  %v14679_v44 = vpop.f32.mrf.mxu0  ;;  %v14663_v23 = vadd.f32 %v14662_v43, %v14661_v25  ;;  %v4818_v63 = vadd.f32 %v14601_v16, %v19421_v28  ;;  %v21215_v43 = vld [vmem:[#allocation83_spill] sm:$0xff]  ;;  %v4810_v10 = vadd.f32 %v14595_v35, %v19421_v28  ;;  %v4813_v45 = vadd.f32 %v14598_v61, %v19421_v28 }
 0x548   : > { %v14719_v49 = vpop.f32.mrf.mxu1  ;;  %v3426_v30 = vadd.f32 %v21215_v43, %v3353_v60  ;;  %v3552_v62 = vadd.f32 %v21219_v42, %v3479_v37  ;;  %v4992_v53 = vadd.f32 %v14706_v31, %v4927_v55  ;;  %v4870_v1 = vadd.f32 %v14632_v27, %v4805_v40  ;;  %v21225_v17 = vld [vmem:[#allocation41_spill] sm:$0xff]  ;;  %v21231_v40 = vld [vmem:[#allocation79_spill] sm:$0xff]  ;;  %v21234_v31 = vld [vmem:[#allocation54_spill] sm:$0xff] }
 0x549   : > { %v14680_v20 = vpop.f32.mrf.mxu0  ;;  %v4924_v41 = vadd.f32 %v14663_v23, %v19424_v4  ;;  %v4997_v4 = vadd.f32 %v14709_v36, %v4932_v32  ;;  %v4883_v46 = vadd.f32 %v14641_v14, %v4818_v63  ;;  %v4875_v16 = vadd.f32 %v14635_v2, %v4810_v10 }
 0x54a   : > { %v14720_v25 = vpop.f32.mrf.mxu1  ;;  %v14681_v58 = vadd.f32 %v14680_v20, %v14679_v44  ;;  %v14672_v23 = vadd.f32 %v21221_v34, %v21220_v0  ;;  %v4878_v60 = vadd.f32 %v14638_v12, %v4813_v45  ;;  %v3416_v2 = vadd.f32 %v21231_v40, %v19482_v33  ;;  %v15810_v40 = vld [vmem:[#allocation11 + $0x130] ss:$8 sps:$4 sm:$0xff]  }
 0x54b   : > { %v14682_v21 = vpop.f32.mrf.mxu0  ;;  %v4989_v47 = vadd.f32 %v14703_v52, %v4924_v41  ;;  %v14721_v5 = vadd.f32 %v14720_v25, %v14719_v49  ;;  %v21222_v13 = vld [vmem:[#allocation44_spill] sm:$0xff]  ;;  %v4940_v6 = vadd.f32 %v14675_v57, %v4875_v16  ;;  %v21227_v41 = vld [vmem:[#allocation49_spill] sm:$0xff]  ;;  %v21237_v16 = vld [vmem:[#allocation102_spill] sm:$0xff] }
 0x54c   : > { %v14722_v15 = vpop.f32.mrf.mxu1  ;;  %v4948_v20 = vadd.f32 %v14681_v58, %v4883_v46  ;;  %v14678_v28 = vadd.f32 %v14677_v59, %v21222_v13  ;;  %v4935_v59 = vadd.f32 %v14672_v23, %v4870_v1  ;;  %v21228_v52 = vld [vmem:[#allocation40_spill] sm:$0xff]  ;;  %v21229_v11 = vld [vmem:[#allocation65_spill] sm:$0xff]  ;;  %v21232_v58 = vld [vmem:[#allocation106_spill] sm:$0xff] }
 0x54d   : > { %v14683_v19 = vpop.f32.mrf.mxu0  ;;  %v14712_v39 = vadd.f32 %v21228_v52, %v21227_v41  ;;  %v21238_v23 = vld [vmem:[#allocation105_spill] sm:$0xff] }
 0x54e   : > { %v14684_v32 = vadd.f32 %v14683_v19, %v14682_v21  ;;  %v14723_v44 = vpop.f32.mrf.mxu1  ;;  %v21226_v21 = vld [vmem:[#allocation42_spill] sm:$0xff]  ;;  %v5013_v43 = vadd.f32 %v14721_v5, %v4948_v20  ;;  %v4943_v19 = vadd.f32 %v14678_v28, %v4878_v60  ;;  %v21235_v5 = vld [vmem:[#allocation108_spill] sm:$0xff] }
 0x54f   : > { %v14715_v35 = vadd.f32 %v21226_v21, %v21225_v17  ;;  %v14724_v22 = vadd.f32 %v14723_v44, %v14722_v15  ;;  %v21230_v56 = vld [vmem:[#allocation66_spill] sm:$0xff]  ;;  %v15800_v52 = vld [vmem:[#allocation11 + $0x154] ss:$8 sps:$4 sm:$0xff]  }
 0x550   : > { %v14985_v24 = vpop.f32.mrf.mxu0  ;;  %v4951_v14 = vadd.f32 %v14684_v32, %v4886_v50  ;;  %v14718_v51 = vadd.f32 %v21230_v56, %v21229_v11  ;;  %v15764_v17 = vld [vmem:[%s20942_s9 + $0x8] sm:$0xff]   ;;  %v15765_v21 = vld [vmem:[%s20942_s9 + $0x20] sm:$0xff]  }
 0x551   : > { %v5062_v9 = vadd.f32 %v14985_v24, %v4997_v4  ;;  %v3499_v4 = vadd.f32 %v21232_v58, %v3426_v30  ;;  %v5005_v26 = vadd.f32 %v14715_v35, %v4940_v6  ;;  %v21233_v24 = vld [vmem:[#allocation101_spill] sm:$0xff]  ;;  %v21236_v30 = vld [vmem:[#allocation107_spill] sm:$0xff] }
 0x552   : > { %v5053_v36 = vpop.f32.mrf.mxu0  ;;  %v5016_v15 = vadd.f32 %v14724_v22, %v4951_v14  ;;  %v3489_v55 = vadd.f32 %v21233_v24, %v3416_v2  ;;  %v5008_v12 = vadd.f32 %v14718_v51, %v4943_v19  ;;  %v15763_v6 = vld [vmem:[%s20942_s9 + $0x10] sm:$0xff]   ;;  %v15766_v35 = vld [vmem:[%s20942_s9 + $0x18] sm:$0xff]   ;;  %v15768_v22 = vld [vmem:[%s20942_s9 + $0x28] sm:$0xff]  }
 0x553   : > { %v19510_v18 = vadd.f32 %v5062_v9, %v21218_v7  ;;  %v5054_v3 = vadd.f32 %v5053_v36, %v4989_v47  ;;  %v3582_v9 = vadd.f32 %v21234_v31, %v3509_v48  ;;  %v5000_v47 = vadd.f32 %v14712_v39, %v4935_v59  ;;  %v15788_v14 = vld [vmem:[#allocation11 + $0x174] ss:$8 sps:$4 sm:$0xff]   ;;  %v15794_v59 = vld [vmem:[#allocation11 + $0x164] ss:$8 sps:$4 sm:$0xff]   ;;  %v15792_v41 = vld [vmem:[#allocation11 + $0x160] ss:$8 sps:$4 sm:$0xff]  }
 0x554   : > { %v14986_v54 = vpop.f32.mrf.mxu0  ;;  %v3572_v7 = vadd.f32 %v21236_v30, %v3499_v4  ;;  %v3562_v0 = vadd.f32 %v21237_v16, %v3489_v55  ;;  %v15798_v39 = vld [vmem:[#allocation11 + $0x150] ss:$8 sps:$4 sm:$0xff]   ;;  %v15806_v19 = vld [vmem:[#allocation11 + $0x144] ss:$8 sps:$4 sm:$0xff]   ;;  %v15773_v11 = vld [vmem:[#allocation11 + $0x74] ss:$8 sps:$4 sm:$0xff]  }
 0x555   : > { %v5084_v49 = vadd.f32 %v5054_v3, %v21224_v8  ;;  %v5065_v3 = vadd.f32 %v14986_v54, %v5000_v47  ;;  %v5094_v1 = vmax.f32 %v19510_v18, 0.0  ;;  %v15762_v18 = vld [vmem:[%s20942_s9] sm:$0xff]   ;;  %v15818_v2 = vld [vmem:[#allocation11 + $0x124] ss:$8 sps:$4 sm:$0xff]   ;;  %v15795_v30 = vld [vmem:[#allocation11 + $0x10] ss:$8 sps:$4 sm:$0xff]  }
 0x556   : > { %v5056_v63 = vpop.f32.mrf.mxu0  ;;  %v15804_v56 = vld [vmem:[#allocation11 + $0x140] ss:$8 sps:$4 sm:$0xff]   ;;  %v15812_v51 = vld [vmem:[#allocation11 + $0x134] ss:$8 sps:$4 sm:$0xff]   ;;  %v15830_v24 = vld [vmem:[#allocation11 + $0x104] ss:$8 sps:$4 sm:$0xff]  }
 0x557   : > { %v5057_v25 = vadd.f32 %v5056_v63, %v4992_v53  ;;  %v5092_v46 = vmax.f32 %v5084_v49, 0.0  ;;  %v5087_v38 = vadd.f32 %v5065_v3, %v3562_v0  ;;  %v21239_v49 = vmov 0.0   ;;  %v15767_v63 = vld [vmem:[%s20942_s9 + $0x30] sm:$0xff]   ;;  %v15774_v58 = vld [vmem:[#allocation11 + $0x60] ss:$8 sps:$4 sm:$0xff]  }
 0x558   : > { %v14989_v37 = vpop.f32.mrf.mxu0  ;;  %v15779_v4 = vld [vmem:[#allocation11 + $0x54] ss:$8 sps:$4 sm:$0xff]   ;;  %v15780_v55 = vld [vmem:[#allocation11 + $0x40] ss:$8 sps:$4 sm:$0xff]   ;;  %v15846_v3 = vld [vmem:[#allocation11 + $0x1d0] ss:$8 sps:$4 sm:$0xff]  }
 0x559   : > { %v5085_v27 = vadd.f32 %v5057_v25, %v3552_v62  ;;  %v5078_v61 = vadd.f32 %v14989_v37, %v5013_v43  ;;  %v5095_v54 = vmax.f32 %v5087_v38, 0.0  ;;  %v15770_v25 = vld [vmem:[%s20942_s9 + $0x40] sm:$0xff]   ;;  %v15786_v43 = vld [vmem:[#allocation11 + $0x170] ss:$8 sps:$4 sm:$0xff]  }
 0x55a   : > { %v5069_v10 = vpop.f32.mrf.mxu0  ;;  %v15769_v37 = vld [vmem:[%s20942_s9 + $0x38] sm:$0xff]   ;;  %v15852_v0 = vld [vmem:[#allocation11 + $0x1c0] ss:$8 sps:$4 sm:$0xff]  }
 0x55b   : > { %v5093_v29 = vmax.f32 %v5085_v27, 0.0  ;;  %v5090_v36 = vadd.f32 %v5078_v61, %v21235_v5  ;;  %v5070_v20 = vadd.f32 %v5069_v10, %v5005_v26  ;;  %v19548_v60 = vpack.c.bf16 %v5095_v54, %v5094_v1  ;;  %v15771_v27 = vld [vmem:[#allocation11 + $0x70] ss:$8 sps:$4 sm:$0xff]   ;;  %v15776_v61 = vld [vmem:[#allocation11 + $0x64] ss:$8 sps:$4 sm:$0xff]  }
 0x55c   : > { %v14990_v45 = vpop.f32.mrf.mxu0  ;;  %v15816_v10 = vld [vmem:[#allocation11 + $0x120] ss:$8 sps:$4 sm:$0xff]   ;;  %v15782_v26 = vld [vmem:[#allocation11 + $0x44] ss:$8 sps:$4 sm:$0xff]   ;;  %v15785_v31 = vld [vmem:[#allocation11 + $0x34] ss:$8 sps:$4 sm:$0xff]  }
 0x55d   : > { %v19529_v57 = vpack.c.bf16 %v5093_v29, %v5092_v46  ;;  %v5081_v33 = vadd.f32 %v14990_v45, %v5016_v15  ;;  %v5098_v34 = vmax.f32 %v5090_v36, 0.0  ;;  %v5088_v13 = vadd.f32 %v5070_v20, %v21238_v23  ;;  %v15824_v46 = vld [vmem:[#allocation11 + $0x114] ss:$8 sps:$4 sm:$0xff]   ;;  %v15777_v29 = vld [vmem:[#allocation11 + $0x50] ss:$8 sps:$4 sm:$0xff]  }
 0x55e   : > { %v5072_v32 = vpop.f32.mrf.mxu0  ;;  %v15822_v15 = vld [vmem:[#allocation11 + $0x110] ss:$8 sps:$4 sm:$0xff]   ;;  %v15836_v47 = vld [vmem:[#allocation11 + $0x1f4] ss:$8 sps:$4 sm:$0xff]   ;;  %v15842_v5 = vld [vmem:[#allocation11 + $0x1e4] ss:$8 sps:$4 sm:$0xff]  }
 0x55f   : > { %v5091_v42 = vadd.f32 %v5081_v33, %v3582_v9  ;;  %v5073_v62 = vadd.f32 %v5072_v32, %v5008_v12  ;;  %v5096_v8 = vmax.f32 %v5088_v13, 0.0  ;;  %v15828_v9 = vld [vmem:[#allocation11 + $0x100] ss:$8 sps:$4 sm:$0xff]   ;;  %v15783_v45 = vld [vmem:[#allocation11 + $0x30] ss:$8 sps:$4 sm:$0xff]  }
 0x560   : > { %v15791_v12 = vld [vmem:[#allocation11 + $0x24] ss:$8 sps:$4 sm:$0xff]   ;;  %v15789_v36 = vld [vmem:[#allocation11 + $0x20] ss:$8 sps:$4 sm:$0xff]   ;;  %v15797_v20 = vld [vmem:[#allocation11 + $0x14] ss:$8 sps:$4 sm:$0xff]  }
 0x561   : > { %v5099_v28 = vmax.f32 %v5091_v42, 0.0  ;;  %v5089_v44 = vadd.f32 %v5073_v62, %v3572_v7  ;;  %v15840_v33 = vld [vmem:[#allocation11 + $0x1e0] ss:$8 sps:$4 sm:$0xff]   ;;  %v15848_v32 = vld [vmem:[#allocation11 + $0x1d4] ss:$8 sps:$4 sm:$0xff]  }
 0x562   : > { %v15803_v7 = vld [vmem:[#allocation11 + $0x4] ss:$8 sps:$4 sm:$0xff]   ;;  %v15801_v62 = vld [vmem:[#allocation11] ss:$8 sps:$4 sm:$0xff]   ;;  %v15809_v16 = vld [vmem:[#allocation11 + $0xf4] ss:$8 sps:$4 sm:$0xff]  }
 0x563   : > { %v19535_v48 = vpack.c.bf16 %v5099_v28, %v5098_v34  ;;  %v5097_v50 = vmax.f32 %v5089_v44, 0.0  ;;  %v15854_v42 = vld [vmem:[#allocation11 + $0x1c4] ss:$8 sps:$4 sm:$0xff]   ;;  %v15857_v34 = vld [vmem:[#allocation11 + $0x1b4] ss:$8 sps:$4 sm:$0xff]  }
 0x564   : > { %v15807_v23 = vld [vmem:[#allocation11 + $0xf0] ss:$8 sps:$4 sm:$0xff]   ;;  %v15815_v13 = vld [vmem:[#allocation11 + $0xe4] ss:$8 sps:$4 sm:$0xff]   ;;  %v15813_v38 = vld [vmem:[#allocation11 + $0xe0] ss:$8 sps:$4 sm:$0xff]  }
 0x565   : > { %14992 = vmatpush3.bf16.msra.mxu0 %v19535_v48  ;;  %15016 = vmatpush3.bf16.msra.mxu1 %v19535_v48  ;;  %v19541_v53 = vpack.c.bf16 %v5097_v50, %v5096_v8  ;;  %v15855_v28 = vld [vmem:[#allocation11 + $0x1b0] ss:$8 sps:$4 sm:$0xff]   ;;  %v15863_v44 = vld [vmem:[#allocation11 + $0x1a4] ss:$8 sps:$4 sm:$0xff]   ;;  %v15861_v50 = vld [vmem:[#allocation11 + $0x1a0] ss:$8 sps:$4 sm:$0xff]  }
 0x566   : > { %14993 = vmatprep.subr.bf16.mxu0 %v21239_v49  ;;  %15017 = vmatprep.subr.bf16.mxu1 %v21239_v49  ;;  %v15869_v8 = vld [vmem:[#allocation11 + $0x194] ss:$8 sps:$4 sm:$0xff]   ;;  %v15819_v54 = vld [vmem:[#allocation11 + $0xd0] ss:$8 sps:$4 sm:$0xff]  }
 0x567   : > { %v15867_v1 = vld [vmem:[#allocation11 + $0x190] ss:$8 sps:$4 sm:$0xff]  }
 0x569   : > { %14994 = vmatpush3.bf16.msra.mxu0 %v19541_v53  ;;  %15018 = vmatpush3.bf16.msra.mxu1 %v19541_v53 }
 0x56a   : > { %14995 = vmatprep.subr.bf16.mxu0 %v21239_v49  ;;  %15019 = vmatprep.subr.bf16.mxu1 %v21239_v49 }
 0x56d   : > { %14996 = vmatpush3.bf16.msra.mxu0 %v19548_v60  ;;  %15020 = vmatpush3.bf16.msra.mxu1 %v19548_v60 }
 0x56e   : > { %14997 = vmatprep.subr.bf16.mxu0 %v21239_v49  ;;  %15021 = vmatprep.subr.bf16.mxu1 %v21239_v49 }
 0x571   : > { %14998 = vmatpush3.bf16.msra.mxu0 %v19529_v57  ;;  %15022 = vmatpush3.bf16.msra.mxu1 %v19529_v57 }
 0x572   : > { %15003 = vmatprep.subr.bf16.mxu0 %v21239_v49  ;;  %15039 = vmatprep.subr.bf16.mxu1 %v21239_v49 }
 0x574   : > { %15000 = vmatmul.mubr.msk.bf16.vlgmr.msra.gmra.mxu0 %vm5111_vm3, %v15762_v18  ;;  %15024 = vmatmul.mubr.msk.bf16.vlgmr.msra.gmra.mxu1 %vm5111_vm3, %v15763_v6  ;;  %v15825_v18 = vld [vmem:[#allocation11 + $0xc0] ss:$8 sps:$4 sm:$0xff]   ;;  %v15833_v6 = vld [vmem:[#allocation11 + $0xb4] ss:$8 sps:$4 sm:$0xff]  }
 0x575   : > { %15004 = vmatpush3.bf16.msra.mxu0 %v19535_v48  ;;  %15040 = vmatpush3.bf16.msra.mxu1 %v19535_v48 }
 0x576   : > { %15005 = vmatprep.subr.bf16.mxu0 %v21239_v49  ;;  %15041 = vmatprep.subr.bf16.mxu1 %v21239_v49 }
 0x577   : > { %15011 = vmatprep.mubr.msk.bf16.mxu0 %vm17359_vm2, %v21239_v49  ;;  %15047 = vmatprep.mubr.msk.bf16.mxu1 %vm17359_vm2, %v21239_v49 }
 0x579   : > { %15006 = vmatpush3.bf16.msra.mxu0 %v19541_v53  ;;  %15042 = vmatpush3.bf16.msra.mxu1 %v19541_v53 }
 0x57a   : > { %15007 = vmatprep.subr.bf16.mxu0 %v21239_v49  ;;  %15043 = vmatprep.subr.bf16.mxu1 %v21239_v49 }
 0x57d   : > { %15008 = vmatpush3.bf16.msra.mxu0 %v19548_v60  ;;  %15044 = vmatpush3.bf16.msra.mxu1 %v19548_v60 }
 0x57e   : > { %15009 = vmatprep.subr.bf16.mxu0 %v21239_v49  ;;  %15045 = vmatprep.subr.bf16.mxu1 %v21239_v49 }
 0x581   : > { %15010 = vmatpush3.bf16.msra.mxu0 %v19529_v57  ;;  %15046 = vmatpush3.bf16.msra.mxu1 %v19529_v57 }
 0x582   : > { %15027 = vmatprep.subr.bf16.mxu0 %v21239_v49  ;;  %15063 = vmatprep.subr.bf16.mxu1 %v21239_v49 }
 0x584   : > { %15012 = vmatmul.mubr.msk.bf16.vlgmr.msra.gmra.mxu0 %vm5111_vm3, %v15764_v17  ;;  %15048 = vmatmul.mubr.msk.bf16.vlgmr.msra.gmra.mxu1 %vm5111_vm3, %v15765_v21  ;;  %v15873_v17 = vld [vmem:[#allocation11 + $0x180] ss:$8 sps:$4 sm:$0xff]   ;;  %v15884_v21 = vld [vmem:[#allocation11 + $0x374] ss:$8 sps:$4 sm:$0xff]  }
 0x585   : > { %15028 = vmatpush3.bf16.msra.mxu0 %v19535_v48  ;;  %15064 = vmatpush3.bf16.msra.mxu1 %v19535_v48 }
 0x586   : > { %15029 = vmatprep.subr.bf16.mxu0 %v21239_v49  ;;  %15065 = vmatprep.subr.bf16.mxu1 %v21239_v49 }
 0x587   : > { %15035 = vmatprep.mubr.msk.bf16.mxu0 %vm17359_vm2, %v21239_v49  ;;  %15071 = vmatprep.mubr.msk.bf16.mxu1 %vm17359_vm2, %v21239_v49 }
 0x589   : > { %15030 = vmatpush3.bf16.msra.mxu0 %v19541_v53  ;;  %15066 = vmatpush3.bf16.msra.mxu1 %v19541_v53 }
 0x58a   : > { %15031 = vmatprep.subr.bf16.mxu0 %v21239_v49  ;;  %15067 = vmatprep.subr.bf16.mxu1 %v21239_v49 }
 0x58d   : > { %15032 = vmatpush3.bf16.msra.mxu0 %v19548_v60  ;;  %15068 = vmatpush3.bf16.msra.mxu1 %v19548_v60 }
 0x58e   : > { %15033 = vmatprep.subr.bf16.mxu0 %v21239_v49  ;;  %15069 = vmatprep.subr.bf16.mxu1 %v21239_v49 }
 0x591   : > { %15034 = vmatpush3.bf16.msra.mxu0 %v19529_v57  ;;  %15070 = vmatpush3.bf16.msra.mxu1 %v19529_v57 }
 0x592   : > { %15051 = vmatprep.subr.bf16.mxu0 %v21239_v49  ;;  %15087 = vmatprep.subr.bf16.mxu1 %v21239_v49 }
 0x594   : > { %15036 = vmatmul.mubr.msk.bf16.vlgmr.msra.gmra.mxu0 %vm5111_vm3, %v15766_v35  ;;  %15072 = vmatmul.mubr.msk.bf16.vlgmr.msra.gmra.mxu1 %vm5111_vm3, %v15767_v63  ;;  %v15831_v35 = vld [vmem:[#allocation11 + $0xb0] ss:$8 sps:$4 sm:$0xff]   ;;  %v15839_v63 = vld [vmem:[#allocation11 + $0xa4] ss:$8 sps:$4 sm:$0xff]  }
 0x595   : > { %15052 = vmatpush3.bf16.msra.mxu0 %v19535_v48  ;;  %15088 = vmatpush3.bf16.msra.mxu1 %v19535_v48 }
 0x596   : > { %15053 = vmatprep.subr.bf16.mxu0 %v21239_v49  ;;  %15089 = vmatprep.subr.bf16.mxu1 %v21239_v49 }
 0x597   : > { %15059 = vmatprep.mubr.msk.bf16.mxu0 %vm17359_vm2, %v21239_v49  ;;  %15095 = vmatprep.mubr.msk.bf16.mxu1 %vm17359_vm2, %v21239_v49 }
 0x599   : > { %15054 = vmatpush3.bf16.msra.mxu0 %v19541_v53  ;;  %15090 = vmatpush3.bf16.msra.mxu1 %v19541_v53 }
 0x59a   : > { %15055 = vmatprep.subr.bf16.mxu0 %v21239_v49  ;;  %15091 = vmatprep.subr.bf16.mxu1 %v21239_v49 }
 0x59d   : > { %15056 = vmatpush3.bf16.msra.mxu0 %v19548_v60  ;;  %15092 = vmatpush3.bf16.msra.mxu1 %v19548_v60 }
 0x59e   : > { %15057 = vmatprep.subr.bf16.mxu0 %v21239_v49  ;;  %15093 = vmatprep.subr.bf16.mxu1 %v21239_v49 }
 0x5a1   : > { %15058 = vmatpush3.bf16.msra.mxu0 %v19529_v57  ;;  %15094 = vmatpush3.bf16.msra.mxu1 %v19529_v57 }
 0x5a2   : > { %15075 = vmatprep.subr.bf16.mxu0 %v21239_v49  ;;  %6500 = vmatprep.subr.bf16.mxu1 %v15788_v14  ;;  %v15837_v14 = vld [vmem:[#allocation11 + $0xa0] ss:$8 sps:$4 sm:$0xff]  }
 0x5a4   : > { %15060 = vmatmul.mubr.msk.bf16.vlgmr.msra.gmra.mxu0 %vm5111_vm3, %v15768_v22  ;;  %15096 = vmatmul.mubr.msk.bf16.vlgmr.msra.gmra.mxu1 %vm5111_vm3, %v15770_v25  ;;  %v15845_v22 = vld [vmem:[#allocation11 + $0x94] ss:$8 sps:$4 sm:$0xff]   ;;  %v15843_v25 = vld [vmem:[#allocation11 + $0x90] ss:$8 sps:$4 sm:$0xff]  }
 0x5a5   : > { %15076 = vmatpush3.bf16.msra.mxu0 %v19535_v48  ;;  %15083 = vmatprep.mubr.msk.bf16.mxu0 %vm17359_vm2, %v21239_v49  ;;  %v15821_v48 = vld [vmem:[#allocation11 + $0xd4] ss:$8 sps:$4 sm:$0xff]  }
 0x5a6   : > { %15077 = vmatprep.subr.bf16.mxu0 %v21239_v49  ;;  %6501 = vmatpush1.bf16.msra.mxu1 %v15786_v43  ;;  %v15851_v43 = vld [vmem:[#allocation11 + $0x84] ss:$8 sps:$4 sm:$0xff]  }
 0x5a7   : > { %6502 = vmatprep.subr.bf16.mxu1 %v15794_v59  ;;  %v15849_v59 = vld [vmem:[#allocation11 + $0x80] ss:$8 sps:$4 sm:$0xff]  }
 0x5a9   : > { %15078 = vmatpush3.bf16.msra.mxu0 %v19541_v53  ;;  %v15827_v53 = vld [vmem:[#allocation11 + $0xc4] ss:$8 sps:$4 sm:$0xff]  }
 0x5aa   : > { %15079 = vmatprep.subr.bf16.mxu0 %v21239_v49  ;;  %6503 = vmatpush1.bf16.msra.mxu1 %v15792_v41  ;;  %v15860_v41 = vld [vmem:[#allocation11 + $0x274] ss:$8 sps:$4 sm:$0xff]  }
 0x5ab   : > { %6504 = vmatprep.subr.bf16.mxu1 %v15800_v52 }
 0x5ad   : > { %15080 = vmatpush3.bf16.msra.mxu0 %v19548_v60  ;;  %v15875_v60 = vld [vmem:[#allocation11 + $0x184] ss:$8 sps:$4 sm:$0xff]  }
 0x5ae   : > { %15081 = vmatprep.subr.bf16.mxu0 %v21239_v49  ;;  %6505 = vmatpush1.bf16.msra.mxu1 %v15798_v39 }
 0x5af   : > { %6506 = vmatprep.subr.bf16.mxu1 %v15806_v19 }
 0x5b1   : > { %15082 = vmatpush3.bf16.msra.mxu0 %v19529_v57  ;;  %v15834_v57 = vld [vmem:[#allocation11 + $0x1f0] ss:$8 sps:$4 sm:$0xff]  }
 0x5b2   : > { %6457 = vmatprep.subr.bf16.mxu0 %v15773_v11  ;;  %6507 = vmatpush1.bf16.msra.mxu1 %v15804_v56 }
 0x5b3   : > { %6508 = vmatprep.subr.bf16.mxu1 %v15812_v51 }
 0x5b4   : > { %15084 = vmatmul.mubr.msk.bf16.vlgmr.msra.gmra.mxu0 %vm5111_vm3, %v15769_v37 }
 0x5b5   : > { %6458 = vmatpush1.bf16.msra.mxu0 %v15771_v27 }
 0x5b6   : > { %6459 = vmatprep.subr.bf16.mxu0 %v15776_v61  ;;  %6509 = vmatpush1.bf16.msra.mxu1 %v15810_v40 }
 0x5b7   : > { %6510 = vmatprep.subr.bf16.mxu1 %v15818_v2 }
 0x5b9   : > { %6460 = vmatpush1.bf16.msra.mxu0 %v15774_v58 }
 0x5ba   : > { %6461 = vmatprep.subr.bf16.mxu0 %v15779_v4  ;;  %6511 = vmatpush1.bf16.msra.mxu1 %v15816_v10 }
 0x5bb   : > { %6512 = vmatprep.subr.bf16.mxu1 %v15824_v46 }
 0x5bd   : > { %6462 = vmatpush1.bf16.msra.mxu0 %v15777_v29  ;;  %v15858_v29 = vld [vmem:[#allocation11 + $0x270] ss:$8 sps:$4 sm:$0xff]  }
 0x5be   : > { %6463 = vmatprep.subr.bf16.mxu0 %v15782_v26  ;;  %6513 = vmatpush1.bf16.msra.mxu1 %v15822_v15 }
 0x5bf   : > { %6514 = vmatprep.subr.bf16.mxu1 %v15830_v24 }
 0x5c1   : > { %6464 = vmatpush1.bf16.msra.mxu0 %v15780_v55  ;;  %v15866_v55 = vld [vmem:[#allocation11 + $0x264] ss:$8 sps:$4 sm:$0xff]  }
 0x5c2   : > { %6465 = vmatprep.subr.bf16.mxu0 %v15785_v31  ;;  %6515 = vmatpush1.bf16.msra.mxu1 %v15828_v9  ;;  %v15864_v9 = vld [vmem:[#allocation11 + $0x260] ss:$8 sps:$4 sm:$0xff]  }
 0x5c3   : > { %6516 = vmatprep.subr.bf16.mxu1 %v15836_v47  ;;  %v15872_v47 = vld [vmem:[#allocation11 + $0x254] ss:$8 sps:$4 sm:$0xff]  }
 0x5c5   : > { %6466 = vmatpush1.bf16.msra.mxu0 %v15783_v45  ;;  %v15870_v45 = vld [vmem:[#allocation11 + $0x250] ss:$8 sps:$4 sm:$0xff]  }
 0x5c6   : > { %6467 = vmatprep.subr.bf16.mxu0 %v15791_v12  ;;  %6517 = vmatpush2.bf16.msra.mxu1 %v15834_v57  ;;  %v15878_v12 = vld [vmem:[#allocation11 + $0x244] ss:$8 sps:$4 sm:$0xff]  }
 0x5c7   : > { %6518 = vmatprep.subr.bf16.mxu1 %v15842_v5 }
 0x5c9   : > { %6468 = vmatpush1.bf16.msra.mxu0 %v15789_v36  ;;  %v15876_v36 = vld [vmem:[#allocation11 + $0x240] ss:$8 sps:$4 sm:$0xff]  }
 0x5ca   : > { %6469 = vmatprep.subr.bf16.mxu0 %v15797_v20  ;;  %6519 = vmatpush2.bf16.msra.mxu1 %v15840_v33  ;;  %v15881_v33 = vld [vmem:[#allocation11 + $0x234] ss:$8 sps:$4 sm:$0xff]  }
 0x5cb   : > { %6520 = vmatprep.subr.bf16.mxu1 %v15848_v32 }
 0x5cd   : > { %6470 = vmatpush1.bf16.msra.mxu0 %v15795_v30 }
 0x5ce   : > { %6471 = vmatprep.subr.bf16.mxu0 %v15803_v7  ;;  %6521 = vmatpush2.bf16.msra.mxu1 %v15846_v3 }
 0x5cf   : > { %6522 = vmatprep.subr.bf16.mxu1 %v15854_v42 }
 0x5d1   : > { %6472 = vmatpush1.bf16.msra.mxu0 %v15801_v62  ;;  %v15879_v62 = vld [vmem:[#allocation11 + $0x230] ss:$8 sps:$4 sm:$0xff]  }
 0x5d2   : > { %6473 = vmatprep.subr.bf16.mxu0 %v15809_v16  ;;  %6523 = vmatpush2.bf16.msra.mxu1 %v15852_v0  ;;  %v15882_v16 = vld [vmem:[#allocation11 + $0x370] ss:$8 sps:$4 sm:$0xff]  }
 0x5d3   : > { %6524 = vmatprep.subr.bf16.mxu1 %v15857_v34  ;;  %v15887_v34 = vld [vmem:[#allocation11 + $0x224] ss:$8 sps:$4 sm:$0xff]  }
 0x5d5   : > { %6474 = vmatpush2.bf16.msra.mxu0 %v15807_v23  ;;  %v15890_v23 = vld [vmem:[#allocation11 + $0x364] ss:$8 sps:$4 sm:$0xff]  }
 0x5d6   : > { %6475 = vmatprep.subr.bf16.mxu0 %v15815_v13  ;;  %6525 = vmatpush2.bf16.msra.mxu1 %v15855_v28 }
 0x5d7   : > { %6526 = vmatprep.subr.bf16.mxu1 %v15863_v44  ;;  %v15885_v44 = vld [vmem:[#allocation11 + $0x220] ss:$8 sps:$4 sm:$0xff]  }
 0x5d9   : > { %6476 = vmatpush2.bf16.msra.mxu0 %v15813_v38  ;;  %v15888_v38 = vld [vmem:[#allocation11 + $0x360] ss:$8 sps:$4 sm:$0xff]  }
 0x5da   : > { %6477 = vmatprep.subr.bf16.mxu0 %v15821_v48  ;;  %6527 = vmatpush2.bf16.msra.mxu1 %v15861_v50  ;;  %v15893_v48 = vld [vmem:[#allocation11 + $0x214] ss:$8 sps:$4 sm:$0xff]  }
 0x5db   : > { %6528 = vmatprep.subr.bf16.mxu1 %v15869_v8  ;;  %v15896_v50 = vld [vmem:[#allocation11 + $0x354] ss:$8 sps:$4 sm:$0xff]   ;;  %v15891_v8 = vld [vmem:[#allocation11 + $0x210] ss:$8 sps:$4 sm:$0xff]  }
 0x5dd   : > { %6478 = vmatpush2.bf16.msra.mxu0 %v15819_v54  ;;  %v15894_v54 = vld [vmem:[#allocation11 + $0x350] ss:$8 sps:$4 sm:$0xff]  }
 0x5de   : > { %6479 = vmatprep.subr.bf16.mxu0 %v15827_v53  ;;  %6529 = vmatpush2.bf16.msra.mxu1 %v15867_v1  ;;  %v15899_v53 = vld [vmem:[#allocation11 + $0x204] ss:$8 sps:$4 sm:$0xff]  }
 0x5df   : > { %6530 = vmatprep.subr.bf16.mxu1 %v15875_v60  ;;  %v15902_v1 = vld [vmem:[#allocation11 + $0x344] ss:$8 sps:$4 sm:$0xff]  }
 0x5e1   : > { %6480 = vmatpush2.bf16.msra.mxu0 %v15825_v18 }
 0x5e2   : > { %6481 = vmatprep.subr.bf16.mxu0 %v15833_v6  ;;  %6531 = vmatpush2.bf16.msra.mxu1 %v15873_v17  ;;  %v15897_v6 = vld [vmem:[#allocation11 + $0x200] ss:$8 sps:$4 sm:$0xff]  }
 0x5e3   : > { %6586 = vmatprep.subr.bf16.mxu1 %v15884_v21  ;;  %v15900_v17 = vld [vmem:[#allocation11 + $0x340] ss:$8 sps:$4 sm:$0xff]   ;;  %v15905_v21 = vld [vmem:[#allocation11 + $0x2f4] ss:$8 sps:$4 sm:$0xff]  }
 0x5e5   : > { %6482 = vmatpush2.bf16.msra.mxu0 %v15831_v35  ;;  %v15908_v35 = vld [vmem:[#allocation11 + $0x334] ss:$8 sps:$4 sm:$0xff]  }
 0x5e6   : > { %6483 = vmatprep.subr.bf16.mxu0 %v15839_v63 }
 0x5e9   : > { %6484 = vmatpush2.bf16.msra.mxu0 %v15837_v14 }
 0x5ea   : > { %6485 = vmatprep.subr.bf16.mxu0 %v15845_v22 }
 0x5ed   : > { %6486 = vmatpush2.bf16.msra.mxu0 %v15843_v25 }
 0x5ee   : > { %6487 = vmatprep.subr.bf16.mxu0 %v15851_v43  ;;  %v15903_v43 = vld [vmem:[#allocation11 + $0x2f0] ss:$8 sps:$4 sm:$0xff]  }
 0x5f1   : > { %6488 = vmatpush2.bf16.msra.mxu0 %v15849_v59  ;;  %v15906_v59 = vld [vmem:[#allocation11 + $0x330] ss:$8 sps:$4 sm:$0xff]  }
 0x5f2   : > { %6543 = vmatprep.subr.bf16.mxu0 %v15860_v41 }
 0x634   : > { %v5149_v52 = vpop.f32.mrf.mxu0  ;;  %v5255_v39 = vpop.f32.mrf.mxu1 }
 0x636   : > { %v15001_v19 = vpop.f32.mrf.mxu0  ;;  %v15025_v11 = vpop.f32.mrf.mxu1 }
 0x637   : > { %v15914_v19 = vld [vmem:[#allocation11 + $0x324] ss:$8 sps:$4 sm:$0xff]  }
 0x638   : > { %v5152_v56 = vpop.f32.mrf.mxu0  ;;  %v5258_v51 = vpop.f32.mrf.mxu1 }
 0x639   : > { %v5156_v15 = vpack.c.bf16 %v5152_v56, %v5149_v52  ;;  %v5262_v7 = vpack.c.bf16 %v5258_v51, %v5255_v39  ;;  %v15911_v39 = vld [vmem:[#allocation11 + $0x2e4] ss:$8 sps:$4 sm:$0xff]   ;;  %v15909_v51 = vld [vmem:[#allocation11 + $0x2e0] ss:$8 sps:$4 sm:$0xff]  }
 0x63a   : > { %v15002_v37 = vpop.f32.mrf.mxu0  ;;  %v15026_v27 = vpop.f32.mrf.mxu1 }
 0x63b   : > { %v15912_v37 = vld [vmem:[#allocation11 + $0x320] ss:$8 sps:$4 sm:$0xff]   ;;  %v15917_v27 = vld [vmem:[#allocation11 + $0x2d4] ss:$8 sps:$4 sm:$0xff]  }
 0x644   : > { %v5202_v61 = vpop.f32.mrf.mxu0  ;;  %v19662_v40 = vpop.f32.mrf.mxu1 }
 0x646   : > { %v15013_v2 = vpop.f32.mrf.mxu0  ;;  %v15049_v58 = vpop.f32.mrf.mxu1 }
 0x647   : > { %v15915_v2 = vld [vmem:[#allocation11 + $0x2d0] ss:$8 sps:$4 sm:$0xff]  }
 0x648   : > { %v5205_v4 = vpop.f32.mrf.mxu0  ;;  %v19664_v10 = vpop.f32.mrf.mxu1  ;;  %v15918_v58 = vld [vmem:[#allocation11 + $0x310] ss:$8 sps:$4 sm:$0xff]  }
 0x649   : > { %v5209_v46 = vpack.c.bf16 %v5205_v4, %v5202_v61  ;;  %v5368_v26 = vpack.c.bf16 %v19664_v10, %v19662_v40  ;;  %v15920_v61 = vld [vmem:[#allocation11 + $0x314] ss:$8 sps:$4 sm:$0xff]   ;;  %v15923_v4 = vld [vmem:[#allocation11 + $0x2c4] ss:$8 sps:$4 sm:$0xff]   ;;  %v15969_v40 = vld [vmem:[#allocation11 + $0x380] ss:$8 sps:$4 sm:$0xff]  }
 0x64a   : > { %v15014_v24 = vpop.f32.mrf.mxu0  ;;  %v15050_v31 = vpop.f32.mrf.mxu1  ;;  %v15972_v10 = vld [vmem:[#allocation11 + $0x440] ss:$8 sps:$4 sm:$0xff]  }
 0x64b   : > { %6489 = vmatprep.mubr.bf16.mxu0 %v5209_v46  ;;  %v15926_v46 = vld [vmem:[#allocation11 + $0x304] ss:$8 sps:$4 sm:$0xff]   ;;  %v15924_v24 = vld [vmem:[#allocation11 + $0x300] ss:$8 sps:$4 sm:$0xff]   ;;  %v15932_v31 = vld [vmem:[#allocation11 + $0x3f4] ss:$8 sps:$4 sm:$0xff]  }
 0x64c   : > { %6490 = vmatmul.mubr.bf16.vlgmr.msra.gmra.mxu0 %v5156_v15  ;;  %v15921_v15 = vld [vmem:[#allocation11 + $0x2c0] ss:$8 sps:$4 sm:$0xff]  }
 0x64d   : > { %6544 = vmatpush1.bf16.msra.mxu0 %v15858_v29 }
 0x64e   : > { %6545 = vmatprep.subr.bf16.mxu0 %v15866_v55  ;;  %v15929_v55 = vld [vmem:[#allocation11 + $0x2b4] ss:$8 sps:$4 sm:$0xff]  }
 0x651   : > { %6546 = vmatpush1.bf16.msra.mxu0 %v15864_v9 }
 0x652   : > { %6547 = vmatprep.subr.bf16.mxu0 %v15872_v47 }
 0x654   : > { %v5308_v57 = vpop.f32.mrf.mxu0  ;;  %v19668_v5 = vpop.f32.mrf.mxu1 }
 0x655   : > { %6548 = vmatpush1.bf16.msra.mxu0 %v15870_v45  ;;  %v15927_v45 = vld [vmem:[#allocation11 + $0x2b0] ss:$8 sps:$4 sm:$0xff]  }
 0x656   : > { %v15037_v20 = vpop.f32.mrf.mxu0  ;;  %6549 = vmatprep.subr.bf16.mxu0 %v15878_v12  ;;  %v15073_v32 = vpop.f32.mrf.mxu1  ;;  %v15930_v12 = vld [vmem:[#allocation11 + $0x3f0] ss:$8 sps:$4 sm:$0xff]  }
 0x657   : > { %v15938_v20 = vld [vmem:[#allocation11 + $0x3e4] ss:$8 sps:$4 sm:$0xff]   ;;  %v15933_v32 = vld [vmem:[#allocation11 + $0x2a0] ss:$8 sps:$4 sm:$0xff]  }
 0x658   : > { %v5311_v30 = vpop.f32.mrf.mxu0  ;;  %v19670_v3 = vpop.f32.mrf.mxu1 }
 0x659   : > { %v5315_v42 = vpack.c.bf16 %v5311_v30, %v5308_v57  ;;  %6550 = vmatpush1.bf16.msra.mxu0 %v15876_v36  ;;  %v5474_v0 = vpack.c.bf16 %v19670_v3, %v19668_v5  ;;  %v15935_v36 = vld [vmem:[#allocation11 + $0x2a4] ss:$8 sps:$4 sm:$0xff]   ;;  %v15936_v30 = vld [vmem:[#allocation11 + $0x3e0] ss:$8 sps:$4 sm:$0xff]  }
 0x65a   : > { %6551 = vmatprep.subr.bf16.mxu0 %v15881_v33  ;;  %v15038_v13 = vpop.f32.mrf.mxu0  ;;  %v15074_v28 = vpop.f32.mrf.mxu1  ;;  %v15989_v5 = vld [vmem:[#allocation14 + $0x38] sm:$0xff]  }
 0x65b   : > { %6532 = vmatprep.mubr.bf16.mxu1 %v5315_v42  ;;  %v15944_v42 = vld [vmem:[#allocation11 + $0x3d4] ss:$8 sps:$4 sm:$0xff]   ;;  %v15945_v13 = vld [vmem:[#allocation11 + $0x280] ss:$8 sps:$4 sm:$0xff]  }
 0x65c   : > { %6533 = vmatmul.mubr.bf16.vlgmr.msra.gmra.mxu1 %v5262_v7  ;;  %v15941_v7 = vld [vmem:[#allocation11 + $0x294] ss:$8 sps:$4 sm:$0xff]   ;;  %v15948_v28 = vld [vmem:[#allocation11 + $0x3c0] ss:$8 sps:$4 sm:$0xff]  }
 0x65d   : > { %6552 = vmatpush1.bf16.msra.mxu0 %v15879_v62  ;;  %6587 = vmatpush1.bf16.msra.mxu1 %v15882_v16  ;;  %v15939_v62 = vld [vmem:[#allocation11 + $0x290] ss:$8 sps:$4 sm:$0xff]  }
 0x65e   : > { %6553 = vmatprep.subr.bf16.mxu0 %v15887_v34  ;;  %6588 = vmatprep.subr.bf16.mxu1 %v15890_v23  ;;  %v15942_v16 = vld [vmem:[#allocation11 + $0x3d0] ss:$8 sps:$4 sm:$0xff]   ;;  %v15947_v34 = vld [vmem:[#allocation11 + $0x284] ss:$8 sps:$4 sm:$0xff]  }
 0x65f   : > { %v15950_v23 = vld [vmem:[#allocation11 + $0x3c4] ss:$8 sps:$4 sm:$0xff]   ;;  %v15990_v3 = vld [vmem:[#allocation14 + $0xb8] sm:$0xff]  }
 0x661   : > { %6554 = vmatpush1.bf16.msra.mxu0 %v15885_v44  ;;  %6589 = vmatpush1.bf16.msra.mxu1 %v15888_v38  ;;  %v15953_v44 = vld [vmem:[#allocation11 + $0x3b4] ss:$8 sps:$4 sm:$0xff]  }
 0x662   : > { %6555 = vmatprep.subr.bf16.mxu0 %v15893_v48  ;;  %6590 = vmatprep.subr.bf16.mxu1 %v15896_v50  ;;  %v15956_v38 = vld [vmem:[#allocation11 + $0x474] ss:$8 sps:$4 sm:$0xff]   ;;  %v15951_v48 = vld [vmem:[#allocation11 + $0x3b0] ss:$8 sps:$4 sm:$0xff]  }
 0x663   : > { %v15954_v50 = vld [vmem:[#allocation11 + $0x470] ss:$8 sps:$4 sm:$0xff]  }
 0x664   : > { %v5414_v60 = vpop.f32.mrf.mxu0  ;;  %v19674_v18 = vpop.f32.mrf.mxu1 }
 0x665   : > { %6556 = vmatpush1.bf16.msra.mxu0 %v15891_v8  ;;  %6591 = vmatpush1.bf16.msra.mxu1 %v15894_v54  ;;  %v15959_v8 = vld [vmem:[#allocation11 + $0x3a4] ss:$8 sps:$4 sm:$0xff]  }
 0x666   : > { %6557 = vmatprep.subr.bf16.mxu0 %v15899_v53  ;;  %6592 = vmatprep.subr.bf16.mxu1 %v15902_v1  ;;  %v15061_v63 = vpop.f32.mrf.mxu0  ;;  %v15097_v14 = vpop.f32.mrf.mxu1  ;;  %v15962_v54 = vld [vmem:[#allocation11 + $0x464] ss:$8 sps:$4 sm:$0xff]   ;;  %v15957_v53 = vld [vmem:[#allocation11 + $0x3a0] ss:$8 sps:$4 sm:$0xff]  }
 0x667   : > { %v15960_v1 = vld [vmem:[#allocation11 + $0x460] ss:$8 sps:$4 sm:$0xff]   ;;  %v15971_v63 = vld [vmem:[#allocation11 + $0x384] ss:$8 sps:$4 sm:$0xff]  }
 0x668   : > { %v5417_v22 = vpop.f32.mrf.mxu0  ;;  %v19676_v25 = vpop.f32.mrf.mxu1  ;;  %v15974_v14 = vld [vmem:[#allocation11 + $0x444] ss:$8 sps:$4 sm:$0xff]  }
 0x669   : > { %6558 = vmatpush1.bf16.msra.mxu0 %v15897_v6  ;;  %6593 = vmatpush1.bf16.msra.mxu1 %v15900_v17  ;;  %v5421_v41 = vpack.c.bf16 %v5417_v22, %v5414_v60  ;;  %v5580_v52 = vpack.c.bf16 %v19676_v25, %v19674_v18  ;;  %v15965_v60 = vld [vmem:[#allocation11 + $0x394] ss:$8 sps:$4 sm:$0xff]   ;;  %v21240_v17 = vmov 0   ;;  %v15975_v22 = vld [vmem:[#allocation11 + $0x430] ss:$8 sps:$4 sm:$0xff]  }
 0x66a   : > { %6559 = vmatprep.subr.bf16.mxu0 %v15905_v21  ;;  %6594 = vmatprep.subr.bf16.mxu1 %v15908_v35  ;;  %v15062_v11 = vpop.f32.mrf.mxu0  ;;  %v15098_v56 = vpop.f32.mrf.mxu1  ;;  %v15968_v6 = vld [vmem:[#allocation11 + $0x454] ss:$8 sps:$4 sm:$0xff]   ;;  %v15963_v21 = vld [vmem:[#allocation11 + $0x390] ss:$8 sps:$4 sm:$0xff]  }
 0x66b   : > { %6575 = vmatprep.mubr.bf16.mxu0 %v5421_v41  ;;  %v15966_v35 = vld [vmem:[#allocation11 + $0x450] ss:$8 sps:$4 sm:$0xff]   ;;  %v15983_v41 = vld [vmem:[#allocation11 + $0x414] ss:$8 sps:$4 sm:$0xff]   ;;  %v15984_v11 = vld [vmem:[#allocation11 + $0x400] ss:$8 sps:$4 sm:$0xff]  }
 0x66c   : > { %v15987_v56 = vld [vmem:[#allocation14 + $0x78] sm:$0xff]   ;;  %v15997_v18 = vld [vmem:[#allocation14 + $0x28] sm:$0xff]  }
 0x66d   : > { %6560 = vmatpush2.bf16.msra.mxu0 %v15903_v43  ;;  %6595 = vmatpush1.bf16.msra.mxu1 %v15906_v59  ;;  %v15980_v43 = vld [vmem:[#allocation11 + $0x424] ss:$8 sps:$4 sm:$0xff]   ;;  %v15978_v59 = vld [vmem:[#allocation11 + $0x420] ss:$8 sps:$4 sm:$0xff]  }
 0x66e   : > { %6561 = vmatprep.subr.bf16.mxu0 %v15911_v39  ;;  %6596 = vmatprep.subr.bf16.mxu1 %v15914_v19  ;;  %v15981_v39 = vld [vmem:[#allocation11 + $0x410] ss:$8 sps:$4 sm:$0xff]   ;;  %v15986_v19 = vld [vmem:[#allocation11 + $0x404] ss:$8 sps:$4 sm:$0xff]  }
 0x66f   : > { %v15998_v25 = vld [vmem:[#allocation14 + $0xa8] sm:$0xff]  }
 0x671   : > { %6562 = vmatpush2.bf16.msra.mxu0 %v15909_v51  ;;  %6597 = vmatpush1.bf16.msra.mxu1 %v15912_v37  ;;  %v15988_v51 = vld [vmem:[#allocation14 + $0xf8] sm:$0xff]   ;;  %v15992_v37 = vld [vmem:[#allocation14 + $0xf0] sm:$0xff]  }
 0x672   : > { %6563 = vmatprep.subr.bf16.mxu0 %v15917_v27  ;;  %6598 = vmatprep.subr.bf16.mxu1 %v15920_v61  ;;  %v15993_v27 = vld [vmem:[#allocation14 + $0x30] sm:$0xff]  }
 0x673   : > { %v15994_v61 = vld [vmem:[#allocation14 + $0xb0] sm:$0xff]  }
 0x674   : > { %v5520_v29 = vpop.f32.mrf.mxu0 }
 0x675   : > { %6564 = vmatpush2.bf16.msra.mxu0 %v15915_v2  ;;  %6599 = vmatpush1.bf16.msra.mxu1 %v15918_v58  ;;  %v15995_v2 = vld [vmem:[#allocation14 + $0x68] sm:$0xff]  }
 0x676   : > { %6565 = vmatprep.subr.bf16.mxu0 %v15923_v4  ;;  %6600 = vmatprep.subr.bf16.mxu1 %v15926_v46  ;;  %v15085_v9 = vpop.f32.mrf.mxu0  ;;  %v15996_v58 = vld [vmem:[#allocation14 + $0xe8] sm:$0xff]   ;;  %v16000_v4 = vld [vmem:[#allocation14 + $0xe0] sm:$0xff]  }
 0x677   : > { %v16001_v46 = vld [vmem:[#allocation14 + $0x20] sm:$0xff]   ;;  %v16007_v9 = vld [vmem:[#allocation14 + $0x50] sm:$0xff]  }
 0x678   : > { %v5523_v47 = vpop.f32.mrf.mxu0 }
 0x679   : > { %6566 = vmatpush2.bf16.msra.mxu0 %v15921_v15  ;;  %6601 = vmatpush1.bf16.msra.mxu1 %v15924_v24  ;;  %v5527_v57 = vpack.c.bf16 %v5523_v47, %v5520_v29  ;;  %v16002_v29 = vld [vmem:[#allocation14 + $0xa0] sm:$0xff]   ;;  %v16003_v15 = vld [vmem:[#allocation14 + $0x58] sm:$0xff]   ;;  %v16008_v47 = vld [vmem:[#allocation14 + $0xd0] sm:$0xff]  }
 0x67a   : > { %6567 = vmatprep.subr.bf16.mxu0 %v15929_v55  ;;  %6602 = vmatprep.subr.bf16.mxu1 %v15932_v31  ;;  %v15086_v33 = vpop.f32.mrf.mxu0  ;;  %v16004_v24 = vld [vmem:[#allocation14 + $0xd8] sm:$0xff]  }
 0x67b   : > { %6618 = vmatprep.mubr.bf16.mxu1 %v5527_v57  ;;  %v16005_v55 = vld [vmem:[#allocation14 + $0x18] sm:$0xff]   ;;  %v16011_v57 = vld [vmem:[#allocation14 + $0x48] sm:$0xff]  }
 0x67c   : > { %v16006_v31 = vld [vmem:[#allocation14 + $0x98] sm:$0xff]   ;;  %v16014_v33 = vld [vmem:[#allocation14 + $0x88] sm:$0xff]  }
 0x67d   : > { %6568 = vmatpush2.bf16.msra.mxu0 %v15927_v45  ;;  %6603 = vmatpush2.bf16.msra.mxu1 %v15930_v12  ;;  %v16009_v45 = vld [vmem:[#allocation14 + $0x10] sm:$0xff]  }
 0x67e   : > { %6569 = vmatprep.subr.bf16.mxu0 %v15935_v36  ;;  %6604 = vmatprep.subr.bf16.mxu1 %v15938_v20  ;;  %v16010_v12 = vld [vmem:[#allocation14 + $0x90] sm:$0xff]   ;;  %v16012_v36 = vld [vmem:[#allocation14 + $0xc8] sm:$0xff]  }
 0x67f   : > { %v16013_v20 = vld [vmem:[#allocation14 + $0x8] sm:$0xff]  }
 0x681   : > { %6570 = vmatpush2.bf16.msra.mxu0 %v15933_v32  ;;  %6605 = vmatpush2.bf16.msra.mxu1 %v15936_v30  ;;  %v16015_v32 = vld [vmem:[#allocation14 + $0x40] sm:$0xff]  }
 0x682   : > { %6571 = vmatprep.subr.bf16.mxu0 %v15941_v7  ;;  %6606 = vmatprep.subr.bf16.mxu1 %v15944_v42  ;;  %v16016_v30 = vld [vmem:[#allocation14 + $0xc0] sm:$0xff]  }
 0x683   : > { %v16017_v7 = vld [vmem:[#allocation14] sm:$0xff]  }
 0x684   : > { %v16018_v42 = vld [vmem:[#allocation14 + $0x80] sm:$0xff]  }
 0x685   : > { %6572 = vmatpush2.bf16.msra.mxu0 %v15939_v62  ;;  %6607 = vmatpush2.bf16.msra.mxu1 %v15942_v16  ;;  %v16019_v62 = vld [vmem:[#allocation14 + $0x178] sm:$0xff]  }
 0x686   : > { %6573 = vmatprep.subr.bf16.mxu0 %v15947_v34  ;;  %6608 = vmatprep.subr.bf16.mxu1 %v15950_v23  ;;  %v16020_v16 = vld [vmem:[#allocation14 + $0x1f8] sm:$0xff]  }
 0x689   : > { %6574 = vmatpush2.bf16.msra.mxu0 %v15945_v13  ;;  %6609 = vmatpush2.bf16.msra.mxu1 %v15948_v28  ;;  %v5725_v13 = vld [vmem:[#allocation13] sm:$0x3] }
 0x68a   : > { %6610 = vmatprep.subr.bf16.mxu1 %v15953_v44  ;;  %6629 = vmatprep.subr.bf16.mxu0 %v15956_v38  ;;  %v21241_v28 = vld [vmem:[#allocation57_spill] sm:$0xff] }
 0x68b   : > { %v5734_v44 = vrot.slane %v5725_v13, %v21241_v28 }
 0x68c   : > { %6576 = vmatmul.mubr.bf16.vlgmr.msra.gmra.mxu0 %v5368_v26  ;;  %v15977_v26 = vld [vmem:[#allocation11 + $0x434] ss:$8 sps:$4 sm:$0xff]  }
 0x68d   : > { %6611 = vmatpush2.bf16.msra.mxu1 %v15951_v48  ;;  %6630 = vmatpush1.bf16.msra.mxu0 %v15954_v50 }
 0x68e   : > { %6612 = vmatprep.subr.bf16.mxu1 %v15959_v8  ;;  %6631 = vmatprep.subr.bf16.mxu0 %v15962_v54 }
 0x68f   : > { %6661 = vmatprep.mubr.bf16.mxu0 %v21240_v17 }
 0x691   : > { %6613 = vmatpush2.bf16.msra.mxu1 %v15957_v53  ;;  %6632 = vmatpush1.bf16.msra.mxu0 %v15960_v1 }
 0x692   : > { %6614 = vmatprep.subr.bf16.mxu1 %v15965_v60  ;;  %6633 = vmatprep.subr.bf16.mxu0 %v15968_v6 }
 0x695   : > { %6615 = vmatpush2.bf16.msra.mxu1 %v15963_v21  ;;  %6634 = vmatpush1.bf16.msra.mxu0 %v15966_v35 }
 0x696   : > { %6616 = vmatprep.subr.bf16.mxu1 %v15971_v63  ;;  %6635 = vmatprep.subr.bf16.mxu0 %v15974_v14 }
 0x699   : > { %6617 = vmatpush2.bf16.msra.mxu1 %v15969_v40  ;;  %6636 = vmatpush1.bf16.msra.mxu0 %v15972_v10 }
 0x69a   : > { %6637 = vmatprep.subr.bf16.mxu0 %v15977_v26  ;;  %14782 = vmatprep.subr.bf16.mxu1 %v15987_v56  ;;  %v21242_v56 = vld [vmem:[#allocation82_spill] sm:$0xff] }
 0x69c   : > { %6619 = vmatmul.mubr.bf16.vlgmr.msra.gmra.mxu1 %v5474_v0  ;;  %v15991_v0 = vld [vmem:[#allocation14 + $0x70] sm:$0xff]  }
 0x69d   : > { %6638 = vmatpush1.bf16.msra.mxu0 %v15975_v22  ;;  %14783 = vmatpush3.bf16.msra.mxu1 %v15989_v5  ;;  %v6705_v22 = vpop.permute.xlu0 %6704 }
 0x69e   : > { %6639 = vmatprep.subr.bf16.mxu0 %v15980_v43  ;;  %14784 = vmatprep.subr.bf16.mxu1 %v15991_v0  ;;  %v6710_v43 = vpop.permute.xlu1 %6709 }
 0x6a1   : > { %6640 = vmatpush1.bf16.msra.mxu0 %v15978_v59  ;;  %14785 = vmatpush3.bf16.msra.mxu1 %v15993_v27 }
 0x6a2   : > { %6641 = vmatprep.subr.bf16.mxu0 %v15983_v41  ;;  %14786 = vmatprep.subr.bf16.mxu1 %v15995_v2  ;;  %v6684_v41 = vpop.permute.xlu0 %6683 }
 0x6a5   : > { %6642 = vmatpush1.bf16.msra.mxu0 %v15981_v39  ;;  %14787 = vmatpush3.bf16.msra.mxu1 %v15997_v18  ;;  %v6689_v39 = vpop.permute.xlu1 %6688 }
 0x6a6   : > { %6643 = vmatprep.subr.bf16.mxu0 %v15986_v19  ;;  %v6746_v5 = vpop.permute.xlu0 %6745 }
 0x6a9   : > { %6644 = vmatpush1.bf16.msra.mxu0 %v15984_v11 }
 0x6aa   : > { %14804 = vmatprep.subr.bf16.mxu0 %v15988_v51  ;;  %v5730_v51 = vrot.slane %v5725_v13, %v21242_v56  ;;  %v6726_v27 = vpop.permute.xlu0 %6725 }
 0x6ac   : > { %6662 = vmatmul.mubr.bf16.vlgmr.msra.gmra.mxu0 %v5580_v52  ;;  %v15999_v52 = vld [vmem:[#allocation14 + $0x60] sm:$0xff]  }
 0x6ad   : > { %14805 = vmatpush3.bf16.msra.mxu0 %v15990_v3  ;;  %14788 = vmatprep.subr.bf16.mxu1 %v15999_v52  ;;  %v6751_v3 = vpop.permute.xlu1 %6750 }
 0x6ae   : > { %14806 = vmatprep.subr.bf16.mxu0 %v15992_v37  ;;  %14789 = vmatpush3.bf16.msra.mxu1 %v16001_v46 }
 0x6af   : > { %14790 = vmatprep.subr.bf16.mxu1 %v16003_v15 }
 0x6b1   : > { %14807 = vmatpush3.bf16.msra.mxu0 %v15994_v61 }
 0x6b2   : > { %14808 = vmatprep.subr.bf16.mxu0 %v15996_v58  ;;  %14791 = vmatpush3.bf16.msra.mxu1 %v16005_v55  ;;  %v6731_v58 = vpop.permute.xlu1 %6730 }
 0x6b3   : > { %14792 = vmatprep.subr.bf16.mxu1 %v16007_v9 }
 0x6b5   : > { %14809 = vmatpush3.bf16.msra.mxu0 %v15998_v25 }
 0x6b6   : > { %14810 = vmatprep.subr.bf16.mxu0 %v16000_v4  ;;  %14793 = vmatpush3.bf16.msra.mxu1 %v16009_v45  ;;  %v6787_v9 = vpop.permute.xlu1 %6786 }
 0x6b7   : > { %14794 = vmatprep.subr.bf16.mxu1 %v16011_v57 }
 0x6b9   : > { %14811 = vmatpush3.bf16.msra.mxu0 %v16002_v29 }
 0x6ba   : > { %14812 = vmatprep.subr.bf16.mxu0 %v16004_v24  ;;  %14795 = vmatpush3.bf16.msra.mxu1 %v16013_v20  ;;  %v6782_v24 = vpop.permute.xlu0 %6781 }
 0x6bb   : > { %14796 = vmatprep.subr.bf16.mxu1 %v16015_v32 }
 0x6bd   : > { %14813 = vmatpush3.bf16.msra.mxu0 %v16006_v31 }
 0x6be   : > { %14814 = vmatprep.subr.bf16.mxu0 %v16008_v47  ;;  %14797 = vmatpush3.bf16.msra.mxu1 %v16017_v7 }
 0x6bf   : > { %14826 = vmatprep.subr.bf16.mxu1 %v16019_v62  ;;  %v19709_v62 = vpop.permute.xlu0 %6761 }
 0x6c1   : > { %14815 = vmatpush3.bf16.msra.mxu0 %v16010_v12 }
 0x6c2   : > { %14816 = vmatprep.subr.bf16.mxu0 %v16012_v36  ;;  %v21243_v36 = vld [vmem:[#allocation56_spill] sm:$0xff] }
 0x6c3   : > { %vm6699_vm4 = vcmp.lt.s32.totalorder %v21243_v36, 4  ;;  %vm6678_vm5 = vcmp.lt.s32.totalorder %v21243_v36, 5  ;;  %vm6720_vm6 = vcmp.lt.s32.totalorder %v21243_v36, 3 }
 0x6c5   : > { %14817 = vmatpush3.bf16.msra.mxu0 %v16014_v33 }
 0x6c6   : > { %14818 = vmatprep.subr.bf16.mxu0 %v16016_v30 }
 0x6c9   : > { %14819 = vmatpush3.bf16.msra.mxu0 %v16018_v42 }
 0x6ca   : > { %14848 = vmatprep.subr.bf16.mxu0 %v16020_v16  ;;  %v19711_v16 = vpop.permute.xlu1 %6766 }
 0x70c   : > { %v6491_v34 = vpop.f32.mrf.mxu0 }
 0x70d   : > { %v6492_v0 = vadd.f32 %v6491_v34, %v5730_v51 }
 0x70e   : > { %v6493_v23 = vpop.f32.mrf.mxu0 }
 0x70f   : > { %v6494_v50 = vadd.f32 %v6493_v23, %v5734_v44 }
 0x710   : > { %v6495_v38 = vpop.f32.mrf.mxu0 }
 0x711   : > { %v6496_v61 = vadd.f32 %v6495_v38, %v5730_v51 }
 0x712   : > { %v6497_v8 = vpop.f32.mrf.mxu0 }
 0x713   : > { %v6498_v60 = vadd.f32 %v6497_v8, %v5734_v44 }
 0x71c   : > { %v6534_v48 = vpop.f32.mrf.mxu1 }
 0x71d   : > { %v6535_v37 = vadd.f32 %v6534_v48, %v6492_v0 }
 0x71e   : > { %v6536_v54 = vpop.f32.mrf.mxu1 }
 0x71f   : > { %v6537_v53 = vadd.f32 %v6536_v54, %v6494_v50 }
 0x720   : > { %v6538_v1 = vpop.f32.mrf.mxu1 }
 0x721   : > { %v6539_v18 = vadd.f32 %v6538_v1, %v6496_v61 }
 0x722   : > { %v6540_v6 = vpop.f32.mrf.mxu1 }
 0x723   : > { %v6541_v21 = vadd.f32 %v6540_v6, %v6498_v60 }
 0x74c   : > { %v6577_v35 = vpop.f32.mrf.mxu0 }
 0x74d   : > { %v6578_v2 = vadd.f32 %v6577_v35, %v6535_v37  ;;  %v16022_v37 = vld [vmem:[#allocation14 + $0x1b8] sm:$0xff]  }
 0x74e   : > { %v6579_v63 = vpop.f32.mrf.mxu0 }
 0x74f   : > { %v6580_v14 = vadd.f32 %v6579_v63, %v6537_v53 }
 0x750   : > { %v6581_v40 = vpop.f32.mrf.mxu0 }
 0x751   : > { %v6582_v46 = vadd.f32 %v6581_v40, %v6539_v18  ;;  %v16023_v18 = vld [vmem:[#allocation14 + $0x170] sm:$0xff]  }
 0x752   : > { %v6583_v10 = vpop.f32.mrf.mxu0 }
 0x753   : > { %v19691_v26 = vadd.f32 %v6583_v10, %v6541_v21 }
 0x75c   : > { %v6620_v59 = vpop.f32.mrf.mxu1 }
 0x75d   : > { %v6621_v25 = vadd.f32 %v6620_v59, %v6578_v2 }
 0x75e   : > { %v6622_v19 = vpop.f32.mrf.mxu1 }
 0x75f   : > { %v6623_v11 = vadd.f32 %v6622_v19, %v6580_v14  ;;  %v16021_v19 = vld [vmem:[#allocation14 + $0x138] sm:$0xff]  }
 0x760   : > { %v6624_v52 = vpop.f32.mrf.mxu1 }
 0x761   : > { %v6625_v55 = vadd.f32 %v6624_v52, %v6582_v46  ;;  %v16026_v46 = vld [vmem:[#allocation14 + $0x1b0] sm:$0xff]  }
 0x76c   : > { %v6663_v4 = vpop.f32.mrf.mxu0 }
 0x76d   : > { %v6664_v29 = vadd.f32 %v6663_v4, %v6621_v25  ;;  %v16024_v25 = vld [vmem:[#allocation14 + $0x1f0] sm:$0xff]  }
 0x76e   : > { %v6665_v15 = vpop.f32.mrf.mxu0  ;;  %v16025_v4 = vld [vmem:[#allocation14 + $0x130] sm:$0xff]  }
 0x76f   : > { %v19694_v31 = vadd.f32 %v6665_v15, %v6623_v11  ;;  %v19696_v47 = vmax.f32 %v6664_v29, 0.0  ;;  %v16027_v29 = vld [vmem:[#allocation14 + $0x168] sm:$0xff]  }
 0x770   : > { %v6667_v45 = vpop.f32.mrf.mxu0  ;;  %v16028_v15 = vld [vmem:[#allocation14 + $0x1e8] sm:$0xff]  }
 0x771   : > { %v6668_v12 = vadd.f32 %v6667_v45, %v6625_v55  ;;  %v6697_v20 = vrot.slane %v19696_v47, 4  ;;  %v6739_v33 = vrot.slane %v19696_v47, 7  ;;  %v6676_v34 = vrot.slane %v19696_v47, 3  ;;  %v16030_v55 = vld [vmem:[#allocation14 + $0x1a8] sm:$0xff]   ;;  %v16032_v45 = vld [vmem:[#allocation14 + $0x1e0] sm:$0xff]  }
 0x772   : > { %v6718_v23 = vrot.slane %v19696_v47, 5  ;;  %v6775_v13 = vrot.slane %v19696_v47, 1 }
 0x773   : > { %v19698_v57 = vmax.f32 %v6668_v12, 0.0  ;;  %v16033_v12 = vld [vmem:[#allocation14 + $0x120] sm:$0xff]  }
 0x775   : > { %v6677_v32 = vrot.slane %v19698_v57, 3  ;;  %v6719_v30 = vrot.slane %v19698_v57, 5  ;;  %v6698_v7 = vrot.slane %v19698_v57, 4  ;;  %v6740_v42 = vrot.slane %v19698_v57, 7 }
 0x776   : > { %v6776_v44 = vrot.slane %v19698_v57, 1 }
 0x777   : > { %v6700_v38 = vsel %vm6699_vm4, %v6697_v20, %v6698_v7  ;;  %v6701_v48 = vsel %vm6699_vm4, %v6698_v7, %v6697_v20  ;;  %v6741_v50 = vsel %vm3610_vm1, %v6739_v33, %v6740_v42  ;;  %v6742_v8 = vsel %vm3610_vm1, %v6740_v42, %v6739_v33  ;;  %v16034_v20 = vld [vmem:[#allocation14 + $0x1a0] sm:$0xff]   ;;  %v16035_v33 = vld [vmem:[#allocation14 + $0x158] sm:$0xff]   ;;  %v16039_v42 = vld [vmem:[#allocation14 + $0x150] sm:$0xff]  }
 0x778   : > { %v6712_v54 = vmul.f32 %v6705_v22, %v6701_v48  ;;  %v6713_v53 = vmul.f32 %v6710_v43, %v6700_v38  ;;  %v6753_v1 = vmul.f32 %v6746_v5, %v6742_v8  ;;  %v6754_v60 = vmul.f32 %v6751_v3, %v6741_v50  ;;  %v6814_v5 = vpop.permute.xlu0 %6813  ;;  %v6819_v3 = vpop.permute.xlu1 %6818  ;;  %v16038_v7 = vld [vmem:[#allocation14 + $0x198] sm:$0xff]   ;;  %v16046_v50 = vld [vmem:[#allocation14 + $0x188] sm:$0xff]   ;;  %v16047_v8 = vld [vmem:[#allocation14 + $0x140] sm:$0xff]  }
 0x779   : > { %v19727_v6 = vsel %vm6678_vm5, %v6676_v34, %v6677_v32  ;;  %v19731_v21 = vsel %vm6678_vm5, %v6677_v32, %v6676_v34  ;;  %v19735_v35 = vsel %vm6720_vm6, %v6718_v23, %v6719_v30  ;;  %v19739_v63 = vsel %vm6720_vm6, %v6719_v30, %v6718_v23  ;;  %v16036_v32 = vld [vmem:[#allocation14 + $0x1d8] sm:$0xff]   ;;  %v16040_v34 = vld [vmem:[#allocation14 + $0x1d0] sm:$0xff]  }
 0x77a   : > { %v6714_v14 = vpack.c.bf16 %v6713_v53, %v6712_v54  ;;  %v6755_v40 = vpack.c.bf16 %v6754_v60, %v6753_v1  ;;  %v6691_v10 = vmul.f32 %v6684_v41, %v19731_v21  ;;  %v6692_v22 = vmul.f32 %v6689_v39, %v19727_v6  ;;  %v16037_v30 = vld [vmem:[#allocation14 + $0x118] sm:$0xff]   ;;  %v16041_v23 = vld [vmem:[#allocation14 + $0x110] sm:$0xff]   ;;  %v16048_v54 = vld [vmem:[#allocation14 + $0x1c0] sm:$0xff]  }
 0x77b   : > { %v6733_v43 = vmul.f32 %v6726_v27, %v19739_v63  ;;  %v6734_v59 = vmul.f32 %v6731_v58, %v19735_v35  ;;  %v6777_v11 = vsel %vm3749_vm0, %v6775_v13, %v6776_v44  ;;  %v6778_v51 = vsel %vm3749_vm0, %v6776_v44, %v6775_v13  ;;  %v16042_v13 = vld [vmem:[#allocation14 + $0x190] sm:$0xff]   ;;  %v16043_v44 = vld [vmem:[#allocation14 + $0x148] sm:$0xff]   ;;  %v16049_v53 = vld [vmem:[#allocation14 + $0x100] sm:$0xff]  }
 0x77c   : > { %7455 = vmatprep.mubr.bf16.mxu1 %v6714_v14  ;;  %7496 = vmatprep.mubr.bf16.mxu0 %v6755_v40  ;;  %v6693_v0 = vpack.c.bf16 %v6692_v22, %v6691_v10  ;;  %v6789_v41 = vmul.f32 %v6782_v24, %v6777_v11  ;;  %v6790_v61 = vmul.f32 %v6787_v9, %v6778_v51  ;;  %v16029_v24 = vld [vmem:[#allocation14 + $0x128] sm:$0xff]   ;;  %v16031_v9 = vld [vmem:[#allocation14 + $0x160] sm:$0xff]   ;;  %v6798_v1 = vpop.permute.xlu0 %6797  ;;  %v6803_v60 = vpop.permute.xlu1 %6802 }
 0x77d   : > { %v6735_v39 = vpack.c.bf16 %v6734_v59, %v6733_v43  ;;  %v6821_v2 = vmul.f32 %v6814_v5, %v6700_v38  ;;  %v6822_v27 = vmul.f32 %v6819_v3, %v6701_v48  ;;  %v16044_v38 = vld [vmem:[#allocation14 + $0x1c8] sm:$0xff]   ;;  %v16050_v14 = vld [vmem:[#allocation14 + $0x180] sm:$0xff]   ;;  %v6770_v40 = vmul.f32 %v19711_v16, %v19698_v57  ;;  %v16051_v59 = vld [vmem:[#allocation14 + $0x238] sm:$0xff]  }
 0x77e   : > { %7456 = vmatmul.mubr.bf16.vlgmr.msra.gmra.mxu1 %v6693_v0  ;;  %v6791_v58 = vpack.c.bf16 %v6790_v61, %v6789_v41  ;;  %v16045_v48 = vld [vmem:[#allocation14 + $0x108] sm:$0xff]   ;;  %v6805_v10 = vmul.f32 %v6798_v1, %v19727_v6  ;;  %v6806_v22 = vmul.f32 %v6803_v60, %v19731_v21  ;;  %v6769_v43 = vmul.f32 %v19709_v62, %v19696_v47  ;;  %v16052_v57 = vld [vmem:[#allocation14 + $0x230] sm:$0xff]   ;;  %v16054_v62 = vld [vmem:[#allocation14 + $0x220] sm:$0xff]   ;;  %v6626_v61 = vpop.f32.mrf.mxu1 }
 0x77f   : > { %7497 = vmatmul.mubr.bf16.vlgmr.msra.gmra.mxu0 %v6735_v39  ;;  %14827 = vmatpush3.bf16.msra.mxu1 %v16021_v19  ;;  %v6823_v52 = vpack.c.bf16 %v6822_v27, %v6821_v2  ;;  %v16053_v47 = vld [vmem:[#allocation14 + $0x228] sm:$0xff]   ;;  %v16055_v16 = vld [vmem:[#allocation14 + $0x218] sm:$0xff]   ;;  %v16056_v6 = vld [vmem:[#allocation14 + $0x210] sm:$0xff]   ;;  %v6669_v2 = vpop.f32.mrf.mxu0 }
 0x780   : > { %14849 = vmatpush3.bf16.msra.mxu0 %v16022_v37  ;;  %7537 = vmatprep.mubr.bf16.mxu1 %v6791_v58  ;;  %v6771_v19 = vpack.c.bf16 %v6770_v40, %v6769_v43  ;;  %v6807_v11 = vpack.c.bf16 %v6806_v22, %v6805_v10  ;;  %v16057_v21 = vld [vmem:[#allocation14 + $0x208] sm:$0xff]   ;;  %v6830_v51 = vpop.permute.xlu0 %6829  ;;  %v6835_v5 = vpop.permute.xlu1 %6834  ;;  %v16058_v3 = vld [vmem:[#allocation14 + $0x200] sm:$0xff]  }
 0x781   : > { %7578 = vmatprep.mubr.bf16.mxu0 %v6823_v52  ;;  %14828 = vmatprep.subr.bf16.mxu1 %v16023_v18  ;;  %v6837_v0 = vmul.f32 %v6830_v51, %v19735_v35  ;;  %v6838_v37 = vmul.f32 %v6835_v5, %v19739_v63  ;;  %v13563_v51 = vld [vmem:[%s20948_s15 + $0x14] sm:$0xf] }
 0x782   : > { %14850 = vmatprep.subr.bf16.mxu0 %v16024_v25  ;;  %v16061_v5 = vld [vmem:[%s20949_s16 + $0xe4] ss:$16 sps:$4 sm:$0xff]  }
 0x783   : > { %14829 = vmatpush3.bf16.msra.mxu1 %v16025_v4  ;;  %v6839_v41 = vpack.c.bf16 %v6838_v37, %v6837_v0  ;;  %v13567_v0 = vld [vmem:[%s20948_s15 + $0x1c] sm:$0xf]  ;;  %v16059_v37 = vld [vmem:[%s20949_s16 + $0xe0] ss:$16 sps:$4 sm:$0xff]  }
 0x784   : > { %14851 = vmatpush3.bf16.msra.mxu0 %v16026_v46  ;;  %14830 = vmatprep.subr.bf16.mxu1 %v16027_v29 }
 0x785   : > { %14852 = vmatprep.subr.bf16.mxu0 %v16028_v15  ;;  %v13481_v15 = vld [vmem:[#allocation16] ss:$0 sm:$0xff] }
 0x787   : > { %14831 = vmatpush3.bf16.msra.mxu1 %v16029_v24 }
 0x788   : > { %14853 = vmatpush3.bf16.msra.mxu0 %v16030_v55  ;;  %14832 = vmatprep.subr.bf16.mxu1 %v16031_v9 }
 0x789   : > { %14854 = vmatprep.subr.bf16.mxu0 %v16032_v45 }
 0x78b   : > { %14833 = vmatpush3.bf16.msra.mxu1 %v16033_v12 }
 0x78c   : > { %14855 = vmatpush3.bf16.msra.mxu0 %v16034_v20  ;;  %14834 = vmatprep.subr.bf16.mxu1 %v16035_v33 }
 0x78d   : > { %14856 = vmatprep.subr.bf16.mxu0 %v16036_v32 }
 0x78f   : > { %14835 = vmatpush3.bf16.msra.mxu1 %v16037_v30 }
 0x790   : > { %14857 = vmatpush3.bf16.msra.mxu0 %v16038_v7  ;;  %14836 = vmatprep.subr.bf16.mxu1 %v16039_v42 }
 0x791   : > { %14858 = vmatprep.subr.bf16.mxu0 %v16040_v34 }
 0x793   : > { %14837 = vmatpush3.bf16.msra.mxu1 %v16041_v23 }
 0x794   : > { %14859 = vmatpush3.bf16.msra.mxu0 %v16042_v13  ;;  %14838 = vmatprep.subr.bf16.mxu1 %v16043_v44 }
 0x795   : > { %14860 = vmatprep.subr.bf16.mxu0 %v16044_v38 }
 0x797   : > { %14839 = vmatpush3.bf16.msra.mxu1 %v16045_v48 }
 0x798   : > { %14861 = vmatpush3.bf16.msra.mxu0 %v16046_v50  ;;  %14840 = vmatprep.subr.bf16.mxu1 %v16047_v8 }
 0x799   : > { %14862 = vmatprep.subr.bf16.mxu0 %v16048_v54 }
 0x79b   : > { %14841 = vmatpush3.bf16.msra.mxu1 %v16049_v53 }
 0x79c   : > { %14863 = vmatpush3.bf16.msra.mxu0 %v16050_v14  ;;  %15099 = vmatprep.subr.bf16.mxu1 %v21239_v49  ;;  %v6627_v14 = vadd.f32 %v6626_v61, %v19691_v26  ;;  %v13555_v26 = vld [vmem:[%s20948_s15 + $0x4] sm:$0xf] }
 0x79d   : > { %15119 = vmatprep.subr.bf16.mxu0 %v21239_v49  ;;  %v16064_v61 = vld [vmem:[%s20949_s16 + $0xc4] ss:$16 sps:$4 sm:$0xff]  }
 0x79e   : > { %7538 = vmatmul.mubr.bf16.vlgmr.msra.gmra.mxu1 %v6771_v19  ;;  %v6670_v22 = vadd.f32 %v6669_v2, %v6627_v14  ;;  %v16067_v2 = vld [vmem:[%s20949_s16 + $0xa4] ss:$16 sps:$4 sm:$0xff]  }
 0x79f   : > { %7579 = vmatmul.mubr.bf16.vlgmr.msra.gmra.mxu0 %v6807_v11  ;;  %15100 = vmatpush3.bf16.msra.mxu1 %v16051_v59  ;;  %v16124_v14 = vld [vmem:[%s20949_s16 + $0x3c4] ss:$16 sps:$4 sm:$0xff]  }
 0x7a0   : > { %15101 = vmatprep.subr.bf16.mxu1 %v21239_v49  ;;  %15115 = vmatprep.mubr.msk.bf16.mxu1 %vm17359_vm2, %v21239_v49 }
 0x7a1   : > { %15121 = vmatprep.mubr.msk.bf16.mxu0 %vm17359_vm2, %v21239_v49 }
 0x7a3   : > { %15102 = vmatpush3.bf16.msra.mxu1 %v16052_v57 }
 0x7a4   : > { %15103 = vmatprep.subr.bf16.mxu1 %v21239_v49 }
 0x7a7   : > { %15104 = vmatpush3.bf16.msra.mxu1 %v16053_v47 }
 0x7a8   : > { %15105 = vmatprep.subr.bf16.mxu1 %v21239_v49 }
 0x7ab   : > { %15106 = vmatpush3.bf16.msra.mxu1 %v16054_v62 }
 0x7ac   : > { %15107 = vmatprep.subr.bf16.mxu1 %v21239_v49 }
 0x7af   : > { %15108 = vmatpush3.bf16.msra.mxu1 %v16055_v16  ;;  %v7633_v16 = vld [vmem:[%s20948_s15] sm:$0xf] }
 0x7b0   : > { %15109 = vmatprep.subr.bf16.mxu1 %v21239_v49 }
 0x7b3   : > { %15110 = vmatpush3.bf16.msra.mxu1 %v16056_v6  ;;  %v13559_v6 = vld [vmem:[%s20948_s15 + $0xc] sm:$0xf] }
 0x7b4   : > { %15111 = vmatprep.subr.bf16.mxu1 %v21239_v49 }
 0x7b7   : > { %15112 = vmatpush3.bf16.msra.mxu1 %v16057_v21  ;;  %v13561_v21 = vld [vmem:[%s20948_s15 + $0x10] sm:$0xf] }
 0x7b8   : > { %15113 = vmatprep.subr.bf16.mxu1 %v21239_v49 }
 0x7bb   : > { %15114 = vmatpush3.bf16.msra.mxu1 %v16058_v3  ;;  %v13565_v3 = vld [vmem:[%s20948_s15 + $0x18] sm:$0xf] }
 0x7bc   : > { %15125 = vmatprep.subr.bf16.mxu1 %v21239_v49 }
 0x7be   : > { %15116 = vmatmul.mubr.bf16.vlgmr.msra.gmra.mxu1 %v6839_v41  ;;  %v16070_v41 = vld [vmem:[%s20949_s16 + $0x2e4] ss:$16 sps:$4 sm:$0xff]  }
 0x7bf   : > { %15127 = vmatprep.mubr.msk.bf16.mxu1 %vm17359_vm2, %v21239_v49 }
 0x83e   : > { %v14798_v39 = vpop.f32.mrf.mxu1 }
 0x83f   : > { %v14820_v18 = vpop.f32.mrf.mxu0 }
 0x840   : > { %v14799_v27 = vpop.f32.mrf.mxu1 }
 0x841   : > { %v14821_v25 = vpop.f32.mrf.mxu0  ;;  %v14800_v29 = vadd.f32 %v14799_v27, %v14798_v39  ;;  %v16062_v39 = vld [vmem:[%s20949_s16 + $0xc0] ss:$16 sps:$4 sm:$0xff]  }
 0x842   : > { %v14801_v58 = vpop.f32.mrf.mxu1  ;;  %v14822_v20 = vadd.f32 %v14821_v25, %v14820_v18  ;;  %v13569_v27 = vld [vmem:[%s20948_s15 + $0x20] sm:$0xf]  ;;  %v16073_v25 = vld [vmem:[%s20949_s16 + $0x84] ss:$16 sps:$4 sm:$0xff]  }
 0x843   : > { %v14823_v4 = vpop.f32.mrf.mxu0  ;;  %v7458_v9 = vadd.f32 %v14800_v29, %v13481_v15  ;;  %v16068_v18 = vld [vmem:[%s20949_s16 + $0x2e0] ss:$16 sps:$4 sm:$0xff]  }
 0x844   : > { %v14802_v52 = vpop.f32.mrf.mxu1  ;;  %v16077_v29 = vld [vmem:[%s20949_s16 + $0x60] ss:$16 sps:$4 sm:$0xff]  }
 0x845   : > { %v14824_v46 = vpop.f32.mrf.mxu0  ;;  %v14803_v45 = vadd.f32 %v14802_v52, %v14801_v58  ;;  %v7499_v30 = vadd.f32 %v14822_v20, %v7458_v9  ;;  %v16076_v58 = vld [vmem:[%s20949_s16 + $0x2c4] ss:$16 sps:$4 sm:$0xff]   ;;  %v16074_v52 = vld [vmem:[%s20949_s16 + $0x2c0] ss:$16 sps:$4 sm:$0xff]  }
 0x846   : > { %v14825_v34 = vadd.f32 %v14824_v46, %v14823_v4  ;;  %v16071_v4 = vld [vmem:[%s20949_s16 + $0x80] ss:$16 sps:$4 sm:$0xff]   ;;  %v16079_v46 = vld [vmem:[%s20949_s16 + $0x64] ss:$16 sps:$4 sm:$0xff]  }
 0x847   : > { %v7461_v7 = vadd.f32 %v14803_v45, %v13481_v15  ;;  %v16088_v15 = vld [vmem:[%s20949_s16 + $0x284] ss:$16 sps:$4 sm:$0xff]   ;;  %v16083_v9 = vld [vmem:[%s20949_s16 + $0x40] ss:$16 sps:$4 sm:$0xff]  }
 0x848   : > { %v16094_v45 = vld [vmem:[%s20949_s16 + $0x264] ss:$16 sps:$4 sm:$0xff]   ;;  %v16092_v20 = vld [vmem:[%s20949_s16 + $0x260] ss:$16 sps:$4 sm:$0xff]  }
 0x849   : > { %v7502_v44 = vadd.f32 %v14825_v34, %v7461_v7  ;;  %v16098_v7 = vld [vmem:[%s20949_s16 + $0x240] ss:$16 sps:$4 sm:$0xff]   ;;  %v16106_v34 = vld [vmem:[%s20949_s16 + $0x224] ss:$16 sps:$4 sm:$0xff]  }
 0x85e   : > { %v14842_v35 = vpop.f32.mrf.mxu1 }
 0x85f   : > { %v14864_v24 = vpop.f32.mrf.mxu0 }
 0x860   : > { %v14843_v63 = vpop.f32.mrf.mxu1 }
 0x861   : > { %v14865_v12 = vpop.f32.mrf.mxu0  ;;  %v14844_v33 = vadd.f32 %v14843_v63, %v14842_v35  ;;  %v16082_v35 = vld [vmem:[%s20949_s16 + $0x2a4] ss:$16 sps:$4 sm:$0xff]   ;;  %v16080_v63 = vld [vmem:[%s20949_s16 + $0x2a0] ss:$16 sps:$4 sm:$0xff]  }
 0x862   : > { %v14845_v55 = vpop.f32.mrf.mxu1  ;;  %v14866_v38 = vadd.f32 %v14865_v12, %v14864_v24  ;;  %v16085_v24 = vld [vmem:[%s20949_s16 + $0x44] ss:$16 sps:$4 sm:$0xff]  }
 0x863   : > { %v14867_v42 = vpop.f32.mrf.mxu0  ;;  %v7540_v23 = vadd.f32 %v14844_v33, %v7499_v30  ;;  %v16091_v12 = vld [vmem:[%s20949_s16 + $0x24] ss:$16 sps:$4 sm:$0xff]   ;;  %v16089_v33 = vld [vmem:[%s20949_s16 + $0x20] ss:$16 sps:$4 sm:$0xff]  }
 0x864   : > { %v14846_v32 = vpop.f32.mrf.mxu1  ;;  %v16097_v30 = vld [vmem:[%s20949_s16 + $0x4] ss:$16 sps:$4 sm:$0xff]  }
 0x865   : > { %v14847_v13 = vadd.f32 %v14846_v32, %v14845_v55  ;;  %v14868_v48 = vpop.f32.mrf.mxu0  ;;  %v7581_v8 = vadd.f32 %v14866_v38, %v7540_v23  ;;  %v16086_v55 = vld [vmem:[%s20949_s16 + $0x280] ss:$16 sps:$4 sm:$0xff]   ;;  %v16100_v32 = vld [vmem:[%s20949_s16 + $0x244] ss:$16 sps:$4 sm:$0xff]  }
 0x866   : > { %v14869_v53 = vadd.f32 %v14868_v48, %v14867_v42  ;;  %v16095_v42 = vld [vmem:[%s20949_s16] ss:$16 sps:$4 sm:$0xff]   ;;  %v16103_v23 = vld [vmem:[%s20949_s16 + $0x1e4] ss:$16 sps:$4 sm:$0xff]  }
 0x867   : > { %v7543_v50 = vadd.f32 %v14847_v13, %v7502_v44  ;;  %v16104_v13 = vld [vmem:[%s20949_s16 + $0x220] ss:$16 sps:$4 sm:$0xff]   ;;  %v16112_v38 = vld [vmem:[%s20949_s16 + $0x204] ss:$16 sps:$4 sm:$0xff]  }
 0x868   : > { %v16101_v44 = vld [vmem:[%s20949_s16 + $0x1e0] ss:$16 sps:$4 sm:$0xff]   ;;  %v16109_v48 = vld [vmem:[%s20949_s16 + $0x1c4] ss:$16 sps:$4 sm:$0xff]  }
 0x869   : > { %v7584_v40 = vadd.f32 %v14869_v53, %v7543_v50  ;;  %v16110_v50 = vld [vmem:[%s20949_s16 + $0x200] ss:$16 sps:$4 sm:$0xff]   ;;  %v16115_v53 = vld [vmem:[%s20949_s16 + $0x1a4] ss:$16 sps:$4 sm:$0xff]  }
 0x87e   : > { %v7621_v54 = vpop.f32.mrf.mxu1 }
 0x87f   : > { %v7622_v1 = vadd.f32 %v7621_v54, %v7581_v8  ;;  %v16107_v8 = vld [vmem:[%s20949_s16 + $0x1c0] ss:$16 sps:$4 sm:$0xff]   ;;  %v16118_v54 = vld [vmem:[%s20949_s16 + $0x3e4] ss:$16 sps:$4 sm:$0xff]  }
 0x880   : > { %v15117_v60 = vpop.f32.mrf.mxu1 }
 0x881   : > { %v7628_v43 = vadd.f32 %v7622_v1, %v19694_v31  ;;  %v13557_v31 = vld [vmem:[%s20948_s15 + $0x8] sm:$0xf]  ;;  %v16116_v1 = vld [vmem:[%s20949_s16 + $0x3e0] ss:$16 sps:$4 sm:$0xff]  }
 0x882   : > { %v7624_v10 = vpop.f32.mrf.mxu1  ;;  %v16113_v60 = vld [vmem:[%s20949_s16 + $0x1a0] ss:$16 sps:$4 sm:$0xff]  }
 0x883   : > { %v7625_v59 = vadd.f32 %v7624_v10, %v7584_v40  ;;  %v7630_v57 = vmax.f32 %v7628_v43, 0.0  ;;  %v16121_v40 = vld [vmem:[%s20949_s16 + $0x184] ss:$16 sps:$4 sm:$0xff]   ;;  %v16122_v10 = vld [vmem:[%s20949_s16 + $0x3c0] ss:$16 sps:$4 sm:$0xff]  }
 0x884   : > { %v15118_v19 = vpop.f32.mrf.mxu1  ;;  %v16130_v43 = vld [vmem:[%s20949_s16 + $0x3a4] ss:$16 sps:$4 sm:$0xff]  }
 0x885   : > { %v7629_v11 = vadd.f32 %v7625_v59, %v6670_v22  ;;  %v16119_v22 = vld [vmem:[%s20949_s16 + $0x180] ss:$16 sps:$4 sm:$0xff]   ;;  %v16127_v59 = vld [vmem:[%s20949_s16 + $0x164] ss:$16 sps:$4 sm:$0xff]  }
 0x886   : > { %v16128_v19 = vld [vmem:[%s20949_s16 + $0x3a0] ss:$16 sps:$4 sm:$0xff]  }
 0x887   : > { %v7631_v47 = vmax.f32 %v7629_v11, 0.0  ;;  %v16125_v11 = vld [vmem:[%s20949_s16 + $0x160] ss:$16 sps:$4 sm:$0xff]  }
 0x889   : > { %v7632_v62 = vpack.c.bf16 %v7631_v47, %v7630_v57  ;;  %v16136_v57 = vld [vmem:[%s20949_s16 + $0x384] ss:$16 sps:$4 sm:$0xff]  }
 0x88a   : > { %v16133_v47 = vld [vmem:[%s20949_s16 + $0x144] ss:$16 sps:$4 sm:$0xff]  }
 0x88b   : > { %15120 = vmatpush3.bf16.msra.mxu0 %v7632_v62  ;;  %15126 = vmatpush3.bf16.msra.mxu1 %v7632_v62 }
 0x88c   : > { %15131 = vmatprep.subr.bf16.mxu0 %v21239_v49  ;;  %15137 = vmatprep.subr.bf16.mxu1 %v21239_v49 }
 0x88e   : > { %15122 = vmatmul.mubr.msk.bf16.vlgmr.msra.gmra.mxu0 %vm7634_vm7, %v7633_v16  ;;  %15128 = vmatmul.mubr.msk.bf16.vlgmr.msra.gmra.mxu1 %vm7634_vm7, %v13555_v26  ;;  %v16131_v16 = vld [vmem:[%s20949_s16 + $0x140] ss:$16 sps:$4 sm:$0xff]   ;;  %v16142_v26 = vld [vmem:[%s20949_s16 + $0x364] ss:$16 sps:$4 sm:$0xff]  }
 0x88f   : > { %15132 = vmatpush3.bf16.msra.mxu0 %v7632_v62  ;;  %15138 = vmatpush3.bf16.msra.mxu1 %v7632_v62 }
 0x890   : > { %15133 = vmatprep.mubr.msk.bf16.mxu0 %vm17359_vm2, %v21239_v49  ;;  %15139 = vmatprep.mubr.msk.bf16.mxu1 %vm17359_vm2, %v21239_v49 }
 0x891   : > { %15143 = vmatprep.subr.bf16.mxu0 %v21239_v49  ;;  %15149 = vmatprep.subr.bf16.mxu1 %v21239_v49 }
 0x896   : > { %15134 = vmatmul.mubr.msk.bf16.vlgmr.msra.gmra.mxu0 %vm7634_vm7, %v13557_v31  ;;  %15140 = vmatmul.mubr.msk.bf16.vlgmr.msra.gmra.mxu1 %vm7634_vm7, %v13559_v6  ;;  %v16139_v31 = vld [vmem:[%s20949_s16 + $0x124] ss:$16 sps:$4 sm:$0xff]   ;;  %v16140_v6 = vld [vmem:[%s20949_s16 + $0x360] ss:$16 sps:$4 sm:$0xff]  }
 0x897   : > { %15144 = vmatpush3.bf16.msra.mxu0 %v7632_v62  ;;  %15150 = vmatpush3.bf16.msra.mxu1 %v7632_v62 }
 0x898   : > { %15145 = vmatprep.mubr.msk.bf16.mxu0 %vm17359_vm2, %v21239_v49  ;;  %15151 = vmatprep.mubr.msk.bf16.mxu1 %vm17359_vm2, %v21239_v49 }
 0x899   : > { %15155 = vmatprep.subr.bf16.mxu0 %v21239_v49  ;;  %15161 = vmatprep.subr.bf16.mxu1 %v21239_v49 }
 0x89e   : > { %15146 = vmatmul.mubr.msk.bf16.vlgmr.msra.gmra.mxu0 %vm7634_vm7, %v13561_v21  ;;  %15152 = vmatmul.mubr.msk.bf16.vlgmr.msra.gmra.mxu1 %vm7634_vm7, %v13563_v51  ;;  %v16137_v21 = vld [vmem:[%s20949_s16 + $0x120] ss:$16 sps:$4 sm:$0xff]   ;;  %v16148_v51 = vld [vmem:[%s20949_s16 + $0x344] ss:$16 sps:$4 sm:$0xff]  }
 0x89f   : > { %15156 = vmatpush3.bf16.msra.mxu0 %v7632_v62  ;;  %15162 = vmatpush3.bf16.msra.mxu1 %v7632_v62 }
 0x8a0   : > { %15157 = vmatprep.mubr.msk.bf16.mxu0 %vm17359_vm2, %v21239_v49  ;;  %15167 = vmatprep.subr.bf16.mxu0 %v21239_v49 }
 0x8a1   : > { %15163 = vmatprep.mubr.msk.bf16.mxu1 %vm17359_vm2, %v21239_v49  ;;  %9797 = vmatprep.subr.bf16.mxu1 %v16061_v5  ;;  %v16145_v5 = vld [vmem:[%s20949_s16 + $0x104] ss:$16 sps:$4 sm:$0xff]  }
 0x8a6   : > { %15158 = vmatmul.mubr.msk.bf16.vlgmr.msra.gmra.mxu0 %vm7634_vm7, %v13565_v3  ;;  %15164 = vmatmul.mubr.msk.bf16.vlgmr.msra.gmra.mxu1 %vm7634_vm7, %v13567_v0  ;;  %v16146_v3 = vld [vmem:[%s20949_s16 + $0x340] ss:$16 sps:$4 sm:$0xff]  }
 0x8a7   : > { %15168 = vmatpush3.bf16.msra.mxu0 %v7632_v62  ;;  %15169 = vmatprep.mubr.msk.bf16.mxu0 %vm17359_vm2, %v21239_v49  ;;  %v16065_v49 = vld [vmem:[%s20949_s16 + $0xa0] ss:$16 sps:$4 sm:$0xff]  }
 0x8a8   : > { %9798 = vmatpush1.bf16.msra.mxu1 %v16059_v37  ;;  %9838 = vmatprep.subr.bf16.mxu0 %v16070_v41  ;;  %v16134_v62 = vld [vmem:[%s20949_s16 + $0x380] ss:$16 sps:$4 sm:$0xff]   ;;  %v16151_v37 = vld [vmem:[%s20949_s16 + $0x324] ss:$16 sps:$4 sm:$0xff]  }
 0x8a9   : > { %9799 = vmatprep.subr.bf16.mxu1 %v16064_v61  ;;  %v16143_v0 = vld [vmem:[%s20949_s16 + $0x100] ss:$16 sps:$4 sm:$0xff]   ;;  %v16154_v41 = vld [vmem:[%s20949_s16 + $0x4e4] ss:$16 sps:$4 sm:$0xff]  }
 0x8aa   : > { %v16149_v61 = vld [vmem:[%s20949_s16 + $0x320] ss:$16 sps:$4 sm:$0xff]  }
 0x8ac   : > { %9800 = vmatpush1.bf16.msra.mxu1 %v16062_v39  ;;  %v16157_v39 = vld [vmem:[%s20949_s16 + $0x304] ss:$16 sps:$4 sm:$0xff]  }
 0x8ad   : > { %9801 = vmatprep.subr.bf16.mxu1 %v16067_v2  ;;  %v16155_v2 = vld [vmem:[%s20949_s16 + $0x300] ss:$16 sps:$4 sm:$0xff]  }
 0x8ae   : > { %15170 = vmatmul.mubr.msk.bf16.vlgmr.msra.gmra.mxu0 %vm7634_vm7, %v13569_v27  ;;  %v16166_v27 = vld [vmem:[%s20949_s16 + $0x6e4] ss:$16 sps:$4 sm:$0xff]  }
 0x8af   : > { %9839 = vmatpush1.bf16.msra.mxu0 %v16068_v18 }
 0x8b0   : > { %9802 = vmatpush1.bf16.msra.mxu1 %v16065_v49  ;;  %9840 = vmatprep.subr.bf16.mxu0 %v16076_v58 }
 0x8b1   : > { %9803 = vmatprep.subr.bf16.mxu1 %v16073_v25 }
 0x8b3   : > { %9841 = vmatpush1.bf16.msra.mxu0 %v16074_v52  ;;  %v16152_v52 = vld [vmem:[%s20949_s16 + $0x4e0] ss:$16 sps:$4 sm:$0xff]  }
 0x8b4   : > { %9804 = vmatpush1.bf16.msra.mxu1 %v16071_v4  ;;  %9842 = vmatprep.subr.bf16.mxu0 %v16082_v35 }
 0x8b5   : > { %9805 = vmatprep.subr.bf16.mxu1 %v16079_v46  ;;  %v16160_v46 = vld [vmem:[%s20949_s16 + $0x4c4] ss:$16 sps:$4 sm:$0xff]  }
 0x8b7   : > { %9843 = vmatpush1.bf16.msra.mxu0 %v16080_v63 }
 0x8b8   : > { %9806 = vmatpush1.bf16.msra.mxu1 %v16077_v29  ;;  %9844 = vmatprep.subr.bf16.mxu0 %v16088_v15  ;;  %v16158_v15 = vld [vmem:[%s20949_s16 + $0x4c0] ss:$16 sps:$4 sm:$0xff]  }
 0x8b9   : > { %9807 = vmatprep.subr.bf16.mxu1 %v16085_v24 }
 0x8bb   : > { %9845 = vmatpush1.bf16.msra.mxu0 %v16086_v55 }
 0x8bc   : > { %9808 = vmatpush1.bf16.msra.mxu1 %v16083_v9  ;;  %9846 = vmatprep.subr.bf16.mxu0 %v16094_v45  ;;  %v16163_v9 = vld [vmem:[%s20949_s16 + $0x4a4] ss:$16 sps:$4 sm:$0xff]  }
 0x8bd   : > { %9809 = vmatprep.subr.bf16.mxu1 %v16091_v12 }
 0x8bf   : > { %9847 = vmatpush1.bf16.msra.mxu0 %v16092_v20 }
 0x8c0   : > { %9810 = vmatpush1.bf16.msra.mxu1 %v16089_v33  ;;  %9848 = vmatprep.subr.bf16.mxu0 %v16100_v32  ;;  %v16161_v32 = vld [vmem:[%s20949_s16 + $0x4a0] ss:$16 sps:$4 sm:$0xff]  }
 0x8c1   : > { %9811 = vmatprep.subr.bf16.mxu1 %v16097_v30  ;;  %v16164_v30 = vld [vmem:[%s20949_s16 + $0x6e0] ss:$16 sps:$4 sm:$0xff]  }
 0x8c3   : > { %9849 = vmatpush1.bf16.msra.mxu0 %v16098_v7  ;;  %v16169_v7 = vld [vmem:[%s20949_s16 + $0x484] ss:$16 sps:$4 sm:$0xff]  }
 0x8c4   : > { %9812 = vmatpush1.bf16.msra.mxu1 %v16095_v42  ;;  %9850 = vmatprep.subr.bf16.mxu0 %v16106_v34  ;;  %v16172_v42 = vld [vmem:[%s20949_s16 + $0x6c4] ss:$16 sps:$4 sm:$0xff]  }
 0x8c5   : > { %9813 = vmatprep.subr.bf16.mxu1 %v16103_v23 }
 0x8c7   : > { %9851 = vmatpush1.bf16.msra.mxu0 %v16104_v13 }
 0x8c8   : > { %9814 = vmatpush2.bf16.msra.mxu1 %v16101_v44  ;;  %9852 = vmatprep.subr.bf16.mxu0 %v16112_v38  ;;  %v16167_v38 = vld [vmem:[%s20949_s16 + $0x480] ss:$16 sps:$4 sm:$0xff]  }
 0x8c9   : > { %9815 = vmatprep.subr.bf16.mxu1 %v16109_v48  ;;  %v16170_v48 = vld [vmem:[%s20949_s16 + $0x6c0] ss:$16 sps:$4 sm:$0xff]  }
 0x8cb   : > { %9853 = vmatpush1.bf16.msra.mxu0 %v16110_v50  ;;  %v16175_v50 = vld [vmem:[%s20949_s16 + $0x464] ss:$16 sps:$4 sm:$0xff]  }
 0x8cc   : > { %9816 = vmatpush2.bf16.msra.mxu1 %v16107_v8  ;;  %9854 = vmatprep.subr.bf16.mxu0 %v16118_v54  ;;  %v16178_v8 = vld [vmem:[%s20949_s16 + $0x6a4] ss:$16 sps:$4 sm:$0xff]  }
 0x8cd   : > { %9817 = vmatprep.subr.bf16.mxu1 %v16115_v53 }
 0x8cf   : > { %9855 = vmatpush2.bf16.msra.mxu0 %v16116_v1 }
 0x8d0   : > { %9818 = vmatpush2.bf16.msra.mxu1 %v16113_v60  ;;  %9856 = vmatprep.subr.bf16.mxu0 %v16124_v14  ;;  %v16173_v14 = vld [vmem:[%s20949_s16 + $0x460] ss:$16 sps:$4 sm:$0xff]  }
 0x8d1   : > { %9819 = vmatprep.subr.bf16.mxu1 %v16121_v40  ;;  %v16176_v40 = vld [vmem:[%s20949_s16 + $0x6a0] ss:$16 sps:$4 sm:$0xff]  }
 0x8d3   : > { %9857 = vmatpush2.bf16.msra.mxu0 %v16122_v10 }
 0x8d4   : > { %9820 = vmatpush2.bf16.msra.mxu1 %v16119_v22  ;;  %9858 = vmatprep.subr.bf16.mxu0 %v16130_v43  ;;  %v16181_v22 = vld [vmem:[%s20949_s16 + $0x444] ss:$16 sps:$4 sm:$0xff]  }
 0x8d5   : > { %9821 = vmatprep.subr.bf16.mxu1 %v16127_v59  ;;  %v16184_v43 = vld [vmem:[%s20949_s16 + $0x684] ss:$16 sps:$4 sm:$0xff]  }
 0x8d7   : > { %9859 = vmatpush2.bf16.msra.mxu0 %v16128_v19 }
 0x8d8   : > { %9822 = vmatpush2.bf16.msra.mxu1 %v16125_v11  ;;  %9860 = vmatprep.subr.bf16.mxu0 %v16136_v57 }
 0x8d9   : > { %9823 = vmatprep.subr.bf16.mxu1 %v16133_v47  ;;  %v16179_v47 = vld [vmem:[%s20949_s16 + $0x440] ss:$16 sps:$4 sm:$0xff]  }
 0x8db   : > { %9861 = vmatpush2.bf16.msra.mxu0 %v16134_v62  ;;  %v16182_v62 = vld [vmem:[%s20949_s16 + $0x680] ss:$16 sps:$4 sm:$0xff]  }
 0x8dc   : > { %9824 = vmatpush2.bf16.msra.mxu1 %v16131_v16  ;;  %9862 = vmatprep.subr.bf16.mxu0 %v16142_v26  ;;  %v16187_v16 = vld [vmem:[%s20949_s16 + $0x424] ss:$16 sps:$4 sm:$0xff]  }
 0x8dd   : > { %9825 = vmatprep.subr.bf16.mxu1 %v16139_v31  ;;  %v16190_v26 = vld [vmem:[%s20949_s16 + $0x664] ss:$16 sps:$4 sm:$0xff]  }
 0x8df   : > { %9863 = vmatpush2.bf16.msra.mxu0 %v16140_v6 }
 0x8e0   : > { %9826 = vmatpush2.bf16.msra.mxu1 %v16137_v21  ;;  %9864 = vmatprep.subr.bf16.mxu0 %v16148_v51 }
 0x8e1   : > { %9827 = vmatprep.subr.bf16.mxu1 %v16145_v5  ;;  %v16185_v5 = vld [vmem:[%s20949_s16 + $0x420] ss:$16 sps:$4 sm:$0xff]  }
 0x8e3   : > { %9865 = vmatpush2.bf16.msra.mxu0 %v16146_v3  ;;  %v16188_v3 = vld [vmem:[%s20949_s16 + $0x660] ss:$16 sps:$4 sm:$0xff]  }
 0x8e4   : > { %9828 = vmatpush2.bf16.msra.mxu1 %v16143_v0  ;;  %9866 = vmatprep.subr.bf16.mxu0 %v16151_v37  ;;  %v16193_v37 = vld [vmem:[%s20949_s16 + $0x404] ss:$16 sps:$4 sm:$0xff]  }
 0x8e5   : > { %9879 = vmatprep.subr.bf16.mxu1 %v16154_v41  ;;  %v16196_v41 = vld [vmem:[%s20949_s16 + $0x644] ss:$16 sps:$4 sm:$0xff]  }
 0x8e7   : > { %9867 = vmatpush2.bf16.msra.mxu0 %v16149_v61 }
 0x8e8   : > { %9868 = vmatprep.subr.bf16.mxu0 %v16157_v39 }
 0x8eb   : > { %9869 = vmatpush2.bf16.msra.mxu0 %v16155_v2 }
 0x8ec   : > { %9920 = vmatprep.subr.bf16.mxu0 %v16166_v27 }
 0x94e   : > { %v7672_v18 = vpop.f32.mrf.mxu0  ;;  %v7718_v49 = vpop.f32.mrf.mxu1 }
 0x94f   : > { %v20030_v58 = vpack.c.bf16 %v7672_v18, %v7672_v18  ;;  %v20032_v25 = vpack.c.bf16 %v7718_v49, %v7718_v49  ;;  %v16191_v18 = vld [vmem:[%s20949_s16 + $0x400] ss:$16 sps:$4 sm:$0xff]  }
 0x950   : > { %v15123_v4 = vpop.f32.mrf.mxu0  ;;  %v15129_v35 = vpop.f32.mrf.mxu1  ;;  %v16194_v49 = vld [vmem:[%s20949_s16 + $0x640] ss:$16 sps:$4 sm:$0xff]  }
 0x951   : > { %9829 = vmatprep.mubr.bf16.mxu1 %v20032_v25  ;;  %v16202_v4 = vld [vmem:[%s20949_s16 + $0x624] ss:$16 sps:$4 sm:$0xff]  }
 0x952   : > { %v7675_v63 = vpop.f32.mrf.mxu0  ;;  %v7721_v29 = vpop.f32.mrf.mxu1  ;;  %9830 = vmatmul.mubr.bf16.vlgmr.msra.gmra.mxu1 %v20030_v58 }
 0x953   : > { %9880 = vmatpush1.bf16.msra.mxu1 %v16152_v52  ;;  %v16199_v52 = vld [vmem:[%s20949_s16 + $0x5e4] ss:$16 sps:$4 sm:$0xff]   ;;  %v16197_v29 = vld [vmem:[%s20949_s16 + $0x5e0] ss:$16 sps:$4 sm:$0xff]  }
 0x954   : > { %v15124_v24 = vpop.f32.mrf.mxu0  ;;  %v15130_v55 = vpop.f32.mrf.mxu1  ;;  %9881 = vmatprep.subr.bf16.mxu1 %v16160_v46 }
 0x955   : > { %v16205_v24 = vld [vmem:[%s20949_s16 + $0x5c4] ss:$16 sps:$4 sm:$0xff]  }
 0x956   : > { %v7810_v45 = vpop.f32.mrf.mxu1  ;;  %v7764_v12 = vpop.f32.mrf.mxu0  ;;  %v16208_v55 = vld [vmem:[%s20949_s16 + $0x604] ss:$16 sps:$4 sm:$0xff]  }
 0x957   : > { %v20048_v20 = vpack.c.bf16 %v7810_v45, %v7810_v45  ;;  %9882 = vmatpush1.bf16.msra.mxu1 %v16158_v15  ;;  %v20050_v33 = vpack.c.bf16 %v7764_v12, %v7764_v12  ;;  %v16200_v15 = vld [vmem:[%s20949_s16 + $0x620] ss:$16 sps:$4 sm:$0xff]  }
 0x958   : > { %9883 = vmatprep.subr.bf16.mxu1 %v16163_v9  ;;  %v15141_v34 = vpop.f32.mrf.mxu1  ;;  %v15135_v23 = vpop.f32.mrf.mxu0  ;;  %v16203_v12 = vld [vmem:[%s20949_s16 + $0x5c0] ss:$16 sps:$4 sm:$0xff]  }
 0x959   : > { %9870 = vmatprep.mubr.bf16.mxu0 %v20048_v20  ;;  %v16209_v34 = vld [vmem:[%s20949_s16 + $0x5a0] ss:$16 sps:$4 sm:$0xff]  }
 0x95a   : > { %9871 = vmatmul.mubr.bf16.vlgmr.msra.gmra.mxu0 %v20050_v33  ;;  %v7813_v13 = vpop.f32.mrf.mxu1  ;;  %v7767_v44 = vpop.f32.mrf.mxu0  ;;  %v16212_v23 = vld [vmem:[%s20949_s16 + $0x7e0] ss:$16 sps:$4 sm:$0xff]  }
 0x95b   : > { %9884 = vmatpush1.bf16.msra.mxu1 %v16161_v32  ;;  %9921 = vmatpush1.bf16.msra.mxu0 %v16164_v30  ;;  %v16206_v32 = vld [vmem:[%s20949_s16 + $0x600] ss:$16 sps:$4 sm:$0xff]   ;;  %v16211_v30 = vld [vmem:[%s20949_s16 + $0x5a4] ss:$16 sps:$4 sm:$0xff]  }
 0x95c   : > { %9885 = vmatprep.subr.bf16.mxu1 %v16169_v7  ;;  %9922 = vmatprep.subr.bf16.mxu0 %v16172_v42  ;;  %v15142_v54 = vpop.f32.mrf.mxu1  ;;  %v15136_v53 = vpop.f32.mrf.mxu0  ;;  %v16214_v7 = vld [vmem:[%s20949_s16 + $0x7e4] ss:$16 sps:$4 sm:$0xff]  }
 0x95d   : > { %v16217_v13 = vld [vmem:[%s20949_s16 + $0x584] ss:$16 sps:$4 sm:$0xff]   ;;  %v16221_v54 = vld [vmem:[%s20949_s16 + $0x560] ss:$16 sps:$4 sm:$0xff]  }
 0x95e   : > { %v7902_v1 = vpop.f32.mrf.mxu1  ;;  %v20078_v60 = vpop.f32.mrf.mxu0  ;;  %v16220_v44 = vld [vmem:[%s20949_s16 + $0x7c4] ss:$16 sps:$4 sm:$0xff]   ;;  %v16224_v53 = vld [vmem:[%s20949_s16 + $0x7a0] ss:$16 sps:$4 sm:$0xff]  }
 0x95f   : > { %9886 = vmatpush1.bf16.msra.mxu1 %v16167_v38  ;;  %9923 = vmatpush1.bf16.msra.mxu0 %v16170_v48  ;;  %v20086_v10 = vpack.c.bf16 %v7902_v1, %v7902_v1  ;;  %v16215_v38 = vld [vmem:[%s20949_s16 + $0x580] ss:$16 sps:$4 sm:$0xff]   ;;  %v16229_v1 = vld [vmem:[%s20949_s16 + $0x544] ss:$16 sps:$4 sm:$0xff]  }
 0x960   : > { %9887 = vmatprep.subr.bf16.mxu1 %v16175_v50  ;;  %9924 = vmatprep.subr.bf16.mxu0 %v16178_v8  ;;  %v15153_v59 = vpop.f32.mrf.mxu1  ;;  %v15147_v19 = vpop.f32.mrf.mxu0  ;;  %v16218_v48 = vld [vmem:[%s20949_s16 + $0x7c0] ss:$16 sps:$4 sm:$0xff]   ;;  %v16223_v50 = vld [vmem:[%s20949_s16 + $0x564] ss:$16 sps:$4 sm:$0xff]  }
 0x961   : > { %9911 = vmatprep.mubr.bf16.mxu1 %v20086_v10  ;;  %v16226_v8 = vld [vmem:[%s20949_s16 + $0x7a4] ss:$16 sps:$4 sm:$0xff]   ;;  %v16233_v19 = vld [vmem:[%s20949_s16 + $0x520] ss:$16 sps:$4 sm:$0xff]  }
 0x962   : > { %v7905_v11 = vpop.f32.mrf.mxu1  ;;  %v7859_v57 = vpop.f32.mrf.mxu0  ;;  %v16238_v59 = vld [vmem:[%s20949_s16 + $0x764] ss:$16 sps:$4 sm:$0xff]  }
 0x963   : > { %9888 = vmatpush1.bf16.msra.mxu1 %v16173_v14  ;;  %9925 = vmatpush1.bf16.msra.mxu0 %v16176_v40  ;;  %v16232_v14 = vld [vmem:[%s20949_s16 + $0x784] ss:$16 sps:$4 sm:$0xff]   ;;  %v16227_v40 = vld [vmem:[%s20949_s16 + $0x540] ss:$16 sps:$4 sm:$0xff]  }
 0x964   : > { %9889 = vmatprep.subr.bf16.mxu1 %v16181_v22  ;;  %9926 = vmatprep.subr.bf16.mxu0 %v16184_v43  ;;  %v15154_v31 = vpop.f32.mrf.mxu1  ;;  %v15148_v6 = vpop.f32.mrf.mxu0  ;;  %v16230_v22 = vld [vmem:[%s20949_s16 + $0x780] ss:$16 sps:$4 sm:$0xff]   ;;  %v16235_v43 = vld [vmem:[%s20949_s16 + $0x524] ss:$16 sps:$4 sm:$0xff]  }
 0x965   : > { %v16236_v11 = vld [vmem:[%s20949_s16 + $0x760] ss:$16 sps:$4 sm:$0xff]   ;;  %v16241_v57 = vld [vmem:[%s20949_s16 + $0x504] ss:$16 sps:$4 sm:$0xff]   ;;  %v20236_v6 = vpack.c.bf16 %v20078_v60, %v20078_v60 }
 0x966   : > { %v7994_v21 = vpop.f32.mrf.mxu1  ;;  %v20107_v51 = vpop.f32.mrf.mxu0  ;;  %v16250_v31 = vld [vmem:[%s20949_s16 + $0x8e4] ss:$16 sps:$4 sm:$0xff]  }
 0x967   : > { %9890 = vmatpush1.bf16.msra.mxu1 %v16179_v47  ;;  %9927 = vmatpush1.bf16.msra.mxu0 %v16182_v62  ;;  %v20115_v0 = vpack.c.bf16 %v7994_v21, %v7994_v21  ;;  %v16244_v47 = vld [vmem:[%s20949_s16 + $0x744] ss:$16 sps:$4 sm:$0xff]   ;;  %v16239_v62 = vld [vmem:[%s20949_s16 + $0x500] ss:$16 sps:$4 sm:$0xff]  }
 0x968   : > { %9891 = vmatprep.subr.bf16.mxu1 %v16187_v16  ;;  %9928 = vmatprep.subr.bf16.mxu0 %v16190_v26  ;;  %v15159_v61 = vpop.f32.mrf.mxu0  ;;  %v15165_v39 = vpop.f32.mrf.mxu1  ;;  %v16242_v16 = vld [vmem:[%s20949_s16 + $0x740] ss:$16 sps:$4 sm:$0xff]   ;;  %v16247_v26 = vld [vmem:[%s20949_s16 + $0x724] ss:$16 sps:$4 sm:$0xff]  }
 0x969   : > { %9952 = vmatprep.mubr.bf16.mxu0 %v20115_v0  ;;  %v16245_v21 = vld [vmem:[%s20949_s16 + $0x720] ss:$16 sps:$4 sm:$0xff]   ;;  %v16256_v60 = vld [vmem:[%s20949_s16 + $0x8c4] ss:$16 sps:$4 sm:$0xff]   ;;  %v16262_v39 = vld [vmem:[%s20949_s16 + $0xec] ss:$16 sps:$4 sm:$0xff]  }
 0x96a   : > { %v7951_v2 = vpop.f32.mrf.mxu0  ;;  %v7997_v27 = vpop.f32.mrf.mxu1  ;;  %v16259_v61 = vld [vmem:[%s20949_s16 + $0x8a4] ss:$16 sps:$4 sm:$0xff]  }
 0x96b   : > { %9892 = vmatpush1.bf16.msra.mxu1 %v16185_v5  ;;  %9929 = vmatpush1.bf16.msra.mxu0 %v16188_v3  ;;  %v16248_v5 = vld [vmem:[%s20949_s16 + $0x8e0] ss:$16 sps:$4 sm:$0xff]   ;;  %v16253_v3 = vld [vmem:[%s20949_s16 + $0x704] ss:$16 sps:$4 sm:$0xff]   ;;  %v20266_v2 = vpack.c.bf16 %v20107_v51, %v20107_v51  ;;  %v16268_v51 = vld [vmem:[%s20949_s16 + $0xcc] ss:$16 sps:$4 sm:$0xff]  }
 0x96c   : > { %9893 = vmatprep.subr.bf16.mxu1 %v16193_v37  ;;  %9930 = vmatprep.subr.bf16.mxu0 %v16196_v41  ;;  %v15160_v35 = vpop.f32.mrf.mxu0  ;;  %v15166_v46 = vpop.f32.mrf.mxu1  ;;  %v16251_v37 = vld [vmem:[%s20949_s16 + $0x700] ss:$16 sps:$4 sm:$0xff]  }
 0x96d   : > { %v16254_v41 = vld [vmem:[%s20949_s16 + $0x8c0] ss:$16 sps:$4 sm:$0xff]   ;;  %v16271_v35 = vld [vmem:[%s20949_s16 + $0x864] ss:$16 sps:$4 sm:$0xff]   ;;  %v16274_v46 = vld [vmem:[%s20949_s16 + $0xac] ss:$16 sps:$4 sm:$0xff]  }
 0x96e   : > { %v20136_v63 = vpop.f32.mrf.mxu0  ;;  %v16257_v27 = vld [vmem:[%s20949_s16 + $0x8a0] ss:$16 sps:$4 sm:$0xff]  }
 0x96f   : > { %9894 = vmatpush1.bf16.msra.mxu1 %v16191_v18  ;;  %9931 = vmatpush1.bf16.msra.mxu0 %v16194_v49  ;;  %v16260_v18 = vld [vmem:[%s20949_s16 + $0xe8] ss:$16 sps:$4 sm:$0xff]   ;;  %v16265_v49 = vld [vmem:[%s20949_s16 + $0x884] ss:$16 sps:$4 sm:$0xff]  }
 0x970   : > { %9895 = vmatprep.subr.bf16.mxu1 %v16199_v52  ;;  %9932 = vmatprep.subr.bf16.mxu0 %v16202_v4  ;;  %v15171_v9 = vpop.f32.mrf.mxu0  ;;  %v16263_v52 = vld [vmem:[%s20949_s16 + $0x880] ss:$16 sps:$4 sm:$0xff]   ;;  %v16266_v4 = vld [vmem:[%s20949_s16 + $0xc8] ss:$16 sps:$4 sm:$0xff]  }
 0x971   : > { %v16278_v9 = vld [vmem:[%s20949_s16 + $0x88] ss:$16 sps:$4 sm:$0xff]  }
 0x972   : > { %v8043_v45 = vpop.f32.mrf.mxu0 }
 0x973   : > { %9896 = vmatpush2.bf16.msra.mxu1 %v16197_v29  ;;  %9933 = vmatpush1.bf16.msra.mxu0 %v16200_v15  ;;  %v16269_v29 = vld [vmem:[%s20949_s16 + $0x860] ss:$16 sps:$4 sm:$0xff]   ;;  %v16277_v15 = vld [vmem:[%s20949_s16 + $0x844] ss:$16 sps:$4 sm:$0xff]  }
 0x974   : > { %9897 = vmatprep.subr.bf16.mxu1 %v16205_v24  ;;  %9934 = vmatprep.subr.bf16.mxu0 %v16208_v55  ;;  %v15172_v42 = vpop.f32.mrf.mxu0  ;;  %v16280_v24 = vld [vmem:[%s20949_s16 + $0x8c] ss:$16 sps:$4 sm:$0xff]   ;;  %v16275_v55 = vld [vmem:[%s20949_s16 + $0x840] ss:$16 sps:$4 sm:$0xff]   ;;  %v16283_v45 = vld [vmem:[%s20949_s16 + $0x824] ss:$16 sps:$4 sm:$0xff]  }
 0x975   : > { %v16292_v42 = vld [vmem:[%s20949_s16 + $0x4c] ss:$16 sps:$4 sm:$0xff]  }
 0x977   : > { %9898 = vmatpush2.bf16.msra.mxu1 %v16203_v12  ;;  %9935 = vmatpush1.bf16.msra.mxu0 %v16206_v32  ;;  %v16286_v12 = vld [vmem:[%s20949_s16 + $0x6c] ss:$16 sps:$4 sm:$0xff]   ;;  %v16281_v32 = vld [vmem:[%s20949_s16 + $0x820] ss:$16 sps:$4 sm:$0xff]  }
 0x978   : > { %9899 = vmatprep.subr.bf16.mxu1 %v16211_v30  ;;  %9936 = vmatprep.subr.bf16.mxu0 %v16214_v7  ;;  %v16284_v30 = vld [vmem:[%s20949_s16 + $0x68] ss:$16 sps:$4 sm:$0xff]   ;;  %v16289_v7 = vld [vmem:[%s20949_s16 + $0x804] ss:$16 sps:$4 sm:$0xff]  }
 0x97b   : > { %9900 = vmatpush2.bf16.msra.mxu1 %v16209_v34  ;;  %9937 = vmatpush2.bf16.msra.mxu0 %v16212_v23  ;;  %v16287_v34 = vld [vmem:[%s20949_s16 + $0x800] ss:$16 sps:$4 sm:$0xff]   ;;  %v16290_v23 = vld [vmem:[%s20949_s16 + $0x48] ss:$16 sps:$4 sm:$0xff]  }
 0x97c   : > { %9901 = vmatprep.subr.bf16.mxu1 %v16217_v13  ;;  %9938 = vmatprep.subr.bf16.mxu0 %v16220_v44  ;;  %v16295_v13 = vld [vmem:[%s20949_s16 + $0x2c] ss:$16 sps:$4 sm:$0xff]  }
 0x97d   : > { %v16298_v44 = vld [vmem:[%s20949_s16 + $0x2ec] ss:$16 sps:$4 sm:$0xff]  }
 0x97f   : > { %9902 = vmatpush2.bf16.msra.mxu1 %v16215_v38  ;;  %9939 = vmatpush2.bf16.msra.mxu0 %v16218_v48  ;;  %v20344_v38 = vpack.c.bf16 %v20136_v63, %v20136_v63  ;;  %v16293_v48 = vld [vmem:[%s20949_s16 + $0x28] ss:$16 sps:$4 sm:$0xff]   ;;  %v16304_v63 = vld [vmem:[%s20949_s16 + $0x2cc] ss:$16 sps:$4 sm:$0xff]  }
 0x980   : > { %9903 = vmatprep.subr.bf16.mxu1 %v16223_v50  ;;  %9940 = vmatprep.subr.bf16.mxu0 %v16226_v8  ;;  %v16296_v50 = vld [vmem:[%s20949_s16 + $0x2e8] ss:$16 sps:$4 sm:$0xff]   ;;  %v16301_v8 = vld [vmem:[%s20949_s16 + $0xc] ss:$16 sps:$4 sm:$0xff]  }
 0x983   : > { %9904 = vmatpush2.bf16.msra.mxu1 %v16221_v54  ;;  %9941 = vmatpush2.bf16.msra.mxu0 %v16224_v53  ;;  %v16299_v54 = vld [vmem:[%s20949_s16 + $0x8] ss:$16 sps:$4 sm:$0xff]  }
 0x984   : > { %9905 = vmatprep.subr.bf16.mxu1 %v16229_v1  ;;  %9942 = vmatprep.subr.bf16.mxu0 %v16232_v14  ;;  %v16302_v53 = vld [vmem:[%s20949_s16 + $0x2c8] ss:$16 sps:$4 sm:$0xff]   ;;  %v16307_v1 = vld [vmem:[%s20949_s16 + $0x1ec] ss:$16 sps:$4 sm:$0xff]  }
 0x985   : > { %v16310_v14 = vld [vmem:[%s20949_s16 + $0x2ac] ss:$16 sps:$4 sm:$0xff]  }
 0x987   : > { %9906 = vmatpush2.bf16.msra.mxu1 %v16227_v40  ;;  %9943 = vmatpush2.bf16.msra.mxu0 %v16230_v22  ;;  %v16305_v40 = vld [vmem:[%s20949_s16 + $0x1e8] ss:$16 sps:$4 sm:$0xff]   ;;  %v16313_v22 = vld [vmem:[%s20949_s16 + $0x1cc] ss:$16 sps:$4 sm:$0xff]  }
 0x988   : > { %9907 = vmatprep.subr.bf16.mxu1 %v16235_v43  ;;  %9944 = vmatprep.subr.bf16.mxu0 %v16238_v59  ;;  %v16316_v43 = vld [vmem:[%s20949_s16 + $0x28c] ss:$16 sps:$4 sm:$0xff]   ;;  %v16311_v59 = vld [vmem:[%s20949_s16 + $0x1c8] ss:$16 sps:$4 sm:$0xff]  }
 0x98b   : > { %9908 = vmatpush2.bf16.msra.mxu1 %v16233_v19  ;;  %9945 = vmatpush2.bf16.msra.mxu0 %v16236_v11  ;;  %v16314_v19 = vld [vmem:[%s20949_s16 + $0x288] ss:$16 sps:$4 sm:$0xff]   ;;  %v16319_v11 = vld [vmem:[%s20949_s16 + $0x1ac] ss:$16 sps:$4 sm:$0xff]  }
 0x98c   : > { %9909 = vmatprep.subr.bf16.mxu1 %v16241_v57  ;;  %9946 = vmatprep.subr.bf16.mxu0 %v16244_v47  ;;  %v16322_v57 = vld [vmem:[%s20949_s16 + $0x26c] ss:$16 sps:$4 sm:$0xff]   ;;  %v16317_v47 = vld [vmem:[%s20949_s16 + $0x1a8] ss:$16 sps:$4 sm:$0xff]  }
 0x98f   : > { %9910 = vmatpush2.bf16.msra.mxu1 %v16239_v62  ;;  %9947 = vmatpush2.bf16.msra.mxu0 %v16242_v16  ;;  %v16320_v62 = vld [vmem:[%s20949_s16 + $0x268] ss:$16 sps:$4 sm:$0xff]   ;;  %v16325_v16 = vld [vmem:[%s20949_s16 + $0x18c] ss:$16 sps:$4 sm:$0xff]  }
 0x990   : > { %9948 = vmatprep.subr.bf16.mxu0 %v16247_v26  ;;  %9961 = vmatprep.subr.bf16.mxu1 %v16250_v31  ;;  %v16328_v26 = vld [vmem:[%s20949_s16 + $0x24c] ss:$16 sps:$4 sm:$0xff]   ;;  %v16323_v31 = vld [vmem:[%s20949_s16 + $0x188] ss:$16 sps:$4 sm:$0xff]  }
 0x992   : > { %9912 = vmatmul.mubr.bf16.vlgmr.msra.gmra.mxu1 %v20236_v6 }
 0x993   : > { %9949 = vmatpush2.bf16.msra.mxu0 %v16245_v21  ;;  %9962 = vmatpush1.bf16.msra.mxu1 %v16248_v5  ;;  %v16326_v21 = vld [vmem:[%s20949_s16 + $0x248] ss:$16 sps:$4 sm:$0xff]   ;;  %v16331_v5 = vld [vmem:[%s20949_s16 + $0x16c] ss:$16 sps:$4 sm:$0xff]  }
 0x994   : > { %9950 = vmatprep.subr.bf16.mxu0 %v16253_v3  ;;  %9963 = vmatprep.subr.bf16.mxu1 %v16256_v60  ;;  %v16334_v3 = vld [vmem:[%s20949_s16 + $0x22c] ss:$16 sps:$4 sm:$0xff]   ;;  %v16329_v60 = vld [vmem:[%s20949_s16 + $0x168] ss:$16 sps:$4 sm:$0xff]  }
 0x995   : > { %9993 = vmatprep.mubr.bf16.mxu1 %v21240_v17 }
 0x997   : > { %9951 = vmatpush2.bf16.msra.mxu0 %v16251_v37  ;;  %9964 = vmatpush1.bf16.msra.mxu1 %v16254_v41  ;;  %v16332_v37 = vld [vmem:[%s20949_s16 + $0x228] ss:$16 sps:$4 sm:$0xff]   ;;  %v16337_v41 = vld [vmem:[%s20949_s16 + $0x14c] ss:$16 sps:$4 sm:$0xff]  }
 0x998   : > { %9965 = vmatprep.subr.bf16.mxu1 %v16259_v61  ;;  %10002 = vmatprep.subr.bf16.mxu0 %v16262_v39  ;;  %v16340_v61 = vld [vmem:[%s20949_s16 + $0x20c] ss:$16 sps:$4 sm:$0xff]   ;;  %v16335_v39 = vld [vmem:[%s20949_s16 + $0x148] ss:$16 sps:$4 sm:$0xff]  }
 0x99a   : > { %9953 = vmatmul.mubr.bf16.vlgmr.msra.gmra.mxu0 %v20266_v2 }
 0x99b   : > { %9966 = vmatpush1.bf16.msra.mxu1 %v16257_v27  ;;  %10003 = vmatpush1.bf16.msra.mxu0 %v16260_v18  ;;  %v16338_v27 = vld [vmem:[%s20949_s16 + $0x208] ss:$16 sps:$4 sm:$0xff]   ;;  %v16343_v18 = vld [vmem:[%s20949_s16 + $0x12c] ss:$16 sps:$4 sm:$0xff]  }
 0x99c   : > { %10034 = vmatprep.mubr.bf16.mxu0 %v20032_v25  ;;  %9967 = vmatprep.subr.bf16.mxu1 %v16265_v49  ;;  %v16272_v25 = vld [vmem:[%s20949_s16 + $0xa8] ss:$16 sps:$4 sm:$0xff]   ;;  %v16346_v49 = vld [vmem:[%s20949_s16 + $0x3ec] ss:$16 sps:$4 sm:$0xff]  }
 0x99d   : > { %10004 = vmatprep.subr.bf16.mxu0 %v16268_v51  ;;  %v16341_v51 = vld [vmem:[%s20949_s16 + $0x128] ss:$16 sps:$4 sm:$0xff]  }
 0x99f   : > { %9968 = vmatpush1.bf16.msra.mxu1 %v16263_v52  ;;  %10005 = vmatpush1.bf16.msra.mxu0 %v16266_v4  ;;  %v16344_v52 = vld [vmem:[%s20949_s16 + $0x3e8] ss:$16 sps:$4 sm:$0xff]   ;;  %v16349_v4 = vld [vmem:[%s20949_s16 + $0x10c] ss:$16 sps:$4 sm:$0xff]  }
 0x9a0   : > { %9969 = vmatprep.subr.bf16.mxu1 %v16271_v35  ;;  %10006 = vmatprep.subr.bf16.mxu0 %v16274_v46  ;;  %v16352_v35 = vld [vmem:[%s20949_s16 + $0x3cc] ss:$16 sps:$4 sm:$0xff]   ;;  %v16347_v46 = vld [vmem:[%s20949_s16 + $0x108] ss:$16 sps:$4 sm:$0xff]  }
 0x9a3   : > { %9970 = vmatpush1.bf16.msra.mxu1 %v16269_v29  ;;  %10007 = vmatpush1.bf16.msra.mxu0 %v16272_v25  ;;  %v16350_v29 = vld [vmem:[%s20949_s16 + $0x3c8] ss:$16 sps:$4 sm:$0xff]   ;;  %v16355_v25 = vld [vmem:[%s20949_s16 + $0x3ac] ss:$16 sps:$4 sm:$0xff]  }
 0x9a4   : > { %9971 = vmatprep.subr.bf16.mxu1 %v16277_v15  ;;  %10008 = vmatprep.subr.bf16.mxu0 %v16280_v24  ;;  %v16358_v15 = vld [vmem:[%s20949_s16 + $0x4ec] ss:$16 sps:$4 sm:$0xff]   ;;  %v16353_v24 = vld [vmem:[%s20949_s16 + $0x3a8] ss:$16 sps:$4 sm:$0xff]  }
 0x9a7   : > { %9972 = vmatpush1.bf16.msra.mxu1 %v16275_v55  ;;  %10009 = vmatpush1.bf16.msra.mxu0 %v16278_v9  ;;  %v16356_v55 = vld [vmem:[%s20949_s16 + $0x4e8] ss:$16 sps:$4 sm:$0xff]   ;;  %v16361_v9 = vld [vmem:[%s20949_s16 + $0x38c] ss:$16 sps:$4 sm:$0xff]  }
 0x9a8   : > { %9973 = vmatprep.subr.bf16.mxu1 %v16283_v45  ;;  %10010 = vmatprep.subr.bf16.mxu0 %v16286_v12  ;;  %v16364_v45 = vld [vmem:[%s20949_s16 + $0x4cc] ss:$16 sps:$4 sm:$0xff]   ;;  %v16359_v12 = vld [vmem:[%s20949_s16 + $0x388] ss:$16 sps:$4 sm:$0xff]  }
 0x9ab   : > { %9974 = vmatpush1.bf16.msra.mxu1 %v16281_v32  ;;  %10011 = vmatpush1.bf16.msra.mxu0 %v16284_v30  ;;  %v16362_v32 = vld [vmem:[%s20949_s16 + $0x4c8] ss:$16 sps:$4 sm:$0xff]   ;;  %v16367_v30 = vld [vmem:[%s20949_s16 + $0x36c] ss:$16 sps:$4 sm:$0xff]  }
 0x9ac   : > { %9975 = vmatprep.subr.bf16.mxu1 %v16289_v7  ;;  %10012 = vmatprep.subr.bf16.mxu0 %v16292_v42  ;;  %v16365_v7 = vld [vmem:[%s20949_s16 + $0x368] ss:$16 sps:$4 sm:$0xff]   ;;  %v16373_v42 = vld [vmem:[%s20949_s16 + $0x34c] ss:$16 sps:$4 sm:$0xff]  }
 0x9af   : > { %9976 = vmatpush1.bf16.msra.mxu1 %v16287_v34  ;;  %10013 = vmatpush1.bf16.msra.mxu0 %v16290_v23  ;;  %v16376_v34 = vld [vmem:[%s20949_s16 + $0x48c] ss:$16 sps:$4 sm:$0xff]   ;;  %v16371_v23 = vld [vmem:[%s20949_s16 + $0x348] ss:$16 sps:$4 sm:$0xff]  }
 0x9b0   : > { %10014 = vmatprep.subr.bf16.mxu0 %v16295_v13  ;;  %10043 = vmatprep.subr.bf16.mxu1 %v16298_v44  ;;  %v16374_v13 = vld [vmem:[%s20949_s16 + $0x488] ss:$16 sps:$4 sm:$0xff]   ;;  %v16379_v44 = vld [vmem:[%s20949_s16 + $0x32c] ss:$16 sps:$4 sm:$0xff]  }
 0x9b2   : > { %9994 = vmatmul.mubr.bf16.vlgmr.msra.gmra.mxu1 %v20344_v38 }
 0x9b3   : > { %10015 = vmatpush1.bf16.msra.mxu0 %v16293_v48  ;;  %10044 = vmatpush1.bf16.msra.mxu1 %v16296_v50  ;;  %v16382_v48 = vld [vmem:[%s20949_s16 + $0x46c] ss:$16 sps:$4 sm:$0xff]   ;;  %v16377_v50 = vld [vmem:[%s20949_s16 + $0x328] ss:$16 sps:$4 sm:$0xff]  }
 0x9b4   : > { %10075 = vmatprep.mubr.bf16.mxu1 %v20048_v20  ;;  %10016 = vmatprep.subr.bf16.mxu0 %v16301_v8  ;;  %v16308_v20 = vld [vmem:[%s20949_s16 + $0x2a8] ss:$16 sps:$4 sm:$0xff]  }
 0x9b5   : > { %10045 = vmatprep.subr.bf16.mxu1 %v16304_v63  ;;  %v16380_v8 = vld [vmem:[%s20949_s16 + $0x468] ss:$16 sps:$4 sm:$0xff]   ;;  %v16385_v63 = vld [vmem:[%s20949_s16 + $0x30c] ss:$16 sps:$4 sm:$0xff]  }
 0x9b7   : > { %10017 = vmatpush1.bf16.msra.mxu0 %v16299_v54  ;;  %10046 = vmatpush1.bf16.msra.mxu1 %v16302_v53  ;;  %v16388_v54 = vld [vmem:[%s20949_s16 + $0x44c] ss:$16 sps:$4 sm:$0xff]   ;;  %v16383_v53 = vld [vmem:[%s20949_s16 + $0x308] ss:$16 sps:$4 sm:$0xff]  }
 0x9b8   : > { %10018 = vmatprep.subr.bf16.mxu0 %v16307_v1  ;;  %10047 = vmatprep.subr.bf16.mxu1 %v16310_v14  ;;  %v16386_v1 = vld [vmem:[%s20949_s16 + $0x448] ss:$16 sps:$4 sm:$0xff]   ;;  %v16391_v14 = vld [vmem:[%s20949_s16 + $0x42c] ss:$16 sps:$4 sm:$0xff]  }
 0x9bb   : > { %10019 = vmatpush2.bf16.msra.mxu0 %v16305_v40  ;;  %10048 = vmatpush1.bf16.msra.mxu1 %v16308_v20  ;;  %v16394_v40 = vld [vmem:[%s20949_s16 + $0x6ec] ss:$16 sps:$4 sm:$0xff]   ;;  %v16389_v20 = vld [vmem:[%s20949_s16 + $0x428] ss:$16 sps:$4 sm:$0xff]  }
 0x9bc   : > { %10020 = vmatprep.subr.bf16.mxu0 %v16313_v22  ;;  %10049 = vmatprep.subr.bf16.mxu1 %v16316_v43  ;;  %v16392_v22 = vld [vmem:[%s20949_s16 + $0x6e8] ss:$16 sps:$4 sm:$0xff]   ;;  %v16397_v43 = vld [vmem:[%s20949_s16 + $0x40c] ss:$16 sps:$4 sm:$0xff]  }
 0x9bf   : > { %10021 = vmatpush2.bf16.msra.mxu0 %v16311_v59  ;;  %10050 = vmatpush1.bf16.msra.mxu1 %v16314_v19  ;;  %v16400_v59 = vld [vmem:[%s20949_s16 + $0x6cc] ss:$16 sps:$4 sm:$0xff]   ;;  %v16395_v19 = vld [vmem:[%s20949_s16 + $0x408] ss:$16 sps:$4 sm:$0xff]  }
 0x9c0   : > { %10022 = vmatprep.subr.bf16.mxu0 %v16319_v11  ;;  %10051 = vmatprep.subr.bf16.mxu1 %v16322_v57  ;;  %v16398_v11 = vld [vmem:[%s20949_s16 + $0x6c8] ss:$16 sps:$4 sm:$0xff]   ;;  %v16403_v57 = vld [vmem:[%s20949_s16 + $0x5ec] ss:$16 sps:$4 sm:$0xff]  }
 0x9c3   : > { %10023 = vmatpush2.bf16.msra.mxu0 %v16317_v47  ;;  %10052 = vmatpush1.bf16.msra.mxu1 %v16320_v62  ;;  %v16401_v47 = vld [vmem:[%s20949_s16 + $0x5e8] ss:$16 sps:$4 sm:$0xff]   ;;  %v16409_v62 = vld [vmem:[%s20949_s16 + $0x5cc] ss:$16 sps:$4 sm:$0xff]  }
 0x9c4   : > { %10024 = vmatprep.subr.bf16.mxu0 %v16325_v16  ;;  %10053 = vmatprep.subr.bf16.mxu1 %v16328_v26  ;;  %v16412_v16 = vld [vmem:[%s20949_s16 + $0x68c] ss:$16 sps:$4 sm:$0xff]   ;;  %v16407_v26 = vld [vmem:[%s20949_s16 + $0x5c8] ss:$16 sps:$4 sm:$0xff]  }
 0x9c7   : > { %10025 = vmatpush2.bf16.msra.mxu0 %v16323_v31  ;;  %10054 = vmatpush1.bf16.msra.mxu1 %v16326_v21  ;;  %v16410_v31 = vld [vmem:[%s20949_s16 + $0x688] ss:$16 sps:$4 sm:$0xff]   ;;  %v16415_v21 = vld [vmem:[%s20949_s16 + $0x5ac] ss:$16 sps:$4 sm:$0xff]  }
 0x9c8   : > { %10026 = vmatprep.subr.bf16.mxu0 %v16331_v5  ;;  %10055 = vmatprep.subr.bf16.mxu1 %v16334_v3  ;;  %v16418_v5 = vld [vmem:[%s20949_s16 + $0x66c] ss:$16 sps:$4 sm:$0xff]   ;;  %v16413_v3 = vld [vmem:[%s20949_s16 + $0x5a8] ss:$16 sps:$4 sm:$0xff]  }
 0x9cb   : > { %10027 = vmatpush2.bf16.msra.mxu0 %v16329_v60  ;;  %10056 = vmatpush1.bf16.msra.mxu1 %v16332_v37  ;;  %v16416_v60 = vld [vmem:[%s20949_s16 + $0x668] ss:$16 sps:$4 sm:$0xff]   ;;  %v16421_v37 = vld [vmem:[%s20949_s16 + $0x58c] ss:$16 sps:$4 sm:$0xff]  }
 0x9cc   : > { %10028 = vmatprep.subr.bf16.mxu0 %v16337_v41  ;;  %10057 = vmatprep.subr.bf16.mxu1 %v16340_v61  ;;  %v16424_v41 = vld [vmem:[%s20949_s16 + $0x64c] ss:$16 sps:$4 sm:$0xff]   ;;  %v16419_v61 = vld [vmem:[%s20949_s16 + $0x588] ss:$16 sps:$4 sm:$0xff]  }
 0x9cf   : > { %10029 = vmatpush2.bf16.msra.mxu0 %v16335_v39  ;;  %10058 = vmatpush1.bf16.msra.mxu1 %v16338_v27  ;;  %v16422_v39 = vld [vmem:[%s20949_s16 + $0x648] ss:$16 sps:$4 sm:$0xff]   ;;  %v16427_v27 = vld [vmem:[%s20949_s16 + $0x56c] ss:$16 sps:$4 sm:$0xff]  }
 0x9d0   : > { %10030 = vmatprep.subr.bf16.mxu0 %v16343_v18  ;;  %10059 = vmatprep.subr.bf16.mxu1 %v16346_v49  ;;  %v16430_v18 = vld [vmem:[%s20949_s16 + $0x62c] ss:$16 sps:$4 sm:$0xff]   ;;  %v16425_v49 = vld [vmem:[%s20949_s16 + $0x568] ss:$16 sps:$4 sm:$0xff]  }
 0x9d3   : > { %10031 = vmatpush2.bf16.msra.mxu0 %v16341_v51  ;;  %10060 = vmatpush2.bf16.msra.mxu1 %v16344_v52  ;;  %v16428_v51 = vld [vmem:[%s20949_s16 + $0x628] ss:$16 sps:$4 sm:$0xff]   ;;  %v16433_v52 = vld [vmem:[%s20949_s16 + $0x54c] ss:$16 sps:$4 sm:$0xff]  }
 0x9d4   : > { %10032 = vmatprep.subr.bf16.mxu0 %v16349_v4  ;;  %10061 = vmatprep.subr.bf16.mxu1 %v16352_v35  ;;  %v16436_v4 = vld [vmem:[%s20949_s16 + $0x60c] ss:$16 sps:$4 sm:$0xff]   ;;  %v16431_v35 = vld [vmem:[%s20949_s16 + $0x548] ss:$16 sps:$4 sm:$0xff]  }
 0x9d7   : > { %10033 = vmatpush2.bf16.msra.mxu0 %v16347_v46  ;;  %10062 = vmatpush2.bf16.msra.mxu1 %v16350_v29  ;;  %v16434_v46 = vld [vmem:[%s20949_s16 + $0x608] ss:$16 sps:$4 sm:$0xff]   ;;  %v16439_v29 = vld [vmem:[%s20949_s16 + $0x52c] ss:$16 sps:$4 sm:$0xff]  }
 0x9d8   : > { %10063 = vmatprep.subr.bf16.mxu1 %v16355_v25  ;;  %10084 = vmatprep.subr.bf16.mxu0 %v16358_v15  ;;  %v16442_v25 = vld [vmem:[%s20949_s16 + $0x7ec] ss:$16 sps:$4 sm:$0xff]   ;;  %v16437_v15 = vld [vmem:[%s20949_s16 + $0x528] ss:$16 sps:$4 sm:$0xff]  }
 0x9da   : > { %10035 = vmatmul.mubr.bf16.vlgmr.msra.gmra.mxu0 %v20030_v58  ;;  %v16370_v58 = vld [vmem:[%s20949_s16 + $0x4ac] ss:$16 sps:$4 sm:$0xff]  }
 0x9db   : > { %10064 = vmatpush2.bf16.msra.mxu1 %v16353_v24  ;;  %10085 = vmatpush1.bf16.msra.mxu0 %v16356_v55  ;;  %v16440_v24 = vld [vmem:[%s20949_s16 + $0x7e8] ss:$16 sps:$4 sm:$0xff]   ;;  %v16445_v55 = vld [vmem:[%s20949_s16 + $0x50c] ss:$16 sps:$4 sm:$0xff]  }
 0x9dc   : > { %10116 = vmatprep.mubr.bf16.mxu0 %v20086_v10  ;;  %10065 = vmatprep.subr.bf16.mxu1 %v16361_v9  ;;  %v16368_v10 = vld [vmem:[%s20949_s16 + $0x4a8] ss:$16 sps:$4 sm:$0xff]   ;;  %v16448_v9 = vld [vmem:[%s20949_s16 + $0x7cc] ss:$16 sps:$4 sm:$0xff]  }
 0x9dd   : > { %10086 = vmatprep.subr.bf16.mxu0 %v16364_v45  ;;  %v20655_v45 = vld [vmem:[%s20950_s17] sm:$0xf] }
 0x9df   : > { %10066 = vmatpush2.bf16.msra.mxu1 %v16359_v12  ;;  %10087 = vmatpush1.bf16.msra.mxu0 %v16362_v32  ;;  %v16443_v32 = vld [vmem:[%s20949_s16 + $0x508] ss:$16 sps:$4 sm:$0xff]  }
 0x9e0   : > { %10067 = vmatprep.subr.bf16.mxu1 %v16367_v30  ;;  %10088 = vmatprep.subr.bf16.mxu0 %v16370_v58  ;;  %v16446_v30 = vld [vmem:[%s20949_s16 + $0x7c8] ss:$16 sps:$4 sm:$0xff]  }
 0x9e3   : > { %10068 = vmatpush2.bf16.msra.mxu1 %v16365_v7  ;;  %10089 = vmatpush1.bf16.msra.mxu0 %v16368_v10  ;;  %v16451_v7 = vld [vmem:[%s20949_s16 + $0x7ac] ss:$16 sps:$4 sm:$0xff]  }
 0x9e4   : > { %10069 = vmatprep.subr.bf16.mxu1 %v16373_v42  ;;  %10090 = vmatprep.subr.bf16.mxu0 %v16376_v34  ;;  %v16454_v10 = vld [vmem:[%s20949_s16 + $0x8ec] ss:$16 sps:$4 sm:$0xff]   ;;  %v8340_v42 = vrot.slane %v20655_v45, %v21242_v56 }
 0x9e7   : > { %10070 = vmatpush2.bf16.msra.mxu1 %v16371_v23  ;;  %10091 = vmatpush1.bf16.msra.mxu0 %v16374_v13  ;;  %v8344_v23 = vrot.slane %v20655_v45, %v21241_v28  ;;  %v16449_v13 = vld [vmem:[%s20949_s16 + $0x7a8] ss:$16 sps:$4 sm:$0xff]  }
 0x9e8   : > { %10071 = vmatprep.subr.bf16.mxu1 %v16379_v44  ;;  %10092 = vmatprep.subr.bf16.mxu0 %v16382_v48  ;;  %v16452_v44 = vld [vmem:[%s20949_s16 + $0x8e8] ss:$16 sps:$4 sm:$0xff]  }
 0x9eb   : > { %10072 = vmatpush2.bf16.msra.mxu1 %v16377_v50  ;;  %10093 = vmatpush1.bf16.msra.mxu0 %v16380_v8  ;;  %v16457_v50 = vld [vmem:[%s20949_s16 + $0x78c] ss:$16 sps:$4 sm:$0xff]  }
 0x9ec   : > { %10073 = vmatprep.subr.bf16.mxu1 %v16385_v63  ;;  %10094 = vmatprep.subr.bf16.mxu0 %v16388_v54  ;;  %v16460_v8 = vld [vmem:[%s20949_s16 + $0x8cc] ss:$16 sps:$4 sm:$0xff]  }
 0x9ef   : > { %10074 = vmatpush2.bf16.msra.mxu1 %v16383_v53  ;;  %10095 = vmatpush1.bf16.msra.mxu0 %v16386_v1 }
 0x9f0   : > { %10096 = vmatprep.subr.bf16.mxu0 %v16391_v14  ;;  %10125 = vmatprep.subr.bf16.mxu1 %v16394_v40  ;;  %v16455_v14 = vld [vmem:[%s20949_s16 + $0x788] ss:$16 sps:$4 sm:$0xff]  }
 0x9f1   : > { %v16458_v40 = vld [vmem:[%s20949_s16 + $0x8c8] ss:$16 sps:$4 sm:$0xff]  }
 0x9f2   : > { %10076 = vmatmul.mubr.bf16.vlgmr.msra.gmra.mxu1 %v20050_v33  ;;  %v16406_v33 = vld [vmem:[%s20949_s16 + $0x6ac] ss:$16 sps:$4 sm:$0xff]  }
 0x9f3   : > { %10097 = vmatpush1.bf16.msra.mxu0 %v16389_v20  ;;  %10126 = vmatpush1.bf16.msra.mxu1 %v16392_v22  ;;  %v16466_v22 = vld [vmem:[%s20949_s16 + $0x8ac] ss:$16 sps:$4 sm:$0xff]  }
 0x9f4   : > { %10157 = vmatprep.mubr.bf16.mxu1 %v20115_v0  ;;  %10098 = vmatprep.subr.bf16.mxu0 %v16397_v43  ;;  %v16404_v0 = vld [vmem:[%s20949_s16 + $0x6a8] ss:$16 sps:$4 sm:$0xff]  }
 0x9f5   : > { %10127 = vmatprep.subr.bf16.mxu1 %v16400_v59 }
 0x9f7   : > { %10099 = vmatpush1.bf16.msra.mxu0 %v16395_v19  ;;  %10128 = vmatpush1.bf16.msra.mxu1 %v16398_v11  ;;  %v16461_v19 = vld [vmem:[%s20949_s16 + $0x768] ss:$16 sps:$4 sm:$0xff]  }
 0x9f8   : > { %10100 = vmatprep.subr.bf16.mxu0 %v16403_v57  ;;  %10129 = vmatprep.subr.bf16.mxu1 %v16406_v33  ;;  %v16464_v11 = vld [vmem:[%s20949_s16 + $0x8a8] ss:$16 sps:$4 sm:$0xff]   ;;  %v16469_v57 = vld [vmem:[%s20949_s16 + $0x74c] ss:$16 sps:$4 sm:$0xff]  }
 0x9fb   : > { %10101 = vmatpush2.bf16.msra.mxu0 %v16401_v47  ;;  %10130 = vmatpush1.bf16.msra.mxu1 %v16404_v0  ;;  %v16467_v47 = vld [vmem:[%s20949_s16 + $0x748] ss:$16 sps:$4 sm:$0xff]  }
 0x9fc   : > { %10102 = vmatprep.subr.bf16.mxu0 %v16409_v62  ;;  %10131 = vmatprep.subr.bf16.mxu1 %v16412_v16  ;;  %v16470_v0 = vld [vmem:[%s20949_s16 + $0x888] ss:$16 sps:$4 sm:$0xff]   ;;  %v16475_v62 = vld [vmem:[%s20949_s16 + $0x72c] ss:$16 sps:$4 sm:$0xff]  }
 0x9fd   : > { %v16478_v16 = vld [vmem:[%s20949_s16 + $0x86c] ss:$16 sps:$4 sm:$0xff]  }
 0x9ff   : > { %10103 = vmatpush2.bf16.msra.mxu0 %v16407_v26  ;;  %10132 = vmatpush1.bf16.msra.mxu1 %v16410_v31  ;;  %v16473_v26 = vld [vmem:[%s20949_s16 + $0x728] ss:$16 sps:$4 sm:$0xff]  }
 0xa00   : > { %10104 = vmatprep.subr.bf16.mxu0 %v16415_v21  ;;  %10133 = vmatprep.subr.bf16.mxu1 %v16418_v5  ;;  %v16476_v31 = vld [vmem:[%s20949_s16 + $0x868] ss:$16 sps:$4 sm:$0xff]   ;;  %v16481_v21 = vld [vmem:[%s20949_s16 + $0x70c] ss:$16 sps:$4 sm:$0xff]  }
 0xa01   : > { %v16484_v5 = vld [vmem:[%s20949_s16 + $0x84c] ss:$16 sps:$4 sm:$0xff]  }
 0xa03   : > { %10105 = vmatpush2.bf16.msra.mxu0 %v16413_v3  ;;  %10134 = vmatpush1.bf16.msra.mxu1 %v16416_v60  ;;  %v16479_v3 = vld [vmem:[%s20949_s16 + $0x708] ss:$16 sps:$4 sm:$0xff]  }
 0xa04   : > { %10106 = vmatprep.subr.bf16.mxu0 %v16421_v37  ;;  %10135 = vmatprep.subr.bf16.mxu1 %v16424_v41  ;;  %v16482_v60 = vld [vmem:[%s20949_s16 + $0x848] ss:$16 sps:$4 sm:$0xff]   ;;  %v16487_v37 = vld [vmem:[%s20949_s16 + $0x82c] ss:$16 sps:$4 sm:$0xff]  }
 0xa05   : > { %v16493_v41 = vld [vmem:[#allocation17 + $0x74] ss:$8 sps:$4 sm:$0xff]  }
 0xa07   : > { %10107 = vmatpush2.bf16.msra.mxu0 %v16419_v61  ;;  %10136 = vmatpush1.bf16.msra.mxu1 %v16422_v39  ;;  %v16485_v61 = vld [vmem:[%s20949_s16 + $0x828] ss:$16 sps:$4 sm:$0xff]  }
 0xa08   : > { %10108 = vmatprep.subr.bf16.mxu0 %v16427_v27  ;;  %10137 = vmatprep.subr.bf16.mxu1 %v16430_v18  ;;  %v16491_v39 = vld [vmem:[#allocation17 + $0x70] ss:$8 sps:$4 sm:$0xff]   ;;  %v16490_v27 = vld [vmem:[%s20949_s16 + $0x80c] ss:$16 sps:$4 sm:$0xff]  }
 0xa09   : > { %v16499_v18 = vld [vmem:[#allocation17 + $0x64] ss:$8 sps:$4 sm:$0xff]  }
 0xa0b   : > { %10109 = vmatpush2.bf16.msra.mxu0 %v16425_v49  ;;  %10138 = vmatpush1.bf16.msra.mxu1 %v16428_v51  ;;  %v16488_v49 = vld [vmem:[%s20949_s16 + $0x808] ss:$16 sps:$4 sm:$0xff]  }
 0xa0c   : > { %10110 = vmatprep.subr.bf16.mxu0 %v16433_v52  ;;  %10139 = vmatprep.subr.bf16.mxu1 %v16436_v4  ;;  %v16497_v51 = vld [vmem:[#allocation17 + $0x60] ss:$8 sps:$4 sm:$0xff]   ;;  %v16496_v52 = vld [vmem:[#allocation17 + $0x174] ss:$8 sps:$4 sm:$0xff]  }
 0xa0d   : > { %v16505_v4 = vld [vmem:[#allocation17 + $0x54] ss:$8 sps:$4 sm:$0xff]  }
 0xa0f   : > { %10111 = vmatpush2.bf16.msra.mxu0 %v16431_v35  ;;  %10140 = vmatpush1.bf16.msra.mxu1 %v16434_v46  ;;  %v16494_v35 = vld [vmem:[#allocation17 + $0x170] ss:$8 sps:$4 sm:$0xff]  }
 0xa10   : > { %10112 = vmatprep.subr.bf16.mxu0 %v16439_v29  ;;  %10141 = vmatprep.subr.bf16.mxu1 %v16442_v25  ;;  %v16503_v46 = vld [vmem:[#allocation17 + $0x50] ss:$8 sps:$4 sm:$0xff]   ;;  %v16502_v29 = vld [vmem:[#allocation17 + $0x164] ss:$8 sps:$4 sm:$0xff]  }
 0xa11   : > { %v16511_v25 = vld [vmem:[#allocation17 + $0x44] ss:$8 sps:$4 sm:$0xff]  }
 0xa12   : > { %v9831_v12 = vpop.f32.mrf.mxu1 }
 0xa13   : > { %10113 = vmatpush2.bf16.msra.mxu0 %v16437_v15  ;;  %10142 = vmatpush2.bf16.msra.mxu1 %v16440_v24  ;;  %v9832_v63 = vadd.f32 %v9831_v12, %v8340_v42  ;;  %v16509_v15 = vld [vmem:[#allocation17 + $0x40] ss:$8 sps:$4 sm:$0xff]   ;;  %v16508_v24 = vld [vmem:[#allocation17 + $0x154] ss:$8 sps:$4 sm:$0xff]   ;;  %v16515_v12 = vld [vmem:[#allocation17 + $0x30] ss:$8 sps:$4 sm:$0xff]  }
 0xa14   : > { %v9833_v58 = vpop.f32.mrf.mxu1  ;;  %10114 = vmatprep.subr.bf16.mxu0 %v16445_v55  ;;  %10143 = vmatprep.subr.bf16.mxu1 %v16448_v9  ;;  %v16517_v55 = vld [vmem:[#allocation17 + $0x34] ss:$8 sps:$4 sm:$0xff]   ;;  %v16506_v9 = vld [vmem:[#allocation17 + $0x150] ss:$8 sps:$4 sm:$0xff]  }
 0xa15   : > { %v9834_v53 = vadd.f32 %v9833_v58, %v8344_v23  ;;  %v16512_v58 = vld [vmem:[#allocation17 + $0x140] ss:$8 sps:$4 sm:$0xff]   ;;  %v16518_v42 = vld [vmem:[#allocation17 + $0x130] ss:$8 sps:$4 sm:$0xff]   ;;  %v16526_v23 = vld [vmem:[#allocation17 + $0x124] ss:$8 sps:$4 sm:$0xff]  }
 0xa16   : > { %v9835_v34 = vpop.f32.mrf.mxu1 }
 0xa17   : > { %10115 = vmatpush2.bf16.msra.mxu0 %v16443_v32  ;;  %10144 = vmatpush2.bf16.msra.mxu1 %v16446_v30  ;;  %v16514_v32 = vld [vmem:[#allocation17 + $0x144] ss:$8 sps:$4 sm:$0xff]   ;;  %v16527_v34 = vld [vmem:[#allocation17 + $0x10] ss:$8 sps:$4 sm:$0xff]  }
 0xa18   : > { %v9836_v48 = vpop.f32.mrf.mxu1  ;;  %10145 = vmatprep.subr.bf16.mxu1 %v16451_v7  ;;  %10166 = vmatprep.subr.bf16.mxu0 %v16454_v10  ;;  %v16523_v30 = vld [vmem:[#allocation17 + $0x24] ss:$8 sps:$4 sm:$0xff]   ;;  %v16520_v7 = vld [vmem:[#allocation17 + $0x134] ss:$8 sps:$4 sm:$0xff]  }
 0xa19   : > { %v16529_v10 = vld [vmem:[#allocation17 + $0x14] ss:$8 sps:$4 sm:$0xff]   ;;  %v16533_v48 = vld [vmem:[#allocation17] ss:$8 sps:$4 sm:$0xff]  }
 0xa1a   : > { %10117 = vmatmul.mubr.bf16.vlgmr.msra.gmra.mxu0 %v20236_v6  ;;  %v9872_v54 = vpop.f32.mrf.mxu0  ;;  %v16463_v6 = vld [vmem:[%s20949_s16 + $0x76c] ss:$16 sps:$4 sm:$0xff]  }
 0xa1b   : > { %v20686_v1 = vadd.f32 %v9872_v54, %v9832_v63  ;;  %10146 = vmatpush2.bf16.msra.mxu1 %v16449_v13  ;;  %10167 = vmatpush1.bf16.msra.mxu0 %v16452_v44  ;;  %v16535_v13 = vld [vmem:[#allocation17 + $0x4] ss:$8 sps:$4 sm:$0xff]   ;;  %v16524_v44 = vld [vmem:[#allocation17 + $0x120] ss:$8 sps:$4 sm:$0xff]   ;;  %v16530_v63 = vld [vmem:[#allocation17 + $0x110] ss:$8 sps:$4 sm:$0xff]  }
 0xa1c   : > { %v9874_v20 = vpop.f32.mrf.mxu0  ;;  %10147 = vmatprep.subr.bf16.mxu1 %v16457_v50  ;;  %10168 = vmatprep.subr.bf16.mxu0 %v16460_v8  ;;  %v16532_v50 = vld [vmem:[#allocation17 + $0x114] ss:$8 sps:$4 sm:$0xff]   ;;  %v16539_v54 = vld [vmem:[#allocation17 + $0xf0] ss:$8 sps:$4 sm:$0xff]  }
 0xa1d   : > { %v20700_v43 = vadd.f32 %v9874_v20, %v9834_v53  ;;  %10198 = vmatprep.mubr.bf16.mxu0 %v21240_v17  ;;  %v16472_v17 = vld [vmem:[%s20949_s16 + $0x88c] ss:$16 sps:$4 sm:$0xff]   ;;  %v16536_v20 = vld [vmem:[#allocation17 + $0x100] ss:$8 sps:$4 sm:$0xff]  }
 0xa1e   : > { %v9876_v59 = vpop.f32.mrf.mxu0  ;;  %v16541_v8 = vld [vmem:[#allocation17 + $0xf4] ss:$8 sps:$4 sm:$0xff]   ;;  %v16538_v53 = vld [vmem:[#allocation17 + $0x104] ss:$8 sps:$4 sm:$0xff]  }
 0xa1f   : > { %10148 = vmatpush2.bf16.msra.mxu1 %v16455_v14  ;;  %10169 = vmatpush1.bf16.msra.mxu0 %v16458_v40  ;;  %v16547_v14 = vld [vmem:[#allocation17 + $0xe4] ss:$8 sps:$4 sm:$0xff]   ;;  %v16544_v59 = vld [vmem:[#allocation17 + $0x1f4] ss:$8 sps:$4 sm:$0xff]  }
 0xa20   : > { %10149 = vmatprep.subr.bf16.mxu1 %v16463_v6  ;;  %10170 = vmatprep.subr.bf16.mxu0 %v16466_v22  ;;  %v9877_v33 = vpop.f32.mrf.mxu0  ;;  %v16545_v6 = vld [vmem:[#allocation17 + $0xe0] ss:$8 sps:$4 sm:$0xff]  }
 0xa23   : > { %10150 = vmatpush2.bf16.msra.mxu1 %v16461_v19  ;;  %10171 = vmatpush1.bf16.msra.mxu0 %v16464_v11  ;;  %v16553_v19 = vld [vmem:[#allocation17 + $0xd4] ss:$8 sps:$4 sm:$0xff]  }
 0xa24   : > { %10151 = vmatprep.subr.bf16.mxu1 %v16469_v57  ;;  %10172 = vmatprep.subr.bf16.mxu0 %v16472_v17  ;;  %v16542_v57 = vld [vmem:[#allocation17 + $0x1f0] ss:$8 sps:$4 sm:$0xff]  }
 0xa25   : > { %v16551_v17 = vld [vmem:[#allocation17 + $0xd0] ss:$8 sps:$4 sm:$0xff]  }
 0xa27   : > { %10152 = vmatpush2.bf16.msra.mxu1 %v16467_v47  ;;  %10173 = vmatpush1.bf16.msra.mxu0 %v16470_v0  ;;  %v16550_v47 = vld [vmem:[#allocation17 + $0x1e4] ss:$8 sps:$4 sm:$0xff]  }
 0xa28   : > { %10153 = vmatprep.subr.bf16.mxu1 %v16475_v62  ;;  %10174 = vmatprep.subr.bf16.mxu0 %v16478_v16  ;;  %v16559_v0 = vld [vmem:[#allocation17 + $0xc4] ss:$8 sps:$4 sm:$0xff]   ;;  %v16548_v16 = vld [vmem:[#allocation17 + $0x1e0] ss:$8 sps:$4 sm:$0xff]  }
 0xa2b   : > { %10154 = vmatpush2.bf16.msra.mxu1 %v16473_v26  ;;  %10175 = vmatpush1.bf16.msra.mxu0 %v16476_v31  ;;  %v16557_v26 = vld [vmem:[#allocation17 + $0xc0] ss:$8 sps:$4 sm:$0xff]  }
 0xa2c   : > { %10155 = vmatprep.subr.bf16.mxu1 %v16481_v21  ;;  %10176 = vmatprep.subr.bf16.mxu0 %v16484_v5  ;;  %v16556_v21 = vld [vmem:[#allocation17 + $0x1d4] ss:$8 sps:$4 sm:$0xff]  }
 0xa2d   : > { %v16565_v5 = vld [vmem:[#allocation17 + $0xb4] ss:$8 sps:$4 sm:$0xff]  }
 0xa2f   : > { %10156 = vmatpush2.bf16.msra.mxu1 %v16479_v3  ;;  %10177 = vmatpush1.bf16.msra.mxu0 %v16482_v60  ;;  %v16554_v60 = vld [vmem:[#allocation17 + $0x1d0] ss:$8 sps:$4 sm:$0xff]  }
 0xa30   : > { %10178 = vmatprep.subr.bf16.mxu0 %v16487_v37  ;;  %12059 = vmatprep.subr.bf16.mxu1 %v16493_v41  ;;  %v16563_v37 = vld [vmem:[#allocation17 + $0xb0] ss:$8 sps:$4 sm:$0xff]   ;;  %v16562_v41 = vld [vmem:[#allocation17 + $0x1c4] ss:$8 sps:$4 sm:$0xff]  }
 0xa32   : > { %10158 = vmatmul.mubr.bf16.vlgmr.msra.gmra.mxu1 %v20266_v2  ;;  %v16500_v2 = vld [vmem:[#allocation17 + $0x160] ss:$8 sps:$4 sm:$0xff]  }
 0xa33   : > { %10179 = vmatpush1.bf16.msra.mxu0 %v16485_v61  ;;  %12060 = vmatpush1.bf16.msra.mxu1 %v16491_v39  ;;  %v16571_v39 = vld [vmem:[#allocation17 + $0xa4] ss:$8 sps:$4 sm:$0xff]  }
 0xa34   : > { %10180 = vmatprep.subr.bf16.mxu0 %v16490_v27  ;;  %12061 = vmatprep.subr.bf16.mxu1 %v16499_v18  ;;  %v16560_v27 = vld [vmem:[#allocation17 + $0x1c0] ss:$8 sps:$4 sm:$0xff]  }
 0xa35   : > { %v16569_v18 = vld [vmem:[#allocation17 + $0xa0] ss:$8 sps:$4 sm:$0xff]  }
 0xa37   : > { %10181 = vmatpush1.bf16.msra.mxu0 %v16488_v49  ;;  %12062 = vmatpush1.bf16.msra.mxu1 %v16497_v51  ;;  %v16568_v49 = vld [vmem:[#allocation17 + $0x1b4] ss:$8 sps:$4 sm:$0xff]  }
 0xa38   : > { %12100 = vmatprep.subr.bf16.mxu0 %v16496_v52  ;;  %12063 = vmatprep.subr.bf16.mxu1 %v16505_v4  ;;  %v16577_v51 = vld [vmem:[#allocation17 + $0x94] ss:$8 sps:$4 sm:$0xff]   ;;  %v16566_v52 = vld [vmem:[#allocation17 + $0x1b0] ss:$8 sps:$4 sm:$0xff]  }
 0xa39   : > { %v16575_v4 = vld [vmem:[#allocation17 + $0x90] ss:$8 sps:$4 sm:$0xff]  }
 0xa3a   : > { %10199 = vmatmul.mubr.bf16.vlgmr.msra.gmra.mxu0 %v20344_v38  ;;  %v16521_v38 = vld [vmem:[#allocation17 + $0x20] ss:$8 sps:$4 sm:$0xff]  }
 0xa3b   : > { %12101 = vmatpush1.bf16.msra.mxu0 %v16494_v35  ;;  %12064 = vmatpush1.bf16.msra.mxu1 %v16503_v46  ;;  %v16574_v35 = vld [vmem:[#allocation17 + $0x1a4] ss:$8 sps:$4 sm:$0xff]  }
 0xa3c   : > { %12102 = vmatprep.subr.bf16.mxu0 %v16502_v29  ;;  %12065 = vmatprep.subr.bf16.mxu1 %v16511_v25  ;;  %v16583_v46 = vld [vmem:[#allocation17 + $0x84] ss:$8 sps:$4 sm:$0xff]   ;;  %v16572_v29 = vld [vmem:[#allocation17 + $0x1a0] ss:$8 sps:$4 sm:$0xff]  }
 0xa3d   : > { %v16581_v25 = vld [vmem:[#allocation17 + $0x80] ss:$8 sps:$4 sm:$0xff]  }
 0xa3f   : > { %12103 = vmatpush1.bf16.msra.mxu0 %v16500_v2  ;;  %12066 = vmatpush1.bf16.msra.mxu1 %v16509_v15  ;;  %v16580_v2 = vld [vmem:[#allocation17 + $0x194] ss:$8 sps:$4 sm:$0xff]  }
 0xa40   : > { %12104 = vmatprep.subr.bf16.mxu0 %v16508_v24  ;;  %12067 = vmatprep.subr.bf16.mxu1 %v16517_v55  ;;  %v16589_v15 = vld [vmem:[#allocation17 + $0x274] ss:$8 sps:$4 sm:$0xff]   ;;  %v16578_v55 = vld [vmem:[#allocation17 + $0x190] ss:$8 sps:$4 sm:$0xff]  }
 0xa43   : > { %12105 = vmatpush1.bf16.msra.mxu0 %v16506_v9  ;;  %12068 = vmatpush1.bf16.msra.mxu1 %v16515_v12  ;;  %v16586_v9 = vld [vmem:[#allocation17 + $0x184] ss:$8 sps:$4 sm:$0xff]  }
 0xa44   : > { %12106 = vmatprep.subr.bf16.mxu0 %v16514_v32  ;;  %12069 = vmatprep.subr.bf16.mxu1 %v16523_v30 }
 0xa47   : > { %12107 = vmatpush1.bf16.msra.mxu0 %v16512_v58  ;;  %12070 = vmatpush1.bf16.msra.mxu1 %v16521_v38 }
 0xa48   : > { %12108 = vmatprep.subr.bf16.mxu0 %v16520_v7  ;;  %12071 = vmatprep.subr.bf16.mxu1 %v16529_v10  ;;  %v16584_v7 = vld [vmem:[#allocation17 + $0x180] ss:$8 sps:$4 sm:$0xff]  }
 0xa4b   : > { %12109 = vmatpush1.bf16.msra.mxu0 %v16518_v42  ;;  %12072 = vmatpush1.bf16.msra.mxu1 %v16527_v34  ;;  %v16592_v42 = vld [vmem:[#allocation17 + $0x374] ss:$8 sps:$4 sm:$0xff]   ;;  %v10215_v34 = vpop.permute.xlu0 %10214 }
 0xa4c   : > { %12110 = vmatprep.subr.bf16.mxu0 %v16526_v23  ;;  %12073 = vmatprep.subr.bf16.mxu1 %v16535_v13 }
 0xa4f   : > { %12111 = vmatpush1.bf16.msra.mxu0 %v16524_v44  ;;  %12074 = vmatpush1.bf16.msra.mxu1 %v16533_v48 }
 0xa50   : > { %12112 = vmatprep.subr.bf16.mxu0 %v16532_v50  ;;  %12075 = vmatprep.subr.bf16.mxu1 %v16541_v8 }
 0xa52   : > { %v20759_v40 = vpop.f32.mrf.mxu1 }
 0xa53   : > { %12113 = vmatpush1.bf16.msra.mxu0 %v16530_v63  ;;  %12076 = vmatpush2.bf16.msra.mxu1 %v16539_v54  ;;  %v9914_v24 = vadd.f32 %v20759_v40, %v20686_v1  ;;  %v10228_v1 = vpop.permute.xlu1 %10227 }
 0xa54   : > { %v20761_v22 = vpop.f32.mrf.mxu1  ;;  %12114 = vmatprep.subr.bf16.mxu0 %v16538_v53  ;;  %12077 = vmatprep.subr.bf16.mxu1 %v16547_v14 }
 0xa55   : > { %v9916_v12 = vadd.f32 %v20761_v22, %v20700_v43 }
 0xa56   : > { %v9917_v11 = vpop.f32.mrf.mxu1 }
 0xa57   : > { %12115 = vmatpush1.bf16.msra.mxu0 %v16536_v20  ;;  %12078 = vmatpush2.bf16.msra.mxu1 %v16545_v6  ;;  %v20776_v20 = vpop.permute.xlu0 %10240  ;;  %v20778_v6 = vpop.permute.xlu1 %10251 }
 0xa58   : > { %v9918_v33 = vpop.f32.mrf.mxu1  ;;  %12116 = vmatprep.subr.bf16.mxu0 %v16544_v59  ;;  %12079 = vmatprep.subr.bf16.mxu1 %v16553_v19 }
 0xa59   : > { %v16587_v33 = vld [vmem:[#allocation17 + $0x270] ss:$8 sps:$4 sm:$0xff]  }
 0xa5a   : > { %v9954_v62 = vpop.f32.mrf.mxu0 }
 0xa5b   : > { %12117 = vmatpush2.bf16.msra.mxu0 %v16542_v57  ;;  %12080 = vmatpush2.bf16.msra.mxu1 %v16551_v17  ;;  %v9955_v32 = vadd.f32 %v9954_v62, %v9914_v24  ;;  %v16628_v24 = vld [vmem:[#allocation17 + $0x314] ss:$8 sps:$4 sm:$0xff]  }
 0xa5c   : > { %v9956_v31 = vpop.f32.mrf.mxu0  ;;  %12118 = vmatprep.subr.bf16.mxu0 %v16550_v47  ;;  %12081 = vmatprep.subr.bf16.mxu1 %v16559_v0  ;;  %v16590_v47 = vld [vmem:[#allocation17 + $0x370] ss:$8 sps:$4 sm:$0xff]  }
 0xa5d   : > { %v9957_v58 = vadd.f32 %v9956_v31, %v9916_v12  ;;  %v16631_v12 = vld [vmem:[#allocation17 + $0x204] ss:$8 sps:$4 sm:$0xff]  }
 0xa5e   : > { %v9958_v3 = vpop.f32.mrf.mxu0 }
 0xa5f   : > { %12119 = vmatpush2.bf16.msra.mxu0 %v16548_v16  ;;  %12082 = vmatpush2.bf16.msra.mxu1 %v16557_v26  ;;  %v16595_v16 = vld [vmem:[#allocation17 + $0x264] ss:$8 sps:$4 sm:$0xff]   ;;  %v16596_v3 = vld [vmem:[#allocation17 + $0x360] ss:$8 sps:$4 sm:$0xff]  }
 0xa60   : > { %12120 = vmatprep.subr.bf16.mxu0 %v16556_v21  ;;  %v9959_v61 = vpop.f32.mrf.mxu0  ;;  %12083 = vmatprep.subr.bf16.mxu1 %v16565_v5  ;;  %v16598_v26 = vld [vmem:[#allocation17 + $0x364] ss:$8 sps:$4 sm:$0xff]   ;;  %v16593_v5 = vld [vmem:[#allocation17 + $0x260] ss:$8 sps:$4 sm:$0xff]  }
 0xa61   : > { %v16602_v61 = vld [vmem:[#allocation17 + $0x350] ss:$8 sps:$4 sm:$0xff]  }
 0xa63   : > { %12121 = vmatpush2.bf16.msra.mxu0 %v16554_v60  ;;  %12084 = vmatpush2.bf16.msra.mxu1 %v16563_v37  ;;  %v16601_v60 = vld [vmem:[#allocation17 + $0x254] ss:$8 sps:$4 sm:$0xff]  }
 0xa64   : > { %12122 = vmatprep.subr.bf16.mxu0 %v16562_v41  ;;  %12085 = vmatprep.subr.bf16.mxu1 %v16571_v39  ;;  %v16604_v37 = vld [vmem:[#allocation17 + $0x354] ss:$8 sps:$4 sm:$0xff]   ;;  %v16599_v41 = vld [vmem:[#allocation17 + $0x250] ss:$8 sps:$4 sm:$0xff]   ;;  %v16607_v39 = vld [vmem:[#allocation17 + $0x244] ss:$8 sps:$4 sm:$0xff]  }
 0xa67   : > { %12123 = vmatpush2.bf16.msra.mxu0 %v16560_v27  ;;  %12086 = vmatpush2.bf16.msra.mxu1 %v16569_v18  ;;  %v16610_v27 = vld [vmem:[#allocation17 + $0x344] ss:$8 sps:$4 sm:$0xff]   ;;  %v16605_v18 = vld [vmem:[#allocation17 + $0x240] ss:$8 sps:$4 sm:$0xff]  }
 0xa68   : > { %12124 = vmatprep.subr.bf16.mxu0 %v16568_v49  ;;  %12087 = vmatprep.subr.bf16.mxu1 %v16577_v51  ;;  %v16608_v49 = vld [vmem:[#allocation17 + $0x340] ss:$8 sps:$4 sm:$0xff]   ;;  %v16613_v51 = vld [vmem:[#allocation17 + $0x234] ss:$8 sps:$4 sm:$0xff]  }
 0xa6b   : > { %12125 = vmatpush2.bf16.msra.mxu0 %v16566_v52  ;;  %12088 = vmatpush2.bf16.msra.mxu1 %v16575_v4  ;;  %v16616_v52 = vld [vmem:[#allocation17 + $0x334] ss:$8 sps:$4 sm:$0xff]   ;;  %v16611_v4 = vld [vmem:[#allocation17 + $0x230] ss:$8 sps:$4 sm:$0xff]  }
 0xa6c   : > { %12126 = vmatprep.subr.bf16.mxu0 %v16574_v35  ;;  %12089 = vmatprep.subr.bf16.mxu1 %v16583_v46  ;;  %v16614_v35 = vld [vmem:[#allocation17 + $0x330] ss:$8 sps:$4 sm:$0xff]   ;;  %v16619_v46 = vld [vmem:[#allocation17 + $0x224] ss:$8 sps:$4 sm:$0xff]  }
 0xa6f   : > { %12127 = vmatpush2.bf16.msra.mxu0 %v16572_v29  ;;  %12090 = vmatpush2.bf16.msra.mxu1 %v16581_v25  ;;  %v16622_v29 = vld [vmem:[#allocation17 + $0x324] ss:$8 sps:$4 sm:$0xff]   ;;  %v16617_v25 = vld [vmem:[#allocation17 + $0x220] ss:$8 sps:$4 sm:$0xff]  }
 0xa70   : > { %12128 = vmatprep.subr.bf16.mxu0 %v16580_v2  ;;  %12141 = vmatprep.subr.bf16.mxu1 %v16589_v15  ;;  %v16620_v2 = vld [vmem:[#allocation17 + $0x320] ss:$8 sps:$4 sm:$0xff]   ;;  %v16625_v15 = vld [vmem:[#allocation17 + $0x214] ss:$8 sps:$4 sm:$0xff]  }
 0xa72   : > { %v9995_v30 = vpop.f32.mrf.mxu1 }
 0xa73   : > { %v9996_v38 = vadd.f32 %v9995_v30, %v9955_v32  ;;  %12129 = vmatpush2.bf16.msra.mxu0 %v16578_v55  ;;  %v16623_v55 = vld [vmem:[#allocation17 + $0x210] ss:$8 sps:$4 sm:$0xff]   ;;  %v16634_v32 = vld [vmem:[#allocation17 + $0x304] ss:$8 sps:$4 sm:$0xff]   ;;  %v16629_v30 = vld [vmem:[#allocation17 + $0x200] ss:$8 sps:$4 sm:$0xff]  }
 0xa74   : > { %v9997_v10 = vpop.f32.mrf.mxu1  ;;  %12130 = vmatprep.subr.bf16.mxu0 %v16586_v9  ;;  %v16626_v9 = vld [vmem:[#allocation17 + $0x310] ss:$8 sps:$4 sm:$0xff]  }
 0xa75   : > { %v20767_v23 = vmax.f32 %v9996_v38, 0.0  ;;  %v9998_v13 = vadd.f32 %v9997_v10, %v9957_v58  ;;  %v16632_v58 = vld [vmem:[#allocation17 + $0x300] ss:$8 sps:$4 sm:$0xff]   ;;  %v16640_v10 = vld [vmem:[#allocation17 + $0x3f4] ss:$8 sps:$4 sm:$0xff]  }
 0xa76   : > { %v9999_v44 = vpop.f32.mrf.mxu1 }
 0xa77   : > { %v20769_v48 = vmax.f32 %v9998_v13, 0.0  ;;  %12131 = vmatpush2.bf16.msra.mxu0 %v16584_v7  ;;  %v10210_v43 = vrot.slane %v20767_v23, 5  ;;  %v10223_v50 = vrot.slane %v20767_v23, 6  ;;  %v16637_v7 = vld [vmem:[#allocation17 + $0x2f4] ss:$8 sps:$4 sm:$0xff]  }
 0xa78   : > { %v10000_v8 = vpop.f32.mrf.mxu1  ;;  %12182 = vmatprep.subr.bf16.mxu0 %v16592_v42  ;;  %v16643_v44 = vld [vmem:[#allocation17 + $0x2e4] ss:$8 sps:$4 sm:$0xff]  }
 0xa79   : > { %v10211_v63 = vrot.slane %v20769_v48, 5  ;;  %v10224_v54 = vrot.slane %v20769_v48, 6  ;;  %v10217_v53 = vmul.f32 %v10215_v34, %v10210_v43  ;;  %v10230_v14 = vmul.f32 %v10228_v1, %v10223_v50  ;;  %v16646_v43 = vld [vmem:[#allocation17 + $0x3e4] ss:$8 sps:$4 sm:$0xff]   ;;  %v16641_v8 = vld [vmem:[#allocation17 + $0x2e0] ss:$8 sps:$4 sm:$0xff]  }
 0xa7a   : > { %v10237_v40 = vrot.slane %v20769_v48, 7 }
 0xa7b   : > { %v10218_v22 = vmul.f32 %v10215_v34, %v10211_v63  ;;  %v10231_v59 = vmul.f32 %v10228_v1, %v10224_v54  ;;  %v10219_v0 = vpack.c.bf16 %v10217_v53, %v10217_v53  ;;  %v10232_v62 = vpack.c.bf16 %v10230_v14, %v10230_v14  ;;  %v16635_v34 = vld [vmem:[#allocation17 + $0x2f0] ss:$8 sps:$4 sm:$0xff]   ;;  %v16644_v63 = vld [vmem:[#allocation17 + $0x3e0] ss:$8 sps:$4 sm:$0xff]   ;;  %v16649_v54 = vld [vmem:[#allocation17 + $0x2d4] ss:$8 sps:$4 sm:$0xff]  }
 0xa7c   : > { %v10244_v19 = vmul.f32 %v20776_v20, %v10237_v40  ;;  %v10255_v11 = vmul.f32 %v20778_v6, %v10237_v40  ;;  %v16638_v1 = vld [vmem:[#allocation17 + $0x3f0] ss:$8 sps:$4 sm:$0xff]   ;;  %v16652_v53 = vld [vmem:[#allocation17 + $0x3d4] ss:$8 sps:$4 sm:$0xff]  }
 0xa7d   : > { %v10220_v57 = vpack.c.bf16 %v10218_v22, %v10218_v22  ;;  %v10233_v17 = vpack.c.bf16 %v10231_v59, %v10231_v59  ;;  %v16647_v14 = vld [vmem:[#allocation17 + $0x2d0] ss:$8 sps:$4 sm:$0xff]   ;;  %v16655_v22 = vld [vmem:[#allocation17 + $0x2c4] ss:$8 sps:$4 sm:$0xff]  }
 0xa7e   : > { %v10246_v31 = vpack.c.bf16 %v10244_v19, %v10244_v19  ;;  %v10257_v21 = vpack.c.bf16 %v10255_v11, %v10255_v11  ;;  %v16650_v40 = vld [vmem:[#allocation17 + $0x3d0] ss:$8 sps:$4 sm:$0xff]   ;;  %v16658_v59 = vld [vmem:[#allocation17 + $0x3c4] ss:$8 sps:$4 sm:$0xff]   ;;  %v8347_v19 = vsub.s32 2, %v21243_v36 }
 0xa7f   : > { %12091 = vmatprep.mubr.bf16.mxu1 %v10220_v57  ;;  %12132 = vmatprep.mubr.bf16.mxu0 %v10233_v17  ;;  %v16653_v11 = vld [vmem:[#allocation17 + $0x2c0] ss:$8 sps:$4 sm:$0xff]   ;;  %v16661_v17 = vld [vmem:[#allocation17 + $0x2b4] ss:$8 sps:$4 sm:$0xff]  }
 0xa80   : > { %12092 = vmatmul.mubr.bf16.vlgmr.msra.gmra.mxu1 %v10219_v0  ;;  %12133 = vmatmul.mubr.bf16.vlgmr.msra.gmra.mxu0 %v10232_v62  ;;  %v16656_v57 = vld [vmem:[#allocation17 + $0x3c0] ss:$8 sps:$4 sm:$0xff]   ;;  %v8348_v0 = vrot.slane %v20655_v45, %v8347_v19  ;;  %v16659_v62 = vld [vmem:[#allocation17 + $0x2b0] ss:$8 sps:$4 sm:$0xff]  }
 0xa81   : > { %12142 = vmatpush1.bf16.msra.mxu1 %v16587_v33  ;;  %12183 = vmatpush1.bf16.msra.mxu0 %v16590_v47  ;;  %v16664_v33 = vld [vmem:[#allocation17 + $0x3b4] ss:$8 sps:$4 sm:$0xff]   ;;  %v8351_v47 = vsub.s32 3, %v21243_v36  ;;  %v16707_v19 = vld [vmem:[#allocation17 + $0x430] ss:$8 sps:$4 sm:$0xff]  }
 0xa82   : > { %12173 = vmatprep.mubr.bf16.mxu1 %v10246_v31  ;;  %12214 = vmatprep.mubr.bf16.mxu0 %v10257_v21  ;;  %v16670_v31 = vld [vmem:[#allocation17 + $0x3a4] ss:$8 sps:$4 sm:$0xff]   ;;  %v16673_v36 = vld [vmem:[#allocation17 + $0x294] ss:$8 sps:$4 sm:$0xff]  }
 0xa83   : > { %12143 = vmatprep.subr.bf16.mxu1 %v16595_v16  ;;  %12184 = vmatprep.subr.bf16.mxu0 %v16598_v26  ;;  %v16662_v16 = vld [vmem:[#allocation17 + $0x3b0] ss:$8 sps:$4 sm:$0xff]   ;;  %v16667_v26 = vld [vmem:[#allocation17 + $0x2a4] ss:$8 sps:$4 sm:$0xff]   ;;  %v8352_v21 = vrot.slane %v20655_v45, %v8351_v47  ;;  %v16716_v47 = vld [vmem:[#allocation17 + $0x520] ss:$8 sps:$4 sm:$0xff]  }
 0xa84   : > { %v16674_v45 = vld [vmem:[#allocation17 + $0x390] ss:$8 sps:$4 sm:$0xff]  }
 0xa85   : > { %12144 = vmatpush1.bf16.msra.mxu1 %v16593_v5  ;;  %12185 = vmatpush1.bf16.msra.mxu0 %v16596_v3  ;;  %v16665_v3 = vld [vmem:[#allocation17 + $0x2a0] ss:$8 sps:$4 sm:$0xff]  }
 0xa86   : > { %12145 = vmatprep.subr.bf16.mxu1 %v16601_v60  ;;  %12186 = vmatprep.subr.bf16.mxu0 %v16604_v37  ;;  %v16668_v60 = vld [vmem:[#allocation17 + $0x3a0] ss:$8 sps:$4 sm:$0xff]  }
 0xa89   : > { %12146 = vmatpush1.bf16.msra.mxu1 %v16599_v41  ;;  %12187 = vmatpush1.bf16.msra.mxu0 %v16602_v61  ;;  %v16676_v41 = vld [vmem:[#allocation17 + $0x394] ss:$8 sps:$4 sm:$0xff]  }
 0xa8a   : > { %12147 = vmatprep.subr.bf16.mxu1 %v16607_v39  ;;  %12188 = vmatprep.subr.bf16.mxu0 %v16610_v27 }
 0xa8d   : > { %12148 = vmatpush1.bf16.msra.mxu1 %v16605_v18  ;;  %12189 = vmatpush1.bf16.msra.mxu0 %v16608_v49  ;;  %v16671_v49 = vld [vmem:[#allocation17 + $0x290] ss:$8 sps:$4 sm:$0xff]  }
 0xa8e   : > { %12149 = vmatprep.subr.bf16.mxu1 %v16613_v51  ;;  %12190 = vmatprep.subr.bf16.mxu0 %v16616_v52  ;;  %v16679_v52 = vld [vmem:[#allocation17 + $0x284] ss:$8 sps:$4 sm:$0xff]  }
 0xa91   : > { %12150 = vmatpush1.bf16.msra.mxu1 %v16611_v4  ;;  %12191 = vmatpush1.bf16.msra.mxu0 %v16614_v35  ;;  %v16682_v4 = vld [vmem:[#allocation17 + $0x384] ss:$8 sps:$4 sm:$0xff]   ;;  %v10236_v35 = vrot.slane %v20767_v23, 7 }
 0xa92   : > { %12151 = vmatprep.subr.bf16.mxu1 %v16619_v46  ;;  %12192 = vmatprep.subr.bf16.mxu0 %v16622_v29  ;;  %v10272_v29 = vrot.slane %v20769_v48, 1 }
 0xa95   : > { %12152 = vmatpush1.bf16.msra.mxu1 %v16617_v25  ;;  %12193 = vmatpush1.bf16.msra.mxu0 %v16620_v2  ;;  %v16677_v25 = vld [vmem:[#allocation17 + $0x280] ss:$8 sps:$4 sm:$0xff]  }
 0xa96   : > { %12153 = vmatprep.subr.bf16.mxu1 %v16625_v15  ;;  %12194 = vmatprep.subr.bf16.mxu0 %v16628_v24  ;;  %v16680_v2 = vld [vmem:[#allocation17 + $0x380] ss:$8 sps:$4 sm:$0xff]   ;;  %v20792_v15 = vpop.permute.xlu0 %10262  ;;  %v10243_v24 = vmul.f32 %v20776_v20, %v10236_v35  ;;  %v16686_v20 = vld [vmem:[#allocation17 + $0x570] ss:$8 sps:$4 sm:$0xff]  }
 0xa99   : > { %12154 = vmatpush1.bf16.msra.mxu1 %v16623_v55  ;;  %12195 = vmatpush1.bf16.msra.mxu0 %v16626_v9  ;;  %v10254_v55 = vmul.f32 %v20778_v6, %v10236_v35  ;;  %v16685_v9 = vld [vmem:[#allocation17 + $0x474] ss:$8 sps:$4 sm:$0xff]  }
 0xa9a   : > { %v10036_v38 = vpop.f32.mrf.mxu0  ;;  %12155 = vmatprep.subr.bf16.mxu1 %v16631_v12  ;;  %12196 = vmatprep.subr.bf16.mxu0 %v16634_v32  ;;  %v16688_v12 = vld [vmem:[#allocation17 + $0x574] ss:$8 sps:$4 sm:$0xff]   ;;  %v20796_v32 = vpop.permute.xlu1 %10275 }
 0xa9b   : > { %v10037_v5 = vadd.f32 %v10036_v38, %v8348_v0  ;;  %v16683_v38 = vld [vmem:[#allocation17 + $0x470] ss:$8 sps:$4 sm:$0xff]   ;;  %v16721_v0 = vld [vmem:[#allocation17 + $0x414] ss:$8 sps:$4 sm:$0xff]  }
 0xa9c   : > { %v10038_v42 = vpop.f32.mrf.mxu0 }
 0xa9d   : > { %12156 = vmatpush1.bf16.msra.mxu1 %v16629_v30  ;;  %12197 = vmatpush1.bf16.msra.mxu0 %v16632_v58  ;;  %v10039_v61 = vadd.f32 %v10038_v42, %v8352_v21  ;;  %v10266_v30 = vmul.f32 %v20792_v15, %v20769_v48  ;;  %v10279_v58 = vmul.f32 %v20796_v32, %v10272_v29  ;;  %v16691_v42 = vld [vmem:[#allocation17 + $0x464] ss:$8 sps:$4 sm:$0xff]  }
 0xa9e   : > { %v10040_v13 = vpop.f32.mrf.mxu0  ;;  %12157 = vmatprep.subr.bf16.mxu1 %v16637_v7  ;;  %12198 = vmatprep.subr.bf16.mxu0 %v16640_v10  ;;  %v10245_v7 = vpack.c.bf16 %v10243_v24, %v10243_v24  ;;  %v10256_v10 = vpack.c.bf16 %v10254_v55, %v10254_v55  ;;  %v16730_v21 = vld [vmem:[#allocation17 + $0x504] ss:$8 sps:$4 sm:$0xff]   ;;  %v16746_v24 = vld [vmem:[#allocation17 + $0x5d0] ss:$8 sps:$4 sm:$0xff]  }
 0xa9f   : > { %v10268_v6 = vpack.c.bf16 %v10266_v30, %v10266_v30  ;;  %v16689_v13 = vld [vmem:[#allocation17 + $0x460] ss:$8 sps:$4 sm:$0xff]   ;;  %v16751_v55 = vld [vmem:[#allocation17 + $0x4c4] ss:$8 sps:$4 sm:$0xff]  }
 0xaa0   : > { %v10041_v50 = vpop.f32.mrf.mxu0  ;;  %v16752_v30 = vld [vmem:[#allocation17 + $0x5c0] ss:$8 sps:$4 sm:$0xff]  }
 0xaa1   : > { %12158 = vmatpush2.bf16.msra.mxu1 %v16635_v34  ;;  %12199 = vmatpush2.bf16.msra.mxu0 %v16638_v1  ;;  %v16694_v34 = vld [vmem:[#allocation17 + $0x564] ss:$8 sps:$4 sm:$0xff]   ;;  %v10281_v1 = vpack.c.bf16 %v10279_v58, %v10279_v58  ;;  %v16700_v50 = vld [vmem:[#allocation17 + $0x554] ss:$8 sps:$4 sm:$0xff]  }
 0xaa2   : > { %12159 = vmatprep.subr.bf16.mxu1 %v16643_v44  ;;  %12200 = vmatprep.subr.bf16.mxu0 %v16646_v43  ;;  %v16692_v44 = vld [vmem:[#allocation17 + $0x560] ss:$8 sps:$4 sm:$0xff]   ;;  %v16697_v43 = vld [vmem:[#allocation17 + $0x454] ss:$8 sps:$4 sm:$0xff]  }
 0xaa3   : > { %v16757_v58 = vld [vmem:[#allocation17 + $0x4b4] ss:$8 sps:$4 sm:$0xff]  }
 0xaa5   : > { %12160 = vmatpush2.bf16.msra.mxu1 %v16641_v8  ;;  %12201 = vmatpush2.bf16.msra.mxu0 %v16644_v63  ;;  %v16695_v8 = vld [vmem:[#allocation17 + $0x450] ss:$8 sps:$4 sm:$0xff]  }
 0xaa6   : > { %12161 = vmatprep.subr.bf16.mxu1 %v16649_v54  ;;  %12202 = vmatprep.subr.bf16.mxu0 %v16652_v53  ;;  %v16698_v63 = vld [vmem:[#allocation17 + $0x550] ss:$8 sps:$4 sm:$0xff]   ;;  %v16703_v54 = vld [vmem:[#allocation17 + $0x444] ss:$8 sps:$4 sm:$0xff]  }
 0xaa7   : > { %v16706_v53 = vld [vmem:[#allocation17 + $0x544] ss:$8 sps:$4 sm:$0xff]  }
 0xaa9   : > { %12162 = vmatpush2.bf16.msra.mxu1 %v16647_v14  ;;  %12203 = vmatpush2.bf16.msra.mxu0 %v16650_v40  ;;  %v16701_v14 = vld [vmem:[#allocation17 + $0x440] ss:$8 sps:$4 sm:$0xff]  }
 0xaaa   : > { %12163 = vmatprep.subr.bf16.mxu1 %v16655_v22  ;;  %12204 = vmatprep.subr.bf16.mxu0 %v16658_v59  ;;  %v16704_v40 = vld [vmem:[#allocation17 + $0x540] ss:$8 sps:$4 sm:$0xff]   ;;  %v16709_v22 = vld [vmem:[#allocation17 + $0x434] ss:$8 sps:$4 sm:$0xff]  }
 0xaab   : > { %v16712_v59 = vld [vmem:[#allocation17 + $0x534] ss:$8 sps:$4 sm:$0xff]  }
 0xaad   : > { %12164 = vmatpush2.bf16.msra.mxu1 %v16653_v11  ;;  %12205 = vmatpush2.bf16.msra.mxu0 %v16656_v57  ;;  %v16710_v11 = vld [vmem:[#allocation17 + $0x530] ss:$8 sps:$4 sm:$0xff]   ;;  %v16715_v57 = vld [vmem:[#allocation17 + $0x424] ss:$8 sps:$4 sm:$0xff]  }
 0xaae   : > { %12165 = vmatprep.subr.bf16.mxu1 %v16661_v17  ;;  %12206 = vmatprep.subr.bf16.mxu0 %v16664_v33  ;;  %v16718_v17 = vld [vmem:[#allocation17 + $0x524] ss:$8 sps:$4 sm:$0xff]   ;;  %v16713_v33 = vld [vmem:[#allocation17 + $0x420] ss:$8 sps:$4 sm:$0xff]  }
 0xab1   : > { %12166 = vmatpush2.bf16.msra.mxu1 %v16659_v62  ;;  %12207 = vmatpush2.bf16.msra.mxu0 %v16662_v16  ;;  %v16724_v62 = vld [vmem:[#allocation17 + $0x514] ss:$8 sps:$4 sm:$0xff]   ;;  %v16719_v16 = vld [vmem:[#allocation17 + $0x410] ss:$8 sps:$4 sm:$0xff]  }
 0xab2   : > { %v10077_v37 = vpop.f32.mrf.mxu1  ;;  %12167 = vmatprep.subr.bf16.mxu1 %v16667_v26  ;;  %12208 = vmatprep.subr.bf16.mxu0 %v16670_v31  ;;  %v16722_v26 = vld [vmem:[#allocation17 + $0x510] ss:$8 sps:$4 sm:$0xff]   ;;  %v16727_v31 = vld [vmem:[#allocation17 + $0x404] ss:$8 sps:$4 sm:$0xff]  }
 0xab3   : > { %v20786_v39 = vadd.f32 %v10077_v37, %v10037_v5  ;;  %v16725_v5 = vld [vmem:[#allocation17 + $0x400] ss:$8 sps:$4 sm:$0xff]   ;;  %v16733_v37 = vld [vmem:[#allocation17 + $0x4f4] ss:$8 sps:$4 sm:$0xff]  }
 0xab4   : > { %v10079_v27 = vpop.f32.mrf.mxu1 }
 0xab5   : > { %v20788_v18 = vadd.f32 %v10079_v27, %v10039_v61  ;;  %12168 = vmatpush2.bf16.msra.mxu1 %v16665_v3  ;;  %12209 = vmatpush2.bf16.msra.mxu0 %v16668_v60  ;;  %v16728_v60 = vld [vmem:[#allocation17 + $0x500] ss:$8 sps:$4 sm:$0xff]  }
 0xab6   : > { %v10081_v51 = vpop.f32.mrf.mxu1  ;;  %12169 = vmatprep.subr.bf16.mxu1 %v16673_v36  ;;  %12210 = vmatprep.subr.bf16.mxu0 %v16676_v41  ;;  %v16736_v41 = vld [vmem:[#allocation17 + $0x5f4] ss:$8 sps:$4 sm:$0xff]  }
 0xab7   : > { %v16734_v51 = vld [vmem:[#allocation17 + $0x5f0] ss:$8 sps:$4 sm:$0xff]  }
 0xab8   : > { %v10082_v46 = vpop.f32.mrf.mxu1 }
 0xab9   : > { %12170 = vmatpush2.bf16.msra.mxu1 %v16671_v49  ;;  %12211 = vmatpush2.bf16.msra.mxu0 %v16674_v45  ;;  %v16731_v49 = vld [vmem:[#allocation17 + $0x4f0] ss:$8 sps:$4 sm:$0xff]   ;;  %v16737_v46 = vld [vmem:[#allocation17 + $0x4e0] ss:$8 sps:$4 sm:$0xff]  }
 0xaba   : > { %12171 = vmatprep.subr.bf16.mxu1 %v16679_v52  ;;  %12212 = vmatprep.subr.bf16.mxu0 %v16682_v4  ;;  %v16739_v52 = vld [vmem:[#allocation17 + $0x4e4] ss:$8 sps:$4 sm:$0xff]  }
 0xabb   : > { %v16742_v4 = vld [vmem:[#allocation17 + $0x5e4] ss:$8 sps:$4 sm:$0xff]  }
 0xabd   : > { %12172 = vmatpush2.bf16.msra.mxu1 %v16677_v25  ;;  %12213 = vmatpush2.bf16.msra.mxu0 %v16680_v2  ;;  %v16745_v25 = vld [vmem:[#allocation17 + $0x4d4] ss:$8 sps:$4 sm:$0xff]  }
 0xabe   : > { %12223 = vmatprep.subr.bf16.mxu1 %v16685_v9  ;;  %12264 = vmatprep.subr.bf16.mxu0 %v16688_v12  ;;  %v16748_v2 = vld [vmem:[#allocation17 + $0x5d4] ss:$8 sps:$4 sm:$0xff]   ;;  %v16754_v9 = vld [vmem:[#allocation17 + $0x5c4] ss:$8 sps:$4 sm:$0xff]   ;;  %v16749_v12 = vld [vmem:[#allocation17 + $0x4c0] ss:$8 sps:$4 sm:$0xff]  }
 0xac0   : > { %12174 = vmatmul.mubr.bf16.vlgmr.msra.gmra.mxu1 %v10245_v7  ;;  %12215 = vmatmul.mubr.bf16.vlgmr.msra.gmra.mxu0 %v10256_v10  ;;  %v16755_v7 = vld [vmem:[#allocation17 + $0x4b0] ss:$8 sps:$4 sm:$0xff]  }
 0xac1   : > { %12224 = vmatpush1.bf16.msra.mxu1 %v16683_v38  ;;  %12255 = vmatprep.mubr.bf16.mxu1 %v10268_v6  ;;  %v16760_v38 = vld [vmem:[#allocation17 + $0x5b4] ss:$8 sps:$4 sm:$0xff]   ;;  %v16758_v10 = vld [vmem:[#allocation17 + $0x5b0] ss:$8 sps:$4 sm:$0xff]   ;;  %v16766_v6 = vld [vmem:[#allocation17 + $0x5a4] ss:$8 sps:$4 sm:$0xff]  }
 0xac2   : > { %12265 = vmatpush1.bf16.msra.mxu0 %v16686_v20  ;;  %12296 = vmatprep.mubr.bf16.mxu0 %v10281_v1  ;;  %v16763_v20 = vld [vmem:[#allocation17 + $0x4a4] ss:$8 sps:$4 sm:$0xff]   ;;  %v16764_v1 = vld [vmem:[#allocation17 + $0x5a0] ss:$8 sps:$4 sm:$0xff]  }
 0xac3   : > { %12225 = vmatprep.subr.bf16.mxu1 %v16691_v42  ;;  %12266 = vmatprep.subr.bf16.mxu0 %v16694_v34  ;;  %v16761_v42 = vld [vmem:[#allocation17 + $0x4a0] ss:$8 sps:$4 sm:$0xff]  }
 0xac5   : > { %12226 = vmatpush1.bf16.msra.mxu1 %v16689_v13  ;;  %v16769_v13 = vld [vmem:[#allocation17 + $0x494] ss:$8 sps:$4 sm:$0xff]  }
 0xac6   : > { %12267 = vmatpush1.bf16.msra.mxu0 %v16692_v44  ;;  %12227 = vmatprep.subr.bf16.mxu1 %v16697_v43  ;;  %v16772_v43 = vld [vmem:[#allocation17 + $0x594] ss:$8 sps:$4 sm:$0xff]  }
 0xac7   : > { %12268 = vmatprep.subr.bf16.mxu0 %v16700_v50 }
 0xac9   : > { %12228 = vmatpush1.bf16.msra.mxu1 %v16695_v8 }
 0xaca   : > { %12269 = vmatpush1.bf16.msra.mxu0 %v16698_v63  ;;  %12229 = vmatprep.subr.bf16.mxu1 %v16703_v54  ;;  %v16767_v63 = vld [vmem:[#allocation17 + $0x490] ss:$8 sps:$4 sm:$0xff]  }
 0xacb   : > { %12270 = vmatprep.subr.bf16.mxu0 %v16706_v53  ;;  %v16770_v53 = vld [vmem:[#allocation17 + $0x590] ss:$8 sps:$4 sm:$0xff]  }
 0xacd   : > { %12230 = vmatpush1.bf16.msra.mxu1 %v16701_v14  ;;  %v16775_v14 = vld [vmem:[#allocation17 + $0x484] ss:$8 sps:$4 sm:$0xff]  }
 0xace   : > { %12271 = vmatpush1.bf16.msra.mxu0 %v16704_v40  ;;  %12231 = vmatprep.subr.bf16.mxu1 %v16709_v22  ;;  %v16778_v40 = vld [vmem:[#allocation17 + $0x584] ss:$8 sps:$4 sm:$0xff]   ;;  %v10271_v22 = vrot.slane %v20767_v23, 1 }
 0xacf   : > { %12272 = vmatprep.subr.bf16.mxu0 %v16712_v59 }
 0xad1   : > { %12232 = vmatpush1.bf16.msra.mxu1 %v16707_v19  ;;  %v16773_v19 = vld [vmem:[#allocation17 + $0x480] ss:$8 sps:$4 sm:$0xff]  }
 0xad2   : > { %12273 = vmatpush1.bf16.msra.mxu0 %v16710_v11  ;;  %12233 = vmatprep.subr.bf16.mxu1 %v16715_v57  ;;  %v10296_v11 = vrot.slane %v20769_v48, 2 }
 0xad3   : > { %12274 = vmatprep.subr.bf16.mxu0 %v16718_v17  ;;  %v16776_v17 = vld [vmem:[#allocation17 + $0x580] ss:$8 sps:$4 sm:$0xff]  }
 0xad5   : > { %12234 = vmatpush1.bf16.msra.mxu1 %v16713_v33  ;;  %v10265_v33 = vmul.f32 %v20792_v15, %v20767_v23  ;;  %v16779_v15 = vld [vmem:[#allocation17 + $0x670] ss:$8 sps:$4 sm:$0xff]  }
 0xad6   : > { %12275 = vmatpush1.bf16.msra.mxu0 %v16716_v47  ;;  %12235 = vmatprep.subr.bf16.mxu1 %v16721_v0  ;;  %v16781_v47 = vld [vmem:[#allocation17 + $0x674] ss:$8 sps:$4 sm:$0xff]   ;;  %v20809_v0 = vpop.permute.xlu0 %10286 }
 0xad7   : > { %12276 = vmatprep.subr.bf16.mxu0 %v16724_v62 }
 0xad9   : > { %12236 = vmatpush1.bf16.msra.mxu1 %v16719_v16  ;;  %v10278_v16 = vmul.f32 %v20796_v32, %v10271_v22 }
 0xada   : > { %12277 = vmatpush1.bf16.msra.mxu0 %v16722_v26  ;;  %v10118_v3 = vpop.f32.mrf.mxu0  ;;  %12237 = vmatprep.subr.bf16.mxu1 %v16727_v31  ;;  %v16784_v26 = vld [vmem:[#allocation17 + $0x774] ss:$8 sps:$4 sm:$0xff]   ;;  %v20816_v31 = vpop.permute.xlu1 %10299 }
 0xadb   : > { %v10119_v36 = vadd.f32 %v10118_v3, %v20786_v39  ;;  %12278 = vmatprep.subr.bf16.mxu0 %v16730_v21  ;;  %v16740_v39 = vld [vmem:[#allocation17 + $0x5e0] ss:$8 sps:$4 sm:$0xff]   ;;  %v10280_v32 = vpack.c.bf16 %v10278_v16, %v10278_v16 }
 0xadc   : > { %v10120_v61 = vpop.f32.mrf.mxu0  ;;  %v16845_v16 = vld [vmem:[#allocation17 + $0x6c0] ss:$8 sps:$4 sm:$0xff]  }
 0xadd   : > { %v10121_v27 = vadd.f32 %v10120_v61, %v20788_v18  ;;  %12238 = vmatpush1.bf16.msra.mxu1 %v16725_v5  ;;  %v16743_v18 = vld [vmem:[#allocation17 + $0x4d0] ss:$8 sps:$4 sm:$0xff]   ;;  %v10290_v5 = vmul.f32 %v20809_v0, %v10272_v29  ;;  %v16787_v61 = vld [vmem:[#allocation17 + $0x664] ss:$8 sps:$4 sm:$0xff]  }
 0xade   : > { %12279 = vmatpush1.bf16.msra.mxu0 %v16728_v60  ;;  %v10122_v45 = vpop.f32.mrf.mxu0  ;;  %12239 = vmatprep.subr.bf16.mxu1 %v16733_v37  ;;  %v10303_v60 = vmul.f32 %v20816_v31, %v10296_v11  ;;  %v16844_v11 = vld [vmem:[#allocation17 + $0x7d4] ss:$8 sps:$4 sm:$0xff]  }
 0xadf   : > { %12280 = vmatprep.subr.bf16.mxu0 %v16736_v41  ;;  %v16782_v41 = vld [vmem:[#allocation17 + $0x770] ss:$8 sps:$4 sm:$0xff]   ;;  %v16790_v45 = vld [vmem:[#allocation17 + $0x764] ss:$8 sps:$4 sm:$0xff]  }
 0xae0   : > { %v10123_v35 = vpop.f32.mrf.mxu0  ;;  %v10305_v29 = vpack.c.bf16 %v10303_v60, %v10303_v60  ;;  %v16854_v60 = vld [vmem:[#allocation17 + $0x7b0] ss:$8 sps:$4 sm:$0xff]  }
 0xae1   : > { %12240 = vmatpush2.bf16.msra.mxu1 %v16731_v49  ;;  %v10292_v49 = vpack.c.bf16 %v10290_v5, %v10290_v5  ;;  %v16796_v35 = vld [vmem:[#allocation17 + $0x754] ss:$8 sps:$4 sm:$0xff]  }
 0xae2   : > { %12281 = vmatpush2.bf16.msra.mxu0 %v16734_v51  ;;  %12241 = vmatprep.subr.bf16.mxu1 %v16739_v52  ;;  %v16785_v51 = vld [vmem:[#allocation17 + $0x660] ss:$8 sps:$4 sm:$0xff]   ;;  %v16856_v5 = vld [vmem:[#allocation17 + $0x7b4] ss:$8 sps:$4 sm:$0xff]  }
 0xae3   : > { %12282 = vmatprep.subr.bf16.mxu0 %v16742_v4  ;;  %v16788_v52 = vld [vmem:[#allocation17 + $0x760] ss:$8 sps:$4 sm:$0xff]   ;;  %v16793_v4 = vld [vmem:[#allocation17 + $0x654] ss:$8 sps:$4 sm:$0xff]  }
 0xae5   : > { %12242 = vmatpush2.bf16.msra.mxu1 %v16737_v46  ;;  %v16791_v46 = vld [vmem:[#allocation17 + $0x650] ss:$8 sps:$4 sm:$0xff]  }
 0xae6   : > { %12283 = vmatpush2.bf16.msra.mxu0 %v16740_v39  ;;  %12243 = vmatprep.subr.bf16.mxu1 %v16745_v25  ;;  %v16794_v39 = vld [vmem:[#allocation17 + $0x750] ss:$8 sps:$4 sm:$0xff]   ;;  %v16799_v25 = vld [vmem:[#allocation17 + $0x644] ss:$8 sps:$4 sm:$0xff]  }
 0xae7   : > { %12284 = vmatprep.subr.bf16.mxu0 %v16748_v2  ;;  %v16802_v2 = vld [vmem:[#allocation17 + $0x744] ss:$8 sps:$4 sm:$0xff]  }
 0xae9   : > { %12244 = vmatpush2.bf16.msra.mxu1 %v16743_v18  ;;  %v16797_v18 = vld [vmem:[#allocation17 + $0x640] ss:$8 sps:$4 sm:$0xff]  }
 0xaea   : > { %12285 = vmatpush2.bf16.msra.mxu0 %v16746_v24  ;;  %12245 = vmatprep.subr.bf16.mxu1 %v16751_v55  ;;  %v16800_v24 = vld [vmem:[#allocation17 + $0x740] ss:$8 sps:$4 sm:$0xff]   ;;  %v16805_v55 = vld [vmem:[#allocation17 + $0x634] ss:$8 sps:$4 sm:$0xff]  }
 0xaeb   : > { %12286 = vmatprep.subr.bf16.mxu0 %v16754_v9  ;;  %v16808_v9 = vld [vmem:[#allocation17 + $0x734] ss:$8 sps:$4 sm:$0xff]  }
 0xaed   : > { %12246 = vmatpush2.bf16.msra.mxu1 %v16749_v12  ;;  %v16803_v12 = vld [vmem:[#allocation17 + $0x630] ss:$8 sps:$4 sm:$0xff]  }
 0xaee   : > { %12287 = vmatpush2.bf16.msra.mxu0 %v16752_v30  ;;  %12247 = vmatprep.subr.bf16.mxu1 %v16757_v58  ;;  %v16806_v30 = vld [vmem:[#allocation17 + $0x730] ss:$8 sps:$4 sm:$0xff]   ;;  %v16811_v58 = vld [vmem:[#allocation17 + $0x624] ss:$8 sps:$4 sm:$0xff]  }
 0xaef   : > { %12288 = vmatprep.subr.bf16.mxu0 %v16760_v38  ;;  %v16814_v38 = vld [vmem:[#allocation17 + $0x724] ss:$8 sps:$4 sm:$0xff]  }
 0xaf1   : > { %12248 = vmatpush2.bf16.msra.mxu1 %v16755_v7  ;;  %v16809_v7 = vld [vmem:[#allocation17 + $0x620] ss:$8 sps:$4 sm:$0xff]  }
 0xaf2   : > { %12289 = vmatpush2.bf16.msra.mxu0 %v16758_v10  ;;  %v10159_v34 = vpop.f32.mrf.mxu1  ;;  %12249 = vmatprep.subr.bf16.mxu1 %v16763_v20  ;;  %v16812_v10 = vld [vmem:[#allocation17 + $0x720] ss:$8 sps:$4 sm:$0xff]   ;;  %v16817_v20 = vld [vmem:[#allocation17 + $0x614] ss:$8 sps:$4 sm:$0xff]  }
 0xaf3   : > { %v10160_v44 = vadd.f32 %v10159_v34, %v10119_v36  ;;  %12290 = vmatprep.subr.bf16.mxu0 %v16766_v6  ;;  %v10267_v36 = vpack.c.bf16 %v10265_v33, %v10265_v33  ;;  %v16820_v6 = vld [vmem:[#allocation17 + $0x714] ss:$8 sps:$4 sm:$0xff]   ;;  %v16818_v34 = vld [vmem:[#allocation17 + $0x710] ss:$8 sps:$4 sm:$0xff]   ;;  %v16847_v33 = vld [vmem:[#allocation17 + $0x6c4] ss:$8 sps:$4 sm:$0xff]  }
 0xaf4   : > { %v10161_v50 = vpop.f32.mrf.mxu1 }
 0xaf5   : > { %v10162_v8 = vadd.f32 %v10161_v50, %v10121_v27  ;;  %12250 = vmatpush2.bf16.msra.mxu1 %v16761_v42  ;;  %v16815_v42 = vld [vmem:[#allocation17 + $0x610] ss:$8 sps:$4 sm:$0xff]   ;;  %v16829_v50 = vld [vmem:[#allocation17 + $0x6f4] ss:$8 sps:$4 sm:$0xff]  }
 0xaf6   : > { %12291 = vmatpush2.bf16.msra.mxu0 %v16764_v1  ;;  %v10163_v54 = vpop.f32.mrf.mxu1  ;;  %12251 = vmatprep.subr.bf16.mxu1 %v16769_v13  ;;  %v16823_v1 = vld [vmem:[#allocation17 + $0x604] ss:$8 sps:$4 sm:$0xff]  }
 0xaf7   : > { %12292 = vmatprep.subr.bf16.mxu0 %v16772_v43  ;;  %v16826_v13 = vld [vmem:[#allocation17 + $0x704] ss:$8 sps:$4 sm:$0xff]   ;;  %v16824_v43 = vld [vmem:[#allocation17 + $0x700] ss:$8 sps:$4 sm:$0xff]   ;;  %v16830_v54 = vld [vmem:[#allocation17 + $0x7f0] ss:$8 sps:$4 sm:$0xff]  }
 0xaf8   : > { %v10164_v59 = vpop.f32.mrf.mxu1 }
 0xaf9   : > { %12252 = vmatpush2.bf16.msra.mxu1 %v16767_v63  ;;  %v16827_v63 = vld [vmem:[#allocation17 + $0x6f0] ss:$8 sps:$4 sm:$0xff]   ;;  %v16836_v59 = vld [vmem:[#allocation17 + $0x7e0] ss:$8 sps:$4 sm:$0xff]  }
 0xafa   : > { %12293 = vmatpush2.bf16.msra.mxu0 %v16770_v53  ;;  %v10200_v57 = vpop.f32.mrf.mxu0  ;;  %12253 = vmatprep.subr.bf16.mxu1 %v16775_v14  ;;  %v16835_v53 = vld [vmem:[#allocation17 + $0x6e4] ss:$8 sps:$4 sm:$0xff]  }
 0xafb   : > { %v20811_v62 = vadd.f32 %v10200_v57, %v10160_v44  ;;  %12294 = vmatprep.subr.bf16.mxu0 %v16778_v40  ;;  %v16821_v44 = vld [vmem:[#allocation17 + $0x600] ss:$8 sps:$4 sm:$0xff]   ;;  %v16838_v14 = vld [vmem:[#allocation17 + $0x7e4] ss:$8 sps:$4 sm:$0xff]   ;;  %v16839_v57 = vld [vmem:[#allocation17 + $0x6d0] ss:$8 sps:$4 sm:$0xff]  }
 0xafc   : > { %v10202_v21 = vpop.f32.mrf.mxu0  ;;  %v16833_v40 = vld [vmem:[#allocation17 + $0x6e0] ss:$8 sps:$4 sm:$0xff]  }
 0xafd   : > { %v20821_v3 = vadd.f32 %v10202_v21, %v10162_v8  ;;  %12254 = vmatpush2.bf16.msra.mxu1 %v16773_v19  ;;  %v16832_v8 = vld [vmem:[#allocation17 + $0x7f4] ss:$8 sps:$4 sm:$0xff]  }
 0xafe   : > { %12295 = vmatpush2.bf16.msra.mxu0 %v16776_v17  ;;  %v10204_v37 = vpop.f32.mrf.mxu0  ;;  %12305 = vmatprep.subr.bf16.mxu1 %v16781_v47  ;;  %v16841_v19 = vld [vmem:[#allocation17 + $0x6d4] ss:$8 sps:$4 sm:$0xff]   ;;  %v16842_v17 = vld [vmem:[#allocation17 + $0x7d0] ss:$8 sps:$4 sm:$0xff]   ;;  %v16850_v47 = vld [vmem:[#allocation17 + $0x7c4] ss:$8 sps:$4 sm:$0xff]  }
 0xaff   : > { %12346 = vmatprep.subr.bf16.mxu0 %v16784_v26  ;;  %v16848_v26 = vld [vmem:[#allocation17 + $0x7c0] ss:$8 sps:$4 sm:$0xff]   ;;  %v16853_v21 = vld [vmem:[#allocation17 + $0x6b4] ss:$8 sps:$4 sm:$0xff]   ;;  %v16859_v37 = vld [vmem:[#allocation17 + $0x6a4] ss:$8 sps:$4 sm:$0xff]  }
 0xb00   : > { %12256 = vmatmul.mubr.bf16.vlgmr.msra.gmra.mxu1 %v10267_v36  ;;  %v10205_v27 = vpop.f32.mrf.mxu0  ;;  %v16862_v36 = vld [vmem:[#allocation17 + $0x7a4] ss:$8 sps:$4 sm:$0xff]  }
 0xb01   : > { %12297 = vmatmul.mubr.bf16.vlgmr.msra.gmra.mxu0 %v10280_v32  ;;  %12306 = vmatpush1.bf16.msra.mxu1 %v16779_v15  ;;  %v16851_v15 = vld [vmem:[#allocation17 + $0x6b0] ss:$8 sps:$4 sm:$0xff]   ;;  %v16860_v32 = vld [vmem:[#allocation17 + $0x7a0] ss:$8 sps:$4 sm:$0xff]   ;;  %v16868_v27 = vld [vmem:[#allocation17 + $0x794] ss:$8 sps:$4 sm:$0xff]  }
 0xb02   : > { %12337 = vmatprep.mubr.bf16.mxu1 %v10292_v49  ;;  %12347 = vmatpush1.bf16.msra.mxu0 %v16782_v41  ;;  %v16857_v41 = vld [vmem:[#allocation17 + $0x6a0] ss:$8 sps:$4 sm:$0xff]   ;;  %v16863_v49 = vld [vmem:[#allocation17 + $0x690] ss:$8 sps:$4 sm:$0xff]  }
 0xb03   : > { %12378 = vmatprep.mubr.bf16.mxu0 %v10305_v29  ;;  %12307 = vmatprep.subr.bf16.mxu1 %v16787_v61  ;;  %v16865_v61 = vld [vmem:[#allocation17 + $0x694] ss:$8 sps:$4 sm:$0xff]   ;;  %v16871_v29 = vld [vmem:[#allocation17 + $0x684] ss:$8 sps:$4 sm:$0xff]  }
 0xb04   : > { %12348 = vmatprep.subr.bf16.mxu0 %v16790_v45  ;;  %v16866_v45 = vld [vmem:[#allocation17 + $0x790] ss:$8 sps:$4 sm:$0xff]  }
 0xb05   : > { %12308 = vmatpush1.bf16.msra.mxu1 %v16785_v51  ;;  %v16874_v51 = vld [vmem:[#allocation17 + $0x784] ss:$8 sps:$4 sm:$0xff]  }
 0xb06   : > { %12349 = vmatpush1.bf16.msra.mxu0 %v16788_v52  ;;  %12309 = vmatprep.subr.bf16.mxu1 %v16793_v4  ;;  %v10295_v52 = vrot.slane %v20767_v23, 2  ;;  %v10309_v4 = vrot.slane %v20769_v48, 3  ;;  %v16875_v48 = vld [vmem:[#allocation17 + $0x870] ss:$8 sps:$4 sm:$0xff]  }
 0xb07   : > { %12350 = vmatprep.subr.bf16.mxu0 %v16796_v35  ;;  %v16869_v35 = vld [vmem:[#allocation17 + $0x680] ss:$8 sps:$4 sm:$0xff]  }
 0xb09   : > { %12310 = vmatpush1.bf16.msra.mxu1 %v16791_v46  ;;  %v16872_v46 = vld [vmem:[#allocation17 + $0x780] ss:$8 sps:$4 sm:$0xff]  }
 0xb0a   : > { %12351 = vmatpush1.bf16.msra.mxu0 %v16794_v39  ;;  %12311 = vmatprep.subr.bf16.mxu1 %v16799_v25  ;;  %v10289_v39 = vmul.f32 %v20809_v0, %v10271_v22  ;;  %v16877_v25 = vld [vmem:[#allocation17 + $0x874] ss:$8 sps:$4 sm:$0xff]  }
 0xb0b   : > { %12352 = vmatprep.subr.bf16.mxu0 %v16802_v2  ;;  %v10607_v2 = vld [vmem:[#allocation19] sm:$0x3] }
 0xb0c   : > { %v10616_v22 = vrot.slane %v10607_v2, %v21241_v28  ;;  %v16881_v28 = vld [vmem:[#allocation17 + $0x850] ss:$8 sps:$4 sm:$0xff]  }
 0xb0d   : > { %12312 = vmatpush1.bf16.msra.mxu1 %v16797_v18  ;;  %v20829_v18 = vpop.permute.xlu0 %10312 }
 0xb0e   : > { %12353 = vmatpush1.bf16.msra.mxu0 %v16800_v24  ;;  %12313 = vmatprep.subr.bf16.mxu1 %v16805_v55  ;;  %v10302_v24 = vmul.f32 %v20816_v31, %v10295_v52  ;;  %v10316_v55 = vmul.f32 %v20829_v18, %v10309_v4  ;;  %v16878_v31 = vld [vmem:[#allocation17 + $0x860] ss:$8 sps:$4 sm:$0xff]  }
 0xb0f   : > { %12354 = vmatprep.subr.bf16.mxu0 %v16808_v9  ;;  %v10612_v9 = vrot.slane %v10607_v2, %v21242_v56  ;;  %v16883_v56 = vld [vmem:[#allocation17 + $0x854] ss:$8 sps:$4 sm:$0xff]  }
 0xb11   : > { %12314 = vmatpush1.bf16.msra.mxu1 %v16803_v12  ;;  %v10291_v12 = vpack.c.bf16 %v10289_v39, %v10289_v39 }
 0xb12   : > { %12355 = vmatpush1.bf16.msra.mxu0 %v16806_v30  ;;  %12315 = vmatprep.subr.bf16.mxu1 %v16811_v58  ;;  %v16880_v30 = vld [vmem:[#allocation17 + $0x864] ss:$8 sps:$4 sm:$0xff]   ;;  %v10304_v58 = vpack.c.bf16 %v10302_v24, %v10302_v24 }
 0xb13   : > { %12356 = vmatprep.subr.bf16.mxu0 %v16814_v38 }
 0xb15   : > { %12316 = vmatpush1.bf16.msra.mxu1 %v16809_v7  ;;  %v10318_v7 = vpack.c.bf16 %v10316_v55, %v10316_v55 }
 0xb16   : > { %12357 = vmatpush1.bf16.msra.mxu0 %v16812_v10  ;;  %12317 = vmatprep.subr.bf16.mxu1 %v16817_v20 }
 0xb17   : > { %12358 = vmatprep.subr.bf16.mxu0 %v16820_v6 }
 0xb19   : > { %12318 = vmatpush1.bf16.msra.mxu1 %v16815_v42 }
 0xb1a   : > { %12359 = vmatpush1.bf16.msra.mxu0 %v16818_v34  ;;  %12319 = vmatprep.subr.bf16.mxu1 %v16823_v1 }
 0xb1b   : > { %12360 = vmatprep.subr.bf16.mxu0 %v16826_v13 }
 0xb1d   : > { %12320 = vmatpush1.bf16.msra.mxu1 %v16821_v44 }
 0xb1e   : > { %12361 = vmatpush1.bf16.msra.mxu0 %v16824_v43  ;;  %12321 = vmatprep.subr.bf16.mxu1 %v16829_v50 }
 0xb1f   : > { %12362 = vmatprep.subr.bf16.mxu0 %v16832_v8  ;;  %v16886_v8 = vld [vmem:[#allocation17 + $0x844] ss:$8 sps:$4 sm:$0xff]  }
 0xb21   : > { %12322 = vmatpush2.bf16.msra.mxu1 %v16827_v63  ;;  %v16884_v63 = vld [vmem:[#allocation17 + $0x840] ss:$8 sps:$4 sm:$0xff]  }
 0xb22   : > { %12363 = vmatpush2.bf16.msra.mxu0 %v16830_v54  ;;  %12323 = vmatprep.subr.bf16.mxu1 %v16835_v53  ;;  %v16889_v54 = vld [vmem:[#allocation17 + $0x834] ss:$8 sps:$4 sm:$0xff]   ;;  %v16887_v53 = vld [vmem:[#allocation17 + $0x830] ss:$8 sps:$4 sm:$0xff]  }
 0xb23   : > { %12364 = vmatprep.subr.bf16.mxu0 %v16838_v14  ;;  %v16892_v14 = vld [vmem:[#allocation17 + $0x824] ss:$8 sps:$4 sm:$0xff]  }
 0xb25   : > { %12324 = vmatpush2.bf16.msra.mxu1 %v16833_v40  ;;  %v16890_v40 = vld [vmem:[#allocation17 + $0x820] ss:$8 sps:$4 sm:$0xff]  }
 0xb26   : > { %12365 = vmatpush2.bf16.msra.mxu0 %v16836_v59  ;;  %12325 = vmatprep.subr.bf16.mxu1 %v16841_v19  ;;  %v16895_v59 = vld [vmem:[#allocation17 + $0x814] ss:$8 sps:$4 sm:$0xff]   ;;  %v16893_v19 = vld [vmem:[#allocation17 + $0x810] ss:$8 sps:$4 sm:$0xff]  }
 0xb27   : > { %12366 = vmatprep.subr.bf16.mxu0 %v16844_v11  ;;  %v16898_v11 = vld [vmem:[#allocation17 + $0x804] ss:$8 sps:$4 sm:$0xff]  }
 0xb29   : > { %12326 = vmatpush2.bf16.msra.mxu1 %v16839_v57  ;;  %v16896_v57 = vld [vmem:[#allocation17 + $0x800] ss:$8 sps:$4 sm:$0xff]  }
 0xb2a   : > { %12367 = vmatpush2.bf16.msra.mxu0 %v16842_v17  ;;  %12327 = vmatprep.subr.bf16.mxu1 %v16847_v33  ;;  %v16901_v17 = vld [vmem:[#allocation17 + $0x8f4] ss:$8 sps:$4 sm:$0xff]   ;;  %v16899_v33 = vld [vmem:[#allocation17 + $0x8f0] ss:$8 sps:$4 sm:$0xff]  }
 0xb2b   : > { %12368 = vmatprep.subr.bf16.mxu0 %v16850_v47  ;;  %v16904_v47 = vld [vmem:[#allocation17 + $0x8e4] ss:$8 sps:$4 sm:$0xff]  }
 0xb2d   : > { %12328 = vmatpush2.bf16.msra.mxu1 %v16845_v16  ;;  %v16902_v16 = vld [vmem:[#allocation17 + $0x8e0] ss:$8 sps:$4 sm:$0xff]  }
 0xb2e   : > { %12369 = vmatpush2.bf16.msra.mxu0 %v16848_v26  ;;  %12329 = vmatprep.subr.bf16.mxu1 %v16853_v21  ;;  %v16907_v26 = vld [vmem:[#allocation17 + $0x8d4] ss:$8 sps:$4 sm:$0xff]   ;;  %v16905_v21 = vld [vmem:[#allocation17 + $0x8d0] ss:$8 sps:$4 sm:$0xff]  }
 0xb2f   : > { %12370 = vmatprep.subr.bf16.mxu0 %v16856_v5  ;;  %v16910_v5 = vld [vmem:[#allocation17 + $0x8c4] ss:$8 sps:$4 sm:$0xff]  }
 0xb31   : > { %12330 = vmatpush2.bf16.msra.mxu1 %v16851_v15  ;;  %v16908_v15 = vld [vmem:[#allocation17 + $0x8c0] ss:$8 sps:$4 sm:$0xff]  }
 0xb32   : > { %12371 = vmatpush2.bf16.msra.mxu0 %v16854_v60  ;;  %12331 = vmatprep.subr.bf16.mxu1 %v16859_v37  ;;  %v16913_v60 = vld [vmem:[#allocation17 + $0x8b4] ss:$8 sps:$4 sm:$0xff]   ;;  %v16911_v37 = vld [vmem:[#allocation17 + $0x8b0] ss:$8 sps:$4 sm:$0xff]  }
 0xb33   : > { %12372 = vmatprep.subr.bf16.mxu0 %v16862_v36  ;;  %v16916_v36 = vld [vmem:[#allocation17 + $0x8a4] ss:$8 sps:$4 sm:$0xff]  }
 0xb35   : > { %12332 = vmatpush2.bf16.msra.mxu1 %v16857_v41  ;;  %v16914_v41 = vld [vmem:[#allocation17 + $0x8a0] ss:$8 sps:$4 sm:$0xff]  }
 0xb36   : > { %12373 = vmatpush2.bf16.msra.mxu0 %v16860_v32  ;;  %12333 = vmatprep.subr.bf16.mxu1 %v16865_v61  ;;  %v16919_v32 = vld [vmem:[#allocation17 + $0x894] ss:$8 sps:$4 sm:$0xff]   ;;  %v16917_v61 = vld [vmem:[#allocation17 + $0x890] ss:$8 sps:$4 sm:$0xff]  }
 0xb37   : > { %12374 = vmatprep.subr.bf16.mxu0 %v16868_v27  ;;  %v16922_v27 = vld [vmem:[#allocation17 + $0x884] ss:$8 sps:$4 sm:$0xff]  }
 0xb39   : > { %12334 = vmatpush2.bf16.msra.mxu1 %v16863_v49  ;;  %v10308_v49 = vrot.slane %v20767_v23, 3 }
 0xb3a   : > { %12375 = vmatpush2.bf16.msra.mxu0 %v16866_v45  ;;  %12335 = vmatprep.subr.bf16.mxu1 %v16871_v29  ;;  %v16920_v45 = vld [vmem:[#allocation17 + $0x880] ss:$8 sps:$4 sm:$0xff]  }
 0xb3b   : > { %12376 = vmatprep.subr.bf16.mxu0 %v16874_v51  ;;  %v10315_v29 = vmul.f32 %v20829_v18, %v10308_v49  ;;  %v16923_v18 = vld [vmem:[%s20954_s21 + $0x78] sm:$0xff]  }
 0xb3d   : > { %12336 = vmatpush2.bf16.msra.mxu1 %v16869_v35  ;;  %v10317_v51 = vpack.c.bf16 %v10315_v29, %v10315_v29 }
 0xb3e   : > { %12377 = vmatpush2.bf16.msra.mxu0 %v16872_v46  ;;  %12387 = vmatprep.subr.bf16.mxu1 %v16877_v25 }
 0xb3f   : > { %14897 = vmatprep.subr.bf16.mxu0 %v16923_v18 }
 0xb40   : > { %12338 = vmatmul.mubr.bf16.vlgmr.msra.gmra.mxu1 %v10291_v12  ;;  %v12093_v0 = vpop.f32.mrf.mxu1  ;;  %v12134_v38 = vpop.f32.mrf.mxu0  ;;  %v16924_v12 = vld [vmem:[%s20954_s21 + $0x38] sm:$0xff]  }
 0xb41   : > { %12379 = vmatmul.mubr.bf16.vlgmr.msra.gmra.mxu0 %v10304_v58  ;;  %v12094_v10 = vadd.f32 %v12093_v0, %v10612_v9  ;;  %12388 = vmatpush1.bf16.msra.mxu1 %v16875_v48 }
 0xb42   : > { %12419 = vmatprep.mubr.bf16.mxu1 %v10318_v7  ;;  %v12095_v20 = vpop.f32.mrf.mxu1  ;;  %v12136_v6 = vpop.f32.mrf.mxu0  ;;  %12389 = vmatprep.subr.bf16.mxu1 %v16880_v30  ;;  %v16925_v30 = vld [vmem:[%s20954_s21 + $0x70] sm:$0xff]  }
 0xb43   : > { %v20835_v42 = vadd.f32 %v12134_v38, %v12094_v10  ;;  %v12096_v34 = vadd.f32 %v12095_v20, %v10616_v22  ;;  %14898 = vmatpush3.bf16.msra.mxu0 %v16924_v12 }
 0xb44   : > { %v12097_v1 = vpop.f32.mrf.mxu1  ;;  %v12138_v13 = vpop.f32.mrf.mxu0  ;;  %14899 = vmatprep.subr.bf16.mxu0 %v16925_v30 }
 0xb45   : > { %v20837_v44 = vadd.f32 %v12136_v6, %v12096_v34  ;;  %12390 = vmatpush1.bf16.msra.mxu1 %v16878_v31  ;;  %v16926_v1 = vld [vmem:[%s20954_s21 + $0x30] sm:$0xff]   ;;  %v16927_v13 = vld [vmem:[%s20954_s21 + $0x68] sm:$0xff]  }
 0xb46   : > { %v12098_v43 = vpop.f32.mrf.mxu1  ;;  %v12139_v50 = vpop.f32.mrf.mxu0  ;;  %12391 = vmatprep.subr.bf16.mxu1 %v16883_v56 }
 0xb47   : > { %14900 = vmatpush3.bf16.msra.mxu0 %v16926_v1  ;;  %v16930_v43 = vld [vmem:[%s20954_s21 + $0x20] sm:$0xff]   ;;  %v16931_v50 = vld [vmem:[%s20954_s21 + $0x58] sm:$0xff]  }
 0xb48   : > { %14901 = vmatprep.subr.bf16.mxu0 %v16927_v13 }
 0xb49   : > { %12392 = vmatpush1.bf16.msra.mxu1 %v16881_v28  ;;  %v16929_v28 = vld [vmem:[%s20954_s21 + $0x60] sm:$0xff]  }
 0xb4a   : > { %12393 = vmatprep.subr.bf16.mxu1 %v16886_v8  ;;  %v16932_v8 = vld [vmem:[%s20954_s21 + $0x18] sm:$0xff]  }
 0xb4d   : > { %12394 = vmatpush1.bf16.msra.mxu1 %v16884_v63  ;;  %v16933_v63 = vld [vmem:[%s20954_s21 + $0x50] sm:$0xff]  }
 0xb4e   : > { %12395 = vmatprep.subr.bf16.mxu1 %v16889_v54  ;;  %v16934_v54 = vld [vmem:[%s20954_s21 + $0x10] sm:$0xff]  }
 0xb51   : > { %12396 = vmatpush1.bf16.msra.mxu1 %v16887_v53  ;;  %v16935_v53 = vld [vmem:[%s20954_s21 + $0x48] sm:$0xff]  }
 0xb52   : > { %12397 = vmatprep.subr.bf16.mxu1 %v16892_v14  ;;  %v16936_v14 = vld [vmem:[%s20954_s21 + $0x8] sm:$0xff]  }
 0xb55   : > { %12398 = vmatpush1.bf16.msra.mxu1 %v16890_v40  ;;  %v16937_v40 = vld [vmem:[%s20954_s21 + $0x40] sm:$0xff]  }
 0xb56   : > { %12399 = vmatprep.subr.bf16.mxu1 %v16895_v59  ;;  %v16938_v59 = vld [vmem:[%s20954_s21] sm:$0xff]  }
 0xb59   : > { %12400 = vmatpush1.bf16.msra.mxu1 %v16893_v19 }
 0xb5a   : > { %12401 = vmatprep.subr.bf16.mxu1 %v16898_v11 }
 0xb5d   : > { %12402 = vmatpush1.bf16.msra.mxu1 %v16896_v57 }
 0xb5e   : > { %12403 = vmatprep.subr.bf16.mxu1 %v16901_v17 }
 0xb61   : > { %12404 = vmatpush2.bf16.msra.mxu1 %v16899_v33 }
 0xb62   : > { %12405 = vmatprep.subr.bf16.mxu1 %v16904_v47 }
 0xb65   : > { %12406 = vmatpush2.bf16.msra.mxu1 %v16902_v16 }
 0xb66   : > { %12407 = vmatprep.subr.bf16.mxu1 %v16907_v26 }
 0xb69   : > { %12408 = vmatpush2.bf16.msra.mxu1 %v16905_v21 }
 0xb6a   : > { %12409 = vmatprep.subr.bf16.mxu1 %v16910_v5 }
 0xb6d   : > { %12410 = vmatpush2.bf16.msra.mxu1 %v16908_v15 }
 0xb6e   : > { %12411 = vmatprep.subr.bf16.mxu1 %v16913_v60 }
 0xb71   : > { %12412 = vmatpush2.bf16.msra.mxu1 %v16911_v37 }
 0xb72   : > { %12413 = vmatprep.subr.bf16.mxu1 %v16916_v36 }
 0xb75   : > { %12414 = vmatpush2.bf16.msra.mxu1 %v16914_v41 }
 0xb76   : > { %12415 = vmatprep.subr.bf16.mxu1 %v16919_v32 }
 0xb79   : > { %12416 = vmatpush2.bf16.msra.mxu1 %v16917_v61 }
 0xb7a   : > { %12417 = vmatprep.subr.bf16.mxu1 %v16922_v27 }
 0xb7d   : > { %12418 = vmatpush2.bf16.msra.mxu1 %v16920_v45 }
 0xb80   : > { %v12175_v52 = vpop.f32.mrf.mxu1  ;;  %v12216_v4 = vpop.f32.mrf.mxu0  ;;  %12420 = vmatmul.mubr.bf16.vlgmr.msra.gmra.mxu1 %v10317_v51 }
 0xb81   : > { %v12176_v35 = vadd.f32 %v12175_v52, %v20835_v42 }
 0xb82   : > { %v12177_v46 = vpop.f32.mrf.mxu1  ;;  %v12218_v39 = vpop.f32.mrf.mxu0 }
 0xb83   : > { %v12217_v25 = vadd.f32 %v12216_v4, %v12176_v35  ;;  %v12178_v2 = vadd.f32 %v12177_v46, %v20837_v44  ;;  %v16928_v44 = vld [vmem:[%s20954_s21 + $0x28] sm:$0xff]  }
 0xb84   : > { %v12179_v24 = vpop.f32.mrf.mxu1  ;;  %v12220_v55 = vpop.f32.mrf.mxu0  ;;  %14902 = vmatpush3.bf16.msra.mxu0 %v16928_v44 }
 0xb85   : > { %v12219_v23 = vadd.f32 %v12218_v39, %v12178_v2  ;;  %14903 = vmatprep.subr.bf16.mxu0 %v16929_v28 }
 0xb86   : > { %v12180_v48 = vpop.f32.mrf.mxu1  ;;  %v12221_v9 = vpop.f32.mrf.mxu0 }
 0xb88   : > { %14904 = vmatpush3.bf16.msra.mxu0 %v16930_v43 }
 0xb89   : > { %14905 = vmatprep.subr.bf16.mxu0 %v16931_v50 }
 0xb8c   : > { %14906 = vmatpush3.bf16.msra.mxu0 %v16932_v8 }
 0xb8d   : > { %14907 = vmatprep.subr.bf16.mxu0 %v16933_v63 }
 0xb90   : > { %14908 = vmatpush3.bf16.msra.mxu0 %v16934_v54 }
 0xb91   : > { %14909 = vmatprep.subr.bf16.mxu0 %v16935_v53 }
 0xb94   : > { %14910 = vmatpush3.bf16.msra.mxu0 %v16936_v14 }
 0xb95   : > { %14911 = vmatprep.subr.bf16.mxu0 %v16937_v40 }
 0xb98   : > { %14912 = vmatpush3.bf16.msra.mxu0 %v16938_v59 }
 0xbc0   : > { %v12257_v58 = vpop.f32.mrf.mxu1 }
 0xbc1   : > { %v12258_v22 = vadd.f32 %v12257_v58, %v12217_v25  ;;  %v12298_v0 = vpop.f32.mrf.mxu0 }
 0xbc2   : > { %v12259_v38 = vpop.f32.mrf.mxu1 }
 0xbc3   : > { %v12299_v7 = vadd.f32 %v12298_v0, %v12258_v22  ;;  %v12260_v10 = vadd.f32 %v12259_v38, %v12219_v23  ;;  %v12300_v31 = vpop.f32.mrf.mxu0  ;;  %v14155_v0 = vld [vmem:[#allocation20] ss:$0 sm:$0xff] }
 0xbc4   : > { %v12261_v20 = vpop.f32.mrf.mxu1 }
 0xbc5   : > { %v12301_v6 = vadd.f32 %v12300_v31, %v12260_v10  ;;  %v12302_v56 = vpop.f32.mrf.mxu0 }
 0xbc6   : > { %v12262_v42 = vpop.f32.mrf.mxu1 }
 0xbc7   : > { %v12303_v34 = vpop.f32.mrf.mxu0 }
 0xc00   : > { %v12339_v19 = vpop.f32.mrf.mxu1 }
 0xc01   : > { %v12340_v11 = vadd.f32 %v12339_v19, %v12299_v7  ;;  %v12380_v57 = vpop.f32.mrf.mxu0 }
 0xc02   : > { %v12341_v17 = vpop.f32.mrf.mxu1 }
 0xc03   : > { %v12381_v33 = vadd.f32 %v12380_v57, %v12340_v11  ;;  %v12382_v47 = vpop.f32.mrf.mxu0  ;;  %v12342_v15 = vadd.f32 %v12341_v17, %v12301_v6 }
 0xc04   : > { %v12343_v16 = vpop.f32.mrf.mxu1 }
 0xc05   : > { %v12384_v26 = vpop.f32.mrf.mxu0  ;;  %v12383_v37 = vadd.f32 %v12382_v47, %v12342_v15 }
 0xc06   : > { %v12344_v21 = vpop.f32.mrf.mxu1 }
 0xc07   : > { %v12385_v5 = vpop.f32.mrf.mxu0 }
 0xc40   : > { %v12421_v60 = vpop.f32.mrf.mxu1 }
 0xc41   : > { %v12422_v36 = vadd.f32 %v12421_v60, %v12381_v33 }
 0xc42   : > { %v12423_v41 = vpop.f32.mrf.mxu1 }
 0xc43   : > { %v12428_v32 = vadd.f32 %v12422_v36, %v20811_v62  ;;  %v12424_v61 = vadd.f32 %v12423_v41, %v12383_v37 }
 0xc44   : > { %v12425_v27 = vpop.f32.mrf.mxu1 }
 0xc45   : > { %v12430_v49 = vmax.f32 %v12428_v32, 0.0  ;;  %v12429_v45 = vadd.f32 %v12424_v61, %v20821_v3 }
 0xc46   : > { %v12426_v29 = vpop.f32.mrf.mxu1 }
 0xc47   : > { %v12433_v51 = vsel %vm12432_vm8, %v12430_v49, 0.0  ;;  %v12431_v52 = vmax.f32 %v12429_v45, 0.0 }
 0xc48   : > { %v12434_v4 = vrot.slane %v12433_v51, 4 }
 0xc49   : > { %v12440_v35 = vsel %vm12432_vm8, %v12431_v52, 0.0 }
 0xc4a   : > { %v12435_v46 = vadd.f32 %v12434_v4, %v12433_v51  ;;  %v12441_v39 = vrot.slane %v12440_v35, 4 }
 0xc4c   : > { %v12436_v25 = vrot.slane %v12435_v46, 2  ;;  %v12442_v2 = vadd.f32 %v12441_v39, %v12440_v35 }
 0xc4e   : > { %v12437_v24 = vadd.f32 %v12436_v25, %v12435_v46  ;;  %v12443_v55 = vrot.slane %v12442_v2, 2 }
 0xc50   : > { %v12438_v23 = vrot.slane %v12437_v24, 1  ;;  %v12444_v62 = vadd.f32 %v12443_v55, %v12442_v2 }
 0xc52   : > { %v12439_v48 = vadd.f32 %v12438_v23, %v12437_v24  ;;  %v12445_v9 = vrot.slane %v12444_v62, 1 }
 0xc54   : > { %v12446_v18 = vadd.f32 %v12445_v9, %v12444_v62  ;;  %v12447_v3 = vmul.f32 0.25, %v12439_v48 }
 0xc56   : > { %v12448_v12 = vmul.f32 0.25, %v12446_v18  ;;  %v14176_v58 = vpack.c.bf16 %v12447_v3, %v12447_v3 }
 0xc58   : > { %v14173_v30 = vpack.c.bf16 %v12448_v12, %v12448_v12 }
 0xc5a   : > { %14174 = vmatprep.mubr.msk.bf16.mxu0 %vm14172_vm10, %v14173_v30 }
 0xc5b   : > { %14177 = vmatmul.mubr.msk.bf16.vlgmr.msra.gmra.mxu0 %vm14172_vm10, %v14176_v58 }
 0xd1b   : > { %v14913_v22 = vpop.f32.mrf.mxu0 }
 0xd1d   : > { %v14914_v38 = vpop.f32.mrf.mxu0 }
 0xd1e   : > { %v14915_v7 = vadd.f32 %v14914_v38, %v14913_v22 }
 0xd1f   : > { %v14916_v10 = vpop.f32.mrf.mxu0 }
 0xd20   : > { %v12624_v31 = vadd.f32 %v14915_v7, %v14155_v0 }
 0xd21   : > { %v14917_v20 = vpop.f32.mrf.mxu0 }
 0xd22   : > { %12629 = vst [vmem:[%s866_s3] sm:$0x1] %v12624_v31 }
 0xd23   : > { %17264 = shalt.err (!%p17261_p6)
}
 0xd24   : > { %s17265_s28 = scalar_lea.hbm %s20898_s25, 16  ;;  %s17269_s27 = scalar_lea.hbm %s21246_s1, 32 }
 0xd25   : > { %p17266_p10 = scmp.ne.s32.totalorder %s20898_s25, %s17265_s28  ;;  %p17270_p3 = scmp.lt.s32.totalorder %s20898_s25, %s21246_s1 }
 0xd26   : > { %p17271_p7 = scmp.lt.s32.totalorder %s17269_s27, %s17265_s28 }
 0xd27   : > { %p17267_p9 = pnand %p17266_p10, %p21247_p0 }
 0xd28   : > { %p17272_p8 = por %p17271_p7, %p17270_p3 }
 0xd29   : > { %p17268_p4 = pneg %p17267_p9 }
 0xd2b   : > { %p17273_p13 = pnand %p17272_p8, %p17268_p4 }
 0xd2d   : > { %17276 = shalt.err (!%p17273_p13)
}
 0xd2e   : > { %15221 = dma.vmem_to_hbm [thread:$0]  (%p21247_p0), %s12644_s2, 16, %s20898_s25, %s12631_s26  }
 0xd2f PF: > { %s21248_s0 = sld [smem:[#allocation34_spill]] }
 0xd30   : > { %s21249_s7 = sld [smem:[#allocation31_spill]] }
 0xd31   : > { %s21250_s24 = sld [smem:[#allocation38_spill]] }
 0xd35   : > { %p15288_p11 = scmp.ge.s32.totalorder %s21248_s0, 2 }
 0xd36   : > { %s12655_s6 = sand.u32 1, %s21249_s7  }
 0xd37   : > { %p21251_p1 = scmp.ne.s32.totalorder %s21250_s24, 0  ;;  %s12656_s30 = scalar_lea.sflag [#allocation4], %s12655_s6 }
 0xd39   : > { %p15261_p12 = pnand %p15288_p11, %p21251_p1 }
 0xd3b   : > { %p15262_p2 = pneg %p15261_p12 }
 0xd3d   : > { %17322 = dma.done.wait (%p15262_p2), %s12656_s30, 16  }
 0xd3e   : > { %17324 = vsyncadd (%p15262_p2), %s12656_s30, 4294967280  ;;  %s21252_s25 = sld [smem:[#allocation35_spill]] }
 0xd3f   : > { %s21253_s4 = sld [smem:[#allocation32_spill]] }
 0xd40   : > { %s21254_s30 = sld [smem:[#allocation33_spill]] }
 0xd41   : > { %s21255_s24 = sld [smem:[#allocation36_spill]] }
 0xd44   : > { %p40_p5 = scmp.ge.s32.totalorder %s21252_s25, 4  }
 0xd46   :  { %42 = sbr.rel (!%p40_p5) target bundleno = 20 (0x14), region = 244 }
 0xd4b   :  { %12660 = vsyncpa [#allocation3], 1 }
 0xd4c   :  { %12662 = vsyncpa [#allocation3 + $0x1], 1 }
 0xd4d   :  { %12663 = vsyncpa [#allocation6], 1 }
 0xd4e   :  { %12664 = vsyncpa [#allocation9], 1 }
 0xd4f   :  { %12665 = vsyncpa [#allocation12], 1 }
 0xd50   :  { %12666 = vsyncpa [#allocation15], 1 }
 0xd51   :  { %12667 = vsyncpa [#allocation18], 1 }
 0xd52   :  { %12668 = vsyncpa [#allocation21], 1 }
 0xd53   :  { %12669 = vsyncpa [#allocation4], 1 }
 0xd54   :  { %12671 = vsyncpa [#allocation4 + $0x1], 1 }

</bundles_post_ra>
